<compile_context>
chip_gen: v6e
topology: v6e:2x2x1
jax: 0.10.0
libtpu: 0.0.40
codegen_flags: <defaults>
</compile_context>

<pallas_src>
import functools

import jax
import jax.numpy as jnp
from jax.experimental import pallas as pl
from jax.experimental.pallas import tpu as pltpu


def _round_up(x, m):
    return (x + m - 1) // m * m


# ----------------------------------------------------------------------------
# In-kernel helpers (traced inside the Pallas kernel).
# ----------------------------------------------------------------------------
def _groupnorm_silu(x2d, gamma, beta, group_avg, eps=1e-5):
    """GroupNorm (+affine) followed by SiLU on an f32 (H*W, C) slab.

    group_avg is a (C, C) f32 matrix holding 1/(group_size*H*W) for channels
    in the same group, so `sums @ group_avg` broadcasts per-group statistics
    back to per-channel vectors with one tiny MXU matmul (no in-kernel group
    reshapes).  Statistics stay in f32.
    """
    s = jnp.sum(x2d, axis=0, keepdims=True)                   # (1, C)
    sq = jnp.sum(x2d * x2d, axis=0, keepdims=True)            # (1, C)
    mean = jnp.dot(s, group_avg, preferred_element_type=jnp.float32)
    ex2 = jnp.dot(sq, group_avg, preferred_element_type=jnp.float32)
    var = ex2 - mean * mean                                    # biased, like PyTorch
    inv = jax.lax.rsqrt(var + eps)
    y = (x2d - mean) * inv * gamma + beta
    # SiLU: keep the divide on the EUP (approx reciprocal) next to the exp so
    # the VALU slots stay free in this VPU-bound region.
    return y * pl.reciprocal(1.0 + jnp.exp(-y), approx=True)


def _conv3x3_same(h2d, pad_ref, w_ref, H, W, Cin, col0):
    """3x3 "same" conv on an f32 (H*W, Cin) slab.

    Implemented as 9 accumulating bf16 MXU dots (K = Cin per tap) against the
    folded (9*Cin, Cout) weight; no (H*W, 9*Cin) im2col patch is materialized.
    pad_ref is an (H+2, Wp, Cin) VMEM scratch in the matmul compute dtype with
    the interior placed at sublane-aligned column offset `col0`; only the
    1-wide halo that the taps read is zeroed.
    """
    hw = H * W
    cdt = pad_ref.dtype

    # Interior store (sublane-aligned: col0 % 8 == 0) in the compute dtype.
    pad_ref[1:H + 1, col0:col0 + W, :] = h2d.reshape(H, W, Cin).astype(cdt)

    # Zero only the halo that the tap reads touch (interior just overwritten).
    zrow = jnp.zeros((1, W + 2, Cin), cdt)
    zcol = jnp.zeros((H, 1, Cin), cdt)
    pad_ref[0:1, col0 - 1:col0 + W + 1, :] = zrow
    pad_ref[H + 1:H + 2, col0 - 1:col0 + W + 1, :] = zrow
    pad_ref[1:H + 1, col0 - 1:col0, :] = zcol
    pad_ref[1:H + 1, col0 + W:col0 + W + 1, :] = zcol

    acc = None
    for ky in range(3):
        for kx in range(3):
            t = ky * 3 + kx
            c0 = col0 - 1 + kx
            tap = pad_ref[ky:ky + H, c0:c0 + W, :].reshape(hw, Cin)
            part = jnp.dot(tap, w_ref[t * Cin:(t + 1) * Cin, :],
                           preferred_element_type=jnp.float32)
            acc = part if acc is None else acc + part
    return acc


def _resblock_kernel(*refs, H, W, Cin, Cout, has_skip, col0):
    if has_skip:
        (x_ref, g1_ref, bt1_ref, gm1_ref, w1_ref, b1_ref, tb_ref,
         g2_ref, bt2_ref, gm2_ref, w2_ref, b2_ref, skw_ref,
         o_ref, pad1_ref, pad2_ref) = refs
    else:
        (x_ref, g1_ref, bt1_ref, gm1_ref, w1_ref, b1_ref, tb_ref,
         g2_ref, bt2_ref, gm2_ref, w2_ref, b2_ref,
         o_ref, pad1_ref, pad2_ref) = refs
        skw_ref = None

    f32 = jnp.float32
    hw = H * W

    x2d = x_ref[0].reshape(hw, Cin).astype(f32)                # (H*W, Cin)

    # norm1 -> SiLU -> conv1 -> +bias (+temb bias)
    h = _groupnorm_silu(x2d, g1_ref[...].astype(f32), bt1_ref[...].astype(f32),
                        gm1_ref[...])
    h = _conv3x3_same(h, pad1_ref, w1_ref, H, W, Cin, col0)
    h = h + b1_ref[...].astype(f32) + tb_ref[0].astype(f32)

    # norm2 -> SiLU -> conv2 -> +bias
    h = _groupnorm_silu(h, g2_ref[...].astype(f32), bt2_ref[...].astype(f32),
                        gm2_ref[...])
    h = _conv3x3_same(h, pad2_ref, w2_ref, H, W, Cout, col0)
    h = h + b2_ref[...].astype(f32)

    # residual / skip path (identity, or fused bf16 1x1-conv matmul)
    if has_skip:
        xs = x_ref[0].reshape(hw, Cin).astype(skw_ref.dtype)
        skip = jnp.dot(xs, skw_ref[...], preferred_element_type=f32)
    else:
        skip = x2d

    o_ref[...] = (h + skip).reshape(1, H, W, Cout).astype(o_ref.dtype)


# ----------------------------------------------------------------------------
# Wrapper-side parameter preparation + pallas_call.
# ----------------------------------------------------------------------------
def _group_avg_matrix(C, groups, hw):
    gsz = C // groups
    gid = jnp.arange(C, dtype=jnp.int32) // gsz
    same = (gid[:, None] == gid[None, :]).astype(jnp.float32)
    return same / float(gsz * hw)


def _fold_conv3x3(w, dtype):
    """(Cout, Cin, 3, 3) OIHW -> (9*Cin, Cout); K laid out as (ky, kx, ci)."""
    cout, cin = w.shape[0], w.shape[1]
    return jnp.transpose(w, (2, 3, 1, 0)).reshape(9 * cin, cout).astype(dtype)


def _resblock_nhwc(x, params, temb=None, groups=32):
    """x: (B, H, W, Cin) NHWC.  Returns (B, H, W, Cout) NHWC."""
    B, H, W, Cin = x.shape
    Cout = params["conv1_w"].shape[0]
    f32 = jnp.float32
    cdt = jnp.bfloat16            # MXU compute dtype for the conv/skip matmuls

    g1 = params["norm1_w"].reshape(1, Cin).astype(f32)
    bt1 = params["norm1_b"].reshape(1, Cin).astype(f32)
    gm1 = _group_avg_matrix(Cin, groups, H * W)
    w1f = _fold_conv3x3(params["conv1_w"], cdt)                # (9*Cin, Cout)
    b1 = params["conv1_b"].reshape(1, Cout).astype(f32)

    g2 = params["norm2_w"].reshape(1, Cout).astype(f32)
    bt2 = params["norm2_b"].reshape(1, Cout).astype(f32)
    gm2 = _group_avg_matrix(Cout, groups, H * W)
    w2f = _fold_conv3x3(params["conv2_w"], cdt)                # (9*Cout, Cout)
    b2 = params["conv2_b"].reshape(1, Cout).astype(f32)

    # Time-embedding projection is a tiny (B, temb_c) matmul: plain JAX; the
    # kernel only receives the per-batch bias vector.
    if temb is not None:
        t = temb.astype(f32)
        t = t * (1.0 / (1.0 + jnp.exp(-t)))                    # SiLU
        tb = t @ params["temb_w"].astype(f32).T + params["temb_b"].astype(f32)
    else:
        tb = jnp.zeros((B, Cout), f32)
    tb = tb.reshape(B, 1, Cout)

    skip_w = params.get("skip_w")
    has_skip = skip_w is not None

    # Padded conv scratches: interior at a sublane-aligned column offset.
    col0 = 8
    wp1 = _round_up(col0 + W + 1, 8)
    wp2 = wp1

    in_specs = [
        pl.BlockSpec((1, H, W, Cin), lambda b: (b, 0, 0, 0)),   # x
        pl.BlockSpec((1, Cin), lambda b: (0, 0)),               # norm1 gamma
        pl.BlockSpec((1, Cin), lambda b: (0, 0)),               # norm1 beta
        pl.BlockSpec((Cin, Cin), lambda b: (0, 0)),             # group-avg 1
        pl.BlockSpec((9 * Cin, Cout), lambda b: (0, 0)),        # conv1 w (folded)
        pl.BlockSpec((1, Cout), lambda b: (0, 0)),              # conv1 b
        pl.BlockSpec((1, 1, Cout), lambda b: (b, 0, 0)),        # temb bias
        pl.BlockSpec((1, Cout), lambda b: (0, 0)),              # norm2 gamma
        pl.BlockSpec((1, Cout), lambda b: (0, 0)),              # norm2 beta
        pl.BlockSpec((Cout, Cout), lambda b: (0, 0)),           # group-avg 2
        pl.BlockSpec((9 * Cout, Cout), lambda b: (0, 0)),       # conv2 w (folded)
        pl.BlockSpec((1, Cout), lambda b: (0, 0)),              # conv2 b
    ]
    args = [x, g1, bt1, gm1, w1f, b1, tb, g2, bt2, gm2, w2f, b2]
    if has_skip:
        skw = jnp.transpose(skip_w[:, :, 0, 0]).astype(cdt)     # (Cin, Cout)
        in_specs.append(pl.BlockSpec((Cin, Cout), lambda b: (0, 0)))
        args.append(skw)
    # TODO(synk): mark the grid-invariant weight/affine operands with
    # pipeline_mode=pl.Buffered(1) once large-C shapes need the VMEM headroom.

    kernel = functools.partial(_resblock_kernel, H=H, W=W, Cin=Cin, Cout=Cout,
                               has_skip=has_skip, col0=col0)

    # Advisory cost estimate (dtype-aware byte counts).
    flops = 2 * B * H * W * (9 * Cin * Cout + 9 * Cout * Cout)
    if has_skip:
        flops += 2 * B * H * W * Cin * Cout
    transcendentals = 2 * B * H * W * (Cin + Cout)              # exp + rcp / SiLU
    bytes_accessed = (x.dtype.itemsize * (x.size + B * H * W * Cout)
                      + 2 * (9 * Cin * Cout + 9 * Cout * Cout
                             + (Cin * Cout if has_skip else 0))
                      + 4 * (Cin * Cin + Cout * Cout))

    # Explicit scoped-VMEM budget (v5e default is only 16 MiB).
    blk = H * W * (Cin + Cout) * x.dtype.itemsize               # x + out blocks
    wbytes = 2 * (9 * Cin * Cout + 9 * Cout * Cout
                  + (Cin * Cout if has_skip else 0))
    mbytes = 4 * (Cin * Cin + Cout * Cout + 2 * Cin + 6 * Cout)
    scratch = 2 * ((H + 2) * wp1 * Cin + (H + 2) * wp2 * Cout)
    temps = 4 * H * W * (2 * max(Cin, Cout) + 2 * Cout)         # live f32 slabs
    need = 2 * (blk + wbytes + mbytes) + scratch + temps
    vmem_limit = int(min(max(2 * need, 32 << 20), 100 << 20))

    out = pl.pallas_call(
        kernel,
        out_shape=jax.ShapeDtypeStruct((B, H, W, Cout), x.dtype),
        grid=(B,),
        in_specs=in_specs,
        out_specs=pl.BlockSpec((1, H, W, Cout), lambda b: (b, 0, 0, 0)),
        scratch_shapes=[pltpu.VMEM((H + 2, wp1, Cin), cdt),
                        pltpu.VMEM((H + 2, wp2, Cout), cdt)],
        compiler_params=pltpu.CompilerParams(
            dimension_semantics=("parallel",),
            vmem_limit_bytes=vmem_limit),
        cost_estimate=pl.CostEstimate(flops=flops,
                                      transcendentals=transcendentals,
                                      bytes_accessed=bytes_accessed),
    )(*args)
    return out


# Preferred entry point: NHWC in / NHWC out (no HBM transpose round trips).
resblock_forward_nhwc = jax.jit(_resblock_nhwc, static_argnames=("groups",))


# PyTorch-parity entry point (NCHW).  The transposes cost extra HBM passes;
# callers that can keep activations in NHWC should use resblock_forward_nhwc.
@functools.partial(jax.jit, static_argnames=("groups",))
def resblock_forward(x, params, temb=None, groups=32):
    out = _resblock_nhwc(jnp.transpose(x, (0, 2, 3, 1)), params, temb, groups)
    return jnp.transpose(out, (0, 3, 1, 2))


# ----------------------------------------------------------------------------
# Pure-JAX reference mirroring the PyTorch module (for the numerical check).
# ----------------------------------------------------------------------------
def _silu_ref(x):
    return x * (1.0 / (1.0 + jnp.exp(-x)))


def _group_norm_ref(x, groups, gamma, beta, eps=1e-5):
    B, C, H, W = x.shape
    xg = x.reshape(B, groups, (C // groups) * H * W)
    mean = jnp.mean(xg, axis=2, keepdims=True)
    var = jnp.mean((xg - mean) ** 2, axis=2, keepdims=True)
    xn = ((xg - mean) * jax.lax.rsqrt(var + eps)).reshape(B, C, H, W)
    return xn * gamma[None, :, None, None] + beta[None, :, None, None]


def _conv2d_ref(x, w, b=None, padding=1):
    y = jax.lax.conv_general_dilated(
        x, w, window_strides=(1, 1),
        padding=((padding, padding), (padding, padding)),
        dimension_numbers=("NCHW", "OIHW", "NCHW"))
    if b is not None:
        y = y + b[None, :, None, None]
    return y


def resblock_reference(x, params, temb=None, groups=32):
    skip_w = params.get("skip_w")
    skip = x if skip_w is None else _conv2d_ref(x, skip_w, None, padding=0)
    h = _conv2d_ref(
        _silu_ref(_group_norm_ref(x, groups, params["norm1_w"], params["norm1_b"])),
        params["conv1_w"], params["conv1_b"])
    if temb is not None:
        t = _silu_ref(temb) @ params["temb_w"].T + params["temb_b"]
        h = h + t[:, :, None, None]
    h = _conv2d_ref(
        _silu_ref(_group_norm_ref(h, groups, params["norm2_w"], params["norm2_b"])),
        params["conv2_w"], params["conv2_b"])
    return h + skip


# ----------------------------------------------------------------------------
# Self-test.
# ----------------------------------------------------------------------------
if __name__ == "__main__":
    key = jax.random.PRNGKey(0)

    def uniform(k, shape, fan_in):
        bound = 1.0 / (fan_in ** 0.5)
        return jax.random.uniform(k, shape, jnp.float32, -bound, bound)

    def make_params(k, in_c, nc, temb_c=None, with_skip=False):
        ks = jax.random.split(k, 11)
        p = {
            "norm1_w": 1.0 + 0.1 * jax.random.normal(ks[0], (in_c,), jnp.float32),
            "norm1_b": 0.1 * jax.random.normal(ks[1], (in_c,), jnp.float32),
            "conv1_w": uniform(ks[2], (nc, in_c, 3, 3), in_c * 9),
            "conv1_b": uniform(ks[3], (nc,), in_c * 9),
            "norm2_w": 1.0 + 0.1 * jax.random.normal(ks[4], (nc,), jnp.float32),
            "norm2_b": 0.1 * jax.random.normal(ks[5], (nc,), jnp.float32),
            # NOTE: the PyTorch module zero-inits conv2 (zero_module); random
            # weights are used here so the forward check is meaningful.
            "conv2_w": uniform(ks[6], (nc, nc, 3, 3), nc * 9),
            "conv2_b": uniform(ks[7], (nc,), nc * 9),
        }
        if temb_c is not None:
            p["temb_w"] = uniform(ks[8], (nc, temb_c), temb_c)
            p["temb_b"] = uniform(ks[9], (nc,), temb_c)
        if with_skip:
            p["skip_w"] = uniform(ks[10], (nc, in_c, 1, 1), in_c)
        return p

    kA, kB, kx1, kx2, kt = jax.random.split(key, 5)

    # The conv / skip matmuls run on the MXU in bf16 (f32 accumulation), so
    # the comparison against the all-f32 reference uses a bf16-level tolerance.
    ATOL = RTOL = 5e-2

    # Config A: in_c == nc (identity skip) with a time embedding.
    B, C, H, W, TC = 2, 32, 16, 16, 16
    pA = make_params(kA, C, C, temb_c=TC, with_skip=False)
    xA = jax.random.normal(kx1, (B, C, H, W), jnp.float32)
    temb = jax.random.normal(kt, (B, TC), jnp.float32)
    outA = jax.block_until_ready(resblock_forward(xA, pA, temb))
    refA = resblock_reference(xA, pA, temb)
    assert outA.shape == (B, C, H, W) and outA.dtype == xA.dtype
    errA = float(jnp.max(jnp.abs(outA - refA)))
    assert jnp.allclose(outA, refA, atol=ATOL, rtol=RTOL), errA

    # Also exercise the NHWC entry point (no wrapper transposes).
    outA_nhwc = jax.block_until_ready(
        resblock_forward_nhwc(jnp.transpose(xA, (0, 2, 3, 1)), pA, temb))
    refA_nhwc = jnp.transpose(refA, (0, 2, 3, 1))
    errA2 = float(jnp.max(jnp.abs(outA_nhwc - refA_nhwc)))
    assert jnp.allclose(outA_nhwc, refA_nhwc, atol=ATOL, rtol=RTOL), errA2

    # Config B: in_c != nc (1x1-conv skip path), no time embedding.
    in_c, nc, H2, W2 = 32, 64, 8, 8
    pB = make_params(kB, in_c, nc, temb_c=None, with_skip=True)
    xB = jax.random.normal(kx2, (B, in_c, H2, W2), jnp.float32)
    outB = jax.block_until_ready(resblock_forward(xB, pB, None))
    refB = resblock_reference(xB, pB, None)
    assert outB.shape == (B, nc, H2, W2) and outB.dtype == xB.dtype
    errB = float(jnp.max(jnp.abs(outB - refB)))
    assert jnp.allclose(outB, refB, atol=ATOL, rtol=RTOL), errB

    print("KERNEL_OK")
</pallas_src>

<mosaic_0001>
module attributes {stable_mosaic.version = 11 : i64} {
  func.func @_resblock_kernel(%arg0: i32, %arg1: memref<1x16x16x32xf32, #tpu.memory_space<vmem>>, %arg2: memref<1x32xf32, #tpu.memory_space<vmem>>, %arg3: memref<1x32xf32, #tpu.memory_space<vmem>>, %arg4: memref<32x32xf32, #tpu.memory_space<vmem>>, %arg5: memref<288x32xbf16, #tpu.memory_space<vmem>>, %arg6: memref<1x32xf32, #tpu.memory_space<vmem>>, %arg7: memref<1x1x32xf32, #tpu.memory_space<vmem>>, %arg8: memref<1x32xf32, #tpu.memory_space<vmem>>, %arg9: memref<1x32xf32, #tpu.memory_space<vmem>>, %arg10: memref<32x32xf32, #tpu.memory_space<vmem>>, %arg11: memref<288x32xbf16, #tpu.memory_space<vmem>>, %arg12: memref<1x32xf32, #tpu.memory_space<vmem>>, %arg13: memref<1x16x16x32xf32, #tpu.memory_space<vmem>>, %arg14: memref<18x32x32xbf16, #tpu.memory_space<vmem>>, %arg15: memref<18x32x32xbf16, #tpu.memory_space<vmem>>) attributes {dimension_semantics = [#tpu.dimension_semantics<parallel>], iteration_bounds = array<i64: 2>, scalar_prefetch = 0 : i64, scratch_operands = 2 : i64, tpu.core_type = #tpu.core_type<tc>, window_params = [{transform_indices = @transform_0, window_bounds = array<i64: 1, 16, 16, 32>}, {pipeline_mode = #tpu.pipeline_mode<synchronous>, transform_indices = @transform_1, window_bounds = array<i64: 1, 32>}, {pipeline_mode = #tpu.pipeline_mode<synchronous>, transform_indices = @transform_2, window_bounds = array<i64: 1, 32>}, {pipeline_mode = #tpu.pipeline_mode<synchronous>, transform_indices = @transform_3, window_bounds = array<i64: 32, 32>}, {pipeline_mode = #tpu.pipeline_mode<synchronous>, transform_indices = @transform_4, window_bounds = array<i64: 288, 32>}, {pipeline_mode = #tpu.pipeline_mode<synchronous>, transform_indices = @transform_5, window_bounds = array<i64: 1, 32>}, {transform_indices = @transform_6, window_bounds = array<i64: 1, 1, 32>}, {pipeline_mode = #tpu.pipeline_mode<synchronous>, transform_indices = @transform_7, window_bounds = array<i64: 1, 32>}, {pipeline_mode = #tpu.pipeline_mode<synchronous>, transform_indices = @transform_8, window_bounds = array<i64: 1, 32>}, {pipeline_mode = #tpu.pipeline_mode<synchronous>, transform_indices = @transform_9, window_bounds = array<i64: 32, 32>}, {pipeline_mode = #tpu.pipeline_mode<synchronous>, transform_indices = @transform_10, window_bounds = array<i64: 288, 32>}, {pipeline_mode = #tpu.pipeline_mode<synchronous>, transform_indices = @transform_11, window_bounds = array<i64: 1, 32>}, {transform_indices = @transform_12, window_bounds = array<i64: 1, 16, 16, 32>}]} {
    %c0 = arith.constant 0 : index
    %c0_0 = arith.constant 0 : index
    %c0_1 = arith.constant 0 : index
    %c0_2 = arith.constant 0 : index
    %0 = vector.load %arg1[%c0, %c0_0, %c0_1, %c0_2] : memref<1x16x16x32xf32, #tpu.memory_space<vmem>>, vector<1x16x16x32xf32>
    %1 = vector.shape_cast %0 : vector<1x16x16x32xf32> to vector<16x16x32xf32>
    %2 = vector.shape_cast %1 : vector<16x16x32xf32> to vector<256x32xf32>
    %c0_3 = arith.constant 0 : index
    %c0_4 = arith.constant 0 : index
    %3 = vector.load %arg2[%c0_3, %c0_4] : memref<1x32xf32, #tpu.memory_space<vmem>>, vector<1x32xf32>
    %c0_5 = arith.constant 0 : index
    %c0_6 = arith.constant 0 : index
    %4 = vector.load %arg3[%c0_5, %c0_6] : memref<1x32xf32, #tpu.memory_space<vmem>>, vector<1x32xf32>
    %c0_7 = arith.constant 0 : index
    %c0_8 = arith.constant 0 : index
    %5 = vector.load %arg4[%c0_7, %c0_8] : memref<32x32xf32, #tpu.memory_space<vmem>>, vector<32x32xf32>
    %cst = arith.constant dense<0.000000e+00> : vector<32xf32>
    %6 = vector.multi_reduction <add>, %2, %cst [0] : vector<256x32xf32> to vector<32xf32>
    %7 = vector.shape_cast %6 : vector<32xf32> to vector<1x32xf32>
    %8 = arith.mulf %2, %2 : vector<256x32xf32>
    %cst_9 = arith.constant dense<0.000000e+00> : vector<32xf32>
    %9 = vector.multi_reduction <add>, %8, %cst_9 [0] : vector<256x32xf32> to vector<32xf32>
    %10 = vector.shape_cast %9 : vector<32xf32> to vector<1x32xf32>
    %cst_10 = arith.constant dense<0.000000e+00> : vector<1x32xf32>
    %11 = tpu.matmul %7, %5, %cst_10 {dimension_numbers = #tpu.dot_dimension_numbers<[1], [0], [0], [1], [0, 0, 1, 1], [], []>} : vector<1x32xf32>, vector<32x32xf32>, vector<1x32xf32> -> vector<1x32xf32>
    %cst_11 = arith.constant dense<0.000000e+00> : vector<1x32xf32>
    %12 = tpu.matmul %10, %5, %cst_11 {dimension_numbers = #tpu.dot_dimension_numbers<[1], [0], [0], [1], [0, 0, 1, 1], [], []>} : vector<1x32xf32>, vector<32x32xf32>, vector<1x32xf32> -> vector<1x32xf32>
    %13 = arith.mulf %11, %11 : vector<1x32xf32>
    %14 = arith.subf %12, %13 : vector<1x32xf32>
    %cst_12 = arith.constant 9.99999974E-6 : f32
    %15 = vector.broadcast %cst_12 : f32 to vector<1x32xf32>
    %16 = arith.addf %14, %15 : vector<1x32xf32>
    %17 = math.rsqrt %16 : vector<1x32xf32>
    %18 = vector.broadcast %11 : vector<1x32xf32> to vector<256x32xf32>
    %19 = arith.subf %2, %18 : vector<256x32xf32>
    %20 = vector.broadcast %17 : vector<1x32xf32> to vector<256x32xf32>
    %21 = arith.mulf %19, %20 : vector<256x32xf32>
    %22 = vector.broadcast %3 : vector<1x32xf32> to vector<256x32xf32>
    %23 = arith.mulf %21, %22 : vector<256x32xf32>
    %24 = vector.broadcast %4 : vector<1x32xf32> to vector<256x32xf32>
    %25 = arith.addf %23, %24 : vector<256x32xf32>
    %cst_13 = arith.constant 0.000000e+00 : f32
    %26 = vector.broadcast %cst_13 : f32 to vector<256x32xf32>
    %27 = arith.subf %26, %25 : vector<256x32xf32>
    %28 = math.exp %27 : vector<256x32xf32>
    %cst_14 = arith.constant 1.000000e+00 : f32
    %29 = vector.broadcast %cst_14 : f32 to vector<256x32xf32>
    %30 = arith.addf %29, %28 : vector<256x32xf32>
    %31 = tpu.reciprocal %30 {approx = true} : vector<256x32xf32> -> vector<256x32xf32>
    %32 = arith.mulf %25, %31 : vector<256x32xf32>
    %33 = vector.shape_cast %32 : vector<256x32xf32> to vector<16x16x32xf32>
    %34 = arith.truncf %33 : vector<16x16x32xf32> to vector<16x16x32xbf16>
    %c1 = arith.constant 1 : index
    %c8 = arith.constant 8 : index
    %c0_15 = arith.constant 0 : index
    %35 = vector.load %arg14[%c1, %c8, %c0_15] : memref<18x32x32xbf16, #tpu.memory_space<vmem>>, vector<16x16x32xbf16>
    tpu.vector_store %arg14[%c1, %c8, %c0_15], %34 {strides = array<i32>} : memref<18x32x32xbf16, #tpu.memory_space<vmem>>, vector<16x16x32xbf16>,
    %cst_16 = arith.constant 0.000000e+00 : bf16
    %36 = vector.broadcast %cst_16 : bf16 to vector<1x18x32xbf16>
    %cst_17 = arith.constant 0.000000e+00 : bf16
    %37 = vector.broadcast %cst_17 : bf16 to vector<16x1x32xbf16>
    %c0_18 = arith.constant 0 : index
    %c7 = arith.constant 7 : index
    %c0_19 = arith.constant 0 : index
    %38 = vector.load %arg14[%c0_18, %c7, %c0_19] : memref<18x32x32xbf16, #tpu.memory_space<vmem>>, vector<1x18x32xbf16>
    tpu.vector_store %arg14[%c0_18, %c7, %c0_19], %36 {strides = array<i32>} : memref<18x32x32xbf16, #tpu.memory_space<vmem>>, vector<1x18x32xbf16>,
    %c17 = arith.constant 17 : index
    %c7_20 = arith.constant 7 : index
    %c0_21 = arith.constant 0 : index
    %39 = vector.load %arg14[%c17, %c7_20, %c0_21] : memref<18x32x32xbf16, #tpu.memory_space<vmem>>, vector<1x18x32xbf16>
    tpu.vector_store %arg14[%c17, %c7_20, %c0_21], %36 {strides = array<i32>} : memref<18x32x32xbf16, #tpu.memory_space<vmem>>, vector<1x18x32xbf16>,
    %c1_22 = arith.constant 1 : index
    %c7_23 = arith.constant 7 : index
    %c0_24 = arith.constant 0 : index
    %40 = vector.load %arg14[%c1_22, %c7_23, %c0_24] : memref<18x32x32xbf16, #tpu.memory_space<vmem>>, vector<16x1x32xbf16>
    tpu.vector_store %arg14[%c1_22, %c7_23, %c0_24], %37 {strides = array<i32>} : memref<18x32x32xbf16, #tpu.memory_space<vmem>>, vector<16x1x32xbf16>,
    %c1_25 = arith.constant 1 : index
    %c24 = arith.constant 24 : index
    %c0_26 = arith.constant 0 : index
    %41 = vector.load %arg14[%c1_25, %c24, %c0_26] : memref<18x32x32xbf16, #tpu.memory_space<vmem>>, vector<16x1x32xbf16>
    tpu.vector_store %arg14[%c1_25, %c24, %c0_26], %37 {strides = array<i32>} : memref<18x32x32xbf16, #tpu.memory_space<vmem>>, vector<16x1x32xbf16>,
    %c0_27 = arith.constant 0 : index
    %c7_28 = arith.constant 7 : index
    %c0_29 = arith.constant 0 : index
    %42 = vector.load %arg14[%c0_27, %c7_28, %c0_29] : memref<18x32x32xbf16, #tpu.memory_space<vmem>>, vector<16x16x32xbf16>
    %43 = vector.shape_cast %42 : vector<16x16x32xbf16> to vector<256x32xbf16>
    %c0_30 = arith.constant 0 : index
    %c0_31 = arith.constant 0 : index
    %44 = vector.load %arg5[%c0_30, %c0_31] : memref<288x32xbf16, #tpu.memory_space<vmem>>, vector<32x32xbf16>
    %cst_32 = arith.constant dense<0.000000e+00> : vector<256x32xf32>
    %45 = tpu.matmul %43, %44, %cst_32 {dimension_numbers = #tpu.dot_dimension_numbers<[1], [0], [0], [1], [0, 0, 1, 1], [], []>} : vector<256x32xbf16>, vector<32x32xbf16>, vector<256x32xf32> -> vector<256x32xf32>
    %c0_33 = arith.constant 0 : index
    %c8_34 = arith.constant 8 : index
    %c0_35 = arith.constant 0 : index
    %46 = vector.load %arg14[%c0_33, %c8_34, %c0_35] : memref<18x32x32xbf16, #tpu.memory_space<vmem>>, vector<16x16x32xbf16>
    %47 = vector.shape_cast %46 : vector<16x16x32xbf16> to vector<256x32xbf16>
    %c32 = arith.constant 32 : index
    %c0_36 = arith.constant 0 : index
    %48 = vector.load %arg5[%c32, %c0_36] : memref<288x32xbf16, #tpu.memory_space<vmem>>, vector<32x32xbf16>
    %cst_37 = arith.constant dense<0.000000e+00> : vector<256x32xf32>
    %49 = tpu.matmul %47, %48, %cst_37 {dimension_numbers = #tpu.dot_dimension_numbers<[1], [0], [0], [1], [0, 0, 1, 1], [], []>} : vector<256x32xbf16>, vector<32x32xbf16>, vector<256x32xf32> -> vector<256x32xf32>
    %50 = arith.addf %45, %49 : vector<256x32xf32>
    %c0_38 = arith.constant 0 : index
    %c9 = arith.constant 9 : index
    %c0_39 = arith.constant 0 : index
    %51 = vector.load %arg14[%c0_38, %c9, %c0_39] : memref<18x32x32xbf16, #tpu.memory_space<vmem>>, vector<16x16x32xbf16>
    %52 = vector.shape_cast %51 : vector<16x16x32xbf16> to vector<256x32xbf16>
    %c64 = arith.constant 64 : index
    %c0_40 = arith.constant 0 : index
    %53 = vector.load %arg5[%c64, %c0_40] : memref<288x32xbf16, #tpu.memory_space<vmem>>, vector<32x32xbf16>
    %cst_41 = arith.constant dense<0.000000e+00> : vector<256x32xf32>
    %54 = tpu.matmul %52, %53, %cst_41 {dimension_numbers = #tpu.dot_dimension_numbers<[1], [0], [0], [1], [0, 0, 1, 1], [], []>} : vector<256x32xbf16>, vector<32x32xbf16>, vector<256x32xf32> -> vector<256x32xf32>
    %55 = arith.addf %50, %54 : vector<256x32xf32>
    %c1_42 = arith.constant 1 : index
    %c7_43 = arith.constant 7 : index
    %c0_44 = arith.constant 0 : index
    %56 = vector.load %arg14[%c1_42, %c7_43, %c0_44] : memref<18x32x32xbf16, #tpu.memory_space<vmem>>, vector<16x16x32xbf16>
    %57 = vector.shape_cast %56 : vector<16x16x32xbf16> to vector<256x32xbf16>
    %c96 = arith.constant 96 : index
    %c0_45 = arith.constant 0 : index
    %58 = vector.load %arg5[%c96, %c0_45] : memref<288x32xbf16, #tpu.memory_space<vmem>>, vector<32x32xbf16>
    %cst_46 = arith.constant dense<0.000000e+00> : vector<256x32xf32>
    %59 = tpu.matmul %57, %58, %cst_46 {dimension_numbers = #tpu.dot_dimension_numbers<[1], [0], [0], [1], [0, 0, 1, 1], [], []>} : vector<256x32xbf16>, vector<32x32xbf16>, vector<256x32xf32> -> vector<256x32xf32>
    %60 = arith.addf %55, %59 : vector<256x32xf32>
    %c1_47 = arith.constant 1 : index
    %c8_48 = arith.constant 8 : index
    %c0_49 = arith.constant 0 : index
    %61 = vector.load %arg14[%c1_47, %c8_48, %c0_49] : memref<18x32x32xbf16, #tpu.memory_space<vmem>>, vector<16x16x32xbf16>
    %62 = vector.shape_cast %61 : vector<16x16x32xbf16> to vector<256x32xbf16>
    %c128 = arith.constant 128 : index
    %c0_50 = arith.constant 0 : index
    %63 = vector.load %arg5[%c128, %c0_50] : memref<288x32xbf16, #tpu.memory_space<vmem>>, vector<32x32xbf16>
    %cst_51 = arith.constant dense<0.000000e+00> : vector<256x32xf32>
    %64 = tpu.matmul %62, %63, %cst_51 {dimension_numbers = #tpu.dot_dimension_numbers<[1], [0], [0], [1], [0, 0, 1, 1], [], []>} : vector<256x32xbf16>, vector<32x32xbf16>, vector<256x32xf32> -> vector<256x32xf32>
    %65 = arith.addf %60, %64 : vector<256x32xf32>
    %c1_52 = arith.constant 1 : index
    %c9_53 = arith.constant 9 : index
    %c0_54 = arith.constant 0 : index
    %66 = vector.load %arg14[%c1_52, %c9_53, %c0_54] : memref<18x32x32xbf16, #tpu.memory_space<vmem>>, vector<16x16x32xbf16>
    %67 = vector.shape_cast %66 : vector<16x16x32xbf16> to vector<256x32xbf16>
    %c160 = arith.constant 160 : index
    %c0_55 = arith.constant 0 : index
    %68 = vector.load %arg5[%c160, %c0_55] : memref<288x32xbf16, #tpu.memory_space<vmem>>, vector<32x32xbf16>
    %cst_56 = arith.constant dense<0.000000e+00> : vector<256x32xf32>
    %69 = tpu.matmul %67, %68, %cst_56 {dimension_numbers = #tpu.dot_dimension_numbers<[1], [0], [0], [1], [0, 0, 1, 1], [], []>} : vector<256x32xbf16>, vector<32x32xbf16>, vector<256x32xf32> -> vector<256x32xf32>
    %70 = arith.addf %65, %69 : vector<256x32xf32>
    %c2 = arith.constant 2 : index
    %c7_57 = arith.constant 7 : index
    %c0_58 = arith.constant 0 : index
    %71 = vector.load %arg14[%c2, %c7_57, %c0_58] : memref<18x32x32xbf16, #tpu.memory_space<vmem>>, vector<16x16x32xbf16>
    %72 = vector.shape_cast %71 : vector<16x16x32xbf16> to vector<256x32xbf16>
    %c192 = arith.constant 192 : index
    %c0_59 = arith.constant 0 : index
    %73 = vector.load %arg5[%c192, %c0_59] : memref<288x32xbf16, #tpu.memory_space<vmem>>, vector<32x32xbf16>
    %cst_60 = arith.constant dense<0.000000e+00> : vector<256x32xf32>
    %74 = tpu.matmul %72, %73, %cst_60 {dimension_numbers = #tpu.dot_dimension_numbers<[1], [0], [0], [1], [0, 0, 1, 1], [], []>} : vector<256x32xbf16>, vector<32x32xbf16>, vector<256x32xf32> -> vector<256x32xf32>
    %75 = arith.addf %70, %74 : vector<256x32xf32>
    %c2_61 = arith.constant 2 : index
    %c8_62 = arith.constant 8 : index
    %c0_63 = arith.constant 0 : index
    %76 = vector.load %arg14[%c2_61, %c8_62, %c0_63] : memref<18x32x32xbf16, #tpu.memory_space<vmem>>, vector<16x16x32xbf16>
    %77 = vector.shape_cast %76 : vector<16x16x32xbf16> to vector<256x32xbf16>
    %c224 = arith.constant 224 : index
    %c0_64 = arith.constant 0 : index
    %78 = vector.load %arg5[%c224, %c0_64] : memref<288x32xbf16, #tpu.memory_space<vmem>>, vector<32x32xbf16>
    %cst_65 = arith.constant dense<0.000000e+00> : vector<256x32xf32>
    %79 = tpu.matmul %77, %78, %cst_65 {dimension_numbers = #tpu.dot_dimension_numbers<[1], [0], [0], [1], [0, 0, 1, 1], [], []>} : vector<256x32xbf16>, vector<32x32xbf16>, vector<256x32xf32> -> vector<256x32xf32>
    %80 = arith.addf %75, %79 : vector<256x32xf32>
    %c2_66 = arith.constant 2 : index
    %c9_67 = arith.constant 9 : index
    %c0_68 = arith.constant 0 : index
    %81 = vector.load %arg14[%c2_66, %c9_67, %c0_68] : memref<18x32x32xbf16, #tpu.memory_space<vmem>>, vector<16x16x32xbf16>
    %82 = vector.shape_cast %81 : vector<16x16x32xbf16> to vector<256x32xbf16>
    %c256 = arith.constant 256 : index
    %c0_69 = arith.constant 0 : index
    %83 = vector.load %arg5[%c256, %c0_69] : memref<288x32xbf16, #tpu.memory_space<vmem>>, vector<32x32xbf16>
    %cst_70 = arith.constant dense<0.000000e+00> : vector<256x32xf32>
    %84 = tpu.matmul %82, %83, %cst_70 {dimension_numbers = #tpu.dot_dimension_numbers<[1], [0], [0], [1], [0, 0, 1, 1], [], []>} : vector<256x32xbf16>, vector<32x32xbf16>, vector<256x32xf32> -> vector<256x32xf32>
    %85 = arith.addf %80, %84 : vector<256x32xf32>
    %c0_71 = arith.constant 0 : index
    %c0_72 = arith.constant 0 : index
    %86 = vector.load %arg6[%c0_71, %c0_72] : memref<1x32xf32, #tpu.memory_space<vmem>>, vector<1x32xf32>
    %87 = vector.broadcast %86 : vector<1x32xf32> to vector<256x32xf32>
    %88 = arith.addf %85, %87 : vector<256x32xf32>
    %c0_73 = arith.constant 0 : index
    %c0_74 = arith.constant 0 : index
    %c0_75 = arith.constant 0 : index
    %89 = vector.load %arg7[%c0_73, %c0_74, %c0_75] : memref<1x1x32xf32, #tpu.memory_space<vmem>>, vector<1x1x32xf32>
    %90 = vector.shape_cast %89 : vector<1x1x32xf32> to vector<1x32xf32>
    %91 = vector.broadcast %90 : vector<1x32xf32> to vector<256x32xf32>
    %92 = arith.addf %88, %91 : vector<256x32xf32>
    %c0_76 = arith.constant 0 : index
    %c0_77 = arith.constant 0 : index
    %93 = vector.load %arg8[%c0_76, %c0_77] : memref<1x32xf32, #tpu.memory_space<vmem>>, vector<1x32xf32>
    %c0_78 = arith.constant 0 : index
    %c0_79 = arith.constant 0 : index
    %94 = vector.load %arg9[%c0_78, %c0_79] : memref<1x32xf32, #tpu.memory_space<vmem>>, vector<1x32xf32>
    %c0_80 = arith.constant 0 : index
    %c0_81 = arith.constant 0 : index
    %95 = vector.load %arg10[%c0_80, %c0_81] : memref<32x32xf32, #tpu.memory_space<vmem>>, vector<32x32xf32>
    %cst_82 = arith.constant dense<0.000000e+00> : vector<32xf32>
    %96 = vector.multi_reduction <add>, %92, %cst_82 [0] : vector<256x32xf32> to vector<32xf32>
    %97 = vector.shape_cast %96 : vector<32xf32> to vector<1x32xf32>
    %98 = arith.mulf %92, %92 : vector<256x32xf32>
    %cst_83 = arith.constant dense<0.000000e+00> : vector<32xf32>
    %99 = vector.multi_reduction <add>, %98, %cst_83 [0] : vector<256x32xf32> to vector<32xf32>
    %100 = vector.shape_cast %99 : vector<32xf32> to vector<1x32xf32>
    %cst_84 = arith.constant dense<0.000000e+00> : vector<1x32xf32>
    %101 = tpu.matmul %97, %95, %cst_84 {dimension_numbers = #tpu.dot_dimension_numbers<[1], [0], [0], [1], [0, 0, 1, 1], [], []>} : vector<1x32xf32>, vector<32x32xf32>, vector<1x32xf32> -> vector<1x32xf32>
    %cst_85 = arith.constant dense<0.000000e+00> : vector<1x32xf32>
    %102 = tpu.matmul %100, %95, %cst_85 {dimension_numbers = #tpu.dot_dimension_numbers<[1], [0], [0], [1], [0, 0, 1, 1], [], []>} : vector<1x32xf32>, vector<32x32xf32>, vector<1x32xf32> -> vector<1x32xf32>
    %103 = arith.mulf %101, %101 : vector<1x32xf32>
    %104 = arith.subf %102, %103 : vector<1x32xf32>
    %cst_86 = arith.constant 9.99999974E-6 : f32
    %105 = vector.broadcast %cst_86 : f32 to vector<1x32xf32>
    %106 = arith.addf %104, %105 : vector<1x32xf32>
    %107 = math.rsqrt %106 : vector<1x32xf32>
    %108 = vector.broadcast %101 : vector<1x32xf32> to vector<256x32xf32>
    %109 = arith.subf %92, %108 : vector<256x32xf32>
    %110 = vector.broadcast %107 : vector<1x32xf32> to vector<256x32xf32>
    %111 = arith.mulf %109, %110 : vector<256x32xf32>
    %112 = vector.broadcast %93 : vector<1x32xf32> to vector<256x32xf32>
    %113 = arith.mulf %111, %112 : vector<256x32xf32>
    %114 = vector.broadcast %94 : vector<1x32xf32> to vector<256x32xf32>
    %115 = arith.addf %113, %114 : vector<256x32xf32>
    %cst_87 = arith.constant 0.000000e+00 : f32
    %116 = vector.broadcast %cst_87 : f32 to vector<256x32xf32>
    %117 = arith.subf %116, %115 : vector<256x32xf32>
    %118 = math.exp %117 : vector<256x32xf32>
    %cst_88 = arith.constant 1.000000e+00 : f32
    %119 = vector.broadcast %cst_88 : f32 to vector<256x32xf32>
    %120 = arith.addf %119, %118 : vector<256x32xf32>
    %121 = tpu.reciprocal %120 {approx = true} : vector<256x32xf32> -> vector<256x32xf32>
    %122 = arith.mulf %115, %121 : vector<256x32xf32>
    %123 = vector.shape_cast %122 : vector<256x32xf32> to vector<16x16x32xf32>
    %124 = arith.truncf %123 : vector<16x16x32xf32> to vector<16x16x32xbf16>
    %c1_89 = arith.constant 1 : index
    %c8_90 = arith.constant 8 : index
    %c0_91 = arith.constant 0 : index
    %125 = vector.load %arg15[%c1_89, %c8_90, %c0_91] : memref<18x32x32xbf16, #tpu.memory_space<vmem>>, vector<16x16x32xbf16>
    tpu.vector_store %arg15[%c1_89, %c8_90, %c0_91], %124 {strides = array<i32>} : memref<18x32x32xbf16, #tpu.memory_space<vmem>>, vector<16x16x32xbf16>,
    %cst_92 = arith.constant 0.000000e+00 : bf16
    %126 = vector.broadcast %cst_92 : bf16 to vector<1x18x32xbf16>
    %cst_93 = arith.constant 0.000000e+00 : bf16
    %127 = vector.broadcast %cst_93 : bf16 to vector<16x1x32xbf16>
    %c0_94 = arith.constant 0 : index
    %c7_95 = arith.constant 7 : index
    %c0_96 = arith.constant 0 : index
    %128 = vector.load %arg15[%c0_94, %c7_95, %c0_96] : memref<18x32x32xbf16, #tpu.memory_space<vmem>>, vector<1x18x32xbf16>
    tpu.vector_store %arg15[%c0_94, %c7_95, %c0_96], %126 {strides = array<i32>} : memref<18x32x32xbf16, #tpu.memory_space<vmem>>, vector<1x18x32xbf16>,
    %c17_97 = arith.constant 17 : index
    %c7_98 = arith.constant 7 : index
    %c0_99 = arith.constant 0 : index
    %129 = vector.load %arg15[%c17_97, %c7_98, %c0_99] : memref<18x32x32xbf16, #tpu.memory_space<vmem>>, vector<1x18x32xbf16>
    tpu.vector_store %arg15[%c17_97, %c7_98, %c0_99], %126 {strides = array<i32>} : memref<18x32x32xbf16, #tpu.memory_space<vmem>>, vector<1x18x32xbf16>,
    %c1_100 = arith.constant 1 : index
    %c7_101 = arith.constant 7 : index
    %c0_102 = arith.constant 0 : index
    %130 = vector.load %arg15[%c1_100, %c7_101, %c0_102] : memref<18x32x32xbf16, #tpu.memory_space<vmem>>, vector<16x1x32xbf16>
    tpu.vector_store %arg15[%c1_100, %c7_101, %c0_102], %127 {strides = array<i32>} : memref<18x32x32xbf16, #tpu.memory_space<vmem>>, vector<16x1x32xbf16>,
    %c1_103 = arith.constant 1 : index
    %c24_104 = arith.constant 24 : index
    %c0_105 = arith.constant 0 : index
    %131 = vector.load %arg15[%c1_103, %c24_104, %c0_105] : memref<18x32x32xbf16, #tpu.memory_space<vmem>>, vector<16x1x32xbf16>
    tpu.vector_store %arg15[%c1_103, %c24_104, %c0_105], %127 {strides = array<i32>} : memref<18x32x32xbf16, #tpu.memory_space<vmem>>, vector<16x1x32xbf16>,
    %c0_106 = arith.constant 0 : index
    %c7_107 = arith.constant 7 : index
    %c0_108 = arith.constant 0 : index
    %132 = vector.load %arg15[%c0_106, %c7_107, %c0_108] : memref<18x32x32xbf16, #tpu.memory_space<vmem>>, vector<16x16x32xbf16>
    %133 = vector.shape_cast %132 : vector<16x16x32xbf16> to vector<256x32xbf16>
    %c0_109 = arith.constant 0 : index
    %c0_110 = arith.constant 0 : index
    %134 = vector.load %arg11[%c0_109, %c0_110] : memref<288x32xbf16, #tpu.memory_space<vmem>>, vector<32x32xbf16>
    %cst_111 = arith.constant dense<0.000000e+00> : vector<256x32xf32>
    %135 = tpu.matmul %133, %134, %cst_111 {dimension_numbers = #tpu.dot_dimension_numbers<[1], [0], [0], [1], [0, 0, 1, 1], [], []>} : vector<256x32xbf16>, vector<32x32xbf16>, vector<256x32xf32> -> vector<256x32xf32>
    %c0_112 = arith.constant 0 : index
    %c8_113 = arith.constant 8 : index
    %c0_114 = arith.constant 0 : index
    %136 = vector.load %arg15[%c0_112, %c8_113, %c0_114] : memref<18x32x32xbf16, #tpu.memory_space<vmem>>, vector<16x16x32xbf16>
    %137 = vector.shape_cast %136 : vector<16x16x32xbf16> to vector<256x32xbf16>
    %c32_115 = arith.constant 32 : index
    %c0_116 = arith.constant 0 : index
    %138 = vector.load %arg11[%c32_115, %c0_116] : memref<288x32xbf16, #tpu.memory_space<vmem>>, vector<32x32xbf16>
    %cst_117 = arith.constant dense<0.000000e+00> : vector<256x32xf32>
    %139 = tpu.matmul %137, %138, %cst_117 {dimension_numbers = #tpu.dot_dimension_numbers<[1], [0], [0], [1], [0, 0, 1, 1], [], []>} : vector<256x32xbf16>, vector<32x32xbf16>, vector<256x32xf32> -> vector<256x32xf32>
    %140 = arith.addf %135, %139 : vector<256x32xf32>
    %c0_118 = arith.constant 0 : index
    %c9_119 = arith.constant 9 : index
    %c0_120 = arith.constant 0 : index
    %141 = vector.load %arg15[%c0_118, %c9_119, %c0_120] : memref<18x32x32xbf16, #tpu.memory_space<vmem>>, vector<16x16x32xbf16>
    %142 = vector.shape_cast %141 : vector<16x16x32xbf16> to vector<256x32xbf16>
    %c64_121 = arith.constant 64 : index
    %c0_122 = arith.constant 0 : index
    %143 = vector.load %arg11[%c64_121, %c0_122] : memref<288x32xbf16, #tpu.memory_space<vmem>>, vector<32x32xbf16>
    %cst_123 = arith.constant dense<0.000000e+00> : vector<256x32xf32>
    %144 = tpu.matmul %142, %143, %cst_123 {dimension_numbers = #tpu.dot_dimension_numbers<[1], [0], [0], [1], [0, 0, 1, 1], [], []>} : vector<256x32xbf16>, vector<32x32xbf16>, vector<256x32xf32> -> vector<256x32xf32>
    %145 = arith.addf %140, %144 : vector<256x32xf32>
    %c1_124 = arith.constant 1 : index
    %c7_125 = arith.constant 7 : index
    %c0_126 = arith.constant 0 : index
    %146 = vector.load %arg15[%c1_124, %c7_125, %c0_126] : memref<18x32x32xbf16, #tpu.memory_space<vmem>>, vector<16x16x32xbf16>
    %147 = vector.shape_cast %146 : vector<16x16x32xbf16> to vector<256x32xbf16>
    %c96_127 = arith.constant 96 : index
    %c0_128 = arith.constant 0 : index
    %148 = vector.load %arg11[%c96_127, %c0_128] : memref<288x32xbf16, #tpu.memory_space<vmem>>, vector<32x32xbf16>
    %cst_129 = arith.constant dense<0.000000e+00> : vector<256x32xf32>
    %149 = tpu.matmul %147, %148, %cst_129 {dimension_numbers = #tpu.dot_dimension_numbers<[1], [0], [0], [1], [0, 0, 1, 1], [], []>} : vector<256x32xbf16>, vector<32x32xbf16>, vector<256x32xf32> -> vector<256x32xf32>
    %150 = arith.addf %145, %149 : vector<256x32xf32>
    %c1_130 = arith.constant 1 : index
    %c8_131 = arith.constant 8 : index
    %c0_132 = arith.constant 0 : index
    %151 = vector.load %arg15[%c1_130, %c8_131, %c0_132] : memref<18x32x32xbf16, #tpu.memory_space<vmem>>, vector<16x16x32xbf16>
    %152 = vector.shape_cast %151 : vector<16x16x32xbf16> to vector<256x32xbf16>
    %c128_133 = arith.constant 128 : index
    %c0_134 = arith.constant 0 : index
    %153 = vector.load %arg11[%c128_133, %c0_134] : memref<288x32xbf16, #tpu.memory_space<vmem>>, vector<32x32xbf16>
    %cst_135 = arith.constant dense<0.000000e+00> : vector<256x32xf32>
    %154 = tpu.matmul %152, %153, %cst_135 {dimension_numbers = #tpu.dot_dimension_numbers<[1], [0], [0], [1], [0, 0, 1, 1], [], []>} : vector<256x32xbf16>, vector<32x32xbf16>, vector<256x32xf32> -> vector<256x32xf32>
    %155 = arith.addf %150, %154 : vector<256x32xf32>
    %c1_136 = arith.constant 1 : index
    %c9_137 = arith.constant 9 : index
    %c0_138 = arith.constant 0 : index
    %156 = vector.load %arg15[%c1_136, %c9_137, %c0_138] : memref<18x32x32xbf16, #tpu.memory_space<vmem>>, vector<16x16x32xbf16>
    %157 = vector.shape_cast %156 : vector<16x16x32xbf16> to vector<256x32xbf16>
    %c160_139 = arith.constant 160 : index
    %c0_140 = arith.constant 0 : index
    %158 = vector.load %arg11[%c160_139, %c0_140] : memref<288x32xbf16, #tpu.memory_space<vmem>>, vector<32x32xbf16>
    %cst_141 = arith.constant dense<0.000000e+00> : vector<256x32xf32>
    %159 = tpu.matmul %157, %158, %cst_141 {dimension_numbers = #tpu.dot_dimension_numbers<[1], [0], [0], [1], [0, 0, 1, 1], [], []>} : vector<256x32xbf16>, vector<32x32xbf16>, vector<256x32xf32> -> vector<256x32xf32>
    %160 = arith.addf %155, %159 : vector<256x32xf32>
    %c2_142 = arith.constant 2 : index
    %c7_143 = arith.constant 7 : index
    %c0_144 = arith.constant 0 : index
    %161 = vector.load %arg15[%c2_142, %c7_143, %c0_144] : memref<18x32x32xbf16, #tpu.memory_space<vmem>>, vector<16x16x32xbf16>
    %162 = vector.shape_cast %161 : vector<16x16x32xbf16> to vector<256x32xbf16>
    %c192_145 = arith.constant 192 : index
    %c0_146 = arith.constant 0 : index
    %163 = vector.load %arg11[%c192_145, %c0_146] : memref<288x32xbf16, #tpu.memory_space<vmem>>, vector<32x32xbf16>
    %cst_147 = arith.constant dense<0.000000e+00> : vector<256x32xf32>
    %164 = tpu.matmul %162, %163, %cst_147 {dimension_numbers = #tpu.dot_dimension_numbers<[1], [0], [0], [1], [0, 0, 1, 1], [], []>} : vector<256x32xbf16>, vector<32x32xbf16>, vector<256x32xf32> -> vector<256x32xf32>
    %165 = arith.addf %160, %164 : vector<256x32xf32>
    %c2_148 = arith.constant 2 : index
    %c8_149 = arith.constant 8 : index
    %c0_150 = arith.constant 0 : index
    %166 = vector.load %arg15[%c2_148, %c8_149, %c0_150] : memref<18x32x32xbf16, #tpu.memory_space<vmem>>, vector<16x16x32xbf16>
    %167 = vector.shape_cast %166 : vector<16x16x32xbf16> to vector<256x32xbf16>
    %c224_151 = arith.constant 224 : index
    %c0_152 = arith.constant 0 : index
    %168 = vector.load %arg11[%c224_151, %c0_152] : memref<288x32xbf16, #tpu.memory_space<vmem>>, vector<32x32xbf16>
    %cst_153 = arith.constant dense<0.000000e+00> : vector<256x32xf32>
    %169 = tpu.matmul %167, %168, %cst_153 {dimension_numbers = #tpu.dot_dimension_numbers<[1], [0], [0], [1], [0, 0, 1, 1], [], []>} : vector<256x32xbf16>, vector<32x32xbf16>, vector<256x32xf32> -> vector<256x32xf32>
    %170 = arith.addf %165, %169 : vector<256x32xf32>
    %c2_154 = arith.constant 2 : index
    %c9_155 = arith.constant 9 : index
    %c0_156 = arith.constant 0 : index
    %171 = vector.load %arg15[%c2_154, %c9_155, %c0_156] : memref<18x32x32xbf16, #tpu.memory_space<vmem>>, vector<16x16x32xbf16>
    %172 = vector.shape_cast %171 : vector<16x16x32xbf16> to vector<256x32xbf16>
    %c256_157 = arith.constant 256 : index
    %c0_158 = arith.constant 0 : index
    %173 = vector.load %arg11[%c256_157, %c0_158] : memref<288x32xbf16, #tpu.memory_space<vmem>>, vector<32x32xbf16>
    %cst_159 = arith.constant dense<0.000000e+00> : vector<256x32xf32>
    %174 = tpu.matmul %172, %173, %cst_159 {dimension_numbers = #tpu.dot_dimension_numbers<[1], [0], [0], [1], [0, 0, 1, 1], [], []>} : vector<256x32xbf16>, vector<32x32xbf16>, vector<256x32xf32> -> vector<256x32xf32>
    %175 = arith.addf %170, %174 : vector<256x32xf32>
    %c0_160 = arith.constant 0 : index
    %c0_161 = arith.constant 0 : index
    %176 = vector.load %arg12[%c0_160, %c0_161] : memref<1x32xf32, #tpu.memory_space<vmem>>, vector<1x32xf32>
    %177 = vector.broadcast %176 : vector<1x32xf32> to vector<256x32xf32>
    %178 = arith.addf %175, %177 : vector<256x32xf32>
    %179 = arith.addf %178, %2 : vector<256x32xf32>
    %180 = vector.shape_cast %179 : vector<256x32xf32> to vector<1x16x16x32xf32>
    %c0_162 = arith.constant 0 : index
    %c0_163 = arith.constant 0 : index
    %c0_164 = arith.constant 0 : index
    %c0_165 = arith.constant 0 : index
    %181 = vector.load %arg13[%c0_162, %c0_163, %c0_164, %c0_165] : memref<1x16x16x32xf32, #tpu.memory_space<vmem>>, vector<1x16x16x32xf32>
    tpu.vector_store %arg13[%c0_162, %c0_163, %c0_164, %c0_165], %180 {strides = array<i32>} : memref<1x16x16x32xf32, #tpu.memory_space<vmem>>, vector<1x16x16x32xf32>,
    return
  }
  func.func @transform_0(%arg0: i32) -> (i32, i32, i32, i32) {
    %c0_i32 = arith.constant 0 : i32
    %c0_i32_0 = arith.constant 0 : i32
    %c0_i32_1 = arith.constant 0 : i32
    %c0_i32_2 = arith.constant 0 : i32
    return %arg0, %c0_i32, %c0_i32_0, %c0_i32_1 : i32, i32, i32, i32
  }
  func.func @transform_1(%arg0: i32) -> (i32, i32) {
    %c0_i32 = arith.constant 0 : i32
    %c0_i32_0 = arith.constant 0 : i32
    %c0_i32_1 = arith.constant 0 : i32
    return %c0_i32, %c0_i32_0 : i32, i32
  }
  func.func @transform_2(%arg0: i32) -> (i32, i32) {
    %c0_i32 = arith.constant 0 : i32
    %c0_i32_0 = arith.constant 0 : i32
    %c0_i32_1 = arith.constant 0 : i32
    return %c0_i32, %c0_i32_0 : i32, i32
  }
  func.func @transform_3(%arg0: i32) -> (i32, i32) {
    %c0_i32 = arith.constant 0 : i32
    %c0_i32_0 = arith.constant 0 : i32
    %c0_i32_1 = arith.constant 0 : i32
    return %c0_i32, %c0_i32_0 : i32, i32
  }
  func.func @transform_4(%arg0: i32) -> (i32, i32) {
    %c0_i32 = arith.constant 0 : i32
    %c0_i32_0 = arith.constant 0 : i32
    %c0_i32_1 = arith.constant 0 : i32
    return %c0_i32, %c0_i32_0 : i32, i32
  }
  func.func @transform_5(%arg0: i32) -> (i32, i32) {
    %c0_i32 = arith.constant 0 : i32
    %c0_i32_0 = arith.constant 0 : i32
    %c0_i32_1 = arith.constant 0 : i32
    return %c0_i32, %c0_i32_0 : i32, i32
  }
  func.func @transform_6(%arg0: i32) -> (i32, i32, i32) {
    %c0_i32 = arith.constant 0 : i32
    %c0_i32_0 = arith.constant 0 : i32
    %c0_i32_1 = arith.constant 0 : i32
    return %arg0, %c0_i32, %c0_i32_0 : i32, i32, i32
  }
  func.func @transform_7(%arg0: i32) -> (i32, i32) {
    %c0_i32 = arith.constant 0 : i32
    %c0_i32_0 = arith.constant 0 : i32
    %c0_i32_1 = arith.constant 0 : i32
    return %c0_i32, %c0_i32_0 : i32, i32
  }
  func.func @transform_8(%arg0: i32) -> (i32, i32) {
    %c0_i32 = arith.constant 0 : i32
    %c0_i32_0 = arith.constant 0 : i32
    %c0_i32_1 = arith.constant 0 : i32
    return %c0_i32, %c0_i32_0 : i32, i32
  }
  func.func @transform_9(%arg0: i32) -> (i32, i32) {
    %c0_i32 = arith.constant 0 : i32
    %c0_i32_0 = arith.constant 0 : i32
    %c0_i32_1 = arith.constant 0 : i32
    return %c0_i32, %c0_i32_0 : i32, i32
  }
  func.func @transform_10(%arg0: i32) -> (i32, i32) {
    %c0_i32 = arith.constant 0 : i32
    %c0_i32_0 = arith.constant 0 : i32
    %c0_i32_1 = arith.constant 0 : i32
    return %c0_i32, %c0_i32_0 : i32, i32
  }
  func.func @transform_11(%arg0: i32) -> (i32, i32) {
    %c0_i32 = arith.constant 0 : i32
    %c0_i32_0 = arith.constant 0 : i32
    %c0_i32_1 = arith.constant 0 : i32
    return %c0_i32, %c0_i32_0 : i32, i32
  }
  func.func @transform_12(%arg0: i32) -> (i32, i32, i32, i32) {
    %c0_i32 = arith.constant 0 : i32
    %c0_i32_0 = arith.constant 0 : i32
    %c0_i32_1 = arith.constant 0 : i32
    %c0_i32_2 = arith.constant 0 : i32
    return %arg0, %c0_i32, %c0_i32_0, %c0_i32_1 : i32, i32, i32, i32
  }
}

</mosaic_0001>

<bundles_post_ra>
// kernel: resblock_forward.1
= control target key start
LH: loop header
LB: loop body
LE: loop exit
PB: predicated region body
PF: predicated region fallthrough
CT: control target
= control target key end

     0   :  { %s21421_s0 = inlined_call_operand.vmem [shape: f32[2,16,16,32], index: 0, kind: input, shape index: {}]   ;;  %s21422_s1 = inlined_call_operand.vmem [shape: f32[1,32], index: 1, kind: input, shape index: {}]   ;;  %s21423_s2 = inlined_call_operand.vmem [shape: f32[1,32], index: 2, kind: input, shape index: {}]   ;;  %s21424_s3 = inlined_call_operand.vmem [shape: f32[32,32], index: 3, kind: input, shape index: {}, may-alias: {3,9}]   ;;  %s21425_s4 = inlined_call_operand.vmem [shape: bf16[288,32], index: 4, kind: input, shape index: {}]   ;;  %s21426_s5 = inlined_call_operand.vmem [shape: f32[1,32], index: 5, kind: input, shape index: {}]   ;;  %s21427_s6 = inlined_call_operand.vmem [shape: f32[2,1,32], index: 6, kind: input, shape index: {}]   ;;  %s21428_s7 = inlined_call_operand.vmem [shape: f32[1,32], index: 7, kind: input, shape index: {}]   ;;  %s21429_s8 = inlined_call_operand.vmem [shape: f32[1,32], index: 8, kind: input, shape index: {}]   ;;  %s21430_s9 = inlined_call_operand.vmem [shape: f32[32,32], index: 9, kind: input, shape index: {}, may-alias: {3,9}]   ;;  %s21431_s10 = inlined_call_operand.vmem [shape: bf16[288,32], index: 10, kind: input, shape index: {}]   ;;  %s21432_s11 = inlined_call_operand.vmem [shape: f32[1,32], index: 11, kind: input, shape index: {}]   ;;  %s21433_s12 = inlined_call_operand.hbm [shape: f32[2,16,16,32], index: 12, kind: output, shape index: {}]  }
   0x1   :  { %21474 = sst [smem:[#allocation76_spill]] %s21421_s0 }
   0x2   :  { %21475 = sst [smem:[#allocation77_spill]] %s21422_s1 }
   0x3   :  { %17 = vsyncpa [#allocation5], 0 }
   0x4   :  { %19 = vsyncpa [#allocation5 + $0x1], 0  ;;  %s15694_s21 = smov 0   ;;  %s15696_s22 = smov 0  }
   0x5   :  { %s15698_s23 = smov 0   ;;  %s15700_s24 = smov 0  }
   0x6 LB: > { %s15715_s25 = sadd.s32 4294967295, %s15621_s24   ;;  %s13166_s26 = sadd.s32 4294967294, %s15621_s24   ;;  %s15621_s24 = sphi %s15700_s24, %s21963_s24   ;;  %s15617_s23 = sphi %s15698_s23, %s21962_s23   ;;  %s15613_s22 = sphi %s15696_s22, %s21961_s22   ;;  %s15609_s21 = sphi %s15694_s21, %s21960_s21  }
   0x7   : > { %s15719_s27 = sadd.s32 1, %s15621_s24   ;;  %s294_s28 = sadd.s32 1, %s15617_s23 }
   0x8   : > { %s291_s29 = ssub.s32 %s15621_s24, %s15719_s27  ;;  %p304_p0 = scmp.ne.s32.totalorder %s15617_s23, %s15613_s22 }
   0x9   : > { %p292_p1 = scmp.eq.s32.totalorder %s291_s29, 0  ;;  %p305_p2 = scmp.eq.s32.totalorder %s15715_s25, 1 }
   0xa   : > { %p310_p3 = scmp.ne.s32.totalorder %s15613_s22, %s15609_s21  ;;  %p311_p4 = scmp.eq.s32.totalorder %s13166_s26, 1 }
   0xb   : > { %s15730_s30 = scalar_select %p292_p1, %s15617_s23, %s294_s28  }
   0xc   : > { %p15732_p5 = por %p305_p2, %p304_p0  ;;  %p15736_p6 = por %p311_p4, %p310_p3 }
   0xd   : > { %p13169_p7 = scmp.ge.s32.totalorder %s15621_s24, 1  ;;  %p373_p8 = scmp.lt.s32.totalorder %s15621_s24, 3 }
   0xf   : > { %p374_p9 = pnand %p13169_p7, %p373_p8 }
  0x11   : > { %377 = sbr.rel (%p374_p9) target bundleno = 1995 (0x7cb), region = 68 }
  0x16   : > { %v15745_v0 = vld [vmem:[%s21424_s3 + $0x18] sm:$0xff]  ;;  %p418_p10 = scmp.lt.s32.totalorder %s15715_s25, 1  ;;  %v21434_v1 = vmov 0.0   ;;  %v15752_v2 = vld [vmem:[%s21424_s3 + $0x10] sm:$0xff]  ;;  %vm15624_vm0 = vmmov 0   ;;  %v15760_v3 = vld [vmem:[%s21424_s3 + $0x8] sm:$0xff] }
  0x17   : > { %14371 = vmatprep.subr.mxu0 %v21434_v1  ;;  %14379 = vmatprep.mubr.msk.f32.mxu0 %vm15624_vm0, %v21434_v1  ;;  %v15769_v4 = vld [vmem:[%s21424_s3] sm:$0xff]  ;;  %vm465_vm1 = vcmask 261120   ;;  %s21478_s0 = sld [smem:[#allocation76_spill]]  ;;  %vm1255_vm2 = vcmask 257024   ;;  %vm1288_vm3 = vcmask 257027   ;;  %vm1296_vm9 = vcmask 253952  }
  0x18   : > { %14372 = vmatpush3.msra.mxu0 %v15745_v0  ;;  %s15763_s26 = scalar_select %p418_p10, %s15715_s25, 1  ;;  %vm1289_vm4 = vsmask.f32 7950  ;;  %vm1297_vm6 = vsmask.f32 256 }
  0x19   : > { %14373 = vmatprep.subr.mxu0 %v21434_v1  ;;  %vm16072_vm5 = vmand %vm1288_vm3, %vm1289_vm4  ;;  %vm1455_vm7 = vsmask.f32 4368  ;;  %s21493_s1 = sld [smem:[#allocation77_spill]]  ;;  %vm2435_vm11 = vsmask.f32 3328  ;;  %s415_s16 = sand.u32 1, %s15613_s22  }
  0x1a   : > { %14374 = vmatpush3.msra.mxu0 %v15752_v2  ;;  %s13961_s15 = sshll.u32 %s15763_s26, 8  ;;  %vm16088_vm8 = vmor %vm1297_vm6, %vm1455_vm7  ;;  %vm2436_vm12 = vsmask.f32 7440  ;;  %s425_s29 = scalar_lea.vmem %s21427_s6, %s15763_s26 }
  0x1b   : > { %14375 = vmatprep.subr.mxu0 %v21434_v1  ;;  %vm16204_vm10 = vmand %vm1296_vm9, %vm1297_vm6  ;;  %s14026_s20 = sshll.u32 %s15715_s25, 12  ;;  %s21381_s25 = scalar_lea.sflag [#allocation5], %s415_s16 }
  0x1c   : > { %14376 = vmatpush3.msra.mxu0 %v15760_v3  ;;  %vm16852_vm13 = vmor %vm2435_vm11, %vm2436_vm12  ;;  %s21370_s26 = scalar_lea.hbm %s21433_s12, %s14026_s20 }
  0x1d   : > { %s15777_s18 = scalar_lea.vmem %s21478_s0, %s13961_s15  ;;  %14377 = vmatprep.subr.mxu0 %v21434_v1  ;;  %s13170_s0 = sshll.u32 %s415_s16, 8 }
  0x1e   : > { %v15781_v5 = vld [vmem:[%s15777_s18] sm:$0xff]  ;;  %v15784_v6 = vld [vmem:[%s15777_s18 + $0x8] sm:$0xff]  ;;  %v15787_v7 = vld [vmem:[%s15777_s18 + $0x10] sm:$0xff]  ;;  %14378 = vmatpush3.msra.mxu0 %v15769_v4  ;;  %s21189_s19 = scalar_lea.vmem [#allocation4], %s13170_s0  ;;  %s15626_s0 = smov [#allocation4]  }
  0x1f   : > { %v15791_v8 = vld [vmem:[%s15777_s18 + $0x18] sm:$0xff]  ;;  %v466_v9 = vsel %vm465_vm1, %v15781_v5, 0.0  ;;  %v467_v10 = vsel %vm465_vm1, %v15784_v6, 0.0  ;;  %v469_v11 = vsel %vm465_vm1, %v15787_v7, 0.0  ;;  %v15801_v12 = vld [vmem:[%s15777_s18 + $0x20] sm:$0xff]  ;;  %14382 = vmatprep.subr.mxu0 %v21434_v1  ;;  %v15807_v15 = vld [vmem:[%s15777_s18 + $0x28] sm:$0xff]  ;;  %v535_v36 = vmul.f32 %v15781_v5, %v15781_v5 }
  0x20   : > { %v468_v13 = vadd.f32 %v467_v10, %v466_v9  ;;  %v471_v14 = vsel %vm465_vm1, %v15791_v8, 0.0  ;;  %v473_v17 = vsel %vm465_vm1, %v15801_v12, 0.0  ;;  %v15812_v18 = vld [vmem:[%s15777_s18 + $0x30] sm:$0xff]  ;;  %v15815_v20 = vld [vmem:[%s15777_s18 + $0x38] sm:$0xff]  ;;  %v15818_v21 = vld [vmem:[%s15777_s18 + $0x40] sm:$0xff]  ;;  %v475_v23 = vsel %vm465_vm1, %v15807_v15, 0.0 }
  0x21   : > { %v15821_v22 = vld [vmem:[%s15777_s18 + $0x48] sm:$0xff]  ;;  %v15826_v24 = vld [vmem:[%s15777_s18 + $0x50] sm:$0xff]  ;;  %v15829_v25 = vld [vmem:[%s15777_s18 + $0x58] sm:$0xff]  ;;  %v477_v27 = vsel %vm465_vm1, %v15812_v18, 0.0  ;;  %v479_v29 = vsel %vm465_vm1, %v15815_v20, 0.0  ;;  %v481_v30 = vsel %vm465_vm1, %v15818_v21, 0.0  ;;  %v536_v37 = vmul.f32 %v15784_v6, %v15784_v6 }
  0x22   : > { %v470_v16 = vadd.f32 %v469_v11, %v468_v13  ;;  %v483_v31 = vsel %vm465_vm1, %v15821_v22, 0.0  ;;  %v485_v32 = vsel %vm465_vm1, %v15826_v24, 0.0  ;;  %v487_v33 = vsel %vm465_vm1, %v15829_v25, 0.0  ;;  %v15850_v39 = vld [vmem:[%s15777_s18 + $0x60] sm:$0xff]  ;;  %v15860_v47 = vld [vmem:[%s15777_s18 + $0x68] sm:$0xff]  ;;  %v15863_v50 = vld [vmem:[%s15777_s18 + $0x70] sm:$0xff] }
  0x23   : > { %v537_v38 = vmul.f32 %v15787_v7, %v15787_v7  ;;  %v538_v41 = vmul.f32 %v15791_v8, %v15791_v8  ;;  %v539_v43 = vmul.f32 %v15801_v12, %v15801_v12  ;;  %v567_v44 = vsel %vm465_vm1, %v535_v36, 0.0  ;;  %v15871_v56 = vld [vmem:[%s15777_s18 + $0x78] sm:$0xff]  ;;  %v15874_v57 = vld [vmem:[%s15777_s18 + $0x80] sm:$0xff]  ;;  %v15882_v61 = vld [vmem:[%s15777_s18 + $0x88] sm:$0xff]  ;;  %s13095_s28 = sshll.u32 %s21189_s19, 4  ;;  %s15565_s20 = sshll.u32 %s15626_s0, 4  ;;  %s21372_s28 = int_to_ptr.vmem [resolvable:$true] %s13095_s28  ;;  %s15566_s20 = int_to_ptr.vmem [resolvable:$false] %s15565_s20 }
  0x24   : > { %v472_v19 = vadd.f32 %v471_v14, %v470_v16  ;;  %v568_v45 = vsel %vm465_vm1, %v536_v37, 0.0  ;;  %v489_v51 = vsel %vm465_vm1, %v15850_v39, 0.0  ;;  %v540_v52 = vmul.f32 %v15807_v15, %v15807_v15  ;;  %v15889_v11 = vld [vmem:[%s15777_s18 + $0x90] sm:$0xff]  ;;  %v15892_v13 = vld [vmem:[%s15777_s18 + $0x98] sm:$0xff]  ;;  %s15561_s17 = scalar_lea.vmem %s21372_s28, 4096  ;;  %p15568_p0 = scmp.lt.s32.totalorder %s21372_s28, %s15566_s20 }
  0x25   : > { %v570_v46 = vsel %vm465_vm1, %v537_v38, 0.0  ;;  %v569_v49 = vadd.f32 %v568_v45, %v567_v44  ;;  %v572_v53 = vsel %vm465_vm1, %v538_v41, 0.0  ;;  %v491_v58 = vsel %vm465_vm1, %v15860_v47, 0.0  ;;  %p15562_p11 = scmp.ne.s32.totalorder %s21372_s28, %s15561_s17 }
  0x26   : > { %v474_v26 = vadd.f32 %v473_v17, %v472_v19  ;;  %v541_v59 = vmul.f32 %v15812_v18, %v15812_v18  ;;  %v574_v60 = vsel %vm465_vm1, %v539_v43, 0.0  ;;  %v493_v63 = vsel %vm465_vm1, %v15863_v50, 0.0 }
  0x27   : > { %v571_v55 = vadd.f32 %v570_v46, %v569_v49  ;;  %v542_v9 = vmul.f32 %v15815_v20, %v15815_v20  ;;  %v543_v14 = vmul.f32 %v15818_v21, %v15818_v21  ;;  %v544_v16 = vmul.f32 %v15821_v22, %v15821_v22  ;;  %v15922_v46 = vld [vmem:[%s15777_s18 + $0xa8] sm:$0xff]  ;;  %p15563_p12 = pnand %p15562_p11, %p15732_p5 }
  0x28   : > { %v476_v28 = vadd.f32 %v475_v23, %v474_v26  ;;  %v545_v17 = vmul.f32 %v15826_v24, %v15826_v24  ;;  %v576_v19 = vsel %vm465_vm1, %v540_v52, 0.0  ;;  %v546_v45 = vmul.f32 %v15829_v25, %v15829_v25 }
  0x29   : > { %v573_v10 = vadd.f32 %v572_v53, %v571_v55  ;;  %v582_v36 = vsel %vm465_vm1, %v543_v14, 0.0  ;;  %v584_v37 = vsel %vm465_vm1, %v544_v16, 0.0  ;;  %v548_v55 = vmul.f32 %v15860_v47, %v15860_v47  ;;  %v15940_v14 = vld [vmem:[%s15777_s18 + $0xb8] sm:$0xff]  ;;  %p15564_p13 = pneg %p15563_p12 }
  0x2a   : > { %v478_v34 = vadd.f32 %v477_v27, %v476_v28  ;;  %v495_v27 = vsel %vm465_vm1, %v15871_v56, 0.0  ;;  %v497_v28 = vsel %vm465_vm1, %v15874_v57, 0.0  ;;  %v586_v38 = vsel %vm465_vm1, %v545_v17, 0.0 }
  0x2b   : > { %v575_v26 = vadd.f32 %v574_v60, %v573_v10 }
  0x2c   : > { %v480_v35 = vadd.f32 %v479_v29, %v478_v34  ;;  %v499_v29 = vsel %vm465_vm1, %v15882_v61, 0.0 }
  0x2d   : > { %v577_v34 = vadd.f32 %v576_v19, %v575_v26  ;;  %v592_v26 = vsel %vm465_vm1, %v548_v55, 0.0 }
  0x2e   : > { %v482_v40 = vadd.f32 %v481_v30, %v480_v35  ;;  %v578_v30 = vsel %vm465_vm1, %v541_v59, 0.0  ;;  %v580_v35 = vsel %vm465_vm1, %v542_v9, 0.0  ;;  %v15932_v59 = vld [vmem:[%s15777_s18 + $0xb0] sm:$0xff]  ;;  %v549_v9 = vmul.f32 %v15863_v50, %v15863_v50 }
  0x2f   : > { %v579_v41 = vadd.f32 %v578_v30, %v577_v34  ;;  %v509_v19 = vsel %vm465_vm1, %v15932_v59, 0.0  ;;  %v511_v30 = vsel %vm465_vm1, %v15940_v14, 0.0 }
  0x30   : > { %v484_v42 = vadd.f32 %v483_v31, %v482_v40 }
  0x31   : > { %v581_v44 = vadd.f32 %v580_v35, %v579_v41 }
  0x32   : > { %v486_v48 = vadd.f32 %v485_v32, %v484_v42  ;;  %v501_v32 = vsel %vm465_vm1, %v15889_v11, 0.0  ;;  %v15917_v42 = vld [vmem:[%s15777_s18 + $0xa0] sm:$0xff] }
  0x33   : > { %v583_v49 = vadd.f32 %v582_v36, %v581_v44 }
  0x34   : > { %v488_v54 = vadd.f32 %v487_v33, %v486_v48  ;;  %v503_v33 = vsel %vm465_vm1, %v15892_v13, 0.0 }
  0x35   : > { %v585_v53 = vadd.f32 %v584_v37, %v583_v49  ;;  %v552_v37 = vmul.f32 %v15882_v61, %v15882_v61  ;;  %v15972_v49 = vld [vmem:[%s15777_s18 + $0xd8] sm:$0xff] }
  0x36   : > { %v490_v62 = vadd.f32 %v489_v51, %v488_v54  ;;  %v547_v51 = vmul.f32 %v15850_v39, %v15850_v39  ;;  %v505_v54 = vsel %vm465_vm1, %v15917_v42, 0.0 }
  0x37   : > { %v600_v55 = vsel %vm465_vm1, %v552_v37, 0.0 }
  0x38   : > { %v492_v23 = vadd.f32 %v491_v58, %v490_v62  ;;  %v588_v58 = vsel %vm465_vm1, %v546_v45, 0.0  ;;  %v587_v62 = vadd.f32 %v586_v38, %v585_v53  ;;  %v590_v10 = vsel %vm465_vm1, %v547_v51, 0.0 }
  0x39   : > { %v553_v45 = vmul.f32 %v15889_v11, %v15889_v11 }
  0x3a   : > { %v494_v31 = vadd.f32 %v493_v63, %v492_v23  ;;  %v507_v63 = vsel %vm465_vm1, %v15922_v46, 0.0  ;;  %v589_v17 = vadd.f32 %v588_v58, %v587_v62  ;;  %v550_v23 = vmul.f32 %v15871_v56, %v15871_v56  ;;  %v15980_v58 = vld [vmem:[%s15777_s18 + $0xe0] sm:$0xff] }
  0x3c   : > { %v496_v40 = vadd.f32 %v495_v27, %v494_v31  ;;  %v15948_v27 = vld [vmem:[%s15777_s18 + $0xc0] sm:$0xff]  ;;  %v551_v31 = vmul.f32 %v15874_v57, %v15874_v57  ;;  %v596_v38 = vsel %vm465_vm1, %v550_v23, 0.0  ;;  %v521_v23 = vsel %vm465_vm1, %v15980_v58, 0.0 }
  0x3d   : > { %v513_v36 = vsel %vm465_vm1, %v15948_v27, 0.0 }
  0x3e   : > { %v498_v43 = vadd.f32 %v497_v28, %v496_v40  ;;  %v15964_v40 = vld [vmem:[%s15777_s18 + $0xd0] sm:$0xff] }
  0x3f   : > { %v517_v53 = vsel %vm465_vm1, %v15964_v40, 0.0 }
  0x40   : > { %v500_v48 = vadd.f32 %v499_v29, %v498_v43  ;;  %v591_v29 = vadd.f32 %v590_v10, %v589_v17  ;;  %v602_v10 = vsel %vm465_vm1, %v553_v45, 0.0 }
  0x42   : > { %v502_v52 = vadd.f32 %v501_v32, %v500_v48  ;;  %v594_v32 = vsel %vm465_vm1, %v549_v9, 0.0  ;;  %v593_v35 = vadd.f32 %v592_v26, %v591_v29  ;;  %v598_v48 = vsel %vm465_vm1, %v551_v31, 0.0  ;;  %v15996_v29 = vld [vmem:[%s15777_s18 + $0xf0] sm:$0xff] }
  0x43   : > { %v555_v9 = vmul.f32 %v15917_v42, %v15917_v42  ;;  %v556_v26 = vmul.f32 %v15922_v46, %v15922_v46 }
  0x44   : > { %v504_v60 = vadd.f32 %v503_v33, %v502_v52  ;;  %v15956_v33 = vld [vmem:[%s15777_s18 + $0xc8] sm:$0xff]  ;;  %v595_v43 = vadd.f32 %v594_v32, %v593_v35 }
  0x45   : > { %v515_v44 = vsel %vm465_vm1, %v15956_v33, 0.0  ;;  %v606_v35 = vsel %vm465_vm1, %v555_v9, 0.0 }
  0x46   : > { %v506_v16 = vadd.f32 %v505_v54, %v504_v60  ;;  %v597_v52 = vadd.f32 %v596_v38, %v595_v43  ;;  %v554_v54 = vmul.f32 %v15892_v13, %v15892_v13  ;;  %v558_v43 = vmul.f32 %v15940_v14, %v15940_v14 }
  0x48   : > { %v508_v28 = vadd.f32 %v507_v63, %v506_v16  ;;  %v599_v62 = vadd.f32 %v598_v48, %v597_v52  ;;  %v519_v63 = vsel %vm465_vm1, %v15972_v49, 0.0  ;;  %v15988_v16 = vld [vmem:[%s15777_s18 + $0xe8] sm:$0xff]  ;;  %v559_v52 = vmul.f32 %v15948_v27, %v15948_v27 }
  0x49   : > { %v523_v32 = vsel %vm465_vm1, %v15988_v16, 0.0 }
  0x4a   : > { %v510_v34 = vadd.f32 %v509_v19, %v508_v28  ;;  %v601_v19 = vadd.f32 %v600_v55, %v599_v62  ;;  %v604_v28 = vsel %vm465_vm1, %v554_v54, 0.0  ;;  %v612_v62 = vsel %vm465_vm1, %v558_v43, 0.0 }
  0x4c   : > { %v512_v41 = vadd.f32 %v511_v30, %v510_v34  ;;  %v603_v31 = vadd.f32 %v602_v10, %v601_v19  ;;  %v557_v34 = vmul.f32 %v15932_v59, %v15932_v59  ;;  %v561_v10 = vmul.f32 %v15964_v40, %v15964_v40 }
  0x4e   : > { %v514_v51 = vadd.f32 %v513_v36, %v512_v41  ;;  %v16004_v36 = vld [vmem:[%s15777_s18 + $0xf8] sm:$0xff]  ;;  %v605_v38 = vadd.f32 %v604_v28, %v603_v31  ;;  %v525_v41 = vsel %vm465_vm1, %v15996_v29, 0.0 }
  0x50   : > { %v516_v60 = vadd.f32 %v515_v44, %v514_v51  ;;  %v608_v44 = vsel %vm465_vm1, %v556_v26, 0.0  ;;  %v607_v48 = vadd.f32 %v606_v35, %v605_v38  ;;  %v527_v51 = vsel %vm465_vm1, %v16004_v36, 0.0 }
  0x51   : > { %v562_v26 = vmul.f32 %v15972_v49, %v15972_v49  ;;  %v564_v38 = vmul.f32 %v15988_v16, %v15988_v16 }
  0x52   : > { %v518_v17 = vadd.f32 %v517_v53, %v516_v60  ;;  %v610_v53 = vsel %vm465_vm1, %v557_v34, 0.0  ;;  %v609_v55 = vadd.f32 %v608_v44, %v607_v48  ;;  %v560_v60 = vmul.f32 %v15956_v33, %v15956_v33 }
  0x53   : > { %v618_v34 = vsel %vm465_vm1, %v561_v10, 0.0 }
  0x54   : > { %v520_v30 = vadd.f32 %v519_v63, %v518_v17  ;;  %v611_v9 = vadd.f32 %v610_v53, %v609_v55  ;;  %v614_v17 = vsel %vm465_vm1, %v559_v52, 0.0  ;;  %v616_v28 = vsel %vm465_vm1, %v560_v60, 0.0 }
  0x55   : > { %v566_v53 = vmul.f32 %v16004_v36, %v16004_v36 }
  0x56   : > { %v522_v37 = vadd.f32 %v521_v23, %v520_v30  ;;  %v613_v23 = vadd.f32 %v612_v62, %v611_v9 }
  0x57   : > { %v628_v9 = vsel %vm465_vm1, %v566_v53, 0.0 }
  0x58   : > { %v524_v45 = vadd.f32 %v523_v32, %v522_v37  ;;  %v615_v31 = vadd.f32 %v614_v17, %v613_v23  ;;  %v563_v32 = vmul.f32 %v15980_v58, %v15980_v58 }
  0x5a   : > { %v526_v54 = vadd.f32 %v525_v41, %v524_v45  ;;  %v617_v37 = vadd.f32 %v616_v28, %v615_v31  ;;  %v620_v41 = vsel %vm465_vm1, %v562_v26, 0.0  ;;  %v565_v45 = vmul.f32 %v15996_v29, %v15996_v29 }
  0x5b   : > { %v622_v48 = vsel %vm465_vm1, %v563_v32, 0.0  ;;  %v15625_v31 = vmov 0   ;;  %v16070_v32 = vld [vmem:[%s21425_s4 + $0x28] sm:$0xff]  }
  0x5c   : > { %v528_v63 = vadd.f32 %v527_v51, %v526_v54  ;;  %v619_v44 = vadd.f32 %v618_v34, %v617_v37  ;;  %v624_v54 = vsel %vm465_vm1, %v564_v38, 0.0  ;;  %v626_v62 = vsel %vm465_vm1, %v565_v45, 0.0  ;;  %1294 = vst.msk [vmem:[#allocation2 + $0x4] sm:$0xf] %vm1255_vm2, %v15625_v31  ;;  %1295 = vst.msk [vmem:[#allocation2 + $0x8] sm:$0xf] %vm1255_vm2, %v15625_v31 }
  0x5d   : > { %1306 = vst.msk [vmem:[#allocation2 + $0x114] sm:$0xf] %vm1255_vm2, %v15625_v31  ;;  %1307 = vst.msk [vmem:[#allocation2 + $0x118] sm:$0xf] %vm1255_vm2, %v15625_v31  ;;  %v21479_v34 = vmov 0 }
  0x5e   : > { %v529_v19 = vrot.slane %v528_v63, 4  ;;  %v621_v52 = vadd.f32 %v620_v41, %v619_v44  ;;  %7594 = vst.msk [vmem:[#allocation3 + $0x4] sm:$0xf] %vm1255_vm2, %v15625_v31  ;;  %7595 = vst.msk [vmem:[#allocation3 + $0x8] sm:$0xf] %vm1255_vm2, %v15625_v31  ;;  %v21480_v34 = vsel %vm16072_vm5, 4294967295, %v21479_v34 }
  0x5f   : > { %7603 = vst.msk [vmem:[#allocation3 + $0x114] sm:$0xf] %vm1255_vm2, %v15625_v31  ;;  %7604 = vst.msk [vmem:[#allocation3 + $0x118] sm:$0xf] %vm1255_vm2, %v15625_v31  ;;  %v1311_v38 = vld [vmem:[#allocation2 + $0x10] sm:$0x8] }
  0x60   : > { %v530_v30 = vadd.f32 %v529_v19, %v528_v63  ;;  %v623_v60 = vadd.f32 %v622_v48, %v621_v52  ;;  %21481 = vst [vmem:[#allocation7_spill] sm:$0xff] %v21480_v34  ;;  %v1312_v45 = vsel %vm16072_vm5, 0, %v1311_v38  ;;  %v1314_v48 = vld [vmem:[#allocation2 + $0x20] sm:$0x8] }
  0x61   : > { %1313 = vst [vmem:[#allocation2 + $0x10] sm:$0x8] %v1312_v45  ;;  %v786_v45 = vlaneseq }
  0x62   : > { %v531_v35 = vrot.slane %v530_v30, 2  ;;  %v625_v63 = vadd.f32 %v624_v54, %v623_v60 }
  0x63   : > { %v1408_v41 = vld [vmem:[#allocation2 + $0x4] sm:$0xf] }
  0x64   : > { %v532_v43 = vadd.f32 %v531_v35, %v530_v30  ;;  %v627_v10 = vadd.f32 %v626_v62, %v625_v63  ;;  %v1291_v35 = vld [vmem:[#allocation2] sm:$0x8]  ;;  %v1463_v52 = vshrl.u32 %v1408_v41, 16  ;;  %v1466_v62 = vshll.u32 %v1408_v41, 16 }
  0x65   : > { %v1292_v37 = vsel %vm16072_vm5, 0, %v1291_v35 }
  0x66   : > { %v533_v51 = vrot.slane %v532_v43, 1  ;;  %v629_v17 = vadd.f32 %v628_v9, %v627_v10  ;;  %1293 = vst [vmem:[#allocation2] sm:$0x8] %v1292_v37  ;;  %v1465_v60 = vrot.slane %v1463_v52, 7  ;;  %v15114_v9 = vld [vmem:[%s21425_s4] sm:$0xff]  }
  0x67   : > { %v1323_v37 = vld [vmem:[#allocation2 + $0x50] sm:$0x8] }
  0x68   : > { %v534_v55 = vadd.f32 %v533_v51, %v532_v43  ;;  %v630_v19 = vrot.slane %v629_v17, 4  ;;  %v1409_v43 = vld [vmem:[#allocation2 + $0x8] sm:$0xf]  ;;  %v1315_v51 = vsel %vm16072_vm5, 0, %v1314_v48  ;;  %v1324_v38 = vsel %vm16072_vm5, 0, %v1323_v37 }
  0x69   : > { %v13225_v44 = vcombine.low %v1408_v41, %v1409_v43  ;;  %1316 = vst [vmem:[#allocation2 + $0x20] sm:$0x8] %v1315_v51  ;;  %v1472_v53 = vshrl.u32 %v1409_v43, 16  ;;  %v1475_v10 = vshll.u32 %v1409_v43, 16  ;;  %1325 = vst [vmem:[#allocation2 + $0x50] sm:$0x8] %v1324_v38 }
  0x6a   : > { %14380 = vmatmul.mubr.msk.f32.vlgmr.msra.gmra.mxu0 %vm465_vm1, %v534_v55  ;;  %v1329_v51 = vld [vmem:[#allocation2 + $0x70] sm:$0x8] }
  0x6b   : > { %14383 = vmatpush3.msra.mxu0 %v15745_v0  ;;  %14390 = vmatprep.mubr.msk.f32.mxu0 %vm15624_vm0, %v21434_v1  ;;  %v631_v0 = vadd.f32 %v630_v19, %v629_v17  ;;  %v1474_v63 = vrot.slane %v1472_v53, 7  ;;  %v21482_v17 = vmov 0  ;;  %v1330_v52 = vsel %vm16072_vm5, 0, %v1329_v51 }
  0x6c   : > { %14384 = vmatprep.subr.mxu0 %v21434_v1  ;;  %v21483_v17 = vsel %vm16088_vm8, 4294967295, %v21482_v17  ;;  %v787_v53 = vshrl.u32 %v786_v45, 7  ;;  %1331 = vst [vmem:[#allocation2 + $0x70] sm:$0x8] %v1330_v52 }
  0x6d   : > { %14385 = vmatpush3.msra.mxu0 %v15752_v2  ;;  %v632_v23 = vrot.slane %v631_v0, 2  ;;  %v15107_v2 = vld [vmem:[%s21425_s4 + $0x18] sm:$0xff]   ;;  %v1407_v54 = vld [vmem:[#allocation2] sm:$0x8]  ;;  %21484 = vst [vmem:[#allocation8_spill] sm:$0xff] %v21483_v17 }
  0x6e   : > { %14386 = vmatprep.subr.mxu0 %v21434_v1  ;;  %v1458_v55 = vshrl.u32 %v1407_v54, 16  ;;  %v1332_v54 = vld [vmem:[#allocation2 + $0x80] sm:$0x8] }
  0x6f   : > { %14387 = vmatpush3.msra.mxu0 %v15760_v3  ;;  %v633_v26 = vadd.f32 %v632_v23, %v631_v0  ;;  %v15108_v3 = vld [vmem:[%s21425_s4 + $0x10] sm:$0xff]   ;;  %v1468_v0 = vor.u32 %v1466_v62, %v1465_v60  ;;  %v1470_v23 = vrot.slane %v1465_v60, 4  ;;  %v16109_v62 = vsub.s32 0, %v787_v53 }
  0x70   : > { %14388 = vmatprep.subr.mxu0 %v21434_v1  ;;  %v13209_v19 = vrot.slane %v1458_v55, 11  ;;  %v1333_v55 = vsel %vm16072_vm5, 0, %v1332_v54 }
  0x71   : > { %14389 = vmatpush3.msra.mxu0 %v15769_v4  ;;  %v634_v28 = vrot.slane %v633_v26, 1  ;;  %v15110_v4 = vld [vmem:[%s21425_s4 + $0x8] sm:$0xff]   ;;  %1334 = vst [vmem:[#allocation2 + $0x80] sm:$0x8] %v1333_v55  ;;  %21485 = vst [vmem:[#allocation9_spill] sm:$0xff] %v16109_v62 }
  0x72   : > { %14393 = vmatprep.subr.bf16.mxu0 %v15107_v2  ;;  %14429 = vmatprep.subr.bf16.mxu1 %v15110_v4 }
  0x73   : > { %v635_v30 = vadd.f32 %v634_v28, %v633_v26  ;;  %14430 = vmatpush3.bf16.msra.mxu1 %v15110_v4  ;;  %v1477_v26 = vor.u32 %v1475_v10, %v1474_v63  ;;  %v1469_v28 = vsel %vm16088_vm8, %v13209_v19, %v1468_v0  ;;  %v1320_v4 = vld [vmem:[#allocation2 + $0x40] sm:$0x8] }
  0x74   : > { %14431 = vmatprep.subr.bf16.mxu1 %v15114_v9  ;;  %v1321_v35 = vsel %vm16072_vm5, 0, %v1320_v4  ;;  %v1413_v19 = vld [vmem:[#allocation2 + $0x20] sm:$0x8] }
  0x75   : > { %14391 = vmatmul.mubr.msk.f32.vlgmr.msra.gmra.mxu0 %vm465_vm1, %v635_v30  ;;  %v1478_v30 = vsel %vm16088_vm8, %v1470_v23, %v1477_v26  ;;  %1322 = vst [vmem:[#allocation2 + $0x40] sm:$0x8] %v1321_v35  ;;  %v1335_v35 = vld [vmem:[#allocation2 + $0x90] sm:$0x8] }
  0x76   : > { %14394 = vmatpush3.bf16.msra.mxu0 %v15107_v2  ;;  %14397 = vmatprep.mubr.msk.bf16.mxu0 %vm465_vm1, %v13225_v44  ;;  %v13259_v31 = vcombine.low %v1469_v28, %v1478_v30  ;;  %v1317_v2 = vld [vmem:[#allocation2 + $0x30] sm:$0x8]  ;;  %v1326_v44 = vld [vmem:[#allocation2 + $0x60] sm:$0x8] }
  0x77   : > { %14395 = vmatprep.subr.bf16.mxu0 %v15108_v3  ;;  %14432 = vmatpush3.bf16.msra.mxu1 %v15114_v9  ;;  %v1327_v48 = vsel %vm16072_vm5, 0, %v1326_v44  ;;  %v1410_v9 = vld [vmem:[#allocation2 + $0x10] sm:$0x8] }
  0x78   : > { %14433 = vmatprep.mubr.msk.bf16.mxu1 %vm465_vm1, %v13259_v31  ;;  %1328 = vst [vmem:[#allocation2 + $0x60] sm:$0x8] %v1327_v48  ;;  %v1480_v28 = vshrl.u32 %v1410_v9, 16  ;;  %v1502_v31 = vshrl.u32 %v1413_v19, 16  ;;  %v1428_v44 = vld [vmem:[#allocation2 + $0x70] sm:$0x8] }
  0x7a   : > { %14396 = vmatpush3.bf16.msra.mxu0 %v15108_v3  ;;  %v1318_v3 = vsel %vm16072_vm5, 0, %v1317_v2  ;;  %v16114_v4 = vrot.slane %v1480_v28, 11  ;;  %v16118_v37 = vrot.slane %v1502_v31, 11  ;;  %v1336_v31 = vsel %vm16072_vm5, 0, %v1335_v35 }
  0x7b   : > { %14465 = vmatprep.subr.bf16.mxu0 %v16070_v32  ;;  %1319 = vst [vmem:[#allocation2 + $0x30] sm:$0x8] %v1318_v3  ;;  %1337 = vst [vmem:[#allocation2 + $0x90] sm:$0x8] %v1336_v31  ;;  %v1341_v31 = vld [vmem:[#allocation2 + $0xb0] sm:$0x8] }
  0x7c   : > { %v1419_v3 = vld [vmem:[#allocation2 + $0x40] sm:$0x8] }
  0x7f   : > { %v1425_v1 = vld [vmem:[#allocation2 + $0x60] sm:$0x8] }
  0x80   : > { %v1590_v9 = vshrl.u32 %v1425_v1, 16  ;;  %v1347_v1 = vld [vmem:[#allocation2 + $0xd0] sm:$0x8] }
  0x82   : > { %v1416_v0 = vld [vmem:[#allocation2 + $0x30] sm:$0x8] }
  0x83   : > { %v1524_v2 = vshrl.u32 %v1416_v0, 16  ;;  %v1338_v0 = vld [vmem:[#allocation2 + $0xa0] sm:$0x8] }
  0x84   : > { %v1339_v28 = vsel %vm16072_vm5, 0, %v1338_v0  ;;  %v1342_v0 = vsel %vm16072_vm5, 0, %v1341_v31 }
  0x85   : > { %v16120_v38 = vrot.slane %v1524_v2, 11  ;;  %1340 = vst [vmem:[#allocation2 + $0xa0] sm:$0x8] %v1339_v28  ;;  %v1350_v2 = vld [vmem:[#allocation2 + $0xe0] sm:$0x8] }
  0x86   : > { %1343 = vst [vmem:[#allocation2 + $0xb0] sm:$0x8] %v1342_v0  ;;  %v1351_v31 = vsel %vm16072_vm5, 0, %v1350_v2  ;;  %v16219_v2 = vld [vmem:[%s21493_s1] ss:$0 sm:$0xff] }
  0x87   : > { %1352 = vst [vmem:[#allocation2 + $0xe0] sm:$0x8] %v1351_v31 }
 0x12a   : > { %v705_v41 = vpop.f32.mrf.mxu0 }
 0x12b   : > { %v782_v60 = vmul.f32 %v705_v41, %v705_v41  ;;  %v16112_v30 = vrot.slane %v705_v41, %v16109_v62 }
 0x12c   : > { %v14381_v43 = vpop.f32.mrf.mxu0 }
 0x12d   : > { %v1546_v43 = vshrl.u32 %v1419_v3, 16  ;;  %v809_v41 = vsub.f32 %v15892_v13, %v16112_v30  ;;  %v810_v45 = vsub.f32 %v15917_v42, %v16112_v30  ;;  %v811_v48 = vsub.f32 %v15922_v46, %v16112_v30 }
 0x12e   : > { %v812_v51 = vsub.f32 %v15932_v59, %v16112_v30  ;;  %v813_v52 = vsub.f32 %v15940_v14, %v16112_v30  ;;  %v814_v53 = vsub.f32 %v15948_v27, %v16112_v30  ;;  %v815_v54 = vsub.f32 %v15956_v33, %v16112_v30 }
 0x12f   : > { %v816_v55 = vsub.f32 %v15964_v40, %v16112_v30  ;;  %v16172_v19 = vrot.slane %v1546_v43, 11  ;;  %v1348_v43 = vsel %vm16072_vm5, 0, %v1347_v1  ;;  %v21488_v1 = vmov 0 }
 0x130   : > { %1349 = vst [vmem:[#allocation2 + $0xd0] sm:$0x8] %v1348_v43  ;;  %v21489_v1 = vsel %vm16204_vm10, 4294967295, %v21488_v1  ;;  %v21494_v14 = vsub.f32 %v15972_v49, %v16112_v30  ;;  %v21495_v27 = vsub.f32 %v15980_v58, %v16112_v30  ;;  %v21496_v33 = vsub.f32 %v15988_v16, %v16112_v30  ;;  %v16276_v49 = vld [vmem:[%s21423_s2] ss:$0 sm:$0xff] }
 0x131   : > { %21486 = vst [vmem:[#allocation10_spill] sm:$0xff] %v16172_v19  ;;  %21490 = vst [vmem:[#allocation12_spill] sm:$0xff] %v21489_v1  ;;  %v21497_v40 = vsub.f32 %v15996_v29, %v16112_v30  ;;  %v21498_v58 = vsub.f32 %v16004_v36, %v16112_v30 }
 0x135   : > { %v778_v63 = vpop.f32.mrf.mxu0 }
 0x136   : > { %v783_v10 = vsub.f32 %v778_v63, %v782_v60  ;;  %v1612_v63 = vshrl.u32 %v1428_v44, 16  ;;  %v1359_v60 = vld [vmem:[#allocation2 + $0x1c] sm:$0x1] }
 0x137   : > { %v14392_v23 = vpop.f32.mrf.mxu0 }
 0x138   : > { %v784_v26 = vadd.f32 1e-05, %v783_v10  ;;  %v1344_v23 = vld [vmem:[#allocation2 + $0xc0] sm:$0x8] }
 0x139   : > { %v1345_v35 = vsel %vm16072_vm5, 0, %v1344_v23  ;;  %v1353_v23 = vld [vmem:[#allocation2 + $0xf0] sm:$0x8] }
 0x13a   : > { %15239 = vrsqrt.f32 %v784_v26  ;;  %v1422_v26 = vld [vmem:[#allocation2 + $0x50] sm:$0x8]  ;;  %1346 = vst [vmem:[#allocation2 + $0xc0] sm:$0x8] %v1345_v35  ;;  %v1354_v0 = vsel %vm16072_vm5, 0, %v1353_v23  ;;  %v1360_v35 = vsel %vm16204_vm10, 0, %v1359_v60 }
 0x13b   : > { %v1568_v10 = vshrl.u32 %v1422_v26, 16  ;;  %1355 = vst [vmem:[#allocation2 + $0xf0] sm:$0x8] %v1354_v0  ;;  %1361 = vst [vmem:[#allocation2 + $0x1c] sm:$0x1] %v1360_v35 }
 0x13d   : > { %v16197_v26 = vrot.slane %v1568_v10, 11  ;;  %v16210_v10 = vrot.slane %v1612_v63, 11 }
 0x13f   : > { %21487 = vst [vmem:[#allocation11_spill] sm:$0xff] %v16197_v26  ;;  %21492 = vst [vmem:[#allocation14_spill] sm:$0xff] %v16210_v10 }
 0x147   : > { %v15240_v44 = vpop.eup %15239 }
 0x148   : > { %v16195_v3 = vrot.slane %v15240_v44, %v16109_v62  ;;  %v16208_v44 = vrot.slane %v1590_v9, 11 }
 0x14a   : > { %21491 = vst [vmem:[#allocation13_spill] sm:$0xff] %v16208_v44  ;;  %v16225_v9 = vmul.f32 %v16195_v3, %v809_v41  ;;  %v16231_v63 = vmul.f32 %v16195_v3, %v810_v45  ;;  %v847_v60 = vmul.f32 %v16195_v3, %v811_v48  ;;  %v848_v43 = vmul.f32 %v16195_v3, %v812_v51 }
 0x14b   : > { %v849_v13 = vmul.f32 %v16195_v3, %v813_v52  ;;  %v850_v42 = vmul.f32 %v16195_v3, %v814_v53  ;;  %v851_v46 = vmul.f32 %v16195_v3, %v815_v54  ;;  %v852_v59 = vmul.f32 %v16195_v3, %v816_v55 }
 0x14c   : > { %v853_v41 = vmul.f32 %v16195_v3, %v21494_v14  ;;  %v854_v45 = vmul.f32 %v16195_v3, %v21495_v27  ;;  %v855_v48 = vmul.f32 %v16195_v3, %v21496_v33  ;;  %v856_v51 = vmul.f32 %v16195_v3, %v21497_v40 }
 0x14d   : > { %v857_v52 = vmul.f32 %v16195_v3, %v21498_v58  ;;  %v16283_v53 = vmul.f32 %v16219_v2, %v847_v60  ;;  %v16286_v16 = vmul.f32 %v16219_v2, %v848_v43  ;;  %v887_v29 = vmul.f32 %v16219_v2, %v849_v13 }
 0x14e   : > { %v888_v54 = vmul.f32 %v16219_v2, %v850_v42  ;;  %v889_v55 = vmul.f32 %v16219_v2, %v851_v46  ;;  %v890_v31 = vmul.f32 %v16219_v2, %v852_v59  ;;  %v891_v23 = vmul.f32 %v16219_v2, %v853_v41 }
 0x14f   : > { %v892_v36 = vmul.f32 %v16219_v2, %v854_v45  ;;  %v893_v0 = vmul.f32 %v16219_v2, %v855_v48  ;;  %v894_v35 = vmul.f32 %v16219_v2, %v856_v51  ;;  %v895_v60 = vmul.f32 %v16219_v2, %v857_v52 }
 0x150   : > { %v16298_v43 = vadd.f32 %v16276_v49, %v887_v29  ;;  %v16301_v13 = vadd.f32 %v16276_v49, %v888_v54  ;;  %v16304_v42 = vadd.f32 %v16276_v49, %v889_v55  ;;  %v16307_v46 = vadd.f32 %v16276_v49, %v890_v31 }
 0x151   : > { %v16310_v59 = vadd.f32 %v16276_v49, %v891_v23  ;;  %v16313_v14 = vadd.f32 %v16276_v49, %v892_v36  ;;  %v16316_v41 = vadd.f32 %v16276_v49, %v893_v0  ;;  %v16319_v27 = vadd.f32 %v16276_v49, %v894_v35 }
 0x152   : > { %v16322_v45 = vadd.f32 %v16276_v49, %v895_v60  ;;  %v957_v33 = vsub.f32 0.0, %v16298_v43  ;;  %v958_v48 = vsub.f32 0.0, %v16301_v13  ;;  %v959_v40 = vsub.f32 0.0, %v16304_v42 }
 0x153   : > { %v960_v51 = vsub.f32 0.0, %v16307_v46  ;;  %v961_v58 = vsub.f32 0.0, %v16310_v59  ;;  %v962_v52 = vsub.f32 0.0, %v16313_v14  ;;  %v963_v29 = vsub.f32 0.0, %v16316_v41 }
 0x154   : > { %v964_v54 = vsub.f32 0.0, %v16319_v27  ;;  %v965_v55 = vsub.f32 0.0, %v16322_v45  ;;  %v1012_v31 = vmul.f32 1.442695, %v957_v33  ;;  %v1014_v23 = vmul.f32 1.442695, %v958_v48 }
 0x155   : > { %v1016_v36 = vmul.f32 1.442695, %v959_v40  ;;  %v1018_v0 = vmul.f32 1.442695, %v960_v51  ;;  %v1020_v35 = vmul.f32 1.442695, %v961_v58  ;;  %v21499_v60 = vsub.f32 %v15781_v5, %v16112_v30 }
 0x156   : > { %15241 = vpow2.f32 %v1012_v31  ;;  %v1022_v62 = vmul.f32 1.442695, %v962_v52  ;;  %v1024_v34 = vmul.f32 1.442695, %v963_v29  ;;  %v1026_v1 = vmul.f32 1.442695, %v964_v54 }
 0x157   : > { %v826_v28 = vmul.f32 %v16195_v3, %v21499_v60  ;;  %15243 = vpow2.f32 %v1014_v23  ;;  %v1028_v10 = vmul.f32 1.442695, %v965_v55  ;;  %v21500_v44 = vsub.f32 %v15784_v6, %v16112_v30 }
 0x158   : > { %15245 = vpow2.f32 %v1016_v36  ;;  %v21501_v40 = vsub.f32 %v15787_v7, %v16112_v30  ;;  %v21502_v51 = vsub.f32 %v15791_v8, %v16112_v30  ;;  %v21503_v52 = vsub.f32 %v15801_v12, %v16112_v30 }
 0x159   : > { %v827_v33 = vmul.f32 %v16195_v3, %v21500_v44  ;;  %v864_v48 = vmul.f32 %v16219_v2, %v826_v28  ;;  %15247 = vpow2.f32 %v1018_v0  ;;  %v21504_v7 = vsub.f32 %v15807_v15, %v16112_v30 }
 0x15a   : > { %v828_v5 = vmul.f32 %v16195_v3, %v21501_v40  ;;  %v829_v58 = vmul.f32 %v16195_v3, %v21502_v51  ;;  %v830_v6 = vmul.f32 %v16195_v3, %v21503_v52  ;;  %15249 = vpow2.f32 %v1020_v35  ;;  %v16389_v40 = vld [vmem:[%s21425_s4 + $0x38] sm:$0xff]  }
 0x15b   : > { %v865_v44 = vmul.f32 %v16219_v2, %v827_v33  ;;  %v16356_v28 = vadd.f32 %v16276_v49, %v864_v48  ;;  %v831_v29 = vmul.f32 %v16195_v3, %v21504_v7  ;;  %15251 = vpow2.f32 %v1022_v62  ;;  %14501 = vmatprep.subr.bf16.mxu1 %v16389_v40 }
 0x15c   : > { %v866_v8 = vmul.f32 %v16219_v2, %v828_v5  ;;  %v867_v54 = vmul.f32 %v16219_v2, %v829_v58  ;;  %v868_v12 = vmul.f32 %v16219_v2, %v830_v6  ;;  %15253 = vpow2.f32 %v1024_v34  ;;  %v16396_v58 = vld [vmem:[#allocation2 + $0x80] sm:$0x8] }
 0x15d   : > { %v16366_v55 = vadd.f32 %v16276_v49, %v865_v44  ;;  %v934_v31 = vsub.f32 0.0, %v16356_v28  ;;  %v869_v23 = vmul.f32 %v16219_v2, %v831_v29  ;;  %15255 = vpow2.f32 %v1026_v1 }
 0x15e   : > { %v16371_v15 = vadd.f32 %v16276_v49, %v866_v8  ;;  %v16374_v36 = vadd.f32 %v16276_v49, %v867_v54  ;;  %v16377_v0 = vadd.f32 %v16276_v49, %v868_v12  ;;  %15257 = vpow2.f32 %v1028_v10 }
 0x15f   : > { %v935_v62 = vsub.f32 0.0, %v16366_v55  ;;  %v966_v35 = vmul.f32 1.442695, %v934_v31  ;;  %v16381_v60 = vadd.f32 %v16276_v49, %v869_v23  ;;  %v21505_v51 = vsub.f32 %v15812_v18, %v16112_v30 }
 0x160   : > { %v936_v33 = vsub.f32 0.0, %v16371_v15  ;;  %v937_v34 = vsub.f32 0.0, %v16374_v36  ;;  %v938_v48 = vsub.f32 0.0, %v16377_v0  ;;  %v21506_v7 = vsub.f32 %v15815_v20, %v16112_v30 }
 0x161   : > { %15259 = vpow2.f32 %v966_v35  ;;  %v968_v1 = vmul.f32 1.442695, %v935_v62  ;;  %v939_v5 = vsub.f32 0.0, %v16381_v60  ;;  %v832_v10 = vmul.f32 %v16195_v3, %v21505_v51 }
 0x162   : > { %v970_v52 = vmul.f32 1.442695, %v936_v33  ;;  %v972_v6 = vmul.f32 1.442695, %v937_v34  ;;  %v974_v44 = vmul.f32 1.442695, %v938_v48  ;;  %v833_v29 = vmul.f32 %v16195_v3, %v21506_v7 }
 0x163   : > { %15261 = vpow2.f32 %v968_v1  ;;  %v976_v8 = vmul.f32 1.442695, %v939_v5  ;;  %v870_v54 = vmul.f32 %v16219_v2, %v832_v10  ;;  %v21507_v18 = vsub.f32 %v15818_v21, %v16112_v30  ;;  %v15242_v35 = vpop.eup %15241 }
 0x164   : > { %15263 = vpow2.f32 %v970_v52  ;;  %v871_v31 = vmul.f32 %v16219_v2, %v833_v29  ;;  %v21508_v23 = vsub.f32 %v15821_v22, %v16112_v30  ;;  %v21509_v21 = vsub.f32 %v15826_v24, %v16112_v30  ;;  %v15244_v1 = vpop.eup %15243 }
 0x165   : > { %v834_v12 = vmul.f32 %v16195_v3, %v21507_v18  ;;  %15265 = vpow2.f32 %v972_v6  ;;  %v16415_v33 = vadd.f32 %v16276_v49, %v870_v54  ;;  %v1053_v5 = vadd.f32 1.0, %v15242_v35  ;;  %v15246_v10 = vpop.eup %15245 }
 0x166   : > { %v835_v20 = vmul.f32 %v16195_v3, %v21508_v23  ;;  %v836_v48 = vmul.f32 %v16195_v3, %v21509_v21  ;;  %15267 = vpow2.f32 %v974_v44  ;;  %v16423_v22 = vadd.f32 %v16276_v49, %v871_v31  ;;  %v15248_v29 = vpop.eup %15247 }
 0x167   : > { %v872_v34 = vmul.f32 %v16219_v2, %v834_v12  ;;  %15269 = vpow2.f32 %v976_v8  ;;  %v940_v52 = vsub.f32 0.0, %v16415_v33  ;;  %v21510_v24 = vsub.f32 %v15829_v25, %v16112_v30  ;;  %v15250_v8 = vpop.eup %15249 }
 0x168   : > { %v873_v51 = vmul.f32 %v16219_v2, %v835_v20  ;;  %v16434_v54 = vadd.f32 1.0, %v15244_v1  ;;  %v1055_v44 = vadd.f32 1.0, %v15246_v10  ;;  %v941_v18 = vsub.f32 0.0, %v16423_v22  ;;  %v15252_v35 = vpop.eup %15251 }
 0x169   : > { %v16428_v6 = vadd.f32 %v16276_v49, %v872_v34  ;;  %v837_v7 = vmul.f32 %v16195_v3, %v21510_v24  ;;  %v1056_v31 = vadd.f32 1.0, %v15248_v29  ;;  %15271 = vrcp.f32 %v1053_v5  ;;  %v15254_v1 = vpop.eup %15253 }
 0x16a   : > { %v16438_v12 = vadd.f32 %v16276_v49, %v873_v51  ;;  %v978_v23 = vmul.f32 1.442695, %v940_v52  ;;  %v1057_v34 = vadd.f32 1.0, %v15250_v8  ;;  %15273 = vrcp.f32 %v1055_v44  ;;  %v15256_v62 = vpop.eup %15255 }
 0x16b   : > { %v942_v20 = vsub.f32 0.0, %v16428_v6  ;;  %v16441_v25 = vmul.f32 1.442695, %v941_v18  ;;  %v1058_v10 = vadd.f32 1.0, %v15252_v35  ;;  %15275 = vrcp.f32 %v1056_v31  ;;  %v15258_v8 = vpop.eup %15257 }
 0x16c   : > { %v943_v21 = vsub.f32 0.0, %v16438_v12  ;;  %v874_v51 = vmul.f32 %v16219_v2, %v836_v48  ;;  %v1059_v29 = vadd.f32 1.0, %v15254_v1  ;;  %15277 = vrcp.f32 %v1057_v34 }
 0x16d   : > { %v16444_v24 = vmul.f32 1.442695, %v942_v20  ;;  %v875_v52 = vmul.f32 %v16219_v2, %v837_v7  ;;  %v1060_v44 = vadd.f32 1.0, %v15256_v62  ;;  %15279 = vrcp.f32 %v1058_v10 }
 0x16e   : > { %v16447_v5 = vmul.f32 1.442695, %v943_v21  ;;  %v16451_v18 = vadd.f32 %v16276_v49, %v874_v51  ;;  %v21511_v31 = vsub.f32 %v15850_v39, %v16112_v30  ;;  %v15260_v35 = vpop.eup %15259  ;;  %v1061_v48 = vadd.f32 1.0, %v15258_v8 }
 0x16f   : > { %15281 = vrcp.f32 %v1059_v29  ;;  %v16458_v34 = vadd.f32 %v16276_v49, %v875_v52  ;;  %v21512_v7 = vsub.f32 %v15860_v47, %v16112_v30  ;;  %v1030_v21 = vadd.f32 1.0, %v15260_v35 }
 0x170   : > { %v838_v20 = vmul.f32 %v16195_v3, %v21511_v31  ;;  %15283 = vrcp.f32 %v1060_v44  ;;  %v944_v1 = vsub.f32 0.0, %v16451_v18  ;;  %v15262_v39 = vpop.eup %15261  ;;  %v21513_v52 = vsub.f32 %v15863_v50, %v16112_v30 }
 0x171   : > { %v839_v62 = vmul.f32 %v16195_v3, %v21512_v7  ;;  %15285 = vrcp.f32 %v1061_v48  ;;  %v945_v51 = vsub.f32 0.0, %v16458_v34  ;;  %v15264_v47 = vpop.eup %15263  ;;  %v1031_v31 = vadd.f32 1.0, %v15262_v39 }
 0x172   : > { %v876_v10 = vmul.f32 %v16219_v2, %v838_v20  ;;  %v840_v8 = vmul.f32 %v16195_v3, %v21513_v52  ;;  %15287 = vrcp.f32 %v1030_v21  ;;  %v986_v44 = vmul.f32 1.442695, %v944_v1  ;;  %v15266_v7 = vpop.eup %15265 }
 0x173   : > { %v877_v29 = vmul.f32 %v16219_v2, %v839_v62  ;;  %v1032_v20 = vadd.f32 1.0, %v15264_v47  ;;  %15289 = vpow2.f32 %v978_v23  ;;  %v988_v48 = vmul.f32 1.442695, %v945_v51  ;;  %v15268_v62 = vpop.eup %15267 }
 0x174   : > { %v16473_v35 = vadd.f32 %v16276_v49, %v876_v10  ;;  %15291 = vrcp.f32 %v1031_v31  ;;  %v1033_v19 = vadd.f32 1.0, %v15266_v7  ;;  %v21514_v39 = vsub.f32 %v15871_v56, %v16112_v30  ;;  %v15270_v1 = vpop.eup %15269 }
 0x175   : > { %v16476_v26 = vadd.f32 %v16276_v49, %v877_v29  ;;  %15293 = vrcp.f32 %v1032_v20  ;;  %v1034_v10 = vadd.f32 1.0, %v15268_v62  ;;  %v878_v23 = vmul.f32 %v16219_v2, %v840_v8 }
 0x176   : > { %v946_v50 = vsub.f32 0.0, %v16473_v35  ;;  %v841_v21 = vmul.f32 %v16195_v3, %v21514_v39  ;;  %15295 = vrcp.f32 %v1033_v19  ;;  %v1035_v51 = vadd.f32 1.0, %v15270_v1  ;;  %v16486_v31 = vpop.eup %15271 }
 0x177   : > { %v947_v52 = vsub.f32 0.0, %v16476_v26  ;;  %15297 = vrcp.f32 %v1034_v10  ;;  %v16489_v56 = vadd.f32 %v16276_v49, %v878_v23  ;;  %v21515_v20 = vsub.f32 %v15874_v57, %v16112_v30  ;;  %v15274_v39 = vpop.eup %15273 }
 0x178   : > { %v990_v29 = vmul.f32 1.442695, %v946_v50  ;;  %v879_v47 = vmul.f32 %v16219_v2, %v841_v21  ;;  %15299 = vrcp.f32 %v1035_v51  ;;  %v21516_v8 = vsub.f32 %v15882_v61, %v16112_v30  ;;  %v15276_v10 = vpop.eup %15275 }
 0x179   : > { %v992_v7 = vmul.f32 1.442695, %v947_v52  ;;  %v842_v62 = vmul.f32 %v16195_v3, %v21515_v20  ;;  %v21517_v21 = vsub.f32 %v15889_v11, %v16112_v30  ;;  %v1119_v57 = vmul.f32 %v15274_v39, %v16304_v42  ;;  %v15278_v51 = vpop.eup %15277 }
 0x17a   : > { %v16496_v19 = vadd.f32 %v16276_v49, %v879_v47  ;;  %v843_v50 = vmul.f32 %v16195_v3, %v21516_v8  ;;  %15301 = vpow2.f32 %v16441_v25  ;;  %v948_v52 = vsub.f32 0.0, %v16489_v56  ;;  %v15280_v30 = vpop.eup %15279 }
 0x17b   : > { %v844_v1 = vmul.f32 %v16195_v3, %v21517_v21  ;;  %v880_v23 = vmul.f32 %v16219_v2, %v842_v62  ;;  %v1120_v47 = vmul.f32 %v15276_v10, %v16307_v46  ;;  %15303 = vpow2.f32 %v16444_v24 }
 0x17c   : > { %v949_v61 = vsub.f32 0.0, %v16496_v19  ;;  %v881_v11 = vmul.f32 %v16219_v2, %v843_v50  ;;  %v1121_v3 = vmul.f32 %v15278_v51, %v16310_v59  ;;  %v13987_v20 = vpack.c.bf16 %v1119_v57, %v1119_v57  ;;  %v15282_v25 = vpop.eup %15281 }
 0x17d   : > { %15305 = vpow2.f32 %v16447_v5  ;;  %v994_v42 = vmul.f32 1.442695, %v948_v52  ;;  %v1122_v39 = vmul.f32 %v15280_v30, %v16313_v14  ;;  %v13988_v62 = vpack.c.bf16 %v1120_v47, %v1120_v47  ;;  %v15284_v46 = vpop.eup %15283 }
 0x17e   : > { %15307 = vpow2.f32 %v986_v44  ;;  %v996_v8 = vmul.f32 1.442695, %v949_v61  ;;  %v1123_v24 = vmul.f32 %v15282_v25, %v16316_v41  ;;  %v13989_v21 = vpack.c.bf16 %v1121_v3, %v1121_v3  ;;  %1281 = vst.msk [vmem:[#allocation2 + $0xd8] sm:$0xf] %vm1255_vm2, %v13987_v20  ;;  %v15286_v59 = vpop.eup %15285 }
 0x17f   : > { %15309 = vpow2.f32 %v988_v48  ;;  %v16520_v50 = vadd.f32 %v16276_v49, %v880_v23  ;;  %v1124_v5 = vmul.f32 %v15284_v46, %v16319_v27  ;;  %v13990_v10 = vpack.c.bf16 %v1122_v39, %v1122_v39  ;;  %1282 = vst.msk [vmem:[#allocation2 + $0xe4] sm:$0xf] %vm1255_vm2, %v13988_v62  ;;  %v15288_v44 = vpop.eup %15287 }
 0x180   : > { %15311 = vpow2.f32 %v990_v29  ;;  %v16525_v14 = vadd.f32 %v16276_v49, %v881_v11  ;;  %v1125_v41 = vmul.f32 %v15286_v59, %v16322_v45  ;;  %v13991_v57 = vpack.c.bf16 %v1123_v24, %v1123_v24  ;;  %1283 = vst.msk [vmem:[#allocation2 + $0xe8] sm:$0xf] %vm1255_vm2, %v13989_v21  ;;  %v15290_v52 = vpop.eup %15289 }
 0x181   : > { %15313 = vpow2.f32 %v992_v7  ;;  %v950_v48 = vsub.f32 0.0, %v16520_v50  ;;  %v13992_v23 = vpack.c.bf16 %v1124_v5, %v1124_v5  ;;  %1284 = vst.msk [vmem:[#allocation2 + $0xf4] sm:$0xf] %vm1255_vm2, %v13990_v10  ;;  %v1094_v27 = vmul.f32 %v15288_v44, %v16356_v28  ;;  %v15292_v51 = vpop.eup %15291 }
 0x182   : > { %15315 = vpow2.f32 %v994_v42  ;;  %v951_v29 = vsub.f32 0.0, %v16525_v14  ;;  %v13993_v47 = vpack.c.bf16 %v1125_v41, %v1125_v41  ;;  %1285 = vst.msk [vmem:[#allocation2 + $0xf8] sm:$0xf] %vm1255_vm2, %v13991_v57  ;;  %v1036_v45 = vadd.f32 1.0, %v15290_v52  ;;  %v15294_v11 = vpop.eup %15293  ;;  %v16542_v42 = vld [vmem:[#allocation2 + $0x90] sm:$0x8] }
 0x183   : > { %15317 = vrcp.f32 %v16434_v54  ;;  %v21518_v7 = vshrl.u32 %v16396_v58, 16  ;;  %1286 = vst.msk [vmem:[#allocation2 + $0x104] sm:$0xf] %vm1255_vm2, %v13992_v23  ;;  %v1095_v30 = vmul.f32 %v15292_v51, %v16366_v55  ;;  %v13962_v28 = vpack.c.bf16 %v1094_v27, %v1094_v27  ;;  %v15296_v54 = vpop.eup %15295 }
 0x184   : > { %v998_v3 = vmul.f32 1.442695, %v950_v48  ;;  %v882_v20 = vmul.f32 %v16219_v2, %v844_v1  ;;  %1287 = vst.msk [vmem:[#allocation2 + $0x108] sm:$0xf] %vm1255_vm2, %v13993_v47  ;;  %v1096_v25 = vmul.f32 %v15294_v11, %v16371_v15  ;;  %15319 = vpow2.f32 %v996_v8  ;;  %v15298_v62 = vpop.eup %15297 }
 0x185   : > { %v16537_v61 = vrot.slane %v21518_v7, 11  ;;  %v1000_v58 = vmul.f32 1.442695, %v951_v29  ;;  %v883_v39 = vmul.f32 %v16219_v2, %v16225_v9  ;;  %v13963_v46 = vpack.c.bf16 %v1095_v30, %v1095_v30  ;;  %1256 = vst.msk [vmem:[#allocation2 + $0x14] sm:$0xf] %vm1255_vm2, %v13962_v28  ;;  %v15300_v24 = vpop.eup %15299 }
 0x186   : > { %v1097_v55 = vmul.f32 %v15296_v54, %v16374_v36  ;;  %15321 = vrcp.f32 %v1036_v45  ;;  %v16551_v1 = vadd.f32 %v16276_v49, %v882_v20  ;;  %v13964_v21 = vpack.c.bf16 %v1096_v25, %v1096_v25 }
 0x187   : > { %v1098_v59 = vmul.f32 %v15298_v62, %v16377_v0  ;;  %v16555_v15 = vadd.f32 %v16276_v49, %v883_v39  ;;  %v15302_v9 = vpop.eup %15301  ;;  %1257 = vst.msk [vmem:[#allocation2 + $0x18] sm:$0xf] %vm1255_vm2, %v13963_v46  ;;  %v1099_v10 = vmul.f32 %v15300_v24, %v16381_v60  ;;  %15323 = vpow2.f32 %v998_v3 }
 0x188   : > { %v13965_v5 = vpack.c.bf16 %v1097_v55, %v1097_v55  ;;  %v952_v36 = vsub.f32 0.0, %v16551_v1  ;;  %v15304_v44 = vpop.eup %15303  ;;  %1258 = vst.msk [vmem:[#allocation2 + $0x24] sm:$0xf] %vm1255_vm2, %v13964_v21  ;;  %v1037_v57 = vadd.f32 1.0, %v15302_v9  ;;  %v884_v48 = vmul.f32 %v16219_v2, %v16231_v63  ;;  %v16576_v2 = vld [vmem:[#allocation2 + $0xa0] sm:$0x8] }
 0x189   : > { %21519 = vst [vmem:[#allocation15_spill] sm:$0xff] %v16555_v15  ;;  %v13966_v41 = vpack.c.bf16 %v1098_v59, %v1098_v59  ;;  %v953_v0 = vsub.f32 0.0, %v16555_v15  ;;  %v13967_v23 = vpack.c.bf16 %v1099_v10, %v1099_v10  ;;  %v1038_v27 = vadd.f32 1.0, %v15304_v44  ;;  %v15121_v44 = vld [vmem:[%s21425_s4 + $0x20] sm:$0xff]  }
 0x18a   : > { %v15306_v52 = vpop.eup %15305  ;;  %1259 = vst.msk [vmem:[#allocation2 + $0x28] sm:$0xf] %vm1255_vm2, %v13965_v5  ;;  %15325 = vpow2.f32 %v1000_v58  ;;  %v16568_v60 = vadd.f32 %v16276_v49, %v16283_v53  ;;  %v16571_v47 = vmul.f32 1.442695, %v952_v36  ;;  %v16574_v45 = vadd.f32 %v16276_v49, %v884_v48 }
 0x18b   : > { %v15308_v29 = vpop.eup %15307  ;;  %1260 = vst.msk [vmem:[#allocation2 + $0x34] sm:$0xf] %vm1255_vm2, %v13966_v41  ;;  %15327 = vrcp.f32 %v1037_v57  ;;  %v1039_v51 = vadd.f32 1.0, %v15306_v52  ;;  %1261 = vst.msk [vmem:[#allocation2 + $0x38] sm:$0xf] %vm1255_vm2, %v13967_v23  ;;  %v16585_v54 = vadd.f32 %v16276_v49, %v16286_v16 }
 0x18c   : > { %21520 = vst [vmem:[#allocation16_spill] sm:$0xff] %v16574_v45  ;;  %v15310_v63 = vpop.eup %15309  ;;  %15329 = vrcp.f32 %v1038_v27  ;;  %v1040_v7 = vadd.f32 1.0, %v15308_v29  ;;  %v16579_v11 = vmul.f32 1.442695, %v953_v0  ;;  %v1411_v28 = vld [vmem:[#allocation2 + $0x14] sm:$0xf] }
 0x18d   : > { %v15312_v30 = vpop.eup %15311  ;;  %15331 = vrcp.f32 %v1039_v51  ;;  %v1041_v3 = vadd.f32 1.0, %v15310_v63  ;;  %v954_v20 = vsub.f32 0.0, %v16574_v45  ;;  %v1485_v58 = vshrl.u32 %v1411_v28, 16 }
 0x18e   : > { %v15314_v25 = vpop.eup %15313  ;;  %15333 = vrcp.f32 %v1040_v7  ;;  %v1042_v39 = vadd.f32 1.0, %v15312_v30  ;;  %v1412_v55 = vld [vmem:[#allocation2 + $0x18] sm:$0xf]  ;;  %v1488_v24 = vshll.u32 %v1411_v28, 16 }
 0x18f   : > { %v15316_v46 = vpop.eup %15315  ;;  %15335 = vrcp.f32 %v1041_v3  ;;  %v16588_v21 = vadd.f32 1.0, %v15314_v25  ;;  %v16590_v59 = vmul.f32 1.442695, %v954_v20  ;;  %v13226_v5 = vcombine.low %v1411_v28, %v1412_v55  ;;  %v1414_v10 = vld [vmem:[#allocation2 + $0x24] sm:$0xf] }
 0x190   : > { %v16592_v9 = vpop.eup %15317  ;;  %v1487_v49 = vrot.slane %v1485_v58, 7  ;;  %v1494_v16 = vshrl.u32 %v1412_v55, 16  ;;  %v1497_v36 = vshll.u32 %v1412_v55, 16  ;;  %v1507_v57 = vshrl.u32 %v1414_v10, 16 }
 0x191   : > { %v1415_v41 = vld [vmem:[#allocation2 + $0x28] sm:$0xf]  ;;  %v1510_v0 = vshll.u32 %v1414_v10, 16  ;;  %15337 = vrcp.f32 %v1042_v39  ;;  %v1044_v48 = vadd.f32 1.0, %v15316_v46  ;;  %v15320_v52 = vpop.eup %15319  ;;  %14398 = vmatmul.mubr.msk.bf16.vlgmr.msra.gmra.mxu0 %vm465_vm1, %v13226_v5 }
 0x192   : > { %v1516_v23 = vshrl.u32 %v1415_v41, 16  ;;  %v1519_v27 = vshll.u32 %v1415_v41, 16  ;;  %v13227_v29 = vcombine.low %v1414_v10, %v1415_v41  ;;  %v1490_v51 = vor.u32 %v1488_v24, %v1487_v49  ;;  %v1417_v63 = vld [vmem:[#allocation2 + $0x34] sm:$0xf]  ;;  %14466 = vmatpush3.bf16.msra.mxu0 %v16070_v32  ;;  %v1418_v20 = vld [vmem:[#allocation2 + $0x38] sm:$0xf] }
 0x193   : > { %v15322_v7 = vpop.eup %15321  ;;  %v1509_v30 = vrot.slane %v1507_v57, 7  ;;  %v1492_v28 = vrot.slane %v1487_v49, 4  ;;  %v1496_v3 = vrot.slane %v1494_v16, 7  ;;  %v1529_v25 = vshrl.u32 %v1417_v63, 16  ;;  %14467 = vmatprep.subr.bf16.mxu0 %v15121_v44  ;;  %v16606_v24 = vld [vmem:[%s21425_s4 + $0x48] sm:$0xff]  }
 0x194   : > { %v1518_v58 = vrot.slane %v1516_v23, 7  ;;  %14401 = vmatprep.mubr.msk.bf16.mxu0 %vm465_vm1, %v13227_v29  ;;  %v1491_v39 = vsel %vm16088_vm8, %v16114_v4, %v1490_v51  ;;  %v1532_v46 = vshll.u32 %v1417_v63, 16  ;;  %v1538_v55 = vshrl.u32 %v1418_v20, 16  ;;  %v15324_v32 = vpop.eup %15323 }
 0x195   : > { %v1499_v5 = vor.u32 %v1497_v36, %v1496_v3  ;;  %v1531_v10 = vrot.slane %v1529_v25, 7  ;;  %v1541_v49 = vshll.u32 %v1418_v20, 16  ;;  %v13228_v16 = vcombine.low %v1417_v63, %v1418_v20 }
 0x196   : > { %v1540_v41 = vrot.slane %v1538_v55, 7  ;;  %v1512_v57 = vor.u32 %v1510_v0, %v1509_v30  ;;  %v1514_v23 = vrot.slane %v1509_v30, 4  ;;  %v1521_v29 = vor.u32 %v1519_v27, %v1518_v58  ;;  %14468 = vmatpush3.bf16.msra.mxu0 %v15121_v44  ;;  %v15131_v27 = vld [vmem:[%s21425_s4 + $0x30] sm:$0xff]  }
 0x197   : > { %v15326_v62 = vpop.eup %15325  ;;  %v1500_v4 = vsel %vm16088_vm8, %v1492_v28, %v1499_v5  ;;  %v1100_v51 = vmul.f32 %v15322_v7, %v16415_v33  ;;  %v1534_v8 = vor.u32 %v1532_v46, %v1531_v10  ;;  %v1536_v53 = vrot.slane %v1531_v10, 4  ;;  %14537 = vmatprep.subr.bf16.mxu0 %v16606_v24  ;;  %v1440_v46 = vld [vmem:[#allocation2 + $0xb0] sm:$0x8] }
 0x198   : > { %v15328_v45 = vpop.eup %15327  ;;  %v13260_v15 = vcombine.low %v1491_v39, %v1500_v4  ;;  %v1513_v36 = vsel %vm16088_vm8, %v16118_v37, %v1512_v57  ;;  %v1522_v0 = vsel %vm16088_vm8, %v1514_v23, %v1521_v29  ;;  %v1543_v63 = vor.u32 %v1541_v49, %v1540_v41  ;;  %v16655_v57 = vld [vmem:[#allocation2 + $0xc0] sm:$0x8] }
 0x199   : > { %v15330_v33 = vpop.eup %15329  ;;  %v13261_v7 = vcombine.low %v1513_v36, %v1522_v0  ;;  %v1101_v44 = vmul.f32 %v15328_v45, %v16423_v22  ;;  %v13968_v30 = vpack.c.bf16 %v1100_v51, %v1100_v51  ;;  %v1535_v28 = vsel %vm16088_vm8, %v16120_v38, %v1534_v8  ;;  %14402 = vmatmul.mubr.msk.bf16.gmra.mxu0 %vm465_vm1, %v13228_v16  ;;  %v16673_v0 = vld [vmem:[#allocation2 + $0xe8] sm:$0xf] }
 0x19a   : > { %v15332_v37 = vpop.eup %15331  ;;  %14434 = vmatmul.mubr.msk.bf16.vlgmr.msra.gmra.mxu1 %vm465_vm1, %v13260_v15  ;;  %v1544_v3 = vsel %vm16088_vm8, %v1536_v53, %v1543_v63  ;;  %v1102_v20 = vmul.f32 %v15330_v33, %v16428_v6  ;;  %15339 = vrcp.f32 %v16588_v21  ;;  %v1045_v25 = vadd.f32 1.0, %v15320_v52 }
 0x19b   : > { %v15334_v58 = vpop.eup %15333  ;;  %14437 = vmatprep.mubr.msk.bf16.mxu1 %vm465_vm1, %v13261_v7  ;;  %v13969_v22 = vpack.c.bf16 %v1101_v44, %v1101_v44  ;;  %1262 = vst.msk [vmem:[#allocation2 + $0x44] sm:$0xf] %vm1255_vm2, %v13968_v30  ;;  %v13262_v38 = vcombine.low %v1535_v28, %v1544_v3  ;;  %v1103_v8 = vmul.f32 %v15332_v37, %v16438_v12  ;;  %15341 = vrcp.f32 %v1044_v48 }
 0x19c   : > { %14502 = vmatpush3.bf16.msra.mxu1 %v16389_v40  ;;  %v15336_v15 = vpop.eup %15335  ;;  %v13970_v45 = vpack.c.bf16 %v1102_v20, %v1102_v20  ;;  %v1104_v53 = vmul.f32 %v15334_v58, %v16451_v18  ;;  %15343 = vrcp.f32 %v1045_v25  ;;  %v1046_v6 = vadd.f32 1.0, %v15324_v32  ;;  %v16642_v32 = vld [vmem:[#allocation2 + $0xd8] sm:$0xf] }
 0x19d   : > { %14503 = vmatprep.subr.bf16.mxu1 %v15131_v27  ;;  %1263 = vst.msk [vmem:[#allocation2 + $0x48] sm:$0xf] %vm1255_vm2, %v13969_v22  ;;  %v13971_v21 = vpack.c.bf16 %v1103_v8, %v1103_v8  ;;  %v1105_v52 = vmul.f32 %v15336_v15, %v16458_v34  ;;  %v1047_v39 = vadd.f32 1.0, %v15326_v62  ;;  %15345 = vpow2.f32 %v16571_v47 }
 0x19e   : > { %v15338_v12 = vpop.eup %15337  ;;  %1264 = vst.msk [vmem:[#allocation2 + $0x54] sm:$0xf] %vm1255_vm2, %v13970_v45  ;;  %v13972_v40 = vpack.c.bf16 %v1104_v53, %v1104_v53  ;;  %15347 = vrcp.f32 %v1046_v6  ;;  %v21521_v48 = vsub.f32 0.0, %v16568_v60  ;;  %v956_v55 = vsub.f32 0.0, %v16585_v54 }
 0x19f   : > { %1265 = vst.msk [vmem:[#allocation2 + $0x58] sm:$0xf] %vm1255_vm2, %v13971_v21  ;;  %v13973_v5 = vpack.c.bf16 %v1105_v52, %v1105_v52  ;;  %v1106_v34 = vmul.f32 %v15338_v12, %v16473_v35  ;;  %15349 = vrcp.f32 %v1047_v39  ;;  %v1117_v47 = vmul.f32 %v16486_v31, %v16298_v43  ;;  %v16657_v43 = vld [vmem:[#allocation2 + $0xe4] sm:$0xf] }
 0x1a0   : > { %v1008_v18 = vmul.f32 1.442695, %v21521_v48  ;;  %14504 = vmatpush3.bf16.msra.mxu1 %v15131_v27  ;;  %1266 = vst.msk [vmem:[#allocation2 + $0x64] sm:$0xf] %vm1255_vm2, %v13972_v40  ;;  %15351 = vpow2.f32 %v16579_v11  ;;  %v1010_v62 = vmul.f32 1.442695, %v956_v55  ;;  %v1118_v49 = vmul.f32 %v16592_v9, %v16301_v13 }
 0x1a1   : > { %v1700_v10 = vshrl.u32 %v1440_v46, 16  ;;  %1267 = vst.msk [vmem:[#allocation2 + $0x68] sm:$0xf] %vm1255_vm2, %v13973_v5  ;;  %v13974_v16 = vpack.c.bf16 %v1106_v34, %v1106_v34  ;;  %15353 = vpow2.f32 %v16590_v59  ;;  %v13985_v35 = vpack.c.bf16 %v1117_v47, %v1117_v47  ;;  %v21524_v47 = vld [vmem:[#allocation10_spill] sm:$0xff] }
 0x1a2   : > { %v1758_v41 = vshrl.u32 %v16642_v32, 16  ;;  %v1420_v31 = vld [vmem:[#allocation2 + $0x44] sm:$0xf]  ;;  %14438 = vmatmul.mubr.msk.bf16.gmra.mxu1 %vm465_vm1, %v13262_v38  ;;  %v21522_v11 = vshrl.u32 %v16542_v42, 16  ;;  %15355 = vpow2.f32 %v1008_v18  ;;  %v21523_v13 = vshrl.u32 %v16576_v2, 16 }
 0x1a3   : > { %v13986_v59 = vpack.c.bf16 %v1118_v49, %v1118_v49  ;;  %v1551_v29 = vshrl.u32 %v1420_v31, 16  ;;  %v1554_v4 = vshll.u32 %v1420_v31, 16  ;;  %1268 = vst.msk [vmem:[#allocation2 + $0x74] sm:$0xf] %vm1255_vm2, %v13974_v16  ;;  %1279 = vst.msk [vmem:[#allocation2 + $0xc8] sm:$0xf] %vm1255_vm2, %v13985_v35  ;;  %15357 = vpow2.f32 %v1010_v62 }
 0x1a4   : > { %v16662_v23 = vrot.slane %v21522_v11, 11  ;;  %v16666_v9 = vrot.slane %v21523_v13, 11  ;;  %v16670_v51 = vrot.slane %v1700_v10, 11  ;;  %v1761_v36 = vshll.u32 %v16642_v32, 16  ;;  %v1421_v42 = vld [vmem:[#allocation2 + $0x48] sm:$0xf] }
 0x1a5   : > { %1280 = vst.msk [vmem:[#allocation2 + $0xd4] sm:$0xf] %vm1255_vm2, %v13986_v59  ;;  %v16676_v2 = vrot.slane %v1758_v41, 7  ;;  %v1722_v63 = vshrl.u32 %v16655_v57, 16  ;;  %v1771_v27 = vshrl.u32 %v16657_v43, 16  ;;  %v1553_v33 = vrot.slane %v1551_v29, 7 }
 0x1a6   : > { %v1560_v7 = vshrl.u32 %v1421_v42, 16  ;;  %v13229_v44 = vcombine.low %v1420_v31, %v1421_v42  ;;  %v1423_v30 = vld [vmem:[#allocation2 + $0x54] sm:$0xf]  ;;  %v1774_v28 = vshll.u32 %v16657_v43, 16  ;;  %v1563_v37 = vshll.u32 %v1421_v42, 16 }
 0x1a7   : > { %v1424_v3 = vld [vmem:[#allocation2 + $0x58] sm:$0xf]  ;;  %v1573_v20 = vshrl.u32 %v1423_v30, 16  ;;  %v1576_v25 = vshll.u32 %v1423_v30, 16  ;;  %v1780_v58 = vshrl.u32 %v16673_v0, 16  ;;  %v15340_v22 = vpop.eup %15339  ;;  %v1556_v52 = vor.u32 %v1554_v4, %v1553_v33 }
 0x1a8   : > { %v1562_v38 = vrot.slane %v1560_v7, 7  ;;  %14405 = vmatprep.mubr.msk.bf16.mxu0 %vm465_vm1, %v13229_v44  ;;  %v1582_v8 = vshrl.u32 %v1424_v3, 16  ;;  %v1585_v15 = vshll.u32 %v1424_v3, 16  ;;  %v13230_v45 = vcombine.low %v1423_v30, %v1424_v3  ;;  %v1426_v53 = vld [vmem:[#allocation2 + $0x64] sm:$0xf]  ;;  %v15342_v6 = vpop.eup %15341 }
 0x1a9   : > { %v1575_v21 = vrot.slane %v1573_v20, 7  ;;  %v1558_v39 = vrot.slane %v1553_v33, 4  ;;  %v1427_v46 = vld [vmem:[#allocation2 + $0x68] sm:$0xf]  ;;  %v1595_v12 = vshrl.u32 %v1426_v53, 16  ;;  %v15344_v40 = vpop.eup %15343  ;;  %v1598_v55 = vshll.u32 %v1426_v53, 16 }
 0x1aa   : > { %v1584_v48 = vrot.slane %v1582_v8, 7  ;;  %14406 = vmatmul.mubr.msk.bf16.gmra.mxu0 %vm465_vm1, %v13230_v45  ;;  %v1565_v18 = vor.u32 %v1563_v37, %v1562_v38  ;;  %v1604_v5 = vshrl.u32 %v1427_v46, 16  ;;  %v15346_v34 = vpop.eup %15345  ;;  %v1557_v62 = vsel %vm16088_vm8, %v21524_v47, %v1556_v52  ;;  %v16687_v35 = vld [vmem:[#allocation2 + $0x74] sm:$0xf]  ;;  %v21525_v30 = vld [vmem:[#allocation11_spill] sm:$0xff] }
 0x1ab   : > { %v1597_v10 = vrot.slane %v1595_v12, 7  ;;  %v1607_v49 = vshll.u32 %v1427_v46, 16  ;;  %v13231_v16 = vcombine.low %v1426_v53, %v1427_v46  ;;  %v15348_v41 = vpop.eup %15347  ;;  %v1578_v13 = vor.u32 %v1576_v25, %v1575_v21  ;;  %v16721_v47 = vld [vmem:[#allocation2 + $0xc8] sm:$0xf] }
 0x1ac   : > { %v1566_v31 = vsel %vm16088_vm8, %v1558_v39, %v1565_v18  ;;  %v1606_v11 = vrot.slane %v1604_v5, 7  ;;  %v1580_v59 = vrot.slane %v1575_v21, 4  ;;  %v15350_v29 = vpop.eup %15349  ;;  %v1587_v42 = vor.u32 %v1585_v15, %v1584_v48  ;;  %v21526_v21 = vld [vmem:[#allocation13_spill] sm:$0xff] }
 0x1ad   : > { %v13263_v4 = vcombine.low %v1557_v62, %v1566_v31  ;;  %14409 = vmatprep.mubr.msk.bf16.mxu0 %vm465_vm1, %v13231_v16  ;;  %v1107_v33 = vmul.f32 %v15340_v22, %v16476_v26  ;;  %v1617_v7 = vshrl.u32 %v16687_v35, 16  ;;  %v15352_v44 = vpop.eup %15351  ;;  %v1579_v37 = vsel %vm16088_vm8, %v21525_v30, %v1578_v13  ;;  %v16723_v62 = vld [vmem:[#allocation2 + $0xd4] sm:$0xf]  ;;  %v21527_v13 = vld [vmem:[#allocation14_spill] sm:$0xff] }
 0x1ae   : > { %v1620_v3 = vshll.u32 %v16687_v35, 16  ;;  %v1600_v20 = vor.u32 %v1598_v55, %v1597_v10  ;;  %v1602_v38 = vrot.slane %v1597_v10, 4  ;;  %v15354_v25 = vpop.eup %15353  ;;  %v1588_v8 = vsel %vm16088_vm8, %v1580_v59, %v1587_v42 }
 0x1af   : > { %14441 = vmatprep.mubr.msk.bf16.mxu1 %vm465_vm1, %v13263_v4  ;;  %v13975_v15 = vpack.c.bf16 %v1107_v33, %v1107_v33  ;;  %v16701_v45 = vrot.slane %v1617_v7, 7  ;;  %v1609_v26 = vor.u32 %v1607_v49, %v1606_v11  ;;  %v15356_v22 = vpop.eup %15355  ;;  %v13264_v53 = vcombine.low %v1579_v37, %v1588_v8  ;;  %v1446_v11 = vld [vmem:[#allocation2 + $0xd0] sm:$0x8] }
 0x1b0   : > { %v1601_v52 = vsel %vm16088_vm8, %v21526_v21, %v1600_v20  ;;  %v1108_v39 = vmul.f32 %v15342_v6, %v16489_v56  ;;  %v1109_v46 = vmul.f32 %v15344_v40, %v16496_v19  ;;  %v1110_v18 = vmul.f32 %v15348_v41, %v16520_v50  ;;  %v15358_v5 = vpop.eup %15357 }
 0x1b1   : > { %1269 = vst.msk [vmem:[#allocation2 + $0x78] sm:$0xf] %vm1255_vm2, %v13975_v15  ;;  %v1610_v12 = vsel %vm16088_vm8, %v1602_v38, %v1609_v26  ;;  %v16712_v48 = vor.u32 %v1620_v3, %v16701_v45  ;;  %v16717_v55 = vrot.slane %v1722_v63, 11  ;;  %14442 = vmatmul.mubr.msk.bf16.gmra.mxu1 %vm465_vm1, %v13264_v53  ;;  %v1111_v40 = vmul.f32 %v15350_v29, %v16525_v14 }
 0x1b2   : > { %v13265_v56 = vcombine.low %v1601_v52, %v1610_v12  ;;  %v13976_v6 = vpack.c.bf16 %v1108_v39, %v1108_v39  ;;  %v13977_v19 = vpack.c.bf16 %v1109_v46, %v1109_v46  ;;  %v13978_v10 = vpack.c.bf16 %v1110_v18, %v1110_v18 }
 0x1b3   : > { %v1048_v49 = vadd.f32 1.0, %v15346_v34  ;;  %v1049_v16 = vadd.f32 1.0, %v15352_v44  ;;  %v16727_v50 = vrot.slane %v1771_v27, 7  ;;  %v1624_v57 = vrot.slane %v16701_v45, 4  ;;  %v16745_v44 = vld [vmem:[#allocation2 + $0xf4] sm:$0xf] }
 0x1b4   : > { %14445 = vmatprep.mubr.msk.bf16.mxu1 %vm465_vm1, %v13265_v56  ;;  %1270 = vst.msk [vmem:[#allocation2 + $0x84] sm:$0xf] %vm1255_vm2, %v13976_v6  ;;  %1271 = vst.msk [vmem:[#allocation2 + $0x88] sm:$0xf] %vm1255_vm2, %v13977_v19  ;;  %v13979_v14 = vpack.c.bf16 %v1111_v40, %v1111_v40  ;;  %v1050_v63 = vadd.f32 1.0, %v15354_v25  ;;  %v1051_v41 = vadd.f32 1.0, %v15356_v22  ;;  %v1623_v59 = vsel %vm16088_vm8, %v21527_v13, %v16712_v48 }
 0x1b5   : > { %1272 = vst.msk [vmem:[#allocation2 + $0x94] sm:$0xf] %vm1255_vm2, %v13978_v10  ;;  %15359 = vrcp.f32 %v1048_v49  ;;  %v1052_v34 = vadd.f32 1.0, %v15358_v5  ;;  %v1736_v31 = vshrl.u32 %v16721_v47, 16  ;;  %v1749_v27 = vshrl.u32 %v16723_v62, 16 }
 0x1b6   : > { %1273 = vst.msk [vmem:[#allocation2 + $0x98] sm:$0xf] %vm1255_vm2, %v13979_v14  ;;  %15361 = vrcp.f32 %v1049_v16  ;;  %v1739_v29 = vshll.u32 %v16721_v47, 16  ;;  %v1752_v4 = vshll.u32 %v16723_v62, 16  ;;  %v13238_v7 = vcombine.low %v16723_v62, %v16642_v32 }
 0x1b7   : > { %15363 = vrcp.f32 %v1050_v63  ;;  %v1738_v42 = vrot.slane %v1736_v31, 7  ;;  %v1751_v33 = vrot.slane %v1749_v27, 7  ;;  %v16749_v37 = vrot.slane %v1780_v58, 7 }
 0x1b8   : > { %v1430_v30 = vld [vmem:[#allocation2 + $0x78] sm:$0xf]  ;;  %15365 = vrcp.f32 %v1051_v41  ;;  %v1783_v3 = vshll.u32 %v16673_v0, 16  ;;  %v1744_v20 = vshrl.u32 %v1446_v11, 16  ;;  %v13239_v8 = vcombine.low %v16657_v43, %v16673_v0 }
 0x1b9   : > { %v1626_v38 = vshrl.u32 %v1430_v30, 16  ;;  %v13232_v25 = vcombine.low %v16687_v35, %v1430_v30  ;;  %15367 = vrcp.f32 %v1052_v34  ;;  %v1629_v15 = vshll.u32 %v1430_v30, 16 }
 0x1ba   : > { %v16755_v45 = vrot.slane %v1744_v20, 11  ;;  %v1756_v26 = vrot.slane %v1751_v33, 4  ;;  %v1763_v22 = vor.u32 %v1761_v36, %v16676_v2  ;;  %v16761_v52 = vor.u32 %v1739_v29, %v1738_v42 }
 0x1bb   : > { %v1628_v58 = vrot.slane %v1626_v38, 7  ;;  %14410 = vmatmul.mubr.msk.bf16.gmra.mxu0 %vm465_vm1, %v13232_v25  ;;  %v1432_v53 = vld [vmem:[#allocation2 + $0x84] sm:$0xf]  ;;  %v1433_v21 = vld [vmem:[#allocation2 + $0x88] sm:$0xf]  ;;  %v16763_v35 = vor.u32 %v1752_v4, %v1751_v33  ;;  %v1793_v39 = vshrl.u32 %v16745_v44, 16  ;;  %v16769_v5 = vor.u32 %v1774_v28, %v16727_v50 }
 0x1bc   : > { %v1639_v46 = vshrl.u32 %v1432_v53, 16  ;;  %v1642_v12 = vshll.u32 %v1432_v53, 16  ;;  %v1648_v48 = vshrl.u32 %v1433_v21, 16  ;;  %v1435_v18 = vld [vmem:[#allocation2 + $0x94] sm:$0xf]  ;;  %v1651_v36 = vshll.u32 %v1433_v21, 16 }
 0x1bd   : > { %v13233_v2 = vcombine.low %v1432_v53, %v1433_v21  ;;  %v1631_v56 = vor.u32 %v1629_v15, %v1628_v58  ;;  %v1436_v6 = vld [vmem:[#allocation2 + $0x98] sm:$0xf]  ;;  %v1661_v19 = vshrl.u32 %v1435_v18, 16  ;;  %v1664_v49 = vshll.u32 %v1435_v18, 16 }
 0x1be   : > { %v1641_v40 = vrot.slane %v1639_v46, 7  ;;  %v1650_v10 = vrot.slane %v1648_v48, 7  ;;  %v1670_v16 = vshrl.u32 %v1436_v6, 16  ;;  %v1673_v41 = vshll.u32 %v1436_v6, 16  ;;  %v16778_v33 = vld [vmem:[#allocation2 + $0xf8] sm:$0xf] }
 0x1bf   : > { %14413 = vmatprep.mubr.msk.bf16.mxu0 %vm465_vm1, %v13233_v2  ;;  %v1632_v14 = vsel %vm16088_vm8, %v1624_v57, %v1631_v56  ;;  %v1663_v63 = vrot.slane %v1661_v19, 7  ;;  %v13234_v34 = vcombine.low %v1435_v18, %v1436_v6  ;;  %v1755_v42 = vsel %vm16088_vm8, %v16755_v45, %v16763_v35  ;;  %v21528_v46 = vld [vmem:[#allocation15_spill] sm:$0xff] }
 0x1c0   : > { %v13266_v31 = vcombine.low %v1623_v59, %v1632_v14  ;;  %v1672_v28 = vrot.slane %v1670_v16, 7  ;;  %v1644_v27 = vor.u32 %v1642_v12, %v1641_v40  ;;  %v1646_v11 = vrot.slane %v1641_v40, 4 }
 0x1c1   : > { %v1653_v13 = vor.u32 %v1651_v36, %v1650_v10  ;;  %v1666_v29 = vor.u32 %v1664_v49, %v1663_v63  ;;  %v1668_v4 = vrot.slane %v1663_v63, 4  ;;  %v1764_v20 = vsel %vm16088_vm8, %v1756_v26, %v1763_v22 }
 0x1c2   : > { %v15360_v30 = vpop.eup %15359  ;;  %14446 = vmatmul.mubr.msk.bf16.gmra.mxu1 %vm465_vm1, %v13266_v31  ;;  %v1645_v57 = vsel %vm16088_vm8, %v16537_v61, %v1644_v27  ;;  %v1675_v59 = vor.u32 %v1673_v41, %v1672_v28  ;;  %v1795_v38 = vrot.slane %v1793_v39, 7  ;;  %v1796_v53 = vshll.u32 %v16745_v44, 16  ;;  %v1449_v61 = vld [vmem:[#allocation2 + $0xe0] sm:$0x8]  ;;  %v1299_v41 = vld [vmem:[#allocation2 + $0xc] sm:$0x1] }
 0x1c3   : > { %v15362_v25 = vpop.eup %15361  ;;  %14414 = vmatmul.mubr.msk.bf16.gmra.mxu0 %vm465_vm1, %v13234_v34  ;;  %v1654_v15 = vsel %vm16088_vm8, %v1646_v11, %v1653_v13  ;;  %v1112_v45 = vmul.f32 %v15360_v30, %v16551_v1  ;;  %v1667_v58 = vsel %vm16088_vm8, %v16662_v23, %v1666_v29  ;;  %v1802_v39 = vshrl.u32 %v16778_v33, 16  ;;  %v21529_v1 = vld [vmem:[#allocation16_spill] sm:$0xff]  ;;  %v1452_v23 = vld [vmem:[#allocation2 + $0xf0] sm:$0x8]  ;;  %v2387_v27 = vld [vmem:[#allocation2 + $0x4] sm:$0xf] }
 0x1c4   : > { %v15364_v21 = vpop.eup %15363  ;;  %v13267_v35 = vcombine.low %v1645_v57, %v1654_v15  ;;  %v1113_v26 = vmul.f32 %v15362_v25, %v21528_v46  ;;  %v1676_v22 = vsel %vm16088_vm8, %v1668_v4, %v1675_v59  ;;  %v1805_v2 = vshll.u32 %v16778_v33, 16  ;;  %v2388_v29 = vld [vmem:[#allocation2 + $0x8] sm:$0xf]  ;;  %v2390_v59 = vld [vmem:[#allocation2 + $0x14] sm:$0xf] }
 0x1c5   : > { %v15366_v12 = vpop.eup %15365  ;;  %v13980_v48 = vpack.c.bf16 %v1112_v45, %v1112_v45  ;;  %v13268_v18 = vcombine.low %v1667_v58, %v1676_v22  ;;  %v1114_v36 = vmul.f32 %v15364_v21, %v21529_v1  ;;  %v1804_v40 = vrot.slane %v1802_v39, 7  ;;  %v16828_v58 = vld [vmem:[#allocation2 + $0x18] sm:$0xf] }
 0x1c6   : > { %v15368_v56 = vpop.eup %15367  ;;  %14449 = vmatprep.mubr.msk.bf16.mxu1 %vm465_vm1, %v13267_v35  ;;  %v13981_v6 = vpack.c.bf16 %v1113_v26, %v1113_v26  ;;  %v1115_v19 = vmul.f32 %v15366_v12, %v16568_v60  ;;  %v1766_v10 = vshrl.u32 %v1449_v61, 16  ;;  %v1778_v14 = vrot.slane %v16727_v50, 4 }
 0x1c7   : > { %1274 = vst.msk [vmem:[#allocation2 + $0xa4] sm:$0xf] %vm1255_vm2, %v13980_v48  ;;  %v13982_v49 = vpack.c.bf16 %v1114_v36, %v1114_v36  ;;  %v1116_v16 = vmul.f32 %v15368_v56, %v16585_v54  ;;  %v1785_v63 = vor.u32 %v1783_v3, %v16749_v37  ;;  %v1788_v28 = vshrl.u32 %v1452_v23, 16 }
 0x1c8   : > { %1275 = vst.msk [vmem:[#allocation2 + $0xa8] sm:$0xf] %vm1255_vm2, %v13981_v6  ;;  %v13983_v34 = vpack.c.bf16 %v1115_v19, %v1115_v19  ;;  %v13223_v31 = vrot.slane %v1766_v10, 11  ;;  %v1798_v60 = vor.u32 %v1796_v53, %v1795_v38  ;;  %v1800_v13 = vrot.slane %v1795_v38, 4 }
 0x1c9   : > { %1276 = vst.msk [vmem:[#allocation2 + $0xb4] sm:$0xf] %vm1255_vm2, %v13982_v49  ;;  %v13984_v11 = vpack.c.bf16 %v1116_v16, %v1116_v16  ;;  %v1786_v54 = vsel %vm16088_vm8, %v1778_v14, %v1785_v63  ;;  %v1807_v50 = vor.u32 %v1805_v2, %v1804_v40  ;;  %v13240_v37 = vcombine.low %v16745_v44, %v16778_v33 }
 0x1ca   : > { %14450 = vmatmul.mubr.msk.bf16.gmra.mxu1 %vm465_vm1, %v13268_v18  ;;  %1277 = vst.msk [vmem:[#allocation2 + $0xb8] sm:$0xf] %vm1255_vm2, %v13983_v34  ;;  %v1777_v3 = vsel %vm16088_vm8, %v13223_v31, %v16769_v5  ;;  %v13224_v4 = vrot.slane %v1788_v28, 11  ;;  %v1300_v57 = vsel %vm16204_vm10, 0, %v1299_v41  ;;  %v16822_v38 = vcombine.low %v1755_v42, %v1764_v20 }
 0x1cb   : > { %1278 = vst.msk [vmem:[#allocation2 + $0xc4] sm:$0xf] %vm1255_vm2, %v13984_v11  ;;  %v16824_v25 = vcombine.low %v1777_v3, %v1786_v54  ;;  %v1808_v15 = vsel %vm16088_vm8, %v1800_v13, %v1807_v50  ;;  %1301 = vst [vmem:[#allocation2 + $0xc] sm:$0x1] %v1300_v57  ;;  %v2439_v45 = vshrl.u32 %v2387_v27, 16  ;;  %v2442_v53 = vshll.u32 %v2387_v27, 16 }
 0x1cc   : > { %v1799_v5 = vsel %vm16088_vm8, %v13224_v4, %v1798_v60  ;;  %v2448_v61 = vshll.u32 %v2388_v29, 16  ;;  %v2452_v21 = vshrl.u32 %v2388_v29, 16  ;;  %v2463_v20 = vshrl.u32 %v2390_v59, 16 }
 0x1cd   : > { %v16832_v35 = vcombine.low %v1799_v5, %v1808_v15  ;;  %v2441_v42 = vrot.slane %v2439_v45, 4  ;;  %v2466_v46 = vshll.u32 %v2390_v59, 16  ;;  %v2444_v22 = vrot.slane %v2442_v53, 5 }
 0x1ce   : > { %v1438_v26 = vld [vmem:[#allocation2 + $0xa4] sm:$0xf]  ;;  %v16834_v39 = vrot.slane %v2448_v61, 5  ;;  %v2454_v12 = vrot.slane %v2452_v21, 4  ;;  %v2472_v48 = vshll.u32 %v16828_v58, 16  ;;  %v2465_v2 = vrot.slane %v2463_v20, 4 }
 0x1cf   : > { %v1439_v18 = vld [vmem:[#allocation2 + $0xa8] sm:$0xf]  ;;  %v1683_v1 = vshrl.u32 %v1438_v26, 16  ;;  %v1686_v36 = vshll.u32 %v1438_v26, 16  ;;  %v2468_v23 = vrot.slane %v2466_v46, 5  ;;  %v2445_v10 = vor.u32 %v2444_v22, %v2441_v42 }
 0x1d0   : > { %v1692_v56 = vshrl.u32 %v1439_v18, 16  ;;  %v1695_v6 = vshll.u32 %v1439_v18, 16  ;;  %v13235_v19 = vcombine.low %v1438_v26, %v1439_v18  ;;  %v1441_v40 = vld [vmem:[#allocation2 + $0xb4] sm:$0xf]  ;;  %v2455_v41 = vor.u32 %v2454_v12, %v16834_v39  ;;  %v2392_v12 = vld [vmem:[#allocation2 + $0x1c] sm:$0x1] }
 0x1d1   : > { %v1685_v49 = vrot.slane %v1683_v1, 7  ;;  %v1442_v16 = vld [vmem:[#allocation2 + $0xb8] sm:$0xf]  ;;  %v1705_v14 = vshrl.u32 %v1441_v40, 16  ;;  %v1708_v63 = vshll.u32 %v1441_v40, 16  ;;  %v2446_v42 = vrot.slane %v2445_v10, 4 }
 0x1d2   : > { %v1694_v34 = vrot.slane %v1692_v56, 7  ;;  %14417 = vmatprep.mubr.msk.bf16.mxu0 %vm465_vm1, %v13235_v19  ;;  %v1714_v31 = vshrl.u32 %v1442_v16, 16  ;;  %v1717_v28 = vshll.u32 %v1442_v16, 16  ;;  %v13236_v60 = vcombine.low %v1441_v40, %v1442_v16  ;;  %v1444_v27 = vld [vmem:[#allocation2 + $0xc4] sm:$0xf]  ;;  %v16859_v18 = vld [vmem:[%s21425_s4 + $0x58] sm:$0xff]  }
 0x1d3   : > { %v1707_v11 = vrot.slane %v1705_v14, 7  ;;  %v1688_v54 = vor.u32 %v1686_v36, %v1685_v49  ;;  %v1690_v13 = vrot.slane %v1685_v49, 4  ;;  %v1727_v50 = vshrl.u32 %v1444_v27, 16  ;;  %v2389_v53 = vld [vmem:[#allocation2 + $0xc] sm:$0x1]  ;;  %14573 = vmatprep.subr.bf16.mxu1 %v16859_v18 }
 0x1d4   : > { %v1716_v29 = vrot.slane %v1714_v31, 7  ;;  %14418 = vmatmul.mubr.msk.bf16.gmra.mxu0 %vm465_vm1, %v13236_v60  ;;  %v1697_v3 = vor.u32 %v1695_v6, %v1694_v34  ;;  %v1730_v4 = vshll.u32 %v1444_v27, 16  ;;  %v13237_v57 = vcombine.low %v1444_v27, %v16721_v47  ;;  %v3127_v6 = vld [vmem:[#allocation2 + $0x10] sm:$0x8]  ;;  %v3128_v19 = vld [vmem:[#allocation2 + $0x14] sm:$0xf] }
 0x1d5   : > { %v1689_v59 = vsel %vm16088_vm8, %v16666_v9, %v1688_v54  ;;  %v1729_v15 = vrot.slane %v1727_v50, 7  ;;  %v1710_v45 = vor.u32 %v1708_v63, %v1707_v11  ;;  %v1712_v5 = vrot.slane %v1707_v11, 4  ;;  %v3129_v14 = vld [vmem:[#allocation2 + $0x18] sm:$0xf]  ;;  %v2393_v27 = vld [vmem:[#allocation2 + $0x24] sm:$0xf] }
 0x1d6   : > { %v1698_v61 = vsel %vm16088_vm8, %v1690_v13, %v1697_v3  ;;  %14421 = vmatprep.mubr.msk.bf16.mxu0 %vm465_vm1, %v13237_v57  ;;  %v1719_v21 = vor.u32 %v1717_v28, %v1716_v29  ;;  %v2456_v20 = vrot.slane %v2455_v41, 4  ;;  %v21531_v9 = vmov 0  ;;  %v2394_v54 = vld [vmem:[#allocation2 + $0x28] sm:$0xf] }
 0x1d7   : > { %v13269_v46 = vcombine.low %v1689_v59, %v1698_v61  ;;  %v1711_v47 = vsel %vm16088_vm8, %v16670_v51, %v1710_v45  ;;  %v1732_v26 = vor.u32 %v1730_v4, %v1729_v15  ;;  %v1734_v22 = vrot.slane %v1729_v15, 4  ;;  %v3130_v4 = vld [vmem:[#allocation2 + $0x20] sm:$0x8] }
 0x1d8   : > { %v21532_v9 = vsel %vm16852_vm13, 4294967295, %v21531_v9  ;;  %v1720_v1 = vsel %vm16088_vm8, %v1712_v5, %v1719_v21  ;;  %v2451_v51 = vsel %vm16852_vm13, %v2446_v42, %v16834_v39  ;;  %v2458_v36 = vshll.u32 %v2389_v53, 16  ;;  %v3131_v53 = vld [vmem:[#allocation2 + $0x24] sm:$0xf] }
 0x1d9   : > { %21533 = vst [vmem:[#allocation10_spill] sm:$0xff] %v21532_v9  ;;  %v2469_v56 = vor.u32 %v2468_v23, %v2465_v2  ;;  %14453 = vmatprep.mubr.msk.bf16.mxu1 %vm465_vm1, %v13269_v46  ;;  %v13270_v40 = vcombine.low %v1711_v47, %v1720_v1  ;;  %v1733_v10 = vsel %vm16088_vm8, %v16717_v55, %v1732_v26  ;;  %v2474_v16 = vrot.slane %v2472_v48, 5  ;;  %v1362_v55 = vld [vmem:[#allocation2 + $0x2c] sm:$0x1]  ;;  %v1365_v1 = vld [vmem:[#allocation2 + $0x3c] sm:$0x1] }
 0x1da   : > { %v1742_v49 = vsel %vm16088_vm8, %v1734_v22, %v16761_v52  ;;  %v2460_v63 = vrot.slane %v2458_v36, 5  ;;  %v2476_v23 = vshrl.u32 %v16828_v58, 16  ;;  %v2482_v41 = vshll.u32 %v2392_v12, 16 }
 0x1db   : > { %v13271_v39 = vcombine.low %v1733_v10, %v1742_v49  ;;  %v2470_v2 = vrot.slane %v2469_v56, 4  ;;  %14454 = vmatmul.mubr.msk.bf16.gmra.mxu1 %vm465_vm1, %v13270_v40  ;;  %v3176_v34 = vshrl.u32 %v3127_v6, 16  ;;  %v3181_v31 = vshrl.u32 %v3128_v19, 16 }
 0x1dc   : > { %v3184_v28 = vshll.u32 %v3128_v19, 16  ;;  %14422 = vmatmul.mubr.msk.bf16.gmra.mxu0 %vm465_vm1, %v13238_v7  ;;  %v2461_v52 = vsel %vm16852_vm13, %v2456_v20, %v2460_v63  ;;  %v2478_v48 = vrot.slane %v2476_v23, 4  ;;  %v3190_v60 = vshrl.u32 %v3129_v14, 16  ;;  %v3132_v20 = vld [vmem:[#allocation2 + $0x28] sm:$0xf] }
 0x1dd   : > { %14457 = vmatprep.mubr.msk.bf16.mxu1 %vm465_vm1, %v13271_v39  ;;  %v2475_v58 = vsel %vm16852_vm13, %v2470_v2, %v2474_v16  ;;  %14425 = vmatprep.mubr.msk.bf16.mxu0 %vm465_vm1, %v13239_v8  ;;  %v13293_v11 = vcombine.low %v2451_v51, %v2461_v52  ;;  %v2484_v32 = vrot.slane %v2482_v41, 5  ;;  %v13327_v62 = vrot.slane %v3176_v34, 11  ;;  %v2396_v51 = vld [vmem:[#allocation2 + $0x34] sm:$0xf]  ;;  %v3133_v23 = vld [vmem:[#allocation2 + $0x30] sm:$0x8] }
 0x1de   : > { %v3183_v7 = vrot.slane %v3181_v31, 7  ;;  %v2479_v13 = vor.u32 %v2478_v48, %v2474_v16  ;;  %v3192_v50 = vrot.slane %v3190_v60, 7  ;;  %v3193_v29 = vshll.u32 %v3129_v14, 16  ;;  %v2397_v14 = vld [vmem:[#allocation2 + $0x38] sm:$0xf] }
 0x1df   : > { %v1363_v3 = vsel %vm16204_vm10, 0, %v1362_v55  ;;  %v2487_v15 = vshrl.u32 %v2393_v27, 16  ;;  %v2490_v45 = vshll.u32 %v2393_v27, 16  ;;  %v2496_v8 = vshll.u32 %v2394_v54, 16  ;;  %v3134_v52 = vld [vmem:[#allocation2 + $0x34] sm:$0xf] }
 0x1e0   : > { %v3186_v57 = vor.u32 %v3184_v28, %v3183_v7  ;;  %v3188_v59 = vrot.slane %v3183_v7, 4  ;;  %1364 = vst [vmem:[#allocation2 + $0x2c] sm:$0x1] %v1363_v3  ;;  %v2480_v43 = vrot.slane %v2479_v13, 4  ;;  %v3195_v0 = vor.u32 %v3193_v29, %v3192_v50  ;;  %v3135_v29 = vld [vmem:[#allocation2 + $0x38] sm:$0xf] }
 0x1e1   : > { %v2500_v5 = vshrl.u32 %v2394_v54, 16  ;;  %v2489_v21 = vrot.slane %v2487_v15, 4  ;;  %v2492_v42 = vrot.slane %v2490_v45, 5  ;;  %v3198_v46 = vshrl.u32 %v3130_v4, 16  ;;  %v1368_v4 = vld [vmem:[#allocation2 + $0x4c] sm:$0x1] }
 0x1e2   : > { %v3187_v61 = vsel %vm16088_vm8, %v13327_v62, %v3186_v57  ;;  %v2485_v47 = vsel %vm16852_vm13, %v2480_v43, %v2484_v32  ;;  %v3196_v26 = vsel %vm16088_vm8, %v3188_v59, %v3195_v0  ;;  %v2498_v22 = vrot.slane %v2496_v8, 5  ;;  %v15132_v57 = vld [vmem:[%s21425_s4 + $0x40] sm:$0xff]  }
 0x1e3   : > { %v2502_v12 = vrot.slane %v2500_v5, 4  ;;  %14458 = vmatmul.mubr.msk.bf16.gmra.mxu1 %vm465_vm1, %v16822_v38  ;;  %v13294_v36 = vcombine.low %v2475_v58, %v2485_v47  ;;  %v13343_v56 = vcombine.low %v3187_v61, %v3196_v26  ;;  %v2493_v6 = vor.u32 %v2492_v42, %v2489_v21  ;;  %v2399_v0 = vld [vmem:[#allocation2 + $0x44] sm:$0xf]  ;;  %v2400_v21 = vld [vmem:[#allocation2 + $0x48] sm:$0xf] }
 0x1e4   : > { %v13328_v19 = vrot.slane %v3198_v46, 11  ;;  %14426 = vmatmul.mubr.msk.bf16.gmra.mxu0 %vm465_vm1, %v13240_v37  ;;  %14461 = vmatprep.mubr.msk.bf16.mxu1 %vm465_vm1, %v16824_v25  ;;  %v3203_v10 = vshrl.u32 %v3131_v53, 16  ;;  %v3206_v49 = vshll.u32 %v3131_v53, 16  ;;  %v3212_v16 = vshrl.u32 %v3132_v20, 16 }
 0x1e5   : > { %v2503_v40 = vor.u32 %v2502_v12, %v2498_v22  ;;  %14469 = vmatprep.mubr.msk.bf16.mxu0 %vm465_vm1, %v13293_v11  ;;  %v2494_v38 = vrot.slane %v2493_v6, 4  ;;  %v3215_v39 = vshll.u32 %v3132_v20, 16  ;;  %v1366_v63 = vsel %vm16204_vm10, 0, %v1365_v1 }
 0x1e6   : > { %v2511_v2 = vshrl.u32 %v2396_v51, 16  ;;  %v3205_v37 = vrot.slane %v3203_v10, 7  ;;  %v3214_v41 = vrot.slane %v3212_v16, 7  ;;  %1367 = vst [vmem:[#allocation2 + $0x3c] sm:$0x1] %v1366_v63  ;;  %v2514_v25 = vshll.u32 %v2396_v51, 16 }
 0x1e7   : > { %v2395_v44 = vld [vmem:[#allocation2 + $0x2c] sm:$0x1]  ;;  %v2504_v33 = vrot.slane %v2503_v40, 4  ;;  %v2499_v34 = vsel %vm16852_vm13, %v2494_v38, %v2498_v22  ;;  %v2520_v55 = vshll.u32 %v2397_v14, 16  ;;  %v2524_v62 = vshrl.u32 %v2397_v14, 16 }
 0x1e8   : > { %v2506_v31 = vshll.u32 %v2395_v44, 16  ;;  %v2513_v28 = vrot.slane %v2511_v2, 4  ;;  %v3208_v58 = vor.u32 %v3206_v49, %v3205_v37  ;;  %v3210_v48 = vrot.slane %v3205_v37, 4  ;;  %v3136_v51 = vld [vmem:[#allocation2 + $0x40] sm:$0x8]  ;;  %v15138_v44 = vld [vmem:[%s21425_s4 + $0x50] sm:$0xff]  }
 0x1e9   : > { %v3217_v60 = vor.u32 %v3215_v39, %v3214_v41  ;;  %v2516_v27 = vrot.slane %v2514_v25, 5  ;;  %v2522_v32 = vrot.slane %v2520_v55, 5  ;;  %v3220_v7 = vshrl.u32 %v3133_v23, 16  ;;  %v3137_v40 = vld [vmem:[#allocation2 + $0x44] sm:$0xf] }
 0x1ea   : > { %v2508_v11 = vrot.slane %v2506_v31, 5  ;;  %v3209_v54 = vsel %vm16088_vm8, %v13328_v19, %v3208_v58  ;;  %v3225_v3 = vshrl.u32 %v3134_v52, 16  ;;  %v2526_v45 = vrot.slane %v2524_v62, 4  ;;  %v1371_v23 = vld [vmem:[#allocation2 + $0x5c] sm:$0x1] }
 0x1eb   : > { %v3218_v13 = vsel %vm16088_vm8, %v3210_v48, %v3217_v60  ;;  %v2517_v50 = vor.u32 %v2516_v27, %v2513_v28  ;;  %14462 = vmatmul.mubr.msk.bf16.gmra.mxu1 %vm465_vm1, %v16832_v35  ;;  %v13329_v43 = vrot.slane %v3220_v7, 11  ;;  %v3228_v61 = vshll.u32 %v3134_v52, 16  ;;  %v3138_v25 = vld [vmem:[#allocation2 + $0x48] sm:$0xf] }
 0x1ec   : > { %v2509_v59 = vsel %vm16852_vm13, %v2504_v33, %v2508_v11  ;;  %v13344_v15 = vcombine.low %v3209_v54, %v3218_v13  ;;  %14470 = vmatmul.mubr.msk.bf16.vlgmr.msra.gmra.mxu0 %vm465_vm1, %v13294_v36  ;;  %14505 = vmatprep.mubr.msk.bf16.mxu1 %vm465_vm1, %v13343_v56  ;;  %v3227_v53 = vrot.slane %v3225_v3, 7  ;;  %v2527_v35 = vor.u32 %v2526_v45, %v2522_v32  ;;  %v2402_v11 = vld [vmem:[#allocation2 + $0x54] sm:$0xf] }
 0x1ed   : > { %v13295_v8 = vcombine.low %v2499_v34, %v2509_v59  ;;  %v2518_v5 = vrot.slane %v2517_v50, 4  ;;  %14538 = vmatpush3.bf16.msra.mxu0 %v16606_v24  ;;  %v2398_v42 = vld [vmem:[#allocation2 + $0x3c] sm:$0x1]  ;;  %v3234_v20 = vshrl.u32 %v3135_v29, 16  ;;  %v3237_v46 = vshll.u32 %v3135_v29, 16  ;;  %v15135_v24 = vld [vmem:[%s21425_s4 + $0x68] sm:$0xff]  }
 0x1ee   : > { %v1369_v47 = vsel %vm16204_vm10, 0, %v1368_v4  ;;  %v2530_v22 = vshll.u32 %v2398_v42, 16  ;;  %v3230_v12 = vor.u32 %v3228_v61, %v3227_v53  ;;  %v3232_v1 = vrot.slane %v3227_v53, 4  ;;  %14539 = vmatprep.subr.bf16.mxu0 %v15132_v57  ;;  %v3139_v59 = vld [vmem:[#allocation2 + $0x50] sm:$0x8] }
 0x1ef   : > { %14473 = vmatprep.mubr.msk.bf16.mxu0 %vm465_vm1, %v13295_v8  ;;  %v2523_v26 = vsel %vm16852_vm13, %v2518_v5, %v2522_v32  ;;  %1370 = vst [vmem:[#allocation2 + $0x4c] sm:$0x1] %v1369_v47  ;;  %v2528_v36 = vrot.slane %v2527_v35, 4  ;;  %v3236_v56 = vrot.slane %v3234_v20, 7  ;;  %v2535_v6 = vshrl.u32 %v2399_v0, 16 }
 0x1f0   : > { %v2538_v19 = vshll.u32 %v2399_v0, 16  ;;  %v2532_v10 = vrot.slane %v2530_v22, 5  ;;  %v3231_v49 = vsel %vm16088_vm8, %v13329_v43, %v3230_v12  ;;  %v2544_v16 = vshll.u32 %v2400_v21, 16  ;;  %v2403_v32 = vld [vmem:[#allocation2 + $0x58] sm:$0xf] }
 0x1f1   : > { %v2548_v14 = vshrl.u32 %v2400_v21, 16  ;;  %v3239_v38 = vor.u32 %v3237_v46, %v3236_v56  ;;  %v2537_v39 = vrot.slane %v2535_v6, 4  ;;  %v3242_v2 = vshrl.u32 %v3136_v51, 16  ;;  %14540 = vmatpush3.bf16.msra.mxu0 %v15132_v57  ;;  %v3140_v0 = vld [vmem:[#allocation2 + $0x54] sm:$0xf] }
 0x1f2   : > { %v2540_v63 = vrot.slane %v2538_v19, 5  ;;  %v2533_v33 = vsel %vm16852_vm13, %v2528_v36, %v2532_v10  ;;  %v2546_v37 = vrot.slane %v2544_v16, 5  ;;  %v3247_v34 = vshrl.u32 %v3137_v40, 16  ;;  %14609 = vmatprep.subr.bf16.mxu0 %v15135_v24  ;;  %v1374_v46 = vld [vmem:[#allocation2 + $0x6c] sm:$0x1] }
 0x1f3   : > { %v2550_v41 = vrot.slane %v2548_v14, 4  ;;  %14506 = vmatmul.mubr.msk.bf16.vlgmr.msra.gmra.mxu1 %vm465_vm1, %v13344_v15  ;;  %v13296_v31 = vcombine.low %v2523_v26, %v2533_v33  ;;  %v3240_v28 = vsel %vm16088_vm8, %v3232_v1, %v3239_v38  ;;  %v13330_v52 = vrot.slane %v3242_v2, 11  ;;  %v3141_v12 = vld [vmem:[#allocation2 + $0x58] sm:$0xf]  ;;  %v2406_v16 = vld [vmem:[#allocation2 + $0x68] sm:$0xf] }
 0x1f4   : > { %v2541_v55 = vor.u32 %v2540_v63, %v2537_v39  ;;  %v13345_v58 = vcombine.low %v3231_v49, %v3240_v28  ;;  %v3249_v60 = vrot.slane %v3247_v34, 7  ;;  %v3250_v27 = vshll.u32 %v3137_v40, 16  ;;  %14574 = vmatpush3.bf16.msra.mxu1 %v16859_v18  ;;  %v2405_v49 = vld [vmem:[#allocation2 + $0x64] sm:$0xf] }
 0x1f5   : > { %v2551_v48 = vor.u32 %v2550_v41, %v2546_v37  ;;  %14474 = vmatmul.mubr.msk.bf16.gmra.mxu0 %vm465_vm1, %v13296_v31  ;;  %v3256_v54 = vshrl.u32 %v3138_v25, 16  ;;  %v3259_v13 = vshll.u32 %v3138_v25, 16  ;;  %v1372_v50 = vsel %vm16204_vm10, 0, %v1371_v23  ;;  %14575 = vmatprep.subr.bf16.mxu1 %v15138_v44  ;;  %v3142_v41 = vld [vmem:[#allocation2 + $0x60] sm:$0x8] }
 0x1f6   : > { %v2401_v62 = vld [vmem:[#allocation2 + $0x4c] sm:$0x1]  ;;  %v2542_v7 = vrot.slane %v2541_v55, 4  ;;  %14509 = vmatprep.mubr.msk.bf16.mxu1 %vm465_vm1, %v13345_v58  ;;  %v3252_v4 = vor.u32 %v3250_v27, %v3249_v60  ;;  %v3254_v57 = vrot.slane %v3249_v60, 4  ;;  %1373 = vst [vmem:[#allocation2 + $0x5c] sm:$0x1] %v1372_v50 }
 0x1f7   : > { %v2552_v29 = vrot.slane %v2551_v48, 4  ;;  %v2554_v3 = vshll.u32 %v2401_v62, 16  ;;  %v3258_v15 = vrot.slane %v3256_v54, 7  ;;  %v2559_v45 = vshrl.u32 %v2402_v11, 16  ;;  %v3143_v55 = vld [vmem:[#allocation2 + $0x64] sm:$0xf] }
 0x1f8   : > { %v2547_v18 = vsel %vm16852_vm13, %v2542_v7, %v2546_v37  ;;  %v2562_v43 = vshll.u32 %v2402_v11, 16  ;;  %v3253_v5 = vsel %vm16088_vm8, %v13330_v52, %v3252_v4  ;;  %v2568_v53 = vshll.u32 %v2403_v32, 16  ;;  %14576 = vmatpush3.bf16.msra.mxu1 %v15138_v44  ;;  %v1377_v7 = vld [vmem:[#allocation2 + $0x7c] sm:$0x1] }
 0x1f9   : > { %v2556_v8 = vrot.slane %v2554_v3, 5  ;;  %v2572_v61 = vshrl.u32 %v2403_v32, 16  ;;  %v3261_v21 = vor.u32 %v3259_v13, %v3258_v15  ;;  %v2561_v42 = vrot.slane %v2559_v45, 4 }
 0x1fa   : > { %v2564_v35 = vrot.slane %v2562_v43, 5  ;;  %v3264_v20 = vshrl.u32 %v3139_v59, 16  ;;  %v2570_v26 = vrot.slane %v2568_v53, 5  ;;  %v3269_v1 = vshrl.u32 %v3140_v0, 16 }
 0x1fb   : > { %v2557_v47 = vsel %vm16852_vm13, %v2552_v29, %v2556_v8  ;;  %v2574_v22 = vrot.slane %v2572_v61, 4  ;;  %v3262_v24 = vsel %vm16088_vm8, %v3254_v57, %v3261_v21  ;;  %v3272_v10 = vshll.u32 %v3140_v0, 16  ;;  %v3144_v29 = vld [vmem:[#allocation2 + $0x68] sm:$0xf]  ;;  %v2408_v8 = vld [vmem:[#allocation2 + $0x74] sm:$0xf] }
 0x1fc   : > { %v13297_v51 = vcombine.low %v2547_v18, %v2557_v47  ;;  %v2565_v36 = vor.u32 %v2564_v35, %v2561_v42  ;;  %v13331_v56 = vrot.slane %v3264_v20, 11  ;;  %v13346_v6 = vcombine.low %v3253_v5, %v3262_v24  ;;  %v2409_v5 = vld [vmem:[#allocation2 + $0x78] sm:$0xf] }
 0x1fd   : > { %v2575_v19 = vor.u32 %v2574_v22, %v2570_v26  ;;  %v3271_v40 = vrot.slane %v3269_v1, 7  ;;  %v2404_v14 = vld [vmem:[#allocation2 + $0x5c] sm:$0x1]  ;;  %v3278_v39 = vshrl.u32 %v3141_v12, 16  ;;  %v3281_v63 = vshll.u32 %v3141_v12, 16 }
 0x1fe   : > { %14477 = vmatprep.mubr.msk.bf16.mxu0 %vm465_vm1, %v13297_v51  ;;  %v2566_v38 = vrot.slane %v2565_v36, 4  ;;  %v1375_v2 = vsel %vm16204_vm10, 0, %v1374_v46  ;;  %14510 = vmatmul.mubr.msk.bf16.gmra.mxu1 %vm465_vm1, %v13346_v6  ;;  %v2578_v44 = vshll.u32 %v2404_v14, 16  ;;  %v2583_v31 = vshrl.u32 %v2405_v49, 16  ;;  %v3145_v22 = vld [vmem:[#allocation2 + $0x70] sm:$0x8] }
 0x1ff   : > { %v2576_v23 = vrot.slane %v2575_v19, 4  ;;  %v3274_v33 = vor.u32 %v3272_v10, %v3271_v40  ;;  %v3276_v37 = vrot.slane %v3271_v40, 4  ;;  %1376 = vst [vmem:[#allocation2 + $0x6c] sm:$0x1] %v1375_v2  ;;  %v3280_v34 = vrot.slane %v3278_v39, 7 }
 0x200   : > { %v2571_v25 = vsel %vm16852_vm13, %v2566_v38, %v2570_v26  ;;  %v2586_v28 = vshll.u32 %v2405_v49, 16  ;;  %v2580_v52 = vrot.slane %v2578_v44, 5  ;;  %v2592_v48 = vshll.u32 %v2406_v16, 16  ;;  %v3146_v36 = vld [vmem:[#allocation2 + $0x74] sm:$0xf] }
 0x201   : > { %v3275_v58 = vsel %vm16088_vm8, %v13331_v56, %v3274_v33  ;;  %v2596_v60 = vshrl.u32 %v2406_v16, 16  ;;  %v3283_v27 = vor.u32 %v3281_v63, %v3280_v34  ;;  %v2585_v11 = vrot.slane %v2583_v31, 4  ;;  %v1380_v38 = vld [vmem:[#allocation2 + $0x8c] sm:$0x1] }
 0x202   : > { %v2588_v32 = vrot.slane %v2586_v28, 5  ;;  %v3286_v62 = vshrl.u32 %v3142_v41, 16  ;;  %v2581_v54 = vsel %vm16852_vm13, %v2576_v23, %v2580_v52  ;;  %v2594_v13 = vrot.slane %v2592_v48, 5  ;;  %v3147_v23 = vld [vmem:[#allocation2 + $0x78] sm:$0xf] }
 0x203   : > { %v2598_v50 = vrot.slane %v2596_v60, 4  ;;  %v3291_v3 = vshrl.u32 %v3143_v55, 16  ;;  %v13298_v4 = vcombine.low %v2571_v25, %v2581_v54  ;;  %v3284_v57 = vsel %vm16088_vm8, %v3276_v37, %v3283_v27  ;;  %v2411_v52 = vld [vmem:[#allocation2 + $0x84] sm:$0xf] }
 0x204   : > { %v2589_v59 = vor.u32 %v2588_v32, %v2585_v11  ;;  %v13332_v18 = vrot.slane %v3286_v62, 11  ;;  %v13347_v15 = vcombine.low %v3275_v58, %v3284_v57  ;;  %v3294_v0 = vshll.u32 %v3143_v55, 16  ;;  %v2412_v58 = vld [vmem:[#allocation2 + $0x88] sm:$0xf] }
 0x205   : > { %v2599_v45 = vor.u32 %v2598_v50, %v2594_v13  ;;  %v3293_v43 = vrot.slane %v3291_v3, 7  ;;  %14478 = vmatmul.mubr.msk.bf16.gmra.mxu0 %vm465_vm1, %v13298_v4  ;;  %v3300_v21 = vshrl.u32 %v3144_v29, 16  ;;  %v3303_v42 = vshll.u32 %v3144_v29, 16  ;;  %v3148_v50 = vld [vmem:[#allocation2 + $0x80] sm:$0x8] }
 0x206   : > { %v2407_v53 = vld [vmem:[#allocation2 + $0x6c] sm:$0x1]  ;;  %v2590_v61 = vrot.slane %v2589_v59, 4  ;;  %v1378_v35 = vsel %vm16204_vm10, 0, %v1377_v7  ;;  %14513 = vmatprep.mubr.msk.bf16.mxu1 %vm465_vm1, %v13347_v15  ;;  %v2607_v51 = vshrl.u32 %v2408_v8, 16  ;;  %v2610_v24 = vshll.u32 %v2408_v8, 16 }
 0x207   : > { %v2600_v20 = vrot.slane %v2599_v45, 4  ;;  %v2602_v46 = vshll.u32 %v2407_v53, 16  ;;  %v3296_v47 = vor.u32 %v3294_v0, %v3293_v43  ;;  %v3298_v26 = vrot.slane %v3293_v43, 4  ;;  %1379 = vst [vmem:[#allocation2 + $0x7c] sm:$0x1] %v1378_v35 }
 0x208   : > { %v2595_v12 = vsel %vm16852_vm13, %v2590_v61, %v2594_v13  ;;  %v3302_v1 = vrot.slane %v3300_v21, 7  ;;  %v2616_v19 = vshll.u32 %v2409_v5, 16  ;;  %v2620_v40 = vshrl.u32 %v2409_v5, 16  ;;  %v16985_v59 = vld [vmem:[#allocation2 + $0x84] sm:$0xf] }
 0x209   : > { %v2604_v56 = vrot.slane %v2602_v46, 5  ;;  %v3297_v6 = vsel %vm16088_vm8, %v13332_v18, %v3296_v47  ;;  %v2609_v49 = vrot.slane %v2607_v51, 4  ;;  %v2612_v16 = vrot.slane %v2610_v24, 5  ;;  %v1383_v61 = vld [vmem:[#allocation2 + $0x9c] sm:$0x1] }
 0x20a   : > { %v3305_v10 = vor.u32 %v3303_v42, %v3302_v1  ;;  %v3308_v14 = vshrl.u32 %v3145_v22, 16  ;;  %v2618_v63 = vrot.slane %v2616_v19, 5  ;;  %v2622_v2 = vrot.slane %v2620_v40, 4 }
 0x20b   : > { %v2605_v39 = vsel %vm16852_vm13, %v2600_v20, %v2604_v56  ;;  %v3313_v44 = vshrl.u32 %v3146_v36, 16  ;;  %v2613_v41 = vor.u32 %v2612_v16, %v2609_v49  ;;  %v3316_v55 = vshll.u32 %v3146_v36, 16  ;;  %v16991_v20 = vld [vmem:[#allocation2 + $0x88] sm:$0xf]  ;;  %v2414_v56 = vld [vmem:[#allocation2 + $0x94] sm:$0xf] }
 0x20c   : > { %v13299_v33 = vcombine.low %v2595_v12, %v2605_v39  ;;  %v3306_v37 = vsel %vm16088_vm8, %v3298_v26, %v3305_v10  ;;  %v13333_v25 = vrot.slane %v3308_v14, 11  ;;  %v2623_v31 = vor.u32 %v2622_v2, %v2618_v63  ;;  %v3151_v2 = vld [vmem:[#allocation2 + $0x90] sm:$0x8] }
 0x20d   : > { %v13348_v34 = vcombine.low %v3297_v6, %v3306_v37  ;;  %v3315_v28 = vrot.slane %v3313_v44, 7  ;;  %v2614_v60 = vrot.slane %v2613_v41, 4  ;;  %v3322_v27 = vshrl.u32 %v3147_v23, 16  ;;  %v2415_v6 = vld [vmem:[#allocation2 + $0x98] sm:$0xf] }
 0x20e   : > { %14481 = vmatprep.mubr.msk.bf16.mxu0 %vm465_vm1, %v13299_v33  ;;  %v2410_v48 = vld [vmem:[#allocation2 + $0x7c] sm:$0x1]  ;;  %v3325_v11 = vshll.u32 %v3147_v23, 16  ;;  %v1381_v32 = vsel %vm16204_vm10, 0, %v1380_v38  ;;  %v2624_v62 = vrot.slane %v2623_v31, 4  ;;  %v2631_v4 = vshrl.u32 %v2411_v52, 16 }
 0x20f   : > { %14514 = vmatmul.mubr.msk.bf16.gmra.mxu1 %vm465_vm1, %v13348_v34  ;;  %v2626_v7 = vshll.u32 %v2410_v48, 16  ;;  %v3318_v54 = vor.u32 %v3316_v55, %v3315_v28  ;;  %v3320_v13 = vrot.slane %v3315_v28, 4  ;;  %1382 = vst [vmem:[#allocation2 + $0x8c] sm:$0x1] %v1381_v32  ;;  %v2619_v29 = vsel %vm16852_vm13, %v2614_v60, %v2618_v63  ;;  %v17005_v41 = vld [vmem:[#allocation2 + $0x94] sm:$0xf] }
 0x210   : > { %v3324_v3 = vrot.slane %v3322_v27, 7  ;;  %v2634_v57 = vshll.u32 %v2411_v52, 16  ;;  %v2640_v45 = vshll.u32 %v2412_v58, 16  ;;  %v2644_v43 = vshrl.u32 %v2412_v58, 16  ;;  %v1386_v60 = vld [vmem:[#allocation2 + $0xac] sm:$0x1] }
 0x211   : > { %v2628_v18 = vrot.slane %v2626_v7, 5  ;;  %v3319_v15 = vsel %vm16088_vm8, %v13333_v25, %v3318_v54  ;;  %v2633_v8 = vrot.slane %v2631_v4, 4  ;;  %v3330_v53 = vshrl.u32 %v3148_v50, 16 }
 0x212   : > { %v3327_v0 = vor.u32 %v3325_v11, %v3324_v3  ;;  %v2636_v5 = vrot.slane %v2634_v57, 5  ;;  %v2642_v42 = vrot.slane %v2640_v45, 5  ;;  %v2646_v35 = vrot.slane %v2644_v43, 4  ;;  %v2418_v45 = vld [vmem:[#allocation2 + $0xa8] sm:$0xf] }
 0x213   : > { %v2629_v21 = vsel %vm16852_vm13, %v2624_v62, %v2628_v18  ;;  %v3335_v46 = vshrl.u32 %v16985_v59, 16  ;;  %v13334_v12 = vrot.slane %v3330_v53, 11  ;;  %v3338_v36 = vshll.u32 %v16985_v59, 16  ;;  %v17011_v62 = vld [vmem:[#allocation2 + $0x98] sm:$0xf] }
 0x214   : > { %v13300_v47 = vcombine.low %v2619_v29, %v2629_v21  ;;  %v3328_v26 = vsel %vm16088_vm8, %v3320_v13, %v3327_v0  ;;  %v2637_v22 = vor.u32 %v2636_v5, %v2633_v8  ;;  %v2647_v51 = vor.u32 %v2646_v35, %v2642_v42 }
 0x215   : > { %v13349_v1 = vcombine.low %v3319_v15, %v3328_v26  ;;  %v3337_v24 = vrot.slane %v3335_v46, 7  ;;  %v3344_v10 = vshrl.u32 %v16991_v20, 16  ;;  %v3347_v49 = vshll.u32 %v16991_v20, 16  ;;  %v2417_v15 = vld [vmem:[#allocation2 + $0xa4] sm:$0xf] }
 0x216   : > { %14482 = vmatmul.mubr.msk.bf16.gmra.mxu0 %vm465_vm1, %v13300_v47  ;;  %v2413_v19 = vld [vmem:[#allocation2 + $0x8c] sm:$0x1]  ;;  %v2638_v40 = vrot.slane %v2637_v22, 4  ;;  %v1384_v16 = vsel %vm16204_vm10, 0, %v1383_v61  ;;  %v2648_v14 = vrot.slane %v2647_v51, 4  ;;  %v2655_v33 = vshrl.u32 %v2414_v56, 16 }
 0x217   : > { %14517 = vmatprep.mubr.msk.bf16.mxu1 %vm465_vm1, %v13349_v1  ;;  %v2650_v38 = vshll.u32 %v2413_v19, 16  ;;  %v3340_v39 = vor.u32 %v3338_v36, %v3337_v24  ;;  %v3342_v63 = vrot.slane %v3337_v24, 4  ;;  %1385 = vst [vmem:[#allocation2 + $0x9c] sm:$0x1] %v1384_v16  ;;  %v3346_v44 = vrot.slane %v3344_v10, 7  ;;  %v17032_v16 = vld [vmem:[%s21425_s4 + $0x78] sm:$0xff]  }
 0x218   : > { %v2643_v23 = vsel %vm16852_vm13, %v2638_v40, %v2642_v42  ;;  %v2658_v37 = vshll.u32 %v2414_v56, 16  ;;  %v2664_v31 = vshll.u32 %v2415_v6, 16  ;;  %v2668_v28 = vshrl.u32 %v2415_v6, 16  ;;  %v3154_v46 = vld [vmem:[#allocation2 + $0xa0] sm:$0x8]  ;;  %14645 = vmatprep.subr.bf16.mxu1 %v17032_v16 }
 0x219   : > { %v2652_v25 = vrot.slane %v2650_v38, 5  ;;  %v3341_v34 = vsel %vm16088_vm8, %v13334_v12, %v3340_v39  ;;  %v3349_v55 = vor.u32 %v3347_v49, %v3346_v44  ;;  %v2657_v52 = vrot.slane %v2655_v33, 4  ;;  %v17025_v1 = vld [vmem:[#allocation2 + $0xa4] sm:$0xf]  ;;  %v1389_v49 = vld [vmem:[#allocation2 + $0xbc] sm:$0x1] }
 0x21a   : > { %v2660_v58 = vrot.slane %v2658_v37, 5  ;;  %v3352_v48 = vshrl.u32 %v3151_v2, 16  ;;  %v2666_v11 = vrot.slane %v2664_v31, 5  ;;  %v2670_v32 = vrot.slane %v2668_v28, 4 }
 0x21b   : > { %v2653_v27 = vsel %vm16852_vm13, %v2648_v14, %v2652_v25  ;;  %v3357_v7 = vshrl.u32 %v17005_v41, 16  ;;  %v3350_v13 = vsel %vm16088_vm8, %v3342_v63, %v3349_v55  ;;  %v3360_v18 = vshll.u32 %v17005_v41, 16  ;;  %v17036_v63 = vld [vmem:[#allocation2 + $0xa8] sm:$0xf]  ;;  %v2420_v55 = vld [vmem:[#allocation2 + $0xb4] sm:$0xf] }
 0x21c   : > { %v13301_v54 = vcombine.low %v2643_v23, %v2653_v27  ;;  %v2661_v50 = vor.u32 %v2660_v58, %v2657_v52  ;;  %v13335_v29 = vrot.slane %v3352_v48, 11  ;;  %v13350_v3 = vcombine.low %v3341_v34, %v3350_v13  ;;  %v2421_v52 = vld [vmem:[#allocation2 + $0xb8] sm:$0xf] }
 0x21d   : > { %v2671_v4 = vor.u32 %v2670_v32, %v2666_v11  ;;  %v3359_v57 = vrot.slane %v3357_v7, 7  ;;  %v3366_v8 = vshrl.u32 %v17011_v62, 16  ;;  %v3369_v5 = vshll.u32 %v17011_v62, 16 }
 0x21e   : > { %14485 = vmatprep.mubr.msk.bf16.mxu0 %vm465_vm1, %v13301_v54  ;;  %v2416_v43 = vld [vmem:[#allocation2 + $0x9c] sm:$0x1]  ;;  %v2662_v0 = vrot.slane %v2661_v50, 4  ;;  %v1387_v53 = vsel %vm16204_vm10, 0, %v1386_v60  ;;  %14518 = vmatmul.mubr.msk.bf16.gmra.mxu1 %vm465_vm1, %v13350_v3  ;;  %v2679_v22 = vshrl.u32 %v2417_v15, 16  ;;  %v2682_v12 = vshll.u32 %v2417_v15, 16 }
 0x21f   : > { %v2672_v61 = vrot.slane %v2671_v4, 4  ;;  %v2674_v21 = vshll.u32 %v2416_v43, 16  ;;  %v3362_v42 = vor.u32 %v3360_v18, %v3359_v57  ;;  %v3364_v35 = vrot.slane %v3359_v57, 4  ;;  %1388 = vst [vmem:[#allocation2 + $0xac] sm:$0x1] %v1387_v53 }
 0x220   : > { %v2667_v47 = vsel %vm16852_vm13, %v2662_v0, %v2666_v11  ;;  %v3368_v26 = vrot.slane %v3366_v8, 7  ;;  %v2688_v36 = vshll.u32 %v2418_v45, 16  ;;  %v2692_v56 = vshrl.u32 %v2418_v45, 16  ;;  %v3157_v50 = vld [vmem:[#allocation2 + $0xb0] sm:$0x8] }
 0x221   : > { %v2676_v51 = vrot.slane %v2674_v21, 5  ;;  %v3363_v24 = vsel %vm16088_vm8, %v13335_v29, %v3362_v42  ;;  %v2681_v19 = vrot.slane %v2679_v22, 4  ;;  %v2684_v40 = vrot.slane %v2682_v12, 5  ;;  %v17051_v18 = vld [vmem:[#allocation2 + $0xb4] sm:$0xf] }
 0x222   : > { %v3371_v6 = vor.u32 %v3369_v5, %v3368_v26  ;;  %v3374_v10 = vshrl.u32 %v3154_v46, 16  ;;  %v2690_v38 = vrot.slane %v2688_v36, 5  ;;  %v2694_v39 = vrot.slane %v2692_v56, 4  ;;  %v1392_v21 = vld [vmem:[#allocation2 + $0xcc] sm:$0x1] }
 0x223   : > { %v2677_v14 = vsel %vm16852_vm13, %v2672_v61, %v2676_v51  ;;  %v3379_v2 = vshrl.u32 %v17025_v1, 16  ;;  %v2685_v33 = vor.u32 %v2684_v40, %v2681_v19  ;;  %v3382_v28 = vshll.u32 %v17025_v1, 16  ;;  %v2423_v40 = vld [vmem:[#allocation2 + $0xc4] sm:$0xf] }
 0x224   : > { %v13302_v23 = vcombine.low %v2667_v47, %v2677_v14  ;;  %v3372_v44 = vsel %vm16088_vm8, %v3364_v35, %v3371_v6  ;;  %v13336_v37 = vrot.slane %v3374_v10, 11  ;;  %v2695_v34 = vor.u32 %v2694_v39, %v2690_v38  ;;  %v17057_v47 = vld [vmem:[#allocation2 + $0xb8] sm:$0xf]  ;;  %v2424_v10 = vld [vmem:[#allocation2 + $0xc8] sm:$0xf] }
 0x225   : > { %v13351_v25 = vcombine.low %v3363_v24, %v3372_v44  ;;  %v3381_v31 = vrot.slane %v3379_v2, 7  ;;  %v2686_v48 = vrot.slane %v2685_v33, 4  ;;  %v3388_v60 = vshrl.u32 %v17036_v63, 16 }
 0x226   : > { %14486 = vmatmul.mubr.msk.bf16.gmra.mxu0 %vm465_vm1, %v13302_v23  ;;  %v2419_v58 = vld [vmem:[#allocation2 + $0xac] sm:$0x1]  ;;  %v3391_v27 = vshll.u32 %v17036_v63, 16  ;;  %v1390_v11 = vsel %vm16204_vm10, 0, %v1389_v49  ;;  %v2696_v32 = vrot.slane %v2695_v34, 4  ;;  %v2703_v4 = vshrl.u32 %v2420_v55, 16 }
 0x227   : > { %14521 = vmatprep.mubr.msk.bf16.mxu1 %vm465_vm1, %v13351_v25  ;;  %v2698_v7 = vshll.u32 %v2419_v58, 16  ;;  %v3384_v54 = vor.u32 %v3382_v28, %v3381_v31  ;;  %v3386_v13 = vrot.slane %v3381_v31, 4  ;;  %1391 = vst [vmem:[#allocation2 + $0xbc] sm:$0x1] %v1390_v11  ;;  %v2691_v29 = vsel %vm16852_vm13, %v2686_v48, %v2690_v38  ;;  %v3160_v25 = vld [vmem:[#allocation2 + $0xc0] sm:$0x8] }
 0x228   : > { %v3390_v3 = vrot.slane %v3388_v60, 7  ;;  %v2706_v57 = vshll.u32 %v2420_v55, 16  ;;  %v2712_v43 = vshll.u32 %v2421_v52, 16  ;;  %v2716_v0 = vshrl.u32 %v2421_v52, 16  ;;  %v17071_v52 = vld [vmem:[#allocation2 + $0xc4] sm:$0xf] }
 0x229   : > { %v2700_v15 = vrot.slane %v2698_v7, 5  ;;  %v3385_v45 = vsel %vm16088_vm8, %v13336_v37, %v3384_v54  ;;  %v2705_v5 = vrot.slane %v2703_v4, 4  ;;  %v3396_v61 = vshrl.u32 %v3157_v50, 16  ;;  %v17075_v54 = vld [vmem:[#allocation2 + $0xc8] sm:$0xf] }
 0x22a   : > { %v3393_v8 = vor.u32 %v3391_v27, %v3390_v3  ;;  %v2708_v53 = vrot.slane %v2706_v57, 5  ;;  %v2714_v35 = vrot.slane %v2712_v43, 5  ;;  %v2718_v46 = vrot.slane %v2716_v0, 4  ;;  %v1395_v57 = vld [vmem:[#allocation2 + $0xdc] sm:$0x1] }
 0x22b   : > { %v2701_v42 = vsel %vm16852_vm13, %v2696_v32, %v2700_v15  ;;  %v3401_v26 = vshrl.u32 %v17051_v18, 16  ;;  %v13337_v24 = vrot.slane %v3396_v61, 11  ;;  %v3404_v19 = vshll.u32 %v17051_v18, 16 }
 0x22c   : > { %v13303_v22 = vcombine.low %v2691_v29, %v2701_v42  ;;  %v3394_v12 = vsel %vm16088_vm8, %v3386_v13, %v3393_v8  ;;  %v2709_v51 = vor.u32 %v2708_v53, %v2705_v5  ;;  %v2719_v56 = vor.u32 %v2718_v46, %v2714_v35  ;;  %v2427_v42 = vld [vmem:[#allocation2 + $0xd8] sm:$0xf] }
 0x22d   : > { %v13352_v36 = vcombine.low %v3385_v45, %v3394_v12  ;;  %v3403_v6 = vrot.slane %v3401_v26, 7  ;;  %v3410_v38 = vshrl.u32 %v17057_v47, 16  ;;  %v3413_v39 = vshll.u32 %v17057_v47, 16 }
 0x22e   : > { %14489 = vmatprep.mubr.msk.bf16.mxu0 %vm465_vm1, %v13303_v22  ;;  %v2422_v49 = vld [vmem:[#allocation2 + $0xbc] sm:$0x1]  ;;  %v2710_v14 = vrot.slane %v2709_v51, 4  ;;  %v1393_v2 = vsel %vm16204_vm10, 0, %v1392_v21  ;;  %v2720_v23 = vrot.slane %v2719_v56, 4  ;;  %v2727_v28 = vshrl.u32 %v2423_v40, 16 }
 0x22f   : > { %14522 = vmatmul.mubr.msk.bf16.gmra.mxu1 %vm465_vm1, %v13352_v36  ;;  %v2722_v44 = vshll.u32 %v2422_v49, 16  ;;  %v3406_v33 = vor.u32 %v3404_v19, %v3403_v6  ;;  %v3408_v37 = vrot.slane %v3403_v6, 4  ;;  %1394 = vst [vmem:[#allocation2 + $0xcc] sm:$0x1] %v1393_v2  ;;  %v3412_v31 = vrot.slane %v3410_v38, 7 }
 0x230   : > { %v2715_v34 = vsel %vm16852_vm13, %v2710_v14, %v2714_v35  ;;  %v2730_v55 = vshll.u32 %v2423_v40, 16  ;;  %v2736_v60 = vshll.u32 %v2424_v10, 16  ;;  %v2740_v27 = vshrl.u32 %v2424_v10, 16  ;;  %v2426_v21 = vld [vmem:[#allocation2 + $0xd4] sm:$0xf] }
 0x231   : > { %v2724_v58 = vrot.slane %v2722_v44, 5  ;;  %v3407_v48 = vsel %vm16088_vm8, %v13337_v24, %v3406_v33  ;;  %v3415_v11 = vor.u32 %v3413_v39, %v3412_v31  ;;  %v2729_v32 = vrot.slane %v2727_v28, 4  ;;  %v3163_v6 = vld [vmem:[#allocation2 + $0xd0] sm:$0x8]  ;;  %v17091_v14 = vld [vmem:[#allocation2 + $0xd4] sm:$0xf] }
 0x232   : > { %v2732_v7 = vrot.slane %v2730_v55, 5  ;;  %v3418_v13 = vshrl.u32 %v3160_v25, 16  ;;  %v2738_v29 = vrot.slane %v2736_v60, 5  ;;  %v2742_v3 = vrot.slane %v2740_v27, 4 }
 0x233   : > { %v2725_v50 = vsel %vm16852_vm13, %v2720_v23, %v2724_v58  ;;  %v3423_v4 = vshrl.u32 %v17071_v52, 16  ;;  %v3416_v45 = vsel %vm16088_vm8, %v3408_v37, %v3415_v11  ;;  %v3426_v61 = vshll.u32 %v17071_v52, 16  ;;  %v17097_v58 = vld [vmem:[#allocation2 + $0xd8] sm:$0xf] }
 0x234   : > { %v13304_v15 = vcombine.low %v2715_v34, %v2725_v50  ;;  %v2733_v43 = vor.u32 %v2732_v7, %v2729_v32  ;;  %v13338_v0 = vrot.slane %v3418_v13, 11  ;;  %v13353_v8 = vcombine.low %v3407_v48, %v3416_v45  ;;  %v1398_v34 = vld [vmem:[#allocation2 + $0xec] sm:$0x1] }
 0x235   : > { %v2743_v5 = vor.u32 %v2742_v3, %v2738_v29  ;;  %v3425_v53 = vrot.slane %v3423_v4, 7  ;;  %v3432_v26 = vshrl.u32 %v17075_v54, 16  ;;  %v3435_v22 = vshll.u32 %v17075_v54, 16  ;;  %v2429_v3 = vld [vmem:[#allocation2 + $0xe4] sm:$0xf] }
 0x236   : > { %14490 = vmatmul.mubr.msk.bf16.gmra.mxu0 %vm465_vm1, %v13304_v15  ;;  %v2425_v35 = vld [vmem:[#allocation2 + $0xcc] sm:$0x1]  ;;  %v2734_v46 = vrot.slane %v2733_v43, 4  ;;  %v1396_v12 = vsel %vm16204_vm10, 0, %v1395_v57  ;;  %14525 = vmatprep.mubr.msk.bf16.mxu1 %vm465_vm1, %v13353_v8  ;;  %v2751_v10 = vshrl.u32 %v2426_v21, 16  ;;  %v2754_v49 = vshll.u32 %v2426_v21, 16 }
 0x237   : > { %v2744_v51 = vrot.slane %v2743_v5, 4  ;;  %v2746_v24 = vshll.u32 %v2425_v35, 16  ;;  %v3428_v36 = vor.u32 %v3426_v61, %v3425_v53  ;;  %v3430_v56 = vrot.slane %v3425_v53, 4  ;;  %1397 = vst [vmem:[#allocation2 + $0xdc] sm:$0x1] %v1396_v12 }
 0x238   : > { %v2739_v19 = vsel %vm16852_vm13, %v2734_v46, %v2738_v29  ;;  %v3434_v40 = vrot.slane %v3432_v26, 7  ;;  %v2760_v2 = vshll.u32 %v2427_v42, 16  ;;  %v2764_v23 = vshrl.u32 %v2427_v42, 16  ;;  %v2430_v4 = vld [vmem:[#allocation2 + $0xe8] sm:$0xf] }
 0x239   : > { %v2748_v38 = vrot.slane %v2746_v24, 5  ;;  %v3429_v39 = vsel %vm16088_vm8, %v13338_v0, %v3428_v36  ;;  %v2753_v33 = vrot.slane %v2751_v10, 4  ;;  %v2756_v37 = vrot.slane %v2754_v49, 5  ;;  %v3166_v21 = vld [vmem:[#allocation2 + $0xe0] sm:$0x8] }
 0x23a   : > { %v3437_v44 = vor.u32 %v3435_v22, %v3434_v40  ;;  %v3440_v25 = vshrl.u32 %v3163_v6, 16  ;;  %v2762_v28 = vrot.slane %v2760_v2, 5  ;;  %v2766_v55 = vrot.slane %v2764_v23, 4  ;;  %v17111_v22 = vld [vmem:[#allocation2 + $0xe4] sm:$0xf] }
 0x23b   : > { %v2749_v31 = vsel %vm16852_vm13, %v2744_v51, %v2748_v38  ;;  %v3445_v48 = vshrl.u32 %v17091_v14, 16  ;;  %v2757_v11 = vor.u32 %v2756_v37, %v2753_v33  ;;  %v3448_v29 = vshll.u32 %v17091_v14, 16  ;;  %v17115_v40 = vld [vmem:[#allocation2 + $0xe8] sm:$0xf]  ;;  %v1401_v23 = vld [vmem:[#allocation2 + $0xfc] sm:$0x1] }
 0x23c   : > { %v13305_v60 = vcombine.low %v2739_v19, %v2749_v31  ;;  %v3438_v27 = vsel %vm16088_vm8, %v3430_v56, %v3437_v44  ;;  %v13339_v32 = vrot.slane %v3440_v25, 11  ;;  %v2767_v13 = vor.u32 %v2766_v55, %v2762_v28 }
 0x23d   : > { %v13354_v7 = vcombine.low %v3429_v39, %v3438_v27  ;;  %v3447_v50 = vrot.slane %v3445_v48, 7  ;;  %v2758_v15 = vrot.slane %v2757_v11, 4  ;;  %v3454_v45 = vshrl.u32 %v17097_v58, 16  ;;  %v2432_v48 = vld [vmem:[#allocation2 + $0xf4] sm:$0xf] }
 0x23e   : > { %14493 = vmatprep.mubr.msk.bf16.mxu0 %vm465_vm1, %v13305_v60  ;;  %v2428_v57 = vld [vmem:[#allocation2 + $0xdc] sm:$0x1]  ;;  %v3457_v43 = vshll.u32 %v17097_v58, 16  ;;  %v1399_v0 = vsel %vm16204_vm10, 0, %v1398_v34  ;;  %v2768_v8 = vrot.slane %v2767_v13, 4  ;;  %v2775_v46 = vshrl.u32 %v2429_v3, 16 }
 0x23f   : > { %14526 = vmatmul.mubr.msk.bf16.gmra.mxu1 %vm465_vm1, %v13354_v7  ;;  %v2770_v5 = vshll.u32 %v2428_v57, 16  ;;  %v3450_v53 = vor.u32 %v3448_v29, %v3447_v50  ;;  %v3452_v61 = vrot.slane %v3447_v50, 4  ;;  %1400 = vst [vmem:[#allocation2 + $0xec] sm:$0x1] %v1399_v0  ;;  %v2763_v42 = vsel %vm16852_vm13, %v2758_v15, %v2762_v28  ;;  %v2433_v60 = vld [vmem:[#allocation2 + $0xf8] sm:$0xf] }
 0x240   : > { %v3456_v35 = vrot.slane %v3454_v45, 7  ;;  %v2778_v26 = vshll.u32 %v2429_v3, 16  ;;  %v2784_v24 = vshll.u32 %v2430_v4, 16  ;;  %v2788_v36 = vshrl.u32 %v2430_v4, 16  ;;  %v3169_v57 = vld [vmem:[#allocation2 + $0xf0] sm:$0x8] }
 0x241   : > { %v2772_v12 = vrot.slane %v2770_v5, 5  ;;  %v3451_v51 = vsel %vm16088_vm8, %v13339_v32, %v3450_v53  ;;  %v2777_v6 = vrot.slane %v2775_v46, 4  ;;  %v3462_v10 = vshrl.u32 %v3166_v21, 16 }
 0x242   : > { %v3459_v56 = vor.u32 %v3457_v43, %v3456_v35  ;;  %v2780_v19 = vrot.slane %v2778_v26, 5  ;;  %v2786_v38 = vrot.slane %v2784_v24, 5  ;;  %v2790_v39 = vrot.slane %v2788_v36, 4  ;;  %v17137_v36 = vld [vmem:[#allocation2 + $0xf8] sm:$0xf] }
 0x243   : > { %v2773_v49 = vsel %vm16852_vm13, %v2768_v8, %v2772_v12  ;;  %v3467_v2 = vshrl.u32 %v17111_v22, 16  ;;  %v13340_v25 = vrot.slane %v3462_v10, 11  ;;  %v3470_v55 = vshll.u32 %v17111_v22, 16  ;;  %v17131_v8 = vld [vmem:[#allocation2 + $0xf4] sm:$0xf] }
 0x244   : > { %v13306_v44 = vcombine.low %v2763_v42, %v2773_v49  ;;  %v3460_v33 = vsel %vm16088_vm8, %v3452_v61, %v3459_v56  ;;  %v2781_v37 = vor.u32 %v2780_v19, %v2777_v6  ;;  %v2791_v31 = vor.u32 %v2790_v39, %v2786_v38 }
 0x245   : > { %v13355_v34 = vcombine.low %v3451_v51, %v3460_v33  ;;  %v3469_v28 = vrot.slane %v3467_v2, 7  ;;  %v3476_v32 = vshrl.u32 %v17115_v40, 16  ;;  %v3479_v7 = vshll.u32 %v17115_v40, 16  ;;  %v17143_v33 = vld [vmem:[#allocation2 + $0x104] sm:$0xf] }
 0x246   : > { %14494 = vmatmul.mubr.msk.bf16.gmra.mxu0 %vm465_vm1, %v13306_v44  ;;  %v2431_v27 = vld [vmem:[#allocation2 + $0xec] sm:$0x1]  ;;  %v2782_v11 = vrot.slane %v2781_v37, 4  ;;  %v1402_v13 = vsel %vm16204_vm10, 0, %v1401_v23  ;;  %v2792_v50 = vrot.slane %v2791_v31, 4  ;;  %v2799_v43 = vshrl.u32 %v2432_v48, 16 }
 0x247   : > { %14529 = vmatprep.mubr.msk.bf16.mxu1 %vm465_vm1, %v13355_v34  ;;  %v2794_v29 = vshll.u32 %v2431_v27, 16  ;;  %v3472_v3 = vor.u32 %v3470_v55, %v3469_v28  ;;  %v3474_v4 = vrot.slane %v3469_v28, 4  ;;  %1403 = vst [vmem:[#allocation2 + $0xfc] sm:$0x1] %v1402_v13  ;;  %v3478_v45 = vrot.slane %v3476_v32, 7 }
 0x248   : > { %v2787_v15 = vsel %vm16852_vm13, %v2782_v11, %v2786_v38  ;;  %v2802_v0 = vshll.u32 %v2432_v48, 16  ;;  %v2808_v61 = vshll.u32 %v2433_v60, 16  ;;  %v2812_v21 = vshrl.u32 %v2433_v60, 16  ;;  %v1356_v38 = vld [vmem:[#allocation2 + $0x100] sm:$0x8] }
 0x249   : > { %v2796_v5 = vrot.slane %v2794_v29, 5  ;;  %v3473_v53 = vsel %vm16088_vm8, %v13340_v25, %v3472_v3  ;;  %v3481_v42 = vor.u32 %v3479_v7, %v3478_v45  ;;  %v2801_v35 = vrot.slane %v2799_v43, 4  ;;  %v17145_v37 = vld [vmem:[#allocation2 + $0x108] sm:$0xf]  ;;  %v15499_v55 = vld [vmem:[#allocation2 + $0x14] sm:$0xf] }
 0x24a   : > { %v2804_v46 = vrot.slane %v2802_v0, 5  ;;  %v3484_v26 = vshrl.u32 %v3169_v57, 16  ;;  %v2810_v51 = vrot.slane %v2808_v61, 5  ;;  %v2814_v24 = vrot.slane %v2812_v21, 4  ;;  %v15500_v48 = vld [vmem:[#allocation2 + $0x18] sm:$0xf] }
 0x24b   : > { %v2797_v12 = vsel %vm16852_vm13, %v2792_v50, %v2796_v5  ;;  %v3489_v56 = vshrl.u32 %v17131_v8, 16  ;;  %v3482_v19 = vsel %vm16088_vm8, %v3474_v4, %v3481_v42  ;;  %v3492_v44 = vshll.u32 %v17131_v8, 16  ;;  %v4169_v57 = vld [vmem:[#allocation2 + $0x14] sm:$0xf]  ;;  %v17161_v21 = vld [vmem:[#allocation2 + $0x24] sm:$0xf] }
 0x24c   : > { %v13307_v6 = vcombine.low %v2787_v15, %v2797_v12  ;;  %v2805_v10 = vor.u32 %v2804_v46, %v2801_v35  ;;  %v13341_v49 = vrot.slane %v3484_v26, 11  ;;  %v13356_v39 = vcombine.low %v3473_v53, %v3482_v19  ;;  %v17163_v42 = vld [vmem:[#allocation2 + $0x28] sm:$0xf]  ;;  %v4170_v46 = vld [vmem:[#allocation2 + $0x18] sm:$0xf] }
 0x24d   : > { %v2815_v2 = vor.u32 %v2814_v24, %v2810_v51  ;;  %v3491_v23 = vrot.slane %v3489_v56, 7  ;;  %v3498_v31 = vshrl.u32 %v17137_v36, 16  ;;  %v3501_v28 = vshll.u32 %v17137_v36, 16 }
 0x24e   : > { %14497 = vmatprep.mubr.msk.bf16.mxu0 %vm465_vm1, %v13307_v6  ;;  %v2434_v25 = vld [vmem:[#allocation2 + $0xfc] sm:$0x1]  ;;  %v2806_v34 = vrot.slane %v2805_v10, 4  ;;  %v13377_v60 = vcombine.low %v15499_v55, %v15500_v48  ;;  %14530 = vmatmul.mubr.msk.bf16.gmra.mxu1 %vm465_vm1, %v13356_v39  ;;  %v1357_v3 = vsel %vm16072_vm5, 0, %v1356_v38  ;;  %v3511_v4 = vshrl.u32 %v17143_v33, 16 }
 0x24f   : > { %v2816_v27 = vrot.slane %v2815_v2, 4  ;;  %v2818_v11 = vshll.u32 %v2434_v25, 16  ;;  %v3494_v32 = vor.u32 %v3492_v44, %v3491_v23  ;;  %v3496_v7 = vrot.slane %v3491_v23, 4  ;;  %1358 = vst [vmem:[#allocation2 + $0x100] sm:$0x8] %v1357_v3 }
 0x250   : > { %v2811_v13 = vsel %vm16852_vm13, %v2806_v34, %v2810_v51  ;;  %v3500_v50 = vrot.slane %v3498_v31, 7  ;;  %v3514_v43 = vshll.u32 %v17143_v33, 16  ;;  %v3520_v0 = vshrl.u32 %v17145_v37, 16  ;;  %v4171_v51 = vld [vmem:[#allocation2 + $0x1c] sm:$0x1] }
 0x251   : > { %v2820_v15 = vrot.slane %v2818_v11, 5  ;;  %v3495_v45 = vsel %vm16088_vm8, %v13341_v49, %v3494_v32  ;;  %v3513_v53 = vrot.slane %v3511_v4, 7  ;;  %v3523_v61 = vshll.u32 %v17145_v37, 16  ;;  %v4172_v38 = vld [vmem:[#allocation2 + $0x24] sm:$0xf]  ;;  %v17171_v39 = vpop.f32.mrf.mxu0 }
 0x252   : > { %v3503_v5 = vor.u32 %v3501_v28, %v3500_v50  ;;  %v13378_v35 = vcombine.low %v17161_v21, %v17163_v42  ;;  %v3522_v12 = vrot.slane %v3520_v0, 7  ;;  %v4218_v24 = vshrl.u32 %v4169_v57, 16  ;;  %v4173_v34 = vld [vmem:[#allocation2 + $0x28] sm:$0xf]  ;;  %v15503_v48 = vld [vmem:[#allocation2 + $0x34] sm:$0xf] }
 0x253   : > { %v2821_v26 = vsel %vm16852_vm13, %v2816_v27, %v2820_v15  ;;  %v4221_v56 = vshll.u32 %v4169_v57, 16  ;;  %v3516_v10 = vor.u32 %v3514_v43, %v3513_v53  ;;  %v3518_v49 = vrot.slane %v3513_v53, 4  ;;  %v15504_v27 = vld [vmem:[#allocation2 + $0x38] sm:$0xf]  ;;  %v17174_v32 = vpop.f32.mrf.mxu0  ;;  %v4174_v50 = vld [vmem:[#allocation2 + $0x2c] sm:$0x1] }
 0x254   : > { %v13308_v6 = vcombine.low %v2811_v13, %v2821_v26  ;;  %v3504_v19 = vsel %vm16088_vm8, %v3496_v7, %v3503_v5  ;;  %v3525_v23 = vor.u32 %v3523_v61, %v3522_v12  ;;  %v4220_v44 = vrot.slane %v4218_v24, 4  ;;  %v4175_v12 = vld [vmem:[#allocation2 + $0x34] sm:$0xf] }
 0x255   : > { %v13357_v2 = vcombine.low %v3495_v45, %v3504_v19  ;;  %v4223_v25 = vrot.slane %v4221_v56, 5  ;;  %v4227_v31 = vshll.u32 %v4170_v46, 16  ;;  %v4231_v28 = vshrl.u32 %v4170_v46, 16  ;;  %v17180_v5 = vpop.f32.mrf.mxu0 }
 0x256   : > { %14498 = vmatmul.mubr.msk.bf16.gmra.mxu0 %vm465_vm1, %v13308_v6  ;;  %v4237_v55 = vshll.u32 %v4171_v51, 16  ;;  %v13379_v11 = vcombine.low %v15503_v48, %v15504_v27  ;;  %v3526_v7 = vsel %vm16088_vm8, %v3518_v49, %v3525_v23  ;;  %v4242_v3 = vshrl.u32 %v4172_v38, 16  ;;  %v3172_v57 = vld [vmem:[#allocation2 + $0x100] sm:$0x8]  ;;  %v4176_v6 = vld [vmem:[#allocation2 + $0x38] sm:$0xf] }
 0x257   : > { %14533 = vmatprep.mubr.msk.bf16.mxu1 %vm465_vm1, %v13357_v2  ;;  %14541 = vmatprep.mubr.msk.bf16.mxu0 %vm465_vm1, %v13377_v60  ;;  %v4224_v13 = vor.u32 %v4223_v25, %v4220_v44  ;;  %v4245_v4 = vshll.u32 %v4172_v38, 16  ;;  %v4229_v15 = vrot.slane %v4227_v31, 5  ;;  %v4233_v45 = vrot.slane %v4231_v28, 4  ;;  %v17182_v19 = vpop.f32.mrf.mxu0  ;;  %v17186_v23 = vld [vmem:[#allocation2 + $0x44] sm:$0xf] }
 0x258   : > { %v4239_v43 = vrot.slane %v4237_v55, 5  ;;  %v4251_v0 = vshll.u32 %v4173_v34, 16  ;;  %v3506_v53 = vshrl.u32 %v3172_v57, 16  ;;  %v4244_v46 = vrot.slane %v4242_v3, 4  ;;  %21535 = vst [vmem:[#allocation11_spill] sm:$0xff] %v17182_v19  ;;  %v15145_v48 = vld [vmem:[%s21425_s4 + $0x60] sm:$0xff]  }
 0x259   : > { %v4225_v61 = vrot.slane %v4224_v13, 4  ;;  %v4247_v26 = vrot.slane %v4245_v4, 5  ;;  %v4234_v60 = vor.u32 %v4233_v45, %v4229_v15  ;;  %v4255_v24 = vshrl.u32 %v4173_v34, 16  ;;  %v17188_v44 = vld [vmem:[#allocation2 + $0x48] sm:$0xf]  ;;  %v17197_v13 = vpop.f32.mrf.mxu0 }
 0x25a   : > { %v4253_v51 = vrot.slane %v4251_v0, 5  ;;  %v4261_v56 = vshll.u32 %v4174_v50, 16  ;;  %v13342_v49 = vrot.slane %v3506_v53, 11  ;;  %v4266_v34 = vshrl.u32 %v4175_v12, 16  ;;  %v17195_v27 = vpop.f32.mrf.mxu1  ;;  %v4177_v4 = vld [vmem:[#allocation2 + $0x3c] sm:$0x1] }
 0x25b   : > { %v4230_v38 = vsel %vm16852_vm13, %v4225_v61, %v4229_v15  ;;  %v4248_v2 = vor.u32 %v4247_v26, %v4244_v46  ;;  %v4235_v31 = vrot.slane %v4234_v60, 4  ;;  %v4257_v28 = vrot.slane %v4255_v24, 4  ;;  %v4178_v46 = vld [vmem:[#allocation2 + $0x44] sm:$0xf]  ;;  %v4179_v26 = vld [vmem:[#allocation2 + $0x48] sm:$0xf] }
 0x25c   : > { %v4263_v55 = vrot.slane %v4261_v56, 5  ;;  %v3517_v50 = vsel %vm16088_vm8, %v13342_v49, %v3516_v10  ;;  %v4269_v57 = vshll.u32 %v4175_v12, 16  ;;  %v4275_v15 = vshll.u32 %v4176_v6, 16  ;;  %v17207_v60 = vpop.f32.mrf.mxu1  ;;  %v15507_v12 = vld [vmem:[%s21425_s4 + $0x68] sm:$0xff]   ;;  %v15508_v56 = vld [vmem:[#allocation2 + $0x54] sm:$0xf] }
 0x25d   : > { %v4249_v3 = vrot.slane %v4248_v2, 4  ;;  %v13358_v45 = vcombine.low %v3517_v50, %v3526_v7  ;;  %v4240_v0 = vsel %vm16852_vm13, %v4235_v31, %v4239_v43  ;;  %v4258_v53 = vor.u32 %v4257_v28, %v4253_v51  ;;  %v15509_v49 = vld [vmem:[#allocation2 + $0x58] sm:$0xf]  ;;  %v17221_v2 = vld [vmem:[%s21425_s4 + $0x88] sm:$0xff]   ;;  %v4187_v19 = vld [vmem:[#allocation2 + $0x74] sm:$0xf] }
 0x25e   : > { %14542 = vmatmul.mubr.msk.bf16.vlgmr.msra.gmra.mxu0 %vm465_vm1, %v13378_v35  ;;  %v4268_v61 = vrot.slane %v4266_v34, 4  ;;  %v13411_v10 = vcombine.low %v4230_v38, %v4240_v0  ;;  %v4271_v42 = vrot.slane %v4269_v57, 5  ;;  %v17215_v35 = vrot.slane %v4275_v15, 5  ;;  %v4180_v28 = vld [vmem:[#allocation2 + $0x4c] sm:$0x1] }
 0x25f   : > { %14610 = vmatpush3.bf16.msra.mxu0 %v15507_v12  ;;  %14545 = vmatprep.mubr.msk.bf16.mxu0 %vm465_vm1, %v13379_v11  ;;  %v4254_v21 = vsel %vm16852_vm13, %v4249_v3, %v4253_v51  ;;  %v4259_v7 = vrot.slane %v4258_v53, 4  ;;  %v4279_v43 = vshrl.u32 %v4176_v6, 16  ;;  %v4285_v24 = vshll.u32 %v4177_v4, 16  ;;  %v17223_v11 = vpop.f32.mrf.mxu0  ;;  %v17225_v51 = vpop.f32.mrf.mxu1  ;;  %v4182_v25 = vld [vmem:[#allocation2 + $0x58] sm:$0xf] }
 0x260   : > { %14534 = vmatmul.mubr.msk.bf16.gmra.mxu1 %vm465_vm1, %v13358_v45  ;;  %v13381_v38 = vcombine.low %v15508_v56, %v15509_v49  ;;  %14611 = vmatprep.subr.bf16.mxu0 %v15145_v48  ;;  %v4272_v31 = vor.u32 %v4271_v42, %v4268_v61  ;;  %v4290_v34 = vshrl.u32 %v4178_v46, 16  ;;  %v4293_v6 = vshll.u32 %v4178_v46, 16  ;;  %v4181_v45 = vld [vmem:[#allocation2 + $0x54] sm:$0xf] }
 0x261   : > { %14577 = vmatprep.mubr.msk.bf16.mxu1 %vm465_vm1, %v13411_v10  ;;  %v4299_v50 = vshll.u32 %v4179_v26, 16  ;;  %v4264_v3 = vsel %vm16852_vm13, %v4259_v7, %v4263_v55  ;;  %v4281_v4 = vrot.slane %v4279_v43, 4  ;;  %v4287_v57 = vrot.slane %v4285_v24, 5  ;;  %v17230_v0 = vpop.f32.mrf.mxu1  ;;  %v17234_v55 = vpop.f32.mrf.mxu0  ;;  %v15510_v43 = vld [vmem:[#allocation2 + $0x64] sm:$0xf] }
 0x262   : > { %v4303_v15 = vshrl.u32 %v4179_v26, 16  ;;  %21536 = vst [vmem:[#allocation13_spill] sm:$0xff] %v17230_v0  ;;  %v13412_v53 = vcombine.low %v4254_v21, %v4264_v3  ;;  %v4273_v12 = vrot.slane %v4272_v31, 4  ;;  %v4292_v56 = vrot.slane %v4290_v34, 4  ;;  %v15511_v24 = vld [vmem:[#allocation2 + $0x68] sm:$0xf] }
 0x263   : > { %v4295_v49 = vrot.slane %v4293_v6, 5  ;;  %14612 = vmatpush3.bf16.msra.mxu0 %v15145_v48  ;;  %v4282_v61 = vor.u32 %v4281_v4, %v17215_v35  ;;  %v4301_v10 = vrot.slane %v4299_v50, 5  ;;  %v4309_v46 = vshll.u32 %v4180_v28, 16  ;;  %v17236_v7 = vpop.f32.mrf.mxu1  ;;  %v4183_v31 = vld [vmem:[#allocation2 + $0x5c] sm:$0x1] }
 0x264   : > { %v4305_v42 = vrot.slane %v4303_v15, 4  ;;  %14681 = vmatprep.subr.bf16.mxu0 %v17221_v2  ;;  %v4278_v26 = vsel %vm16852_vm13, %v4273_v12, %v17215_v35  ;;  %v13382_v48 = vcombine.low %v15510_v43, %v15511_v24  ;;  %v4314_v34 = vshrl.u32 %v4181_v45, 16  ;;  %v15156_v15 = vld [vmem:[%s21425_s4 + $0x70] sm:$0xff]  }
 0x265   : > { %v4296_v21 = vor.u32 %v4295_v49, %v4292_v56  ;;  %v21537_v28 = vcombine.low %v17186_v23, %v17188_v44  ;;  %v4283_v6 = vrot.slane %v4282_v61, 4  ;;  %v4311_v3 = vrot.slane %v4309_v46, 5  ;;  %v17249_v43 = vpop.f32.mrf.mxu1  ;;  %v17254_v46 = vpop.f32.mrf.mxu0 }
 0x266   : > { %v4306_v50 = vor.u32 %v4305_v42, %v4301_v10  ;;  %v4317_v4 = vshll.u32 %v4181_v45, 16  ;;  %v4316_v12 = vrot.slane %v4314_v34, 4  ;;  %v4323_v56 = vshll.u32 %v4182_v25, 16  ;;  %v4184_v42 = vld [vmem:[#allocation2 + $0x64] sm:$0xf]  ;;  %21538 = vst [vmem:[#allocation14_spill] sm:$0xff] %v17254_v46 }
 0x267   : > { %14546 = vmatmul.mubr.msk.bf16.gmra.mxu0 %vm465_vm1, %v21537_v28  ;;  %v4297_v35 = vrot.slane %v4296_v21, 4  ;;  %v4327_v49 = vshrl.u32 %v4182_v25, 16  ;;  %v4288_v23 = vsel %vm16852_vm13, %v4283_v6, %v4287_v57  ;;  %v4333_v45 = vshll.u32 %v4183_v31, 16  ;;  %v4185_v25 = vld [vmem:[#allocation2 + $0x68] sm:$0xf] }
 0x268   : > { %14549 = vmatprep.mubr.msk.bf16.mxu0 %vm465_vm1, %v13381_v38  ;;  %14578 = vmatmul.mubr.msk.bf16.vlgmr.msra.gmra.mxu1 %vm465_vm1, %v13412_v53  ;;  %v4307_v44 = vrot.slane %v4306_v50, 4  ;;  %v4319_v61 = vrot.slane %v4317_v4, 5  ;;  %v13413_v24 = vcombine.low %v4278_v26, %v4288_v23  ;;  %v4325_v21 = vrot.slane %v4323_v56, 5  ;;  %v4186_v28 = vld [vmem:[#allocation2 + $0x6c] sm:$0x1]  ;;  %v17262_v56 = vpop.f32.mrf.mxu1 }
 0x269   : > { %v4302_v38 = vsel %vm16852_vm13, %v4297_v35, %v4301_v10  ;;  %v4329_v34 = vrot.slane %v4327_v49, 4  ;;  %14646 = vmatpush3.bf16.msra.mxu1 %v17032_v16  ;;  %v4335_v6 = vrot.slane %v4333_v45, 5  ;;  %v15512_v50 = vld [vmem:[#allocation2 + $0x74] sm:$0xf]  ;;  %v15513_v31 = vld [vmem:[#allocation2 + $0x78] sm:$0xf]  ;;  %v13384_v45 = vcombine.low %v16985_v59, %v16991_v20 }
 0x26a   : > { %v4312_v53 = vsel %vm16852_vm13, %v4307_v44, %v4311_v3  ;;  %v4320_v57 = vor.u32 %v4319_v61, %v4316_v12  ;;  %v13383_v4 = vcombine.low %v15512_v50, %v15513_v31  ;;  %14647 = vmatprep.subr.bf16.mxu1 %v15156_v15  ;;  %14581 = vmatprep.mubr.msk.bf16.mxu1 %vm465_vm1, %v13413_v24  ;;  %v4338_v10 = vshrl.u32 %v4184_v42, 16  ;;  %v17264_v3 = vpop.f32.mrf.mxu0  ;;  %v4188_v24 = vld [vmem:[#allocation2 + $0x78] sm:$0xf] }
 0x26b   : > { %v13414_v26 = vcombine.low %v4302_v38, %v4312_v53  ;;  %v4330_v23 = vor.u32 %v4329_v34, %v4325_v21  ;;  %v4341_v35 = vshll.u32 %v4184_v42, 16  ;;  %v4347_v46 = vshll.u32 %v4185_v25, 16 }
 0x26c   : > { %v4321_v49 = vrot.slane %v4320_v57, 4  ;;  %v4351_v16 = vshrl.u32 %v4185_v25, 16  ;;  %v4357_v0 = vshll.u32 %v4186_v28, 16  ;;  %v4340_v44 = vrot.slane %v4338_v10, 4  ;;  %v4189_v28 = vld [vmem:[#allocation2 + $0x7c] sm:$0x1] }
 0x26d   : > { %v4331_v12 = vrot.slane %v4330_v23, 4  ;;  %v4343_v61 = vrot.slane %v4341_v35, 5  ;;  %14648 = vmatpush3.bf16.msra.mxu1 %v15156_v15  ;;  %v4349_v38 = vrot.slane %v4347_v46, 5  ;;  %v21539_v53 = vmov 0.0   ;;  %v17275_v15 = vpop.f32.mrf.mxu1  ;;  %v17278_v23 = vpop.f32.mrf.mxu0 }
 0x26e   : > { %v4326_v42 = vsel %vm16852_vm13, %v4321_v49, %v4325_v21  ;;  %v4353_v34 = vrot.slane %v4351_v16, 4  ;;  %v4359_v25 = vrot.slane %v4357_v0, 5  ;;  %14717 = vmatprep.subr.mxu1 %v21539_v53  ;;  %v4362_v59 = vshrl.u32 %v4187_v19, 16  ;;  %21540 = vst [vmem:[#allocation15_spill] sm:$0xff] %v17275_v15  ;;  %v4190_v0 = vld [vmem:[#allocation2 + $0x84] sm:$0xf] }
 0x26f   : > { %14550 = vmatmul.mubr.msk.bf16.gmra.mxu0 %vm465_vm1, %v13382_v48  ;;  %v4336_v57 = vsel %vm16852_vm13, %v4331_v12, %v4335_v6  ;;  %v4344_v50 = vor.u32 %v4343_v61, %v4340_v44  ;;  %v4365_v20 = vshll.u32 %v4187_v19, 16  ;;  %v4371_v46 = vshll.u32 %v4188_v24, 16  ;;  %21541 = vst [vmem:[#allocation16_spill] sm:$0xff] %v17278_v23  ;;  %v4191_v16 = vld [vmem:[#allocation2 + $0x88] sm:$0xf] }
 0x270   : > { %14553 = vmatprep.mubr.msk.bf16.mxu0 %vm465_vm1, %v13383_v4  ;;  %14582 = vmatmul.mubr.msk.bf16.gmra.mxu1 %vm465_vm1, %v13414_v26  ;;  %v13415_v48 = vcombine.low %v4326_v42, %v4336_v57  ;;  %v4354_v21 = vor.u32 %v4353_v34, %v4349_v38  ;;  %v4375_v31 = vshrl.u32 %v4188_v24, 16  ;;  %v4364_v35 = vrot.slane %v4362_v59, 4  ;;  %v4192_v42 = vld [vmem:[#allocation2 + $0x8c] sm:$0x1]  ;;  %v4197_v15 = vld [vmem:[#allocation2 + $0xa8] sm:$0xf] }
 0x271   : > { %v4345_v10 = vrot.slane %v4344_v50, 4  ;;  %v4367_v49 = vrot.slane %v4365_v20, 5  ;;  %v4381_v6 = vshll.u32 %v4189_v28, 16  ;;  %v4373_v19 = vrot.slane %v4371_v46, 5  ;;  %v17285_v57 = vpop.f32.mrf.mxu1  ;;  %v4922_v53 = vld [vmem:[#allocation2 + $0x70] sm:$0x8] }
 0x272   : > { %14585 = vmatprep.mubr.msk.bf16.mxu1 %vm465_vm1, %v13415_v48  ;;  %v4355_v4 = vrot.slane %v4354_v21, 4  ;;  %v4377_v12 = vrot.slane %v4375_v31, 4  ;;  %v13385_v26 = vcombine.low %v17005_v41, %v17011_v62  ;;  %v4386_v34 = vshrl.u32 %v4190_v0, 16  ;;  %v4193_v48 = vld [vmem:[#allocation2 + $0x94] sm:$0xf]  ;;  %v17289_v21 = vpop.f32.mrf.mxu0 }
 0x273   : > { %v4350_v44 = vsel %vm16852_vm13, %v4345_v10, %v4349_v38  ;;  %v4368_v61 = vor.u32 %v4367_v49, %v4364_v35  ;;  %v4383_v24 = vrot.slane %v4381_v6, 5  ;;  %v4389_v59 = vshll.u32 %v4190_v0, 16  ;;  %21542 = vst [vmem:[#allocation17_spill] sm:$0xff] %v17289_v21  ;;  %v4194_v6 = vld [vmem:[#allocation2 + $0x98] sm:$0xf] }
 0x274   : > { %v4360_v28 = vsel %vm16852_vm13, %v4355_v4, %v4359_v25  ;;  %v4378_v50 = vor.u32 %v4377_v12, %v4373_v19  ;;  %v4395_v20 = vshll.u32 %v4191_v16, 16  ;;  %v4388_v62 = vrot.slane %v4386_v34, 4  ;;  %v4195_v12 = vld [vmem:[#allocation2 + $0x9c] sm:$0x1] }
 0x275   : > { %v13416_v46 = vcombine.low %v4350_v44, %v4360_v28  ;;  %v4369_v41 = vrot.slane %v4368_v61, 4  ;;  %v4399_v31 = vshrl.u32 %v4191_v16, 16  ;;  %v4391_v10 = vrot.slane %v4389_v59, 5  ;;  %v17297_v61 = vpop.f32.mrf.mxu1  ;;  %v4196_v28 = vld [vmem:[#allocation2 + $0xa4] sm:$0xf] }
 0x276   : > { %v4379_v38 = vrot.slane %v4378_v50, 4  ;;  %v4397_v35 = vrot.slane %v4395_v20, 5  ;;  %v4405_v49 = vshll.u32 %v4192_v42, 16  ;;  %v13386_v4 = vcombine.low %v17025_v1, %v17036_v63  ;;  %21543 = vst [vmem:[#allocation18_spill] sm:$0xff] %v17297_v61 }
 0x277   : > { %14554 = vmatmul.mubr.msk.bf16.gmra.mxu0 %vm465_vm1, %v13384_v45  ;;  %v4374_v25 = vsel %vm16852_vm13, %v4369_v41, %v4373_v19  ;;  %v4401_v0 = vrot.slane %v4399_v31, 4  ;;  %v4410_v44 = vshrl.u32 %v4193_v48, 16  ;;  %v4392_v16 = vor.u32 %v4391_v10, %v4388_v62  ;;  %v17302_v19 = vpop.f32.mrf.mxu0  ;;  %v17307_v62 = vpop.f32.mrf.mxu1 }
 0x278   : > { %14557 = vmatprep.mubr.msk.bf16.mxu0 %vm465_vm1, %v13385_v26  ;;  %14586 = vmatmul.mubr.msk.bf16.gmra.mxu1 %vm465_vm1, %v13416_v46  ;;  %v4384_v45 = vsel %vm16852_vm13, %v4379_v38, %v4383_v24  ;;  %v4407_v42 = vrot.slane %v4405_v49, 5  ;;  %v4413_v34 = vshll.u32 %v4193_v48, 16  ;;  %21544 = vst [vmem:[#allocation19_spill] sm:$0xff] %v17302_v19  ;;  %v4419_v20 = vshll.u32 %v4194_v6, 16  ;;  %21545 = vst [vmem:[#allocation20_spill] sm:$0xff] %v17307_v62 }
 0x279   : > { %v13417_v26 = vcombine.low %v4374_v25, %v4384_v45  ;;  %v4402_v50 = vor.u32 %v4401_v0, %v4397_v35  ;;  %v4412_v59 = vrot.slane %v4410_v44, 4  ;;  %v4393_v1 = vrot.slane %v4392_v16, 4  ;;  %v4198_v0 = vld [vmem:[#allocation2 + $0xac] sm:$0x1] }
 0x27a   : > { %v4415_v63 = vrot.slane %v4413_v34, 5  ;;  %v4423_v41 = vshrl.u32 %v4194_v6, 16  ;;  %v4429_v31 = vshll.u32 %v4195_v12, 16  ;;  %v4421_v21 = vrot.slane %v4419_v20, 5  ;;  %v4199_v34 = vld [vmem:[#allocation2 + $0xb4] sm:$0xf] }
 0x27b   : > { %14589 = vmatprep.mubr.msk.bf16.mxu1 %vm465_vm1, %v13417_v26  ;;  %v4403_v46 = vrot.slane %v4402_v50, 4  ;;  %v13387_v24 = vcombine.low %v17051_v18, %v17057_v47  ;;  %v4434_v48 = vshrl.u32 %v4196_v28, 16  ;;  %v4398_v38 = vsel %vm16852_vm13, %v4393_v1, %v4397_v35  ;;  %v17311_v6 = vpop.f32.mrf.mxu0  ;;  %v4200_v35 = vld [vmem:[#allocation2 + $0xb8] sm:$0xf] }
 0x27c   : > { %v4416_v10 = vor.u32 %v4415_v63, %v4412_v59  ;;  %v4425_v49 = vrot.slane %v4423_v41, 4  ;;  %v4431_v25 = vrot.slane %v4429_v31, 5  ;;  %21546 = vst [vmem:[#allocation21_spill] sm:$0xff] %v17311_v6  ;;  %v4437_v45 = vshll.u32 %v4196_v28, 16  ;;  %v17321_v28 = vpop.f32.mrf.mxu1 }
 0x27d   : > { %v4408_v12 = vsel %vm16852_vm13, %v4403_v46, %v4407_v42  ;;  %v4436_v44 = vrot.slane %v4434_v48, 4  ;;  %v4443_v16 = vshll.u32 %v4197_v15, 16  ;;  %v4447_v50 = vshrl.u32 %v4197_v15, 16  ;;  %v17316_v59 = vpop.f32.mrf.mxu0  ;;  %21548 = vst [vmem:[#allocation23_spill] sm:$0xff] %v17321_v28 }
 0x27e   : > { %v13418_v18 = vcombine.low %v4398_v38, %v4408_v12  ;;  %v4417_v47 = vrot.slane %v4416_v10, 4  ;;  %v4426_v26 = vor.u32 %v4425_v49, %v4421_v21  ;;  %21547 = vst [vmem:[#allocation22_spill] sm:$0xff] %v17316_v59  ;;  %v4439_v20 = vrot.slane %v4437_v45, 5  ;;  %v4201_v38 = vld [vmem:[#allocation2 + $0xbc] sm:$0x1] }
 0x27f   : > { %14558 = vmatmul.mubr.msk.bf16.gmra.mxu0 %vm465_vm1, %v13386_v4  ;;  %v4445_v1 = vrot.slane %v4443_v16, 5  ;;  %v4453_v63 = vshll.u32 %v4198_v0, 16  ;;  %v13388_v42 = vcombine.low %v17071_v52, %v17075_v54  ;;  %v4449_v15 = vrot.slane %v4447_v50, 4  ;;  %v17326_v46 = vpop.f32.mrf.mxu0  ;;  %v4202_v45 = vld [vmem:[#allocation2 + $0xc4] sm:$0xf] }
 0x280   : > { %14561 = vmatprep.mubr.msk.bf16.mxu0 %vm465_vm1, %v13387_v24  ;;  %14590 = vmatmul.mubr.msk.bf16.gmra.mxu1 %vm465_vm1, %v13418_v18  ;;  %v4422_v4 = vsel %vm16852_vm13, %v4417_v47, %v4421_v21  ;;  %v4427_v41 = vrot.slane %v4426_v26, 4  ;;  %v4458_v31 = vshrl.u32 %v4199_v34, 16  ;;  %21549 = vst [vmem:[#allocation24_spill] sm:$0xff] %v17326_v46  ;;  %v4440_v48 = vor.u32 %v4439_v20, %v4436_v44  ;;  %v4203_v50 = vld [vmem:[#allocation2 + $0xc8] sm:$0xf] }
 0x281   : > { %v4455_v24 = vrot.slane %v4453_v63, 5  ;;  %v4461_v10 = vshll.u32 %v4199_v34, 16  ;;  %v4467_v49 = vshll.u32 %v4200_v35, 16  ;;  %v4450_v54 = vor.u32 %v4449_v15, %v4445_v1  ;;  %v17330_v16 = vpop.f32.mrf.mxu0  ;;  %v4919_v59 = vld [vmem:[#allocation2 + $0x60] sm:$0x8] }
 0x282   : > { %v4432_v52 = vsel %vm16852_vm13, %v4427_v41, %v4431_v25  ;;  %v4460_v0 = vrot.slane %v4458_v31, 4  ;;  %v4471_v12 = vshrl.u32 %v4200_v35, 16  ;;  %21550 = vst [vmem:[#allocation25_spill] sm:$0xff] %v17330_v16  ;;  %v4441_v18 = vrot.slane %v4440_v48, 4  ;;  %v17332_v28 = vpop.f32.mrf.mxu1  ;;  %v4204_v41 = vld [vmem:[#allocation2 + $0xcc] sm:$0x1] }
 0x283   : > { %v13419_v21 = vcombine.low %v4422_v4, %v4432_v52  ;;  %v4463_v47 = vrot.slane %v4461_v10, 5  ;;  %v4469_v26 = vrot.slane %v4467_v49, 5  ;;  %21551 = vst [vmem:[#allocation26_spill] sm:$0xff] %v17332_v28  ;;  %v4451_v44 = vrot.slane %v4450_v54, 4  ;;  %v17339_v31 = vpop.f32.mrf.mxu0  ;;  %v4205_v49 = vld [vmem:[#allocation2 + $0xd4] sm:$0xf] }
 0x284   : > { %v4473_v20 = vrot.slane %v4471_v12, 4  ;;  %v4477_v34 = vshll.u32 %v4201_v38, 16  ;;  %v13389_v63 = vcombine.low %v17091_v14, %v17097_v58  ;;  %v4446_v25 = vsel %vm16852_vm13, %v4441_v18, %v4445_v1  ;;  %21552 = vst [vmem:[#allocation27_spill] sm:$0xff] %v17339_v31  ;;  %v17341_v48 = vpop.f32.mrf.mxu1  ;;  %v4206_v16 = vld [vmem:[#allocation2 + $0xd8] sm:$0xf] }
 0x285   : > { %14593 = vmatprep.mubr.msk.bf16.mxu1 %vm465_vm1, %v13419_v21  ;;  %v4464_v35 = vor.u32 %v4463_v47, %v4460_v0  ;;  %v4482_v4 = vshrl.u32 %v4202_v45, 16  ;;  %v4485_v15 = vshll.u32 %v4202_v45, 16  ;;  %21553 = vst [vmem:[#allocation28_spill] sm:$0xff] %v17341_v48  ;;  %v4456_v10 = vsel %vm16852_vm13, %v4451_v44, %v4455_v24  ;;  %v17480_v28 = vld [vmem:[#allocation2 + $0x64] sm:$0xf] }
 0x286   : > { %v4474_v38 = vor.u32 %v4473_v20, %v4469_v26  ;;  %v4479_v14 = vrot.slane %v4477_v34, 5  ;;  %v4491_v58 = vshll.u32 %v4203_v50, 16  ;;  %v13420_v52 = vcombine.low %v4446_v25, %v4456_v10  ;;  %v17347_v12 = vpop.f32.mrf.mxu1  ;;  %v4207_v20 = vld [vmem:[#allocation2 + $0xdc] sm:$0x1] }
 0x287   : > { %14562 = vmatmul.mubr.msk.bf16.gmra.mxu0 %vm465_vm1, %v13388_v42  ;;  %v4465_v54 = vrot.slane %v4464_v35, 4  ;;  %v4484_v1 = vrot.slane %v4482_v4, 4  ;;  %v4487_v0 = vrot.slane %v4485_v15, 5  ;;  %21554 = vst [vmem:[#allocation29_spill] sm:$0xff] %v17347_v12  ;;  %v4495_v18 = vshrl.u32 %v4203_v50, 16 }
 0x288   : > { %14565 = vmatprep.mubr.msk.bf16.mxu0 %vm465_vm1, %v13389_v63  ;;  %v4475_v45 = vrot.slane %v4474_v38, 4  ;;  %v4493_v21 = vrot.slane %v4491_v58, 5  ;;  %v4501_v47 = vshll.u32 %v4204_v41, 16  ;;  %14594 = vmatmul.mubr.msk.bf16.gmra.mxu1 %vm465_vm1, %v13420_v52  ;;  %v13390_v44 = vcombine.low %v17111_v22, %v17115_v40  ;;  %v17354_v63 = vpop.f32.mrf.mxu0  ;;  %v17356_v25 = vpop.f32.mrf.mxu1  ;;  %v4208_v15 = vld [vmem:[#allocation2 + $0xe4] sm:$0xf] }
 0x289   : > { %v4470_v42 = vsel %vm16852_vm13, %v4465_v54, %v4469_v26  ;;  %v4488_v24 = vor.u32 %v4487_v0, %v4484_v1  ;;  %v4506_v34 = vshrl.u32 %v4205_v49, 16  ;;  %21555 = vst [vmem:[#allocation30_spill] sm:$0xff] %v17354_v63  ;;  %21556 = vst [vmem:[#allocation31_spill] sm:$0xff] %v17356_v25  ;;  %v4497_v35 = vrot.slane %v4495_v18, 4  ;;  %v4209_v1 = vld [vmem:[#allocation2 + $0xe8] sm:$0xf] }
 0x28a   : > { %v4480_v50 = vsel %vm16852_vm13, %v4475_v45, %v4479_v14  ;;  %v4503_v41 = vrot.slane %v4501_v47, 5  ;;  %v4509_v4 = vshll.u32 %v4205_v49, 16  ;;  %v4515_v58 = vshll.u32 %v4206_v16, 16  ;;  %v17360_v0 = vpop.f32.mrf.mxu1  ;;  %v4210_v18 = vld [vmem:[#allocation2 + $0xec] sm:$0x1] }
 0x28b   : > { %v13421_v10 = vcombine.low %v4470_v42, %v4480_v50  ;;  %v4489_v38 = vrot.slane %v4488_v24, 4  ;;  %v4508_v26 = vrot.slane %v4506_v34, 4  ;;  %v4498_v52 = vor.u32 %v4497_v35, %v4493_v21  ;;  %21557 = vst [vmem:[#allocation32_spill] sm:$0xff] %v17360_v0  ;;  %v17367_v42 = vpop.f32.mrf.mxu0  ;;  %v4212_v25 = vld [vmem:[#allocation2 + $0xf8] sm:$0xf] }
 0x28c   : > { %v4511_v54 = vrot.slane %v4509_v4, 5  ;;  %v4519_v22 = vshrl.u32 %v4206_v16, 16  ;;  %v4525_v40 = vshll.u32 %v4207_v20, 16  ;;  %v4517_v45 = vrot.slane %v4515_v58, 5  ;;  %21558 = vst [vmem:[#allocation33_spill] sm:$0xff] %v17367_v42 }
 0x28d   : > { %14597 = vmatprep.mubr.msk.bf16.mxu1 %vm465_vm1, %v13421_v10  ;;  %v4494_v14 = vsel %vm16852_vm13, %v4489_v38, %v4493_v21  ;;  %v13391_v49 = vcombine.low %v17131_v8, %v17137_v36  ;;  %v4530_v47 = vshrl.u32 %v4208_v15, 16  ;;  %v4499_v24 = vrot.slane %v4498_v52, 4  ;;  %v4211_v58 = vld [vmem:[#allocation2 + $0xf4] sm:$0xf]  ;;  %v17373_v52 = vpop.f32.mrf.mxu1 }
 0x28e   : > { %v4512_v16 = vor.u32 %v4511_v54, %v4508_v26  ;;  %v4521_v20 = vrot.slane %v4519_v22, 4  ;;  %v4527_v34 = vrot.slane %v4525_v40, 5  ;;  %v4533_v35 = vshll.u32 %v4208_v15, 16  ;;  %21559 = vst [vmem:[#allocation34_spill] sm:$0xff] %v17373_v52  ;;  %v4213_v40 = vld [vmem:[#allocation2 + $0xfc] sm:$0x1] }
 0x28f   : > { %14566 = vmatmul.mubr.msk.bf16.gmra.mxu0 %vm465_vm1, %v13390_v44  ;;  %v4532_v50 = vrot.slane %v4530_v47, 4  ;;  %v4539_v4 = vshll.u32 %v4209_v1, 16  ;;  %v4543_v21 = vshrl.u32 %v4209_v1, 16  ;;  %v4504_v10 = vsel %vm16852_vm13, %v4499_v24, %v4503_v41  ;;  %v17419_v52 = vld [vmem:[#allocation2 + $0x38] sm:$0xf] }
 0x290   : > { %14569 = vmatprep.mubr.msk.bf16.mxu0 %vm465_vm1, %v13391_v49  ;;  %v4513_v8 = vrot.slane %v4512_v16, 4  ;;  %v4522_v36 = vor.u32 %v4521_v20, %v4517_v45  ;;  %v4549_v38 = vshll.u32 %v4210_v18, 16  ;;  %v13422_v44 = vcombine.low %v4494_v14, %v4504_v10  ;;  %v17375_v49 = vpop.f32.mrf.mxu0  ;;  %v17382_v20 = vld [vmem:[#allocation2 + $0x24] sm:$0xf] }
 0x291   : > { %v4535_v26 = vrot.slane %v4533_v35, 5  ;;  %v4541_v54 = vrot.slane %v4539_v4, 5  ;;  %v4545_v22 = vrot.slane %v4543_v21, 4  ;;  %21560 = vst [vmem:[#allocation35_spill] sm:$0xff] %v17375_v49  ;;  %v13392_v41 = vcombine.low %v17143_v33, %v17145_v37  ;;  %v17391_v49 = vld [vmem:[#allocation2 + $0x28] sm:$0xf] }
 0x292   : > { %v4518_v15 = vsel %vm16852_vm13, %v4513_v8, %v4517_v45  ;;  %v4523_v1 = vrot.slane %v4522_v36, 4  ;;  %v4551_v47 = vrot.slane %v4549_v38, 5  ;;  %14598 = vmatmul.mubr.msk.bf16.gmra.mxu1 %vm465_vm1, %v13422_v44  ;;  %v4554_v16 = vshrl.u32 %v4211_v58, 16  ;;  %v4907_v45 = vld [vmem:[#allocation2 + $0x20] sm:$0x8]  ;;  %v17386_v8 = vpop.f32.mrf.mxu1 }
 0x293   : > { %v4536_v18 = vor.u32 %v4535_v26, %v4532_v50  ;;  %v4546_v24 = vor.u32 %v4545_v22, %v4541_v54  ;;  %v4557_v14 = vshll.u32 %v4211_v58, 16  ;;  %v4563_v4 = vshll.u32 %v4212_v25, 16  ;;  %21561 = vst [vmem:[#allocation36_spill] sm:$0xff] %v17386_v8 }
 0x294   : > { %v4528_v35 = vsel %vm16852_vm13, %v4523_v1, %v4527_v34  ;;  %v4567_v21 = vshrl.u32 %v4212_v25, 16  ;;  %v4573_v10 = vshll.u32 %v4213_v40, 16  ;;  %v4556_v37 = vrot.slane %v4554_v16, 4  ;;  %v17388_v44 = vpop.f32.mrf.mxu0  ;;  %v1404_v1 = vld [vmem:[#allocation2 + $0x10c] sm:$0x1] }
 0x295   : > { %v13423_v36 = vcombine.low %v4518_v15, %v4528_v35  ;;  %v4537_v38 = vrot.slane %v4536_v18, 4  ;;  %v4547_v33 = vrot.slane %v4546_v24, 4  ;;  %v4559_v50 = vrot.slane %v4557_v14, 5  ;;  %v4214_v18 = vld [vmem:[#allocation2 + $0x104] sm:$0xf] }
 0x296   : > { %v4565_v58 = vrot.slane %v4563_v4, 5  ;;  %v4569_v26 = vrot.slane %v4567_v21, 4  ;;  %v4575_v22 = vrot.slane %v4573_v10, 5  ;;  %v4956_v40 = vshrl.u32 %v4907_v45, 16  ;;  %v17402_v4 = vpop.f32.mrf.mxu1  ;;  %v4215_v45 = vld [vmem:[#allocation2 + $0x108] sm:$0xf] }
 0x297   : > { %14570 = vmatmul.mubr.msk.bf16.gmra.mxu0 %vm465_vm1, %v13392_v41  ;;  %14601 = vmatprep.mubr.msk.bf16.mxu1 %vm465_vm1, %v13423_v36  ;;  %v4542_v25 = vsel %vm16852_vm13, %v4537_v38, %v4541_v54  ;;  %v4552_v34 = vsel %vm16852_vm13, %v4547_v33, %v4551_v47  ;;  %v4961_v15 = vshrl.u32 %v17382_v20, 16  ;;  %v17399_v41 = vpop.f32.mrf.mxu0  ;;  %v4560_v16 = vor.u32 %v4559_v50, %v4556_v37  ;;  %v4910_v50 = vld [vmem:[#allocation2 + $0x30] sm:$0x8] }
 0x298   : > { %v13424_v24 = vcombine.low %v4542_v25, %v4552_v34  ;;  %v4570_v14 = vor.u32 %v4569_v26, %v4565_v58  ;;  %v4964_v35 = vshll.u32 %v17382_v20, 16  ;;  %21562 = vst [vmem:[#allocation37_spill] sm:$0xff] %v17402_v4  ;;  %v13445_v21 = vrot.slane %v4956_v40, 11  ;;  %v17411_v4 = vld [vmem:[#allocation2 + $0x34] sm:$0xf] }
 0x299   : > { %v4963_v10 = vrot.slane %v4961_v15, 7  ;;  %v4970_v54 = vshrl.u32 %v17391_v49, 16  ;;  %v4973_v47 = vshll.u32 %v17391_v49, 16  ;;  %v17406_v36 = vpop.f32.mrf.mxu0  ;;  %v4561_v38 = vrot.slane %v4560_v16, 4 }
 0x29a   : > { %v4571_v33 = vrot.slane %v4570_v14, 4  ;;  %v1405_v25 = vsel %vm16204_vm10, 0, %v1404_v1  ;;  %v4578_v37 = vshrl.u32 %v4214_v18, 16  ;;  %14602 = vmatmul.mubr.msk.bf16.gmra.mxu1 %vm465_vm1, %v13424_v24  ;;  %v4581_v15 = vshll.u32 %v4214_v18, 16 }
 0x29b   : > { %v4966_v26 = vor.u32 %v4964_v35, %v4963_v10  ;;  %v4968_v34 = vrot.slane %v4963_v10, 4  ;;  %v4972_v40 = vrot.slane %v4970_v54, 7  ;;  %1406 = vst [vmem:[#allocation2 + $0x10c] sm:$0x1] %v1405_v25  ;;  %v17413_v19 = vpop.f32.mrf.mxu0  ;;  %v4566_v16 = vsel %vm16852_vm13, %v4561_v38, %v4565_v58  ;;  %v17421_v24 = vpop.f32.mrf.mxu1 }
 0x29c   : > { %21563 = vst [vmem:[#allocation38_spill] sm:$0xff] %v17413_v19  ;;  %v4576_v14 = vsel %vm16852_vm13, %v4571_v33, %v4575_v22  ;;  %v4580_v1 = vrot.slane %v4578_v37, 4  ;;  %v4587_v30 = vshll.u32 %v4215_v45, 16  ;;  %v4583_v54 = vrot.slane %v4581_v15, 5  ;;  %v17437_v15 = vld [vmem:[#allocation2 + $0x44] sm:$0xf] }
 0x29d   : > { %v13425_v35 = vcombine.low %v4566_v16, %v4576_v14  ;;  %v4967_v18 = vsel %vm16088_vm8, %v13445_v21, %v4966_v26  ;;  %v4975_v10 = vor.u32 %v4973_v47, %v4972_v40  ;;  %v17425_v25 = vpop.f32.mrf.mxu0  ;;  %v4591_v63 = vshrl.u32 %v4215_v45, 16  ;;  %v17428_v22 = vpop.f32.mrf.mxu1  ;;  %v4913_v47 = vld [vmem:[#allocation2 + $0x40] sm:$0x8] }
 0x29e   : > { %v4589_v19 = vrot.slane %v4587_v30, 5  ;;  %v4978_v58 = vshrl.u32 %v4910_v50, 16  ;;  %v4983_v38 = vshrl.u32 %v17411_v4, 16  ;;  %v4584_v37 = vor.u32 %v4583_v54, %v4580_v1 }
 0x29f   : > { %14605 = vmatprep.mubr.msk.bf16.mxu1 %vm465_vm1, %v13425_v35  ;;  %v4976_v33 = vsel %vm16088_vm8, %v4968_v34, %v4975_v10  ;;  %v4986_v16 = vshll.u32 %v17411_v4, 16  ;;  %v4992_v21 = vshrl.u32 %v17419_v52, 16  ;;  %v17435_v26 = vpop.f32.mrf.mxu0  ;;  %v4593_v45 = vrot.slane %v4591_v63, 4  ;;  %v17439_v14 = vpop.f32.mrf.mxu1 }
 0x2a0   : > { %v13461_v30 = vcombine.low %v4967_v18, %v4976_v33  ;;  %v13446_v50 = vrot.slane %v4978_v58, 11  ;;  %v4985_v40 = vrot.slane %v4983_v38, 7  ;;  %v4585_v35 = vrot.slane %v4584_v37, 4  ;;  %v17445_v18 = vld [vmem:[#allocation2 + $0x48] sm:$0xf] }
 0x2a1   : > { %v4994_v8 = vrot.slane %v4992_v21, 7  ;;  %v4995_v34 = vshll.u32 %v17419_v52, 16  ;;  %v17442_v1 = vpop.f32.mrf.mxu0  ;;  %v4594_v54 = vor.u32 %v4593_v45, %v4589_v19  ;;  %v5000_v63 = vshrl.u32 %v4913_v47, 16  ;;  %v17447_v58 = vpop.f32.mrf.mxu1 }
 0x2a2   : > { %14613 = vmatprep.mubr.msk.bf16.mxu0 %vm465_vm1, %v13461_v30  ;;  %v4216_v10 = vld [vmem:[#allocation2 + $0x10c] sm:$0x1]  ;;  %v4988_v42 = vor.u32 %v4986_v16, %v4985_v40  ;;  %v4990_v0 = vrot.slane %v4985_v40, 4  ;;  %21564 = vst [vmem:[#allocation39_spill] sm:$0xff] %v17447_v58  ;;  %v4590_v38 = vsel %vm16852_vm13, %v4585_v35, %v4589_v19  ;;  %v5005_v21 = vshrl.u32 %v17437_v15, 16 }
 0x2a3   : > { %v4597_v33 = vshll.u32 %v4216_v10, 16  ;;  %v4997_v37 = vor.u32 %v4995_v34, %v4994_v8  ;;  %v17452_v31 = vpop.f32.mrf.mxu0  ;;  %v4595_v12 = vrot.slane %v4594_v54, 4  ;;  %v13447_v16 = vrot.slane %v5000_v63, 11  ;;  %v4916_v40 = vld [vmem:[#allocation2 + $0x50] sm:$0x8]  ;;  %v17457_v47 = vpop.f32.mrf.mxu1  ;;  %v15164_v63 = vld [vmem:[%s21425_s4 + $0x80] sm:$0xff]  }
 0x2a4   : > { %21565 = vst [vmem:[#allocation40_spill] sm:$0xff] %v17452_v31  ;;  %v4989_v30 = vsel %vm16088_vm8, %v13446_v50, %v4988_v42  ;;  %v5008_v45 = vshll.u32 %v17437_v15, 16  ;;  %v5007_v35 = vrot.slane %v5005_v21, 7  ;;  %v5014_v8 = vshrl.u32 %v17445_v18, 16  ;;  %v17462_v34 = vld [vmem:[#allocation2 + $0x54] sm:$0xf] }
 0x2a5   : > { %v4599_v58 = vrot.slane %v4597_v33, 5  ;;  %v4998_v19 = vsel %vm16088_vm8, %v4990_v0, %v4997_v37  ;;  %v17464_v10 = vpop.f32.mrf.mxu0  ;;  %v5017_v42 = vshll.u32 %v17445_v18, 16  ;;  %v17467_v50 = vld [vmem:[#allocation2 + $0x58] sm:$0xf]  ;;  %v17472_v33 = vpop.f32.mrf.mxu1  ;;  %v13495_v62 = vcombine.low %v17382_v20, %v17391_v49 }
 0x2a6   : > { %v13462_v54 = vcombine.low %v4989_v30, %v4998_v19  ;;  %v5010_v37 = vor.u32 %v5008_v45, %v5007_v35  ;;  %v5012_v21 = vrot.slane %v5007_v35, 4  ;;  %v5016_v31 = vrot.slane %v5014_v8, 7 }
 0x2a7   : > { %v4600_v0 = vsel %vm16852_vm13, %v4595_v12, %v4599_v58  ;;  %v17476_v46 = vpop.f32.mrf.mxu0  ;;  %v5022_v30 = vshrl.u32 %v4916_v40, 16  ;;  %v5027_v19 = vshrl.u32 %v17462_v34, 16  ;;  %v17482_v6 = vpop.f32.mrf.mxu1  ;;  %v5030_v8 = vshll.u32 %v17462_v34, 16 }
 0x2a8   : > { %v13426_v48 = vcombine.low %v4590_v38, %v4600_v0  ;;  %14614 = vmatmul.mubr.msk.bf16.vlgmr.msra.gmra.mxu0 %vm465_vm1, %v13462_v54  ;;  %v5011_v12 = vsel %vm16088_vm8, %v13447_v16, %v5010_v37  ;;  %v5019_v58 = vor.u32 %v5017_v42, %v5016_v31  ;;  %v5036_v38 = vshrl.u32 %v17467_v50, 16  ;;  %v17495_v0 = vld [vmem:[#allocation2 + $0x68] sm:$0xf] }
 0x2a9   : > { %14682 = vmatpush3.bf16.msra.mxu0 %v17221_v2  ;;  %v17490_v45 = vpop.f32.mrf.mxu0  ;;  %v13448_v40 = vrot.slane %v5022_v30, 11  ;;  %v5029_v35 = vrot.slane %v5027_v19, 7  ;;  %v5039_v54 = vshll.u32 %v17467_v50, 16  ;;  %v17497_v2 = vpop.f32.mrf.mxu1  ;;  %v5044_v20 = vshrl.u32 %v4919_v59, 16 }
 0x2aa   : > { %21566 = vst [vmem:[#allocation41_spill] sm:$0xff] %v17490_v45  ;;  %14606 = vmatmul.mubr.msk.bf16.gmra.mxu1 %vm465_vm1, %v13426_v48  ;;  %14683 = vmatprep.subr.bf16.mxu0 %v15164_v63  ;;  %21567 = vst [vmem:[#allocation42_spill] sm:$0xff] %v17497_v2  ;;  %v5020_v31 = vsel %vm16088_vm8, %v5012_v21, %v5019_v58  ;;  %v5038_v49 = vrot.slane %v5036_v38, 7  ;;  %v5049_v48 = vshrl.u32 %v17480_v28, 16  ;;  %v5052_v19 = vshll.u32 %v17480_v28, 16 }
 0x2ab   : > { %14649 = vmatprep.mubr.msk.bf16.mxu1 %vm465_vm1, %v13495_v62  ;;  %v17503_v16 = vpop.f32.mrf.mxu0  ;;  %v13463_v42 = vcombine.low %v5011_v12, %v5020_v31  ;;  %v5032_v37 = vor.u32 %v5030_v8, %v5029_v35  ;;  %v5034_v30 = vrot.slane %v5029_v35, 4  ;;  %v17506_v45 = vpop.f32.mrf.mxu1  ;;  %v13449_v2 = vrot.slane %v5044_v20, 11  ;;  %v17515_v58 = vld [vmem:[#allocation2 + $0x74] sm:$0xf] }
 0x2ac   : > { %21568 = vst [vmem:[#allocation43_spill] sm:$0xff] %v17503_v16  ;;  %v5041_v61 = vor.u32 %v5039_v54, %v5038_v49  ;;  %v5051_v23 = vrot.slane %v5049_v48, 7  ;;  %v5058_v62 = vshrl.u32 %v17495_v0, 16  ;;  %v5061_v12 = vshll.u32 %v17495_v0, 16 }
 0x2ad   : > { %14684 = vmatpush3.bf16.msra.mxu0 %v15164_v63  ;;  %v17509_v21 = vpop.f32.mrf.mxu0  ;;  %14617 = vmatprep.mubr.msk.bf16.mxu0 %vm465_vm1, %v13463_v42  ;;  %v5033_v59 = vsel %vm16088_vm8, %v13448_v40, %v5032_v37  ;;  %v17517_v38 = vpop.f32.mrf.mxu1  ;;  %v17521_v63 = vld [vmem:[#allocation2 + $0x78] sm:$0xf]  ;;  %v13496_v20 = vcombine.low %v17411_v4, %v17419_v52  ;;  %v5066_v48 = vshrl.u32 %v4922_v53, 16  ;;  %v4925_v42 = vld [vmem:[#allocation2 + $0x80] sm:$0x8]  ;;  %v13497_v16 = vcombine.low %v17437_v15, %v17445_v18 }
 0x2ae   : > { %v5042_v35 = vsel %vm16088_vm8, %v5034_v30, %v5041_v61  ;;  %v5054_v8 = vor.u32 %v5052_v19, %v5051_v23  ;;  %v5056_v54 = vrot.slane %v5051_v23, 4  ;;  %v5060_v31 = vrot.slane %v5058_v62, 7  ;;  %v17534_v19 = vld [vmem:[#allocation2 + $0x84] sm:$0xf]  ;;  %v17542_v4 = vld [vmem:[#allocation2 + $0x88] sm:$0xf] }
 0x2af   : > { %v17523_v49 = vpop.f32.mrf.mxu0  ;;  %v13464_v40 = vcombine.low %v5033_v59, %v5042_v35  ;;  %v17527_v37 = vpop.f32.mrf.mxu1  ;;  %v5071_v30 = vshrl.u32 %v17515_v58, 16  ;;  %v5074_v53 = vshll.u32 %v17515_v58, 16  ;;  %v5080_v52 = vshrl.u32 %v17521_v63, 16 }
 0x2b0   : > { %21569 = vst [vmem:[#allocation44_spill] sm:$0xff] %v17523_v49  ;;  %21570 = vst [vmem:[#allocation45_spill] sm:$0xff] %v17527_v37  ;;  %v5055_v61 = vsel %vm16088_vm8, %v13449_v2, %v5054_v8  ;;  %v5063_v23 = vor.u32 %v5061_v12, %v5060_v31  ;;  %v13450_v2 = vrot.slane %v5066_v48, 11  ;;  %v5088_v12 = vshrl.u32 %v4925_v42, 16  ;;  %v17556_v49 = vld [vmem:[#allocation2 + $0x94] sm:$0xf] }
 0x2b1   : > { %v17536_v62 = vpop.f32.mrf.mxu0  ;;  %14618 = vmatmul.mubr.msk.bf16.gmra.mxu0 %vm465_vm1, %v13464_v40  ;;  %v17544_v15 = vpop.f32.mrf.mxu1  ;;  %v5073_v59 = vrot.slane %v5071_v30, 7  ;;  %v5082_v31 = vrot.slane %v5080_v52, 7  ;;  %v5093_v40 = vshrl.u32 %v17534_v19, 16 }
 0x2b2   : > { %21571 = vst [vmem:[#allocation46_spill] sm:$0xff] %v17536_v62  ;;  %14650 = vmatmul.mubr.msk.bf16.vlgmr.msra.gmra.mxu1 %vm465_vm1, %v13496_v20  ;;  %21572 = vst [vmem:[#allocation47_spill] sm:$0xff] %v17544_v15  ;;  %v5064_v18 = vsel %vm16088_vm8, %v5056_v54, %v5063_v23  ;;  %v5083_v20 = vshll.u32 %v17521_v63, 16  ;;  %v13451_v48 = vrot.slane %v5088_v12, 11  ;;  %v4928_v23 = vld [vmem:[#allocation2 + $0x90] sm:$0x8] }
 0x2b3   : > { %14653 = vmatprep.mubr.msk.bf16.mxu1 %vm465_vm1, %v13497_v16  ;;  %v17549_v35 = vpop.f32.mrf.mxu0  ;;  %v13465_v8 = vcombine.low %v5055_v61, %v5064_v18  ;;  %v17553_v37 = vpop.f32.mrf.mxu1  ;;  %v5076_v62 = vor.u32 %v5074_v53, %v5073_v59  ;;  %v5078_v15 = vrot.slane %v5073_v59, 4  ;;  %v5102_v16 = vshrl.u32 %v17542_v4, 16 }
 0x2b4   : > { %21573 = vst [vmem:[#allocation48_spill] sm:$0xff] %v17549_v35  ;;  %21574 = vst [vmem:[#allocation49_spill] sm:$0xff] %v17553_v37  ;;  %v5085_v54 = vor.u32 %v5083_v20, %v5082_v31  ;;  %v5095_v42 = vrot.slane %v5093_v40, 7  ;;  %v5096_v61 = vshll.u32 %v17534_v19, 16  ;;  %v13498_v53 = vcombine.low %v17462_v34, %v17467_v50 }
 0x2b5   : > { %14621 = vmatprep.mubr.msk.bf16.mxu0 %vm465_vm1, %v13465_v8  ;;  %v17560_v30 = vpop.f32.mrf.mxu0  ;;  %v17562_v52 = vpop.f32.mrf.mxu1  ;;  %v5077_v18 = vsel %vm16088_vm8, %v13450_v2, %v5076_v62  ;;  %v5104_v59 = vrot.slane %v5102_v16, 7  ;;  %v5105_v35 = vshll.u32 %v17542_v4, 16  ;;  %v17569_v8 = vld [vmem:[#allocation2 + $0x98] sm:$0xf]  ;;  %v13499_v31 = vcombine.low %v17480_v28, %v17495_v0  ;;  %v4931_v2 = vld [vmem:[#allocation2 + $0xa0] sm:$0x8] }
 0x2b6   : > { %21575 = vst [vmem:[#allocation50_spill] sm:$0xff] %v17560_v30  ;;  %21576 = vst [vmem:[#allocation51_spill] sm:$0xff] %v17562_v52  ;;  %v5086_v12 = vsel %vm16088_vm8, %v5078_v15, %v5085_v54  ;;  %v5098_v20 = vor.u32 %v5096_v61, %v5095_v42  ;;  %v5100_v40 = vrot.slane %v5095_v42, 4  ;;  %v5110_v50 = vshrl.u32 %v4928_v23, 16  ;;  %v17582_v54 = vld [vmem:[#allocation2 + $0xa4] sm:$0xf] }
 0x2b7   : > { %v17575_v30 = vpop.f32.mrf.mxu1  ;;  %v13466_v52 = vcombine.low %v5077_v18, %v5086_v12  ;;  %v5107_v34 = vor.u32 %v5105_v35, %v5104_v59  ;;  %v5115_v62 = vshrl.u32 %v17556_v49, 16  ;;  %v5124_v15 = vshrl.u32 %v17569_v8, 16  ;;  %v17584_v28 = vpop.f32.mrf.mxu0  ;;  %v17591_v23 = vld [vmem:[#allocation2 + $0xa8] sm:$0xf] }
 0x2b8   : > { %21577 = vst [vmem:[#allocation52_spill] sm:$0xff] %v17575_v30  ;;  %v5099_v16 = vsel %vm16088_vm8, %v13451_v48, %v5098_v20  ;;  %21578 = vst [vmem:[#allocation53_spill] sm:$0xff] %v17584_v28  ;;  %v13452_v35 = vrot.slane %v5110_v50, 11  ;;  %v5118_v61 = vshll.u32 %v17556_v49, 16  ;;  %v5127_v18 = vshll.u32 %v17569_v8, 16 }
 0x2b9   : > { %14622 = vmatmul.mubr.msk.bf16.gmra.mxu0 %vm465_vm1, %v13466_v52  ;;  %v5108_v0 = vsel %vm16088_vm8, %v5100_v40, %v5107_v34  ;;  %v5117_v42 = vrot.slane %v5115_v62, 7  ;;  %v5132_v59 = vshrl.u32 %v4931_v2, 16  ;;  %v17594_v12 = vpop.f32.mrf.mxu1  ;;  %v13500_v40 = vcombine.low %v17515_v58, %v17521_v63  ;;  %v4934_v62 = vld [vmem:[#allocation2 + $0xb0] sm:$0x8] }
 0x2ba   : > { %14654 = vmatmul.mubr.msk.bf16.gmra.mxu1 %vm465_vm1, %v13498_v53  ;;  %v13467_v48 = vcombine.low %v5099_v16, %v5108_v0  ;;  %v5126_v53 = vrot.slane %v5124_v15, 7  ;;  %21579 = vst [vmem:[#allocation54_spill] sm:$0xff] %v17594_v12  ;;  %v5146_v50 = vshrl.u32 %v17591_v23, 16  ;;  %v17601_v16 = vld [vmem:[#allocation2 + $0xb4] sm:$0xf]  ;;  %v17603_v15 = vpop.f32.mrf.mxu0  ;;  %v13501_v63 = vcombine.low %v17534_v19, %v17542_v4 }
 0x2bb   : > { %14657 = vmatprep.mubr.msk.bf16.mxu1 %vm465_vm1, %v13499_v31  ;;  %v5120_v20 = vor.u32 %v5118_v61, %v5117_v42  ;;  %v5122_v52 = vrot.slane %v5117_v42, 4  ;;  %v5137_v31 = vshrl.u32 %v17582_v54, 16  ;;  %21580 = vst [vmem:[#allocation55_spill] sm:$0xff] %v17603_v15  ;;  %v13453_v0 = vrot.slane %v5132_v59, 11  ;;  %v17608_v12 = vld [vmem:[#allocation2 + $0xb8] sm:$0xf] }
 0x2bc   : > { %14625 = vmatprep.mubr.msk.bf16.mxu0 %vm465_vm1, %v13467_v48  ;;  %v5129_v34 = vor.u32 %v5127_v18, %v5126_v53  ;;  %v5140_v61 = vshll.u32 %v17582_v54, 16  ;;  %v5148_v48 = vrot.slane %v5146_v50, 7  ;;  %v5149_v53 = vshll.u32 %v17591_v23, 16  ;;  %v17622_v19 = vpop.f32.mrf.mxu0 }
 0x2bd   : > { %v5121_v2 = vsel %vm16088_vm8, %v13452_v35, %v5120_v20  ;;  %v5139_v42 = vrot.slane %v5137_v31, 7  ;;  %v5154_v59 = vshrl.u32 %v4934_v62, 16  ;;  %v5159_v31 = vshrl.u32 %v17601_v16, 16  ;;  %21582 = vst [vmem:[#allocation57_spill] sm:$0xff] %v17622_v19  ;;  %v17629_v62 = vld [vmem:[#allocation2 + $0xc8] sm:$0xf] }
 0x2be   : > { %v5130_v58 = vsel %vm16088_vm8, %v5122_v52, %v5129_v34  ;;  %v17615_v18 = vpop.f32.mrf.mxu1  ;;  %v5151_v20 = vor.u32 %v5149_v53, %v5148_v48  ;;  %v5168_v30 = vshrl.u32 %v17608_v12, 16  ;;  %v4937_v52 = vld [vmem:[#allocation2 + $0xc0] sm:$0x8]  ;;  %v17620_v34 = vld [vmem:[#allocation2 + $0xc4] sm:$0xf] }
 0x2bf   : > { %21581 = vst [vmem:[#allocation56_spill] sm:$0xff] %v17615_v18  ;;  %v13468_v15 = vcombine.low %v5121_v2, %v5130_v58  ;;  %v5142_v28 = vor.u32 %v5140_v61, %v5139_v42  ;;  %v5144_v35 = vrot.slane %v5139_v42, 4  ;;  %v13454_v50 = vrot.slane %v5154_v59, 11  ;;  %v17638_v18 = vld [vmem:[#allocation2 + $0xd4] sm:$0xf] }
 0x2c0   : > { %v5161_v42 = vrot.slane %v5159_v31, 7  ;;  %v5170_v61 = vrot.slane %v5168_v30, 7  ;;  %v5171_v58 = vshll.u32 %v17608_v12, 16  ;;  %v17634_v48 = vpop.f32.mrf.mxu1  ;;  %v5176_v53 = vshrl.u32 %v4937_v52, 16  ;;  %v4940_v52 = vld [vmem:[#allocation2 + $0xd0] sm:$0x8] }
 0x2c1   : > { %14626 = vmatmul.mubr.msk.bf16.gmra.mxu0 %vm465_vm1, %v13468_v15  ;;  %v5143_v4 = vsel %vm16088_vm8, %v13453_v0, %v5142_v28  ;;  %v5152_v2 = vsel %vm16088_vm8, %v5144_v35, %v5151_v20  ;;  %v5190_v59 = vshrl.u32 %v17629_v62, 16  ;;  %v13502_v30 = vcombine.low %v17556_v49, %v17569_v8 }
 0x2c2   : > { %14658 = vmatmul.mubr.msk.bf16.gmra.mxu1 %vm465_vm1, %v13500_v40  ;;  %v5162_v40 = vshll.u32 %v17601_v16, 16  ;;  %v13469_v15 = vcombine.low %v5143_v4, %v5152_v2  ;;  %v5166_v28 = vrot.slane %v5161_v42, 4  ;;  %v5173_v0 = vor.u32 %v5171_v58, %v5170_v61  ;;  %v17651_v61 = vld [vmem:[#allocation2 + $0xd8] sm:$0xf]  ;;  %v17653_v58 = vpop.f32.mrf.mxu1 }
 0x2c3   : > { %14661 = vmatprep.mubr.msk.bf16.mxu1 %vm465_vm1, %v13501_v63  ;;  %v5181_v63 = vshrl.u32 %v17620_v34, 16  ;;  %v13455_v35 = vrot.slane %v5176_v53, 11  ;;  %v5184_v31 = vshll.u32 %v17620_v34, 16  ;;  %v5192_v2 = vrot.slane %v5190_v59, 7 }
 0x2c4   : > { %v5164_v19 = vor.u32 %v5162_v40, %v5161_v42  ;;  %14629 = vmatprep.mubr.msk.bf16.mxu0 %vm465_vm1, %v13469_v15  ;;  %v5174_v40 = vsel %vm16088_vm8, %v5166_v28, %v5173_v0  ;;  %v5193_v42 = vshll.u32 %v17629_v62, 16  ;;  %v13503_v49 = vcombine.low %v17582_v54, %v17591_v23  ;;  %v4943_v0 = vld [vmem:[#allocation2 + $0xe0] sm:$0x8]  ;;  %v17678_v23 = vld [vmem:[#allocation2 + $0xe4] sm:$0xf] }
 0x2c5   : > { %v17640_v37 = vpop.f32.mrf.mxu0  ;;  %v5183_v20 = vrot.slane %v5181_v63, 7  ;;  %v17659_v63 = vadd.f32 %v17195_v27, %v17171_v39  ;;  %v5203_v28 = vshrl.u32 %v17638_v18, 16  ;;  %v17671_v54 = vadd.f32 %v17225_v51, %v17180_v5  ;;  %v17683_v5 = vld [vmem:[#allocation2 + $0xe8] sm:$0xf]  ;;  %v17685_v51 = vpop.f32.mrf.mxu1 }
 0x2c6   : > { %v5165_v4 = vsel %vm16088_vm8, %v13454_v50, %v5164_v19  ;;  %v5195_v19 = vor.u32 %v5193_v42, %v5192_v2  ;;  %v5198_v50 = vshrl.u32 %v4940_v52, 16  ;;  %v5212_v27 = vshrl.u32 %v17651_v61, 16  ;;  %21583 = vst [vmem:[#allocation58_spill] sm:$0xff] %v17685_v51 }
 0x2c7   : > { %v13470_v15 = vcombine.low %v5165_v4, %v5174_v40  ;;  %v5186_v8 = vor.u32 %v5184_v31, %v5183_v20  ;;  %v5188_v53 = vrot.slane %v5183_v20, 4  ;;  %v17663_v59 = vpop.f32.mrf.mxu0  ;;  %v17667_v4 = vadd.f32 %v17207_v60, %v17174_v32 }
 0x2c8   : > { %v13456_v32 = vrot.slane %v5198_v50, 11  ;;  %v5205_v60 = vrot.slane %v5203_v28, 7  ;;  %v5206_v20 = vshll.u32 %v17638_v18, 16  ;;  %v5214_v52 = vrot.slane %v5212_v27, 7 }
 0x2c9   : > { %14630 = vmatmul.mubr.msk.bf16.gmra.mxu0 %vm465_vm1, %v13470_v15  ;;  %v5187_v39 = vsel %vm16088_vm8, %v13455_v35, %v5186_v8  ;;  %v5215_v40 = vshll.u32 %v17651_v61, 16  ;;  %v5220_v35 = vshrl.u32 %v4943_v0, 16  ;;  %v17690_v2 = vadd.f32 %v17236_v7, %v17197_v13  ;;  %v17693_v8 = vpop.f32.mrf.mxu0  ;;  %v4946_v0 = vld [vmem:[#allocation2 + $0xf0] sm:$0x8]  ;;  %v17701_v13 = vld [vmem:[#allocation2 + $0xf4] sm:$0xf] }
 0x2ca   : > { %14662 = vmatmul.mubr.msk.bf16.gmra.mxu1 %vm465_vm1, %v13502_v30  ;;  %v5196_v30 = vsel %vm16088_vm8, %v5188_v53, %v5195_v19  ;;  %v5208_v42 = vor.u32 %v5206_v20, %v5205_v60  ;;  %v5210_v15 = vrot.slane %v5205_v60, 4  ;;  %v13504_v53 = vcombine.low %v17601_v16, %v17608_v12  ;;  %v17706_v60 = vld [vmem:[#allocation2 + $0xf8] sm:$0xf] }
 0x2cb   : > { %14665 = vmatprep.mubr.msk.bf16.mxu1 %vm465_vm1, %v13503_v49  ;;  %v13471_v31 = vcombine.low %v5187_v39, %v5196_v30  ;;  %v5225_v49 = vshrl.u32 %v17678_v23, 16  ;;  %v5217_v19 = vor.u32 %v5215_v40, %v5214_v52  ;;  %v13505_v50 = vcombine.low %v17620_v34, %v17629_v62 }
 0x2cc   : > { %v5234_v28 = vshrl.u32 %v17683_v5, 16  ;;  %v5209_v7 = vsel %vm16088_vm8, %v13456_v32, %v5208_v42  ;;  %v13457_v39 = vrot.slane %v5220_v35, 11  ;;  %v5228_v30 = vshll.u32 %v17678_v23, 16  ;;  %v17718_v35 = vpop.f32.mrf.mxu0 }
 0x2cd   : > { %14633 = vmatprep.mubr.msk.bf16.mxu0 %vm465_vm1, %v13471_v31  ;;  %v5227_v27 = vrot.slane %v5225_v49, 7  ;;  %v5218_v12 = vsel %vm16088_vm8, %v5210_v15, %v5217_v19  ;;  %v5237_v34 = vshll.u32 %v17683_v5, 16  ;;  %v17715_v62 = vadd.f32 %v17421_v24, %v17388_v44  ;;  %21584 = vst [vmem:[#allocation59_spill] sm:$0xff] %v17718_v35  ;;  %v4949_v44 = vld [vmem:[#allocation2 + $0x100] sm:$0x8] }
 0x2ce   : > { %v5236_v16 = vrot.slane %v5234_v28, 7  ;;  %v13472_v32 = vcombine.low %v5209_v7, %v5218_v12  ;;  %v5242_v40 = vshrl.u32 %v4946_v0, 16  ;;  %v13506_v15 = vcombine.low %v17638_v18, %v17651_v61  ;;  %v17725_v24 = vld [vmem:[#allocation2 + $0x104] sm:$0xf]  ;;  %v17732_v7 = vld [vmem:[#allocation2 + $0x108] sm:$0xf] }
 0x2cf   : > { %v17708_v20 = vpop.f32.mrf.mxu1  ;;  %v5230_v31 = vor.u32 %v5228_v30, %v5227_v27  ;;  %v5232_v52 = vrot.slane %v5227_v27, 4  ;;  %v5247_v49 = vshrl.u32 %v17701_v13, 16  ;;  %v5256_v19 = vshrl.u32 %v17706_v60, 16 }
 0x2d0   : > { %v5239_v42 = vor.u32 %v5237_v34, %v5236_v16  ;;  %v13458_v28 = vrot.slane %v5242_v40, 11  ;;  %v5250_v0 = vshll.u32 %v17701_v13, 16  ;;  %v17740_v12 = vadd.f32 %v17428_v22, %v17399_v41 }
 0x2d1   : > { %14634 = vmatmul.mubr.msk.bf16.gmra.mxu0 %vm465_vm1, %v13472_v32  ;;  %v17734_v18 = vpop.f32.mrf.mxu1  ;;  %v5249_v27 = vrot.slane %v5247_v49, 7  ;;  %v5258_v30 = vrot.slane %v5256_v19, 7  ;;  %v5264_v34 = vshrl.u32 %v4949_v44, 16  ;;  %v5269_v32 = vshrl.u32 %v17725_v24, 16 }
 0x2d2   : > { %14666 = vmatmul.mubr.msk.bf16.gmra.mxu1 %vm465_vm1, %v13504_v53  ;;  %v5231_v53 = vsel %vm16088_vm8, %v13457_v39, %v5230_v31  ;;  %v5240_v61 = vsel %vm16088_vm8, %v5232_v52, %v5239_v42  ;;  %v13507_v39 = vcombine.low %v17678_v23, %v17683_v5  ;;  %v5278_v52 = vshrl.u32 %v17732_v7, 16  ;;  %v1303_v42 = vld [vmem:[#allocation2 + $0x110] sm:$0x8]  ;;  %v17754_v5 = vld [vmem:[#allocation2 + $0x114] sm:$0xf] }
 0x2d3   : > { %14669 = vmatprep.mubr.msk.bf16.mxu1 %vm465_vm1, %v13505_v50  ;;  %v5259_v50 = vshll.u32 %v17706_v60, 16  ;;  %v13473_v16 = vcombine.low %v5231_v53, %v5240_v61  ;;  %v5252_v40 = vor.u32 %v5250_v0, %v5249_v27  ;;  %v5254_v35 = vrot.slane %v5249_v27, 4  ;;  %v17756_v19 = vpop.f32.mrf.mxu1  ;;  %v17763_v61 = vld [vmem:[#allocation2 + $0x118] sm:$0xf] }
 0x2d4   : > { %v13459_v49 = vrot.slane %v5264_v34, 11  ;;  %v5271_v41 = vrot.slane %v5269_v32, 7  ;;  %v5272_v22 = vshll.u32 %v17725_v24, 16  ;;  %v17752_v23 = vadd.f32 %v17439_v14, %v17406_v36  ;;  %v5949_v34 = vld [vmem:[#allocation2 + $0x24] sm:$0xf] }
 0x2d5   : > { %v5261_v51 = vor.u32 %v5259_v50, %v5258_v30  ;;  %14637 = vmatprep.mubr.msk.bf16.mxu0 %vm465_vm1, %v13473_v16  ;;  %v5253_v44 = vsel %vm16088_vm8, %v13458_v28, %v5252_v40  ;;  %v5280_v0 = vrot.slane %v5278_v52, 7  ;;  %v5281_v50 = vshll.u32 %v17732_v7, 16 }
 0x2d6   : > { %v17745_v31 = vpop.f32.mrf.mxu0  ;;  %v5274_v36 = vor.u32 %v5272_v22, %v5271_v41  ;;  %v5276_v14 = vrot.slane %v5271_v41, 4  ;;  %v17768_v30 = vadd.f32 %v17457_v47, %v17425_v25  ;;  %v17774_v28 = vadd.f32 %v17249_v43, %v17223_v11  ;;  %v5950_v47 = vld [vmem:[#allocation2 + $0x28] sm:$0xf] }
 0x2d7   : > { %v5262_v53 = vsel %vm16088_vm8, %v5254_v35, %v5261_v51  ;;  %v5283_v51 = vor.u32 %v5281_v50, %v5280_v0  ;;  %v1304_v35 = vsel %vm16072_vm5, 0, %v1303_v42  ;;  %v17782_v32 = vadd.f32 %v17262_v56, %v17234_v55  ;;  %v5951_v42 = vld [vmem:[#allocation2 + $0x2c] sm:$0x1] }
 0x2d8   : > { %v13474_v27 = vcombine.low %v5253_v44, %v5262_v53  ;;  %v17770_v16 = vpop.f32.mrf.mxu0  ;;  %v5275_v25 = vsel %vm16088_vm8, %v13459_v49, %v5274_v36  ;;  %1305 = vst [vmem:[#allocation2 + $0x110] sm:$0x8] %v1304_v35  ;;  %v5300_v11 = vshrl.u32 %v17763_v61, 16  ;;  %v5303_v43 = vshll.u32 %v17763_v61, 16 }
 0x2d9   : > { %v5284_v40 = vsel %vm16088_vm8, %v5276_v14, %v5283_v51  ;;  %v5294_v55 = vshll.u32 %v17754_v5, 16  ;;  %v17796_v56 = vadd.f32 %v17472_v33, %v17435_v26  ;;  %v5998_v22 = vshrl.u32 %v5949_v34, 16  ;;  %v5952_v33 = vld [vmem:[#allocation2 + $0x34] sm:$0xf] }
 0x2da   : > { %14670 = vmatmul.mubr.msk.bf16.gmra.mxu1 %vm465_vm1, %v13506_v15  ;;  %v5291_v15 = vshrl.u32 %v17754_v5, 16  ;;  %14638 = vmatmul.mubr.msk.bf16.gmra.mxu0 %vm465_vm1, %v13474_v27  ;;  %v13475_v49 = vcombine.low %v5275_v25, %v5284_v40  ;;  %v5302_v41 = vrot.slane %v5300_v11, 7  ;;  %v6001_v44 = vshll.u32 %v5949_v34, 16  ;;  %v17798_v53 = vpop.f32.mrf.mxu0 }
 0x2db   : > { %14673 = vmatprep.mubr.msk.bf16.mxu1 %vm465_vm1, %v13507_v39  ;;  %v17789_v39 = vpop.f32.mrf.mxu1  ;;  %v13508_v0 = vcombine.low %v17701_v13, %v17706_v60  ;;  %v6007_v27 = vshll.u32 %v5950_v47, 16  ;;  %v6011_v36 = vshrl.u32 %v5950_v47, 16  ;;  %v6000_v51 = vrot.slane %v5998_v22, 4  ;;  %v5953_v60 = vld [vmem:[#allocation2 + $0x38] sm:$0xf] }
 0x2dc   : > { %21585 = vst [vmem:[#allocation60_spill] sm:$0xff] %v17789_v39  ;;  %v5293_v52 = vrot.slane %v5291_v15, 7  ;;  %14641 = vmatprep.mubr.msk.bf16.mxu0 %vm465_vm1, %v13475_v49  ;;  %v5305_v14 = vor.u32 %v5303_v43, %v5302_v41  ;;  %v6003_v35 = vrot.slane %v6001_v44, 5  ;;  %v6017_v26 = vshll.u32 %v5951_v42, 16  ;;  %v5954_v49 = vld [vmem:[#allocation2 + $0x3c] sm:$0x1] }
 0x2dd   : > { %v13509_v34 = vcombine.low %v17725_v24, %v17732_v7  ;;  %v6009_v25 = vrot.slane %v6007_v27, 5  ;;  %v6013_v11 = vrot.slane %v6011_v36, 4  ;;  %v17809_v13 = vadd.f32 %v17482_v6, %v17442_v1  ;;  %v17818_v24 = vpop.f32.mrf.mxu0 }
 0x2de   : > { %v5298_v50 = vrot.slane %v5293_v52, 4  ;;  %v17803_v15 = vpop.f32.mrf.mxu1  ;;  %v5296_v47 = vor.u32 %v5294_v55, %v5293_v52  ;;  %v6004_v40 = vor.u32 %v6003_v35, %v6000_v51  ;;  %v17816_v42 = vadd.f32 %v17506_v45, %v17464_v10  ;;  %21586 = vst [vmem:[#allocation61_spill] sm:$0xff] %v17818_v24 }
 0x2df   : > { %v4952_v7 = vld [vmem:[#allocation2 + $0x110] sm:$0x8]  ;;  %v6014_v6 = vor.u32 %v6013_v11, %v6009_v25  ;;  %v6019_v1 = vrot.slane %v6017_v26, 5  ;;  %v13510_v41 = vcombine.low %v17754_v5, %v17763_v61  ;;  %v6022_v52 = vshrl.u32 %v5952_v33, 16  ;;  %v5956_v11 = vld [vmem:[#allocation2 + $0x48] sm:$0xf] }
 0x2e0   : > { %v5306_v43 = vsel %vm16088_vm8, %v5298_v50, %v5305_v14  ;;  %v5286_v55 = vshrl.u32 %v4952_v7, 16  ;;  %v6005_v22 = vrot.slane %v6004_v40, 4  ;;  %v6025_v44 = vshll.u32 %v5952_v33, 16  ;;  %v17823_v50 = vpop.f32.mrf.mxu1  ;;  %v5955_v14 = vld [vmem:[#allocation2 + $0x44] sm:$0xf] }
 0x2e1   : > { %v6015_v10 = vrot.slane %v6014_v6, 4  ;;  %v6024_v45 = vrot.slane %v6022_v52, 4  ;;  %v6035_v27 = vshrl.u32 %v5953_v60, 16  ;;  %v6041_v36 = vshll.u32 %v5954_v49, 16 }
 0x2e2   : > { %14674 = vmatmul.mubr.msk.bf16.gmra.mxu1 %vm465_vm1, %v13508_v0  ;;  %v6031_v0 = vshll.u32 %v5953_v60, 16  ;;  %v13460_v51 = vrot.slane %v5286_v55, 11  ;;  %v6010_v35 = vsel %vm16852_vm13, %v6005_v22, %v6009_v25  ;;  %v6027_v26 = vrot.slane %v6025_v44, 5  ;;  %v5957_v60 = vld [vmem:[#allocation2 + $0x4c] sm:$0x1]  ;;  %v17837_v55 = vpop.f32.mrf.mxu1 }
 0x2e3   : > { %14677 = vmatprep.mubr.msk.bf16.mxu1 %vm465_vm1, %v13509_v34  ;;  %v6020_v61 = vsel %vm16852_vm13, %v6015_v10, %v6019_v1  ;;  %v6037_v33 = vrot.slane %v6035_v27, 4  ;;  %v6043_v40 = vrot.slane %v6041_v36, 5  ;;  %v17833_v7 = vadd.f32 %v17517_v38, %v17476_v46 }
 0x2e4   : > { %v6033_v34 = vrot.slane %v6031_v0, 5  ;;  %v5297_v49 = vsel %vm16088_vm8, %v13460_v51, %v5296_v47  ;;  %v13529_v6 = vcombine.low %v6010_v35, %v6020_v61  ;;  %v6028_v25 = vor.u32 %v6027_v26, %v6024_v45  ;;  %v17858_v61 = vpop.f32.mrf.mxu1 }
 0x2e5   : > { %v6046_v52 = vshrl.u32 %v5955_v14, 16  ;;  %v13476_v22 = vcombine.low %v5297_v49, %v5306_v43  ;;  %v6049_v0 = vshll.u32 %v5955_v14, 16  ;;  %v6055_v29 = vshll.u32 %v5956_v11, 16  ;;  %v21588_v14 = vld [vmem:[#allocation16_spill] sm:$0xff]  ;;  %v21593_v49 = vld [vmem:[#allocation21_spill] sm:$0xff] }
 0x2e6   : > { %v17827_v5 = vpop.f32.mrf.mxu0  ;;  %v6038_v44 = vor.u32 %v6037_v33, %v6033_v34  ;;  %v6029_v1 = vrot.slane %v6028_v25, 4  ;;  %v6059_v27 = vshrl.u32 %v5956_v11, 16  ;;  %v6065_v46 = vshll.u32 %v5957_v60, 16  ;;  %v5958_v11 = vld [vmem:[#allocation2 + $0x54] sm:$0xf]  ;;  %21590 = vst [vmem:[#allocation16_spill] sm:$0xff] %v17858_v61 }
 0x2e7   : > { %v6048_v10 = vrot.slane %v6046_v52, 4  ;;  %v17844_v47 = vadd.f32 %v17285_v57, %v17264_v3  ;;  %14642 = vmatmul.mubr.msk.bf16.gmra.mxu0 %vm465_vm1, %v13476_v22  ;;  %v6051_v36 = vrot.slane %v6049_v0, 5  ;;  %v6057_v43 = vrot.slane %v6055_v29, 5  ;;  %v21591_v29 = vld [vmem:[#allocation17_spill] sm:$0xff]  ;;  %v21592_v33 = vld [vmem:[#allocation20_spill] sm:$0xff]  ;;  %v21594_v25 = vld [vmem:[#allocation26_spill] sm:$0xff] }
 0x2e8   : > { %v17840_v38 = vpop.f32.mrf.mxu0  ;;  %v6039_v45 = vrot.slane %v6038_v44, 4  ;;  %v21587_v51 = vmov 0.0   ;;  %14685 = vmatprep.mubr.msk.bf16.mxu0 %vm465_vm1, %v13529_v6  ;;  %v3097_v26 = vadd.f32 %v17509_v21, %v17659_v63  ;;  %v6034_v3 = vsel %vm16852_vm13, %v6029_v1, %v6033_v34  ;;  %v5959_v21 = vld [vmem:[#allocation2 + $0x58] sm:$0xf]  ;;  %v5960_v63 = vld [vmem:[#allocation2 + $0x5c] sm:$0x1] }
 0x2e9   : > { %v6061_v57 = vrot.slane %v6059_v27, 4  ;;  %v17862_v60 = vadd.f32 %v21592_v33, %v21591_v29  ;;  %v17866_v52 = vadd.f32 %v21594_v25, %v21593_v49  ;;  %v6052_v22 = vor.u32 %v6051_v36, %v6048_v10  ;;  %v21595_v0 = vld [vmem:[#allocation44_spill] sm:$0xff]  ;;  %v21596_v27 = vld [vmem:[#allocation49_spill] sm:$0xff] }
 0x2ea   : > { %14678 = vmatmul.mubr.msk.bf16.gmra.mxu1 %vm465_vm1, %v13510_v41  ;;  %v21589_v41 = vld [vmem:[#allocation18_spill] sm:$0xff]  ;;  %v6044_v6 = vsel %vm16852_vm13, %v6039_v45, %v6043_v40  ;;  %v6067_v34 = vrot.slane %v6065_v46, 5  ;;  %v3095_v1 = vadd.f32 %v21595_v0, %v17667_v4  ;;  %v6070_v49 = vshrl.u32 %v5958_v11, 16  ;;  %v5961_v45 = vld [vmem:[#allocation2 + $0x64] sm:$0xf] }
 0x2eb   : > { %14725 = vmatprep.mubr.msk.f32.mxu1 %vm15624_vm0, %v21587_v51  ;;  %v17851_v35 = vadd.f32 %v21589_v41, %v21588_v14  ;;  %v6062_v44 = vor.u32 %v6061_v57, %v6057_v43  ;;  %v17873_v14 = vadd.f32 %v21596_v27, %v3097_v26  ;;  %v17875_v41 = vpop.f32.mrf.mxu0  ;;  %v13530_v29 = vcombine.low %v6034_v3, %v6044_v6  ;;  %v21598_v26 = vld [vmem:[#allocation51_spill] sm:$0xff]  ;;  %v5962_v27 = vld [vmem:[#allocation2 + $0x68] sm:$0xf]  ;;  %v5963_v3 = vld [vmem:[#allocation2 + $0x6c] sm:$0x1] }
 0x2ec   : > { %v6053_v33 = vrot.slane %v6052_v22, 4  ;;  %v6073_v25 = vshll.u32 %v5958_v11, 16  ;;  %v6079_v61 = vshll.u32 %v5959_v21, 16  ;;  %v6083_v40 = vshrl.u32 %v5959_v21, 16  ;;  %v5966_v51 = vld [vmem:[#allocation2 + $0x7c] sm:$0x1] }
 0x2ed   : > { %21597 = vst [vmem:[#allocation18_spill] sm:$0xff] %v17873_v14  ;;  %v6063_v17 = vrot.slane %v6062_v44, 4  ;;  %v6089_v10 = vshll.u32 %v5960_v63, 16  ;;  %v6072_v4 = vrot.slane %v6070_v49, 4  ;;  %v17882_v0 = vadd.f32 %v21598_v26, %v3095_v1  ;;  %v17886_v63 = vpop.f32.mrf.mxu0 }
 0x2ee   : > { %v6058_v46 = vsel %vm16852_vm13, %v6053_v33, %v6057_v43  ;;  %v6075_v57 = vrot.slane %v6073_v25, 5  ;;  %v6081_v6 = vrot.slane %v6079_v61, 5  ;;  %v6085_v22 = vrot.slane %v6083_v40, 4  ;;  %21600 = vst [vmem:[#allocation20_spill] sm:$0xff] %v17886_v63  ;;  %v21602_v63 = vld [vmem:[#allocation22_spill] sm:$0xff] }
 0x2ef   : > { %v17877_v36 = vpop.f32.mrf.mxu1  ;;  %21599 = vst [vmem:[#allocation17_spill] sm:$0xff] %v17882_v0  ;;  %v6068_v11 = vsel %vm16852_vm13, %v6063_v17, %v6067_v34  ;;  %v6091_v21 = vrot.slane %v6089_v10, 5  ;;  %14686 = vmatmul.mubr.msk.bf16.vlgmr.msra.gmra.mxu0 %vm465_vm1, %v13530_v29  ;;  %v6094_v43 = vshrl.u32 %v5961_v45, 16  ;;  %v6097_v33 = vshll.u32 %v5961_v45, 16  ;;  %v21601_v17 = vld [vmem:[#allocation46_spill] sm:$0xff]  ;;  %v21603_v29 = vld [vmem:[#allocation28_spill] sm:$0xff] }
 0x2f0   : > { %v13531_v44 = vcombine.low %v6058_v46, %v6068_v11  ;;  %v6076_v39 = vor.u32 %v6075_v57, %v6072_v4  ;;  %v6086_v49 = vor.u32 %v6085_v22, %v6081_v6  ;;  %v6103_v25 = vshll.u32 %v5962_v27, 16  ;;  %v5967_v0 = vld [vmem:[#allocation2 + $0x84] sm:$0xf] }
 0x2f1   : > { %v6107_v1 = vshrl.u32 %v5962_v27, 16  ;;  %v6113_v26 = vshll.u32 %v5963_v3, 16  ;;  %v17889_v24 = vpop.f32.mrf.mxu1  ;;  %v3098_v61 = vadd.f32 %v21601_v17, %v17671_v54  ;;  %v6096_v40 = vrot.slane %v6094_v43, 4  ;;  %v21604_v27 = vld [vmem:[#allocation50_spill] sm:$0xff]  ;;  %v21605_v54 = vld [vmem:[#allocation52_spill] sm:$0xff] }
 0x2f2   : > { %14689 = vmatprep.mubr.msk.bf16.mxu0 %vm465_vm1, %v13531_v44  ;;  %v6077_v34 = vrot.slane %v6076_v39, 4  ;;  %v6099_v10 = vrot.slane %v6097_v33, 5  ;;  %v17896_v46 = vadd.f32 %v21603_v29, %v21602_v63  ;;  %v6087_v4 = vrot.slane %v6086_v49, 4  ;;  %v5964_v43 = vld [vmem:[#allocation2 + $0x74] sm:$0xf]  ;;  %v21607_v17 = vld [vmem:[#allocation24_spill] sm:$0xff] }
 0x2f3   : > { %v6105_v45 = vrot.slane %v6103_v25, 5  ;;  %v6109_v57 = vrot.slane %v6107_v1, 4  ;;  %v3101_v3 = vadd.f32 %v21604_v27, %v17690_v2  ;;  %v17905_v39 = vadd.f32 %v21605_v54, %v3098_v61  ;;  %v5965_v33 = vld [vmem:[#allocation2 + $0x78] sm:$0xf]  ;;  %v21608_v63 = vld [vmem:[#allocation29_spill] sm:$0xff]  ;;  %v17913_v2 = vpop.f32.mrf.mxu1 }
 0x2f4   : > { %v6082_v22 = vsel %vm16852_vm13, %v6077_v34, %v6081_v6  ;;  %v6100_v44 = vor.u32 %v6099_v10, %v6096_v40  ;;  %v17909_v29 = vadd.f32 %v21608_v63, %v21607_v17  ;;  %v6092_v49 = vsel %vm16852_vm13, %v6087_v4, %v6091_v21  ;;  %v21609_v34 = vld [vmem:[#allocation53_spill] sm:$0xff]  ;;  %v21610_v40 = vld [vmem:[#allocation56_spill] sm:$0xff] }
 0x2f5   : > { %21606 = vst [vmem:[#allocation21_spill] sm:$0xff] %v17905_v39  ;;  %v6110_v25 = vor.u32 %v6109_v57, %v6105_v45  ;;  %v6115_v1 = vrot.slane %v6113_v26, 5  ;;  %v13532_v27 = vcombine.low %v6082_v22, %v6092_v49  ;;  %v3099_v61 = vadd.f32 %v21609_v34, %v17774_v28  ;;  %v5968_v28 = vld [vmem:[#allocation2 + $0x88] sm:$0xf]  ;;  %v5969_v49 = vld [vmem:[#allocation2 + $0x8c] sm:$0x1] }
 0x2f6   : > { %v17898_v11 = vpop.f32.mrf.mxu0  ;;  %v6101_v6 = vrot.slane %v6100_v44, 4  ;;  %v17918_v10 = vadd.f32 %v21610_v40, %v3101_v3  ;;  %v6118_v39 = vshrl.u32 %v5964_v43, 16  ;;  %v6121_v17 = vshll.u32 %v5964_v43, 16 }
 0x2f7   : > { %v6111_v54 = vrot.slane %v6110_v25, 4  ;;  %v6127_v63 = vshll.u32 %v5965_v33, 16  ;;  %14690 = vmatmul.mubr.msk.bf16.gmra.mxu0 %vm465_vm1, %v13532_v27  ;;  %v6131_v26 = vshrl.u32 %v5965_v33, 16  ;;  %v6137_v4 = vshll.u32 %v5966_v51, 16  ;;  %v17930_v25 = vpop.f32.mrf.mxu1  ;;  %v21614_v27 = vld [vmem:[#allocation55_spill] sm:$0xff] }
 0x2f8   : > { %21611 = vst [vmem:[#allocation26_spill] sm:$0xff] %v17918_v10  ;;  %v17920_v14 = vpop.f32.mrf.mxu0  ;;  %v6106_v21 = vsel %vm16852_vm13, %v6101_v6, %v6105_v45  ;;  %v17926_v57 = vadd.f32 %v17634_v48, %v3099_v61  ;;  %v6120_v22 = vrot.slane %v6118_v39, 4  ;;  %v6123_v44 = vrot.slane %v6121_v17, 5  ;;  %21613 = vst [vmem:[#allocation49_spill] sm:$0xff] %v17930_v25 }
 0x2f9   : > { %v6116_v3 = vsel %vm16852_vm13, %v6111_v54, %v6115_v1  ;;  %v6129_v43 = vrot.slane %v6127_v63, 5  ;;  %v3102_v40 = vadd.f32 %v21614_v27, %v17782_v32  ;;  %v6133_v45 = vrot.slane %v6131_v26, 4  ;;  %v5971_v27 = vld [vmem:[#allocation2 + $0x98] sm:$0xf] }
 0x2fa   : > { %21612 = vst [vmem:[#allocation44_spill] sm:$0xff] %v17926_v57  ;;  %v13533_v34 = vcombine.low %v6106_v21, %v6116_v3  ;;  %v6142_v33 = vshrl.u32 %v5967_v0, 16  ;;  %v6124_v51 = vor.u32 %v6123_v44, %v6120_v22  ;;  %v6145_v6 = vshll.u32 %v5967_v0, 16  ;;  %v17934_v57 = vpop.f32.mrf.mxu0  ;;  %v5970_v22 = vld [vmem:[#allocation2 + $0x94] sm:$0xf] }
 0x2fb   : > { %v6151_v48 = vshll.u32 %v5968_v28, 16  ;;  %v6155_v61 = vshrl.u32 %v5968_v28, 16  ;;  %v6134_v39 = vor.u32 %v6133_v45, %v6129_v43  ;;  %v6139_v1 = vrot.slane %v6137_v4, 5  ;;  %v5972_v45 = vld [vmem:[#allocation2 + $0x9c] sm:$0x1] }
 0x2fc   : > { %14693 = vmatprep.mubr.msk.bf16.mxu0 %vm465_vm1, %v13533_v34  ;;  %v6144_v54 = vrot.slane %v6142_v33, 4  ;;  %v6161_v17 = vshll.u32 %v5969_v49, 16  ;;  %v6125_v63 = vrot.slane %v6124_v51, 4  ;;  %v6147_v25 = vrot.slane %v6145_v6, 5  ;;  %v17948_v33 = vpop.f32.mrf.mxu0  ;;  %v5973_v51 = vld [vmem:[#allocation2 + $0xa4] sm:$0xf] }
 0x2fd   : > { %v6153_v21 = vrot.slane %v6151_v48, 5  ;;  %v6157_v3 = vrot.slane %v6155_v61, 4  ;;  %v3105_v32 = vadd.f32 %v17640_v37, %v17844_v47  ;;  %v6135_v0 = vrot.slane %v6134_v39, 4 }
 0x2fe   : > { %v3103_v26 = vadd.f32 %v17663_v59, %v17851_v35  ;;  %v17944_v28 = vadd.f32 %v17653_v58, %v3102_v40  ;;  %v6130_v4 = vsel %vm16852_vm13, %v6125_v63, %v6129_v43  ;;  %v6148_v44 = vor.u32 %v6147_v25, %v6144_v54  ;;  %v5974_v54 = vld [vmem:[#allocation2 + $0xa8] sm:$0xf] }
 0x2ff   : > { %v17937_v10 = vpop.f32.mrf.mxu1  ;;  %v6158_v49 = vor.u32 %v6157_v3, %v6153_v21  ;;  %v6163_v34 = vrot.slane %v6161_v17, 5  ;;  %v6140_v37 = vsel %vm16852_vm13, %v6135_v0, %v6139_v1  ;;  %v3106_v59 = vadd.f32 %v17693_v8, %v17862_v60 }
 0x300   : > { %v17955_v58 = vadd.f32 %v17708_v20, %v3105_v32  ;;  %v3109_v47 = vadd.f32 %v17745_v31, %v17866_v52  ;;  %v13534_v35 = vcombine.low %v6130_v4, %v6140_v37  ;;  %v6149_v43 = vrot.slane %v6148_v44, 4  ;;  %v5975_v52 = vld [vmem:[#allocation2 + $0xac] sm:$0x1] }
 0x301   : > { %v6159_v25 = vrot.slane %v6158_v49, 4  ;;  %v6166_v40 = vshrl.u32 %v5970_v22, 16  ;;  %v17959_v6 = vpop.f32.mrf.mxu1  ;;  %v6169_v48 = vshll.u32 %v5970_v22, 16  ;;  %v6175_v61 = vshll.u32 %v5971_v27, 16 }
 0x302   : > { %v6179_v39 = vshrl.u32 %v5971_v27, 16  ;;  %v6185_v1 = vshll.u32 %v5972_v45, 16  ;;  %14694 = vmatmul.mubr.msk.bf16.gmra.mxu0 %vm465_vm1, %v13534_v35  ;;  %v6154_v8 = vsel %vm16852_vm13, %v6149_v43, %v6153_v21  ;;  %v17967_v60 = vadd.f32 %v17734_v18, %v3103_v26 }
 0x303   : > { %v6164_v20 = vsel %vm16852_vm13, %v6159_v25, %v6163_v34  ;;  %v6168_v31 = vrot.slane %v6166_v40, 4  ;;  %v6171_v3 = vrot.slane %v6169_v48, 5  ;;  %v6177_v32 = vrot.slane %v6175_v61, 5  ;;  %v17971_v27 = vpop.f32.mrf.mxu1  ;;  %v21615_v61 = vld [vmem:[#allocation27_spill] sm:$0xff] }
 0x304   : > { %v13535_v63 = vcombine.low %v6154_v8, %v6164_v20  ;;  %v6181_v0 = vrot.slane %v6179_v39, 4  ;;  %v6187_v22 = vrot.slane %v6185_v1, 5  ;;  %v6190_v4 = vshrl.u32 %v5973_v51, 16  ;;  %v21616_v39 = vld [vmem:[#allocation32_spill] sm:$0xff] }
 0x305   : > { %v6193_v44 = vshll.u32 %v5973_v51, 16  ;;  %v6199_v49 = vshll.u32 %v5974_v54, 16  ;;  %v6172_v21 = vor.u32 %v6171_v3, %v6168_v31  ;;  %v6203_v45 = vshrl.u32 %v5974_v54, 16  ;;  %v5976_v31 = vld [vmem:[#allocation2 + $0xb4] sm:$0xf] }
 0x306   : > { %v17969_v17 = vpop.f32.mrf.mxu0  ;;  %14697 = vmatprep.mubr.msk.bf16.mxu0 %vm465_vm1, %v13535_v63  ;;  %v6182_v34 = vor.u32 %v6181_v0, %v6177_v32  ;;  %v6209_v18 = vshll.u32 %v5975_v52, 16  ;;  %v6192_v26 = vrot.slane %v6190_v4, 4  ;;  %v3107_v43 = vadd.f32 %v17770_v16, %v17896_v46  ;;  %v5977_v52 = vld [vmem:[#allocation2 + $0xb8] sm:$0xf]  ;;  %v17985_v63 = vpop.f32.mrf.mxu1  ;;  %v5978_v4 = vld [vmem:[#allocation2 + $0xbc] sm:$0x1] }
 0x307   : > { %v6195_v37 = vrot.slane %v6193_v44, 5  ;;  %v6201_v35 = vrot.slane %v6199_v49, 5  ;;  %v6173_v40 = vrot.slane %v6172_v21, 4  ;;  %v6205_v51 = vrot.slane %v6203_v45, 4  ;;  %21617 = vst [vmem:[#allocation51_spill] sm:$0xff] %v17985_v63 }
 0x308   : > { %v17976_v25 = vpop.f32.mrf.mxu0  ;;  %v6183_v48 = vrot.slane %v6182_v34, 4  ;;  %v2333_v1 = vadd.f32 %v21616_v39, %v21615_v61  ;;  %v17981_v20 = vadd.f32 %v17756_v19, %v3106_v59  ;;  %v3110_v54 = vadd.f32 %v17798_v53, %v17909_v29  ;;  %v5981_v61 = vld [vmem:[#allocation2 + $0xcc] sm:$0x1]  ;;  %v21618_v39 = vld [vmem:[#allocation33_spill] sm:$0xff] }
 0x309   : > { %v6196_v8 = vor.u32 %v6195_v37, %v6192_v26  ;;  %v6178_v16 = vsel %vm16852_vm13, %v6173_v40, %v6177_v32  ;;  %v6206_v3 = vor.u32 %v6205_v51, %v6201_v35  ;;  %v6211_v0 = vrot.slane %v6209_v18, 5  ;;  %v5979_v32 = vld [vmem:[#allocation2 + $0xc4] sm:$0xf] }
 0x30a   : > { %v6188_v46 = vsel %vm16852_vm13, %v6183_v48, %v6187_v22  ;;  %v17992_v19 = vadd.f32 %v17803_v15, %v3109_v47  ;;  %v3113_v53 = vadd.f32 %v17827_v5, %v2333_v1  ;;  %v17995_v29 = vpop.f32.mrf.mxu0  ;;  %v6214_v21 = vshrl.u32 %v5976_v31, 16  ;;  %v5980_v15 = vld [vmem:[#allocation2 + $0xc8] sm:$0xf] }
 0x30b   : > { %v13536_v44 = vcombine.low %v6178_v16, %v6188_v46  ;;  %v6197_v49 = vrot.slane %v6196_v8, 4  ;;  %v6207_v59 = vrot.slane %v6206_v3, 4  ;;  %v6217_v34 = vshll.u32 %v5976_v31, 16  ;;  %v21619_v1 = vld [vmem:[#allocation36_spill] sm:$0xff] }
 0x30c   : > { %v6223_v45 = vshll.u32 %v5977_v52, 16  ;;  %v6227_v18 = vshrl.u32 %v5977_v52, 16  ;;  %v6233_v26 = vshll.u32 %v5978_v4, 16  ;;  %v18001_v37 = vadd.f32 %v17823_v50, %v3107_v43  ;;  %v18009_v16 = vpop.f32.mrf.mxu0 }
 0x30d   : > { %14698 = vmatmul.mubr.msk.bf16.gmra.mxu0 %vm465_vm1, %v13536_v44  ;;  %v6202_v22 = vsel %vm16852_vm13, %v6197_v49, %v6201_v35  ;;  %v6212_v5 = vsel %vm16852_vm13, %v6207_v59, %v6211_v0  ;;  %v6216_v40 = vrot.slane %v6214_v21, 4  ;;  %v6219_v48 = vrot.slane %v6217_v34, 5  ;;  %21620 = vst [vmem:[#allocation46_spill] sm:$0xff] %v18009_v16 }
 0x30e   : > { %v18003_v47 = vpop.f32.mrf.mxu1  ;;  %v6225_v51 = vrot.slane %v6223_v45, 5  ;;  %v2336_v8 = vadd.f32 %v21619_v1, %v21618_v39  ;;  %v13537_v31 = vcombine.low %v6202_v22, %v6212_v5  ;;  %v6229_v35 = vrot.slane %v6227_v18, 4  ;;  %v21621_v18 = vld [vmem:[#allocation30_spill] sm:$0xff] }
 0x30f   : > { %v6238_v52 = vshrl.u32 %v5979_v32, 16  ;;  %v6220_v50 = vor.u32 %v6219_v48, %v6216_v40  ;;  %v6241_v43 = vshll.u32 %v5979_v32, 16  ;;  %v6247_v46 = vshll.u32 %v5980_v15, 16  ;;  %v21622_v5 = vld [vmem:[#allocation34_spill] sm:$0xff]  ;;  %v5982_v40 = vld [vmem:[#allocation2 + $0xd4] sm:$0xf] }
 0x310   : > { %v6251_v3 = vshrl.u32 %v5980_v15, 16  ;;  %14701 = vmatprep.mubr.msk.bf16.mxu0 %vm465_vm1, %v13537_v31  ;;  %v6230_v4 = vor.u32 %v6229_v35, %v6225_v51  ;;  %v6235_v0 = vrot.slane %v6233_v26, 5  ;;  %v6257_v49 = vshll.u32 %v5981_v61, 16  ;;  %v18012_v59 = vpop.f32.mrf.mxu1 }
 0x311   : > { %v6240_v44 = vrot.slane %v6238_v52, 4  ;;  %v6221_v21 = vrot.slane %v6220_v50, 4  ;;  %v6243_v34 = vrot.slane %v6241_v43, 5  ;;  %v6249_v45 = vrot.slane %v6247_v46, 5  ;;  %v5983_v52 = vld [vmem:[#allocation2 + $0xd8] sm:$0xf] }
 0x312   : > { %v6253_v22 = vrot.slane %v6251_v3, 4  ;;  %v2325_v39 = vadd.f32 %v21622_v5, %v21621_v18  ;;  %v6231_v1 = vrot.slane %v6230_v4, 4  ;;  %v18017_v32 = vadd.f32 %v17837_v55, %v3110_v54  ;;  %v5984_v50 = vld [vmem:[#allocation2 + $0xdc] sm:$0x1]  ;;  %v5987_v5 = vld [vmem:[#allocation2 + $0xec] sm:$0x1] }
 0x313   : > { %v3114_v15 = vadd.f32 %v17875_v41, %v2336_v8  ;;  %v6226_v26 = vsel %vm16852_vm13, %v6221_v21, %v6225_v51  ;;  %v6244_v61 = vor.u32 %v6243_v34, %v6240_v44  ;;  %v6259_v35 = vrot.slane %v6257_v49, 5  ;;  %v18034_v8 = vpop.f32.mrf.mxu1  ;;  %v5985_v49 = vld [vmem:[#allocation2 + $0xe4] sm:$0xf] }
 0x314   : > { %v6254_v31 = vor.u32 %v6253_v22, %v6249_v45  ;;  %v6236_v43 = vsel %vm16852_vm13, %v6231_v1, %v6235_v0  ;;  %v3111_v46 = vadd.f32 %v17840_v38, %v2325_v39  ;;  %v18028_v55 = vadd.f32 %v17877_v36, %v3113_v53  ;;  %v5986_v38 = vld [vmem:[#allocation2 + $0xe8] sm:$0xf] }
 0x315   : > { %v3117_v41 = vadd.f32 %v17898_v11, %v17715_v62  ;;  %v13538_v51 = vcombine.low %v6226_v26, %v6236_v43  ;;  %v6245_v3 = vrot.slane %v6244_v61, 4  ;;  %v6262_v44 = vshrl.u32 %v5982_v40, 16  ;;  %v18046_v61 = vpop.f32.mrf.mxu1 }
 0x316   : > { %v18020_v48 = vpop.f32.mrf.mxu0  ;;  %v6255_v4 = vrot.slane %v6254_v31, 4  ;;  %v6265_v21 = vshll.u32 %v5982_v40, 16  ;;  %v6271_v34 = vshll.u32 %v5983_v52, 16  ;;  %v6275_v0 = vshrl.u32 %v5983_v52, 16  ;;  %21623 = vst [vmem:[#allocation22_spill] sm:$0xff] %v18046_v61 }
 0x317   : > { %v6281_v22 = vshll.u32 %v5984_v50, 16  ;;  %14702 = vmatmul.mubr.msk.bf16.gmra.mxu0 %vm465_vm1, %v13538_v51  ;;  %v6250_v62 = vsel %vm16852_vm13, %v6245_v3, %v6249_v45  ;;  %v6264_v11 = vrot.slane %v6262_v44, 4  ;;  %v18044_v53 = vadd.f32 %v17889_v24, %v3111_v46 }
 0x318   : > { %v18032_v54 = vpop.f32.mrf.mxu0  ;;  %v6260_v36 = vsel %vm16852_vm13, %v6255_v4, %v6259_v35  ;;  %v6267_v1 = vrot.slane %v6265_v21, 5  ;;  %v6273_v40 = vrot.slane %v6271_v34, 5  ;;  %v6277_v26 = vrot.slane %v6275_v0, 4 }
 0x319   : > { %v13539_v39 = vcombine.low %v6250_v62, %v6260_v36  ;;  %v6283_v52 = vrot.slane %v6281_v22, 5  ;;  %v6286_v50 = vshrl.u32 %v5985_v49, 16  ;;  %v6289_v43 = vshll.u32 %v5985_v49, 16 }
 0x31a   : > { %v18036_v18 = vpop.f32.mrf.mxu0  ;;  %v6295_v45 = vshll.u32 %v5986_v38, 16  ;;  %v6268_v35 = vor.u32 %v6267_v1, %v6264_v11  ;;  %v6278_v51 = vor.u32 %v6277_v26, %v6273_v40  ;;  %v6299_v3 = vshrl.u32 %v5986_v38, 16  ;;  %v5989_v1 = vld [vmem:[#allocation2 + $0xf8] sm:$0xf] }
 0x31b   : > { %14705 = vmatprep.mubr.msk.bf16.mxu0 %vm465_vm1, %v13539_v39  ;;  %v6305_v24 = vshll.u32 %v5987_v5, 16  ;;  %v6288_v4 = vrot.slane %v6286_v50, 4  ;;  %v6291_v44 = vrot.slane %v6289_v43, 5  ;;  %v3115_v34 = vadd.f32 %v17920_v14, %v17740_v12  ;;  %v5988_v5 = vld [vmem:[#allocation2 + $0xf4] sm:$0xf] }
 0x31c   : > { %v18048_v31 = vpop.f32.mrf.mxu0  ;;  %v6297_v21 = vrot.slane %v6295_v45, 5  ;;  %v6269_v0 = vrot.slane %v6268_v35, 4  ;;  %v6279_v62 = vrot.slane %v6278_v51, 4  ;;  %v6301_v22 = vrot.slane %v6299_v3, 4  ;;  %v5990_v43 = vld [vmem:[#allocation2 + $0xfc] sm:$0x1] }
 0x31d   : > { %21624 = vst [vmem:[#allocation28_spill] sm:$0xff] %v18048_v31  ;;  %v6292_v39 = vor.u32 %v6291_v44, %v6288_v4  ;;  %v18060_v11 = vadd.f32 %v17913_v2, %v3114_v15  ;;  %v3118_v38 = vadd.f32 %v17934_v57, %v17752_v23  ;;  %v6307_v50 = vrot.slane %v6305_v24, 5 }
 0x31e   : > { %v18051_v46 = vpop.f32.mrf.mxu0  ;;  %v6274_v26 = vsel %vm16852_vm13, %v6269_v0, %v6273_v40  ;;  %v6284_v12 = vsel %vm16852_vm13, %v6279_v62, %v6283_v52  ;;  %v6302_v14 = vor.u32 %v6301_v22, %v6297_v21  ;;  %v18073_v51 = vadd.f32 %v17937_v10, %v3117_v41  ;;  %v5991_v52 = vld [vmem:[#allocation2 + $0x104] sm:$0xf] }
 0x31f   : > { %v13540_v2 = vcombine.low %v6274_v26, %v6284_v12  ;;  %v6293_v15 = vrot.slane %v6292_v39, 4  ;;  %v3121_v23 = vadd.f32 %v17969_v17, %v17768_v30  ;;  %v6310_v40 = vshrl.u32 %v5988_v5, 16  ;;  %v5992_v30 = vld [vmem:[#allocation2 + $0x108] sm:$0xf]  ;;  %v5993_v26 = vld [vmem:[#allocation2 + $0x10c] sm:$0x1] }
 0x320   : > { %v18055_v36 = vpop.f32.mrf.mxu1  ;;  %v18057_v49 = vpop.f32.mrf.mxu0  ;;  %v6303_v57 = vrot.slane %v6302_v14, 4  ;;  %v6313_v3 = vshll.u32 %v5988_v5, 16  ;;  %v6319_v4 = vshll.u32 %v5989_v1, 16  ;;  %v6323_v62 = vshrl.u32 %v5989_v1, 16 }
 0x321   : > { %14706 = vmatmul.mubr.msk.bf16.gmra.mxu0 %vm465_vm1, %v13540_v2  ;;  %v6298_v0 = vsel %vm16852_vm13, %v6293_v15, %v6297_v21  ;;  %v6329_v10 = vshll.u32 %v5990_v43, 16  ;;  %v18085_v41 = vadd.f32 %v17959_v6, %v3115_v34  ;;  %v6312_v22 = vrot.slane %v6310_v40, 4 }
 0x322   : > { %v18068_v45 = vpop.f32.mrf.mxu1  ;;  %v18070_v35 = vpop.f32.mrf.mxu0  ;;  %v6308_v17 = vsel %vm16852_vm13, %v6303_v57, %v6307_v50  ;;  %v6315_v39 = vrot.slane %v6313_v3, 5  ;;  %v6321_v5 = vrot.slane %v6319_v4, 5  ;;  %v6325_v31 = vrot.slane %v6323_v62, 4 }
 0x323   : > { %v13541_v2 = vcombine.low %v6298_v0, %v6308_v17  ;;  %v6331_v21 = vrot.slane %v6329_v10, 5  ;;  %v6334_v1 = vshrl.u32 %v5991_v52, 16  ;;  %v6337_v15 = vshll.u32 %v5991_v52, 16 }
 0x324   : > { %v18077_v44 = vpop.f32.mrf.mxu1  ;;  %v18079_v24 = vpop.f32.mrf.mxu0  ;;  %v6316_v43 = vor.u32 %v6315_v39, %v6312_v22  ;;  %v6343_v6 = vshll.u32 %v5992_v30, 16  ;;  %v6347_v34 = vshrl.u32 %v5992_v30, 16  ;;  %v6326_v50 = vor.u32 %v6325_v31, %v6321_v5  ;;  %v1308_v31 = vld [vmem:[#allocation2 + $0x11c] sm:$0x1] }
 0x325   : > { %14709 = vmatprep.mubr.msk.bf16.mxu0 %vm465_vm1, %v13541_v2  ;;  %v6336_v57 = vrot.slane %v6334_v1, 4  ;;  %v6353_v40 = vshll.u32 %v5993_v26, 16  ;;  %v3119_v3 = vadd.f32 %v17976_v25, %v17796_v56  ;;  %v6339_v0 = vrot.slane %v6337_v15, 5  ;;  %v5994_v1 = vld [vmem:[#allocation2 + $0x114] sm:$0xf] }
 0x326   : > { %v18089_v12 = vpop.f32.mrf.mxu1  ;;  %v6317_v4 = vrot.slane %v6316_v43, 4  ;;  %v6345_v62 = vrot.slane %v6343_v6, 5  ;;  %v6349_v10 = vrot.slane %v6347_v34, 4  ;;  %v6327_v30 = vrot.slane %v6326_v50, 4  ;;  %v5995_v43 = vld [vmem:[#allocation2 + $0x118] sm:$0xf] }
 0x327   : > { %21625 = vst [vmem:[#allocation50_spill] sm:$0xff] %v18089_v12  ;;  %v18091_v14 = vpop.f32.mrf.mxu0  ;;  %v18103_v22 = vadd.f32 %v17971_v27, %v3118_v38  ;;  %v3122_v39 = vadd.f32 %v17995_v29, %v17809_v13  ;;  %v6340_v2 = vor.u32 %v6339_v0, %v6336_v57  ;;  %v6355_v25 = vrot.slane %v6353_v40, 5  ;;  %v21626_v34 = vld [vmem:[#allocation41_spill] sm:$0xff] }
 0x328   : > { %v18093_v61 = vpop.f32.mrf.mxu1  ;;  %v6322_v26 = vsel %vm16852_vm13, %v6317_v4, %v6321_v5  ;;  %v6350_v56 = vor.u32 %v6349_v10, %v6345_v62  ;;  %v21627_v50 = vld [vmem:[#allocation45_spill] sm:$0xff]  ;;  %v6332_v27 = vsel %vm16852_vm13, %v6327_v30, %v6331_v21  ;;  %v18116_v13 = vadd.f32 %v18003_v47, %v3121_v23 }
 0x329   : > { %v18095_v16 = vpop.f32.mrf.mxu0  ;;  %v2384_v12 = vadd.f32 %v21627_v50, %v21626_v34  ;;  %v3125_v29 = vadd.f32 %v18020_v48, %v17816_v42  ;;  %v13542_v38 = vcombine.low %v6322_v26, %v6332_v27  ;;  %v6341_v5 = vrot.slane %v6340_v2, 4 }
 0x32a   : > { %v4747_v17 = vpop.f32.mrf.mxu1  ;;  %v6351_v57 = vrot.slane %v6350_v56, 4  ;;  %v1309_v4 = vsel %vm16204_vm10, 0, %v1308_v31  ;;  %v6358_v34 = vshrl.u32 %v5994_v1, 16  ;;  %v6361_v50 = vshll.u32 %v5994_v1, 16 }
 0x32b   : > { %v18100_v52 = vpop.f32.mrf.mxu0  ;;  %1310 = vst [vmem:[#allocation2 + $0x11c] sm:$0x1] %v1309_v4  ;;  %v6367_v63 = vshll.u32 %v5995_v43, 16  ;;  %v6371_v21 = vshrl.u32 %v5995_v43, 16  ;;  %14710 = vmatmul.mubr.msk.bf16.gmra.mxu0 %vm465_vm1, %v13542_v38  ;;  %v6346_v47 = vsel %vm16852_vm13, %v6341_v5, %v6345_v62  ;;  %v18130_v48 = vadd.f32 %v18012_v59, %v3119_v3 }
 0x32c   : > { %v14580_v15 = vpop.f32.mrf.mxu1  ;;  %v6356_v42 = vsel %vm16852_vm13, %v6351_v57, %v6355_v25  ;;  %v3123_v23 = vadd.f32 %v18032_v54, %v17833_v7  ;;  %v6360_v2 = vrot.slane %v6358_v34, 4  ;;  %v6363_v56 = vrot.slane %v6361_v50, 5  ;;  %v21629_v54 = vld [vmem:[#allocation18_spill] sm:$0xff]  ;;  %v21631_v34 = vld [vmem:[#allocation21_spill] sm:$0xff] }
 0x32d   : > { %v18109_v6 = vpop.f32.mrf.mxu0  ;;  %v13543_v26 = vcombine.low %v6346_v47, %v6356_v42  ;;  %v6369_v1 = vrot.slane %v6367_v63, 5  ;;  %v6373_v43 = vrot.slane %v6371_v21, 4  ;;  %v18135_v27 = vadd.f32 %v18034_v8, %v3122_v39  ;;  %v21630_v8 = vld [vmem:[#allocation17_spill] sm:$0xff]  ;;  %v21632_v50 = vld [vmem:[#allocation26_spill] sm:$0xff] }
 0x32e   : > { %v18122_v0 = vpop.f32.mrf.mxu1  ;;  %v3126_v62 = vadd.f32 %v18036_v18, %v2384_v12  ;;  %v6364_v59 = vor.u32 %v6363_v56, %v6360_v2  ;;  %v18142_v7 = vadd.f32 %v18055_v36, %v3125_v29  ;;  %v4139_v3 = vadd.f32 %v18051_v46, %v21629_v54 }
 0x32f   : > { %v14551_v10 = vpop.f32.mrf.mxu0  ;;  %14713 = vmatprep.mubr.msk.bf16.mxu0 %vm465_vm1, %v13543_v26  ;;  %v6374_v5 = vor.u32 %v6373_v43, %v6369_v1  ;;  %v18147_v63 = vadd.f32 %v18068_v45, %v3123_v23  ;;  %v4137_v39 = vadd.f32 %v18057_v49, %v21630_v8  ;;  %v4140_v36 = vadd.f32 %v18070_v35, %v21631_v34  ;;  %v21633_v23 = vld [vmem:[#allocation44_spill] sm:$0xff] }
 0x330   : > { %v14583_v30 = vpop.f32.mrf.mxu1  ;;  %v18152_v18 = vadd.f32 %v18077_v44, %v3126_v62  ;;  %v6365_v4 = vrot.slane %v6364_v59, 4  ;;  %v18159_v46 = vadd.f32 %v18093_v61, %v4139_v3  ;;  %v4143_v45 = vadd.f32 %v18091_v14, %v21632_v50 }
 0x331   : > { %v4042_v31 = vpop.f32.mrf.mxu0  ;;  %v18163_v21 = vadd.f32 %v4747_v17, %v4137_v39  ;;  %v6375_v47 = vrot.slane %v6374_v5, 4  ;;  %v18169_v26 = vadd.f32 %v18095_v16, %v21633_v23  ;;  %v18171_v2 = vadd.f32 %v14580_v15, %v4140_v36 }
 0x332   : > { %v18138_v38 = vpop.f32.mrf.mxu1  ;;  %v5996_v29 = vld [vmem:[#allocation2 + $0x11c] sm:$0x1]  ;;  %v4144_v61 = vadd.f32 %v18100_v52, %v17944_v28  ;;  %v18175_v35 = vadd.f32 %v14583_v30, %v4143_v45  ;;  %v6370_v17 = vsel %vm16852_vm13, %v6365_v4, %v6369_v1  ;;  %v4147_v62 = vadd.f32 %v14551_v10, %v17955_v58 }
 0x333   : > { %v14552_v25 = vpop.f32.mrf.mxu0  ;;  %v6377_v42 = vshll.u32 %v5996_v29, 16  ;;  %v18181_v59 = vadd.f32 %v4042_v31, %v17967_v60 }
 0x334   : > { %v14584_v12 = vpop.f32.mrf.mxu1  ;;  %v4148_v15 = vadd.f32 %v14552_v25, %v17981_v20 }
 0x335   : > { %v18154_v57 = vpop.f32.mrf.mxu0  ;;  %v6379_v43 = vrot.slane %v6377_v42, 5  ;;  %v18183_v16 = vadd.f32 %v14584_v12, %v4144_v61 }
 0x336   : > { %v18165_v49 = vpop.f32.mrf.mxu1 }
 0x337   : > { %v14555_v44 = vpop.f32.mrf.mxu0  ;;  %v6380_v52 = vsel %vm16852_vm13, %v6375_v47, %v6379_v43 }
 0x338   : > { %v14587_v56 = vpop.f32.mrf.mxu1  ;;  %v4151_v1 = vadd.f32 %v14555_v44, %v17992_v19  ;;  %v13544_v3 = vcombine.low %v6370_v17, %v6380_v52 }
 0x339   : > { %v4058_v14 = vpop.f32.mrf.mxu0  ;;  %v18190_v30 = vadd.f32 %v14587_v56, %v4147_v62 }
 0x33a   : > { %v18186_v54 = vpop.f32.mrf.mxu1  ;;  %v18194_v58 = vadd.f32 %v4058_v14, %v18001_v37  ;;  %14714 = vmatmul.mubr.msk.bf16.gmra.mxu0 %vm465_vm1, %v13544_v3 }
 0x33b   : > { %v14556_v28 = vpop.f32.mrf.mxu0 }
 0x33c   : > { %v14588_v60 = vpop.f32.mrf.mxu1  ;;  %v4152_v10 = vadd.f32 %v14556_v28, %v18017_v32 }
 0x33d   : > { %v18197_v31 = vpop.f32.mrf.mxu0  ;;  %v18199_v20 = vadd.f32 %v14588_v60, %v4148_v15 }
 0x33e   : > { %v18202_v25 = vpop.f32.mrf.mxu1 }
 0x33f   : > { %v14559_v5 = vpop.f32.mrf.mxu0 }
 0x340   : > { %v4155_v8 = vadd.f32 %v14559_v5, %v18028_v55  ;;  %v14591_v39 = vpop.f32.mrf.mxu1 }
 0x341   : > { %v4074_v19 = vpop.f32.mrf.mxu0  ;;  %v18205_v12 = vadd.f32 %v14591_v39, %v4151_v1 }
 0x342   : > { %v18208_v37 = vadd.f32 %v4074_v19, %v18044_v53  ;;  %v18210_v4 = vpop.f32.mrf.mxu1 }
 0x343   : > { %v14560_v32 = vpop.f32.mrf.mxu0 }
 0x344   : > { %v4156_v34 = vadd.f32 %v14560_v32, %v18060_v11  ;;  %v14592_v36 = vpop.f32.mrf.mxu1 }
 0x345   : > { %v18213_v29 = vpop.f32.mrf.mxu0  ;;  %v18215_v50 = vadd.f32 %v14592_v36, %v4152_v10 }
 0x346   : > { %21634 = vst [vmem:[#allocation52_spill] sm:$0xff] %v18213_v29  ;;  %v18217_v45 = vpop.f32.mrf.mxu1 }
 0x347   : > { %v14563_v55 = vpop.f32.mrf.mxu0 }
 0x348   : > { %v4159_v44 = vadd.f32 %v14563_v55, %v18073_v51  ;;  %v14595_v42 = vpop.f32.mrf.mxu1 }
 0x349   : > { %v4090_v47 = vpop.f32.mrf.mxu0  ;;  %v18223_v23 = vadd.f32 %v14595_v42, %v4155_v8 }
 0x34a   : > { %v18221_v53 = vadd.f32 %v4090_v47, %v18085_v41  ;;  %v18225_v56 = vpop.f32.mrf.mxu1 }
 0x34b   : > { %v14564_v61 = vpop.f32.mrf.mxu0 }
 0x34c   : > { %21635 = vst [vmem:[#allocation24_spill] sm:$0xff] %v18221_v53  ;;  %v4160_v11 = vadd.f32 %v14564_v61, %v18103_v22  ;;  %v14596_v17 = vpop.f32.mrf.mxu1 }
 0x34d   : > { %v18228_v14 = vpop.f32.mrf.mxu0  ;;  %v18230_v43 = vadd.f32 %v14596_v17, %v4156_v34 }
 0x34e   : > { %21636 = vst [vmem:[#allocation29_spill] sm:$0xff] %v18228_v14  ;;  %v18232_v15 = vpop.f32.mrf.mxu1  ;;  %v21669_v14 = vld [vmem:[#allocation13_spill] sm:$0xff] }
 0x34f   : > { %v14567_v62 = vpop.f32.mrf.mxu0  ;;  %21637 = vst [vmem:[#allocation53_spill] sm:$0xff] %v18232_v15  ;;  %v21680_v15 = vld [vmem:[#allocation25_spill] sm:$0xff] }
 0x350   : > { %v4163_v51 = vadd.f32 %v14567_v62, %v18116_v13 }
 0x351   : > { %v4106_v28 = vpop.f32.mrf.mxu0 }
 0x352   : > { %v18236_v41 = vadd.f32 %v4106_v28, %v18130_v48  ;;  %v14599_v1 = vpop.f32.mrf.mxu1 }
 0x353   : > { %v14568_v52 = vpop.f32.mrf.mxu0  ;;  %v18239_v60 = vadd.f32 %v14599_v1, %v4159_v44  ;;  %v21644_v44 = vmov 0.0  }
 0x354   : > { %21638 = vst [vmem:[#allocation56_spill] sm:$0xff] %v18236_v41  ;;  %v4164_v3 = vadd.f32 %v14568_v52, %v18135_v27  ;;  %v18243_v10 = vpop.f32.mrf.mxu1  ;;  %v18256_v27 = vld [vmem:[%s21430_s9 + $0x18] sm:$0xff] }
 0x355   : > { %v18241_v22 = vpop.f32.mrf.mxu0  ;;  %21640 = vst [vmem:[#allocation27_spill] sm:$0xff] %v18243_v10  ;;  %21643 = vst [vmem:[#allocation36_spill] sm:$0xff] %v18256_v27  ;;  %14718 = vmatpush3.msra.mxu1 %v18256_v27  ;;  %v21671_v10 = vld [vmem:[#allocation48_spill] sm:$0xff] }
 0x356   : > { %21639 = vst [vmem:[#allocation55_spill] sm:$0xff] %v18241_v22  ;;  %v14600_v8 = vpop.f32.mrf.mxu1  ;;  %14719 = vmatprep.subr.mxu1 %v21644_v44 }
 0x357   : > { %v14571_v5 = vpop.f32.mrf.mxu0  ;;  %v18246_v19 = vadd.f32 %v14600_v8, %v4160_v11 }
 0x358   : > { %v4167_v39 = vadd.f32 %v14571_v5, %v18142_v7  ;;  %v18248_v32 = vpop.f32.mrf.mxu1 }
 0x359   : > { %v4122_v13 = vpop.f32.mrf.mxu0  ;;  %21641 = vst [vmem:[#allocation32_spill] sm:$0xff] %v18248_v32 }
 0x35a   : > { %v18251_v48 = vadd.f32 %v4122_v13, %v18147_v63  ;;  %v14603_v36 = vpop.f32.mrf.mxu1 }
 0x35b   : > { %v14572_v34 = vpop.f32.mrf.mxu0  ;;  %v18260_v7 = vadd.f32 %v14603_v36, %v4163_v51 }
 0x35c   : > { %21642 = vst [vmem:[#allocation33_spill] sm:$0xff] %v18251_v48  ;;  %v4168_v55 = vadd.f32 %v14572_v34, %v18152_v18  ;;  %v18263_v47 = vpop.f32.mrf.mxu1 }
 0x35d   : > { %21645 = vst [vmem:[#allocation30_spill] sm:$0xff] %v18263_v47  ;;  %v18267_v61 = vpop.f32.mrf.mxu0 }
 0x35e   : > { %v14604_v42 = vpop.f32.mrf.mxu1  ;;  %21646 = vst [vmem:[#allocation34_spill] sm:$0xff] %v18267_v61 }
 0x35f   : > { %v18265_v63 = vadd.f32 %v14604_v42, %v4164_v3 }
 0x360   : > { %v18269_v11 = vpop.f32.mrf.mxu1 }
 0x361   : > { %21647 = vst [vmem:[#allocation41_spill] sm:$0xff] %v18269_v11 }
 0x368   : > { %v14615_v17 = vpop.f32.mrf.mxu0 }
 0x369   : > { %v18272_v62 = vadd.f32 %v14615_v17, %v18159_v46  ;;  %v18289_v46 = vld [vmem:[%s21430_s9 + $0x10] sm:$0xff] }
 0x36a   : > { %v14607_v18 = vpop.f32.mrf.mxu1  ;;  %v5453_v28 = vpop.f32.mrf.mxu0  ;;  %21649 = vst [vmem:[#allocation18_spill] sm:$0xff] %v18289_v46  ;;  %14720 = vmatpush3.msra.mxu1 %v18289_v46 }
 0x36b   : > { %v18274_v52 = vadd.f32 %v14607_v18, %v4167_v39  ;;  %v18277_v51 = vadd.f32 %v5453_v28, %v18163_v21  ;;  %14721 = vmatprep.subr.mxu1 %v21644_v44 }
 0x36c   : > { %v18279_v1 = vpop.f32.mrf.mxu1  ;;  %v14616_v5 = vpop.f32.mrf.mxu0 }
 0x36d   : > { %21648 = vst [vmem:[#allocation45_spill] sm:$0xff] %v18279_v1  ;;  %v18282_v3 = vadd.f32 %v14616_v5, %v18171_v2 }
 0x36e   : > { %v14608_v8 = vpop.f32.mrf.mxu1  ;;  %v18284_v13 = vpop.f32.mrf.mxu0 }
 0x36f   : > { %v18291_v34 = vadd.f32 %v14608_v8, %v4168_v55 }
 0x371   : > { %v14619_v21 = vpop.f32.mrf.mxu0 }
 0x372   : > { %v18296_v39 = vadd.f32 %v14619_v21, %v18175_v35  ;;  %v18313_v35 = vpop.f32.mrf.mxu1 }
 0x373   : > { %v18298_v2 = vpop.f32.mrf.mxu0  ;;  %21650 = vst [vmem:[#allocation17_spill] sm:$0xff] %v18313_v35 }
 0x375   : > { %v14620_v36 = vpop.f32.mrf.mxu0 }
 0x376   : > { %v18301_v42 = vadd.f32 %v14620_v36, %v18183_v16  ;;  %v14651_v36 = vpop.f32.mrf.mxu1 }
 0x377   : > { %v18303_v17 = vpop.f32.mrf.mxu0 }
 0x379   : > { %v14623_v18 = vpop.f32.mrf.mxu0 }
 0x37a   : > { %v18306_v55 = vadd.f32 %v14623_v18, %v18190_v30  ;;  %v18325_v30 = vld [vmem:[%s21430_s9 + $0x8] sm:$0xff]  ;;  %v5790_v18 = vpop.f32.mrf.mxu1 }
 0x37b   : > { %v18308_v28 = vpop.f32.mrf.mxu0  ;;  %21651 = vst [vmem:[#allocation21_spill] sm:$0xff] %v18325_v30  ;;  %14722 = vmatpush3.msra.mxu1 %v18325_v30 }
 0x37c   : > { %14723 = vmatprep.subr.mxu1 %v21644_v44  ;;  %v14652_v27 = vpop.f32.mrf.mxu1 }
 0x37d   : > { %v14624_v5 = vpop.f32.mrf.mxu0 }
 0x37e   : > { %v18311_v8 = vadd.f32 %v14624_v5, %v18199_v20 }
 0x37f   : > { %v18315_v21 = vpop.f32.mrf.mxu0 }
 0x381   : > { %v14627_v9 = vpop.f32.mrf.mxu0 }
 0x382   : > { %v18318_v16 = vadd.f32 %v14627_v9, %v18205_v12 }
 0x383   : > { %v18320_v40 = vpop.f32.mrf.mxu0 }
 0x385   : > { %v14628_v46 = vpop.f32.mrf.mxu0 }
 0x386   : > { %v18328_v20 = vadd.f32 %v14628_v46, %v18215_v50  ;;  %v18342_v50 = vpop.f32.mrf.mxu1 }
 0x387   : > { %v18331_v5 = vpop.f32.mrf.mxu0 }
 0x388   : > { %21652 = vst [vmem:[#allocation26_spill] sm:$0xff] %v18328_v20  ;;  %21653 = vst [vmem:[#allocation44_spill] sm:$0xff] %v18331_v5  ;;  %v18346_v48 = vpop.f32.mrf.mxu1  ;;  %v18429_v5 = vld [vmem:[%s425_s29] ss:$0 sm:$0xff]  ;;  %s15567_s29 = scalar_lea.vmem %s15566_s20, 8192 }
 0x389   : > { %v14631_v9 = vpop.f32.mrf.mxu0  ;;  %p15569_p1 = scmp.lt.s32.totalorder %s15567_s29, %s15561_s17 }
 0x38a   : > { %v18335_v12 = vadd.f32 %v14631_v9, %v18223_v23  ;;  %v18353_v9 = vpop.f32.mrf.mxu1 }
 0x38b   : > { %v18337_v35 = vpop.f32.mrf.mxu0  ;;  %p15570_p2 = por %p15569_p1, %p15568_p0 }
 0x38c   : > { %21654 = vst [vmem:[#allocation62_spill] sm:$0xff] %v18335_v12  ;;  %21655 = vst [vmem:[#allocation63_spill] sm:$0xff] %v18337_v35  ;;  %v18360_v22 = vpop.f32.mrf.mxu1  ;;  %v21685_v12 = vld [vmem:[#allocation39_spill] sm:$0xff] }
 0x38d   : > { %v14632_v61 = vpop.f32.mrf.mxu0  ;;  %p15571_p3 = pnand %p15570_p2, %p15564_p13 }
 0x38e   : > { %v18340_v1 = vadd.f32 %v14632_v61, %v18230_v43 }
 0x38f   : > { %v18344_v46 = vpop.f32.mrf.mxu0 }
 0x390   : > { %21656 = vst [vmem:[#allocation64_spill] sm:$0xff] %v18340_v1  ;;  %21657 = vst [vmem:[#allocation65_spill] sm:$0xff] %v18344_v46 }
 0x391   : > { %v14635_v30 = vpop.f32.mrf.mxu0 }
 0x392   : > { %v18349_v11 = vadd.f32 %v14635_v30, %v18239_v60  ;;  %v18368_v60 = vld [vmem:[%s21430_s9] sm:$0xff] }
 0x393   : > { %v18351_v47 = vpop.f32.mrf.mxu0  ;;  %21663 = vst [vmem:[#allocation71_spill] sm:$0xff] %v18368_v60  ;;  %14724 = vmatpush3.msra.mxu1 %v18368_v60  ;;  %v21668_v60 = vld [vmem:[#allocation11_spill] sm:$0xff] }
 0x394   : > { %21658 = vst [vmem:[#allocation66_spill] sm:$0xff] %v18349_v11  ;;  %21659 = vst [vmem:[#allocation67_spill] sm:$0xff] %v18351_v47  ;;  %14728 = vmatprep.subr.mxu1 %v21644_v44  ;;  %v2264_v44 = vadd.f32 %v21669_v14, %v21668_v60  ;;  %v21675_v14 = vld [vmem:[#allocation14_spill] sm:$0xff]  ;;  %v5919_v60 = vadd.f32 %v14651_v36, %v18272_v62  ;;  %v21682_v62 = vld [vmem:[#allocation35_spill] sm:$0xff] }
 0x395   : > { %v14636_v23 = vpop.f32.mrf.mxu0  ;;  %v21683_v36 = vld [vmem:[#allocation37_spill] sm:$0xff] }
 0x396   : > { %v18356_v41 = vadd.f32 %v14636_v23, %v18246_v19  ;;  %v18374_v23 = vpop.f32.mrf.mxu1 }
 0x397   : > { %v18358_v43 = vpop.f32.mrf.mxu0 }
 0x398   : > { %21660 = vst [vmem:[#allocation68_spill] sm:$0xff] %v18356_v41  ;;  %21661 = vst [vmem:[#allocation69_spill] sm:$0xff] %v18358_v43 }
 0x39a   : > { %v14639_v61 = vpop.f32.mrf.mxu0 }
 0x39b   : > { %v18363_v32 = vadd.f32 %v14639_v61, %v18260_v7  ;;  %v18379_v7 = vpop.f32.mrf.mxu1 }
 0x39c   : > { %v18370_v30 = vpop.f32.mrf.mxu0 }
 0x39d   : > { %21662 = vst [vmem:[#allocation70_spill] sm:$0xff] %v18363_v32  ;;  %21664 = vst [vmem:[#allocation72_spill] sm:$0xff] %v18370_v30  ;;  %v18383_v32 = vpop.f32.mrf.mxu1 }
 0x39e   : > { %v14640_v19 = vpop.f32.mrf.mxu0 }
 0x39f   : > { %v18377_v43 = vadd.f32 %v14640_v19, %v18265_v63  ;;  %v18390_v11 = vpop.f32.mrf.mxu1  ;;  %v3096_v63 = vadd.f32 %v21671_v10, %v2264_v44 }
 0x3a0   : > { %v18381_v61 = vpop.f32.mrf.mxu0 }
 0x3a1   : > { %21665 = vst [vmem:[#allocation73_spill] sm:$0xff] %v18377_v43  ;;  %21666 = vst [vmem:[#allocation74_spill] sm:$0xff] %v18381_v61  ;;  %v21673_v61 = vld [vmem:[#allocation54_spill] sm:$0xff]  ;;  %v18399_v1 = vpop.f32.mrf.mxu1 }
 0x3a2   : > { %v3801_v53 = vadd.f32 %v21673_v61, %v3096_v63  ;;  %v21677_v61 = vld [vmem:[#allocation19_spill] sm:$0xff] }
 0x3a3   : > { %v21678_v63 = vld [vmem:[#allocation23_spill] sm:$0xff]  ;;  %v18427_v20 = vpop.f32.mrf.mxu1 }
 0x3a4   : > { %v4138_v10 = vadd.f32 %v18079_v24, %v3801_v53  ;;  %v2328_v24 = vadd.f32 %v21683_v36, %v21682_v62  ;;  %v21684_v53 = vld [vmem:[#allocation38_spill] sm:$0xff]  ;;  %v21689_v62 = vld [vmem:[#allocation20_spill] sm:$0xff]  ;;  %v4878_v36 = vadd.f32 %v18138_v38, %v18169_v26 }
 0x3a5   : > { %v2344_v35 = vadd.f32 %v21685_v12, %v21684_v53 }
 0x3a6   : > { %v4875_v29 = vadd.f32 %v18122_v0, %v4138_v10  ;;  %v3112_v12 = vadd.f32 %v21689_v62, %v2328_v24  ;;  %v5584_v38 = vadd.f32 %v18298_v2, %v4878_v36  ;;  %v4882_v2 = vadd.f32 %v18186_v54, %v18181_v59 }
 0x3a7   : > { %v14643_v41 = vpop.f32.mrf.mxu0  ;;  %v5924_v54 = vadd.f32 %v18360_v22, %v18301_v42 }
 0x3a8   : > { %v18386_v30 = vadd.f32 %v14643_v41, %v18274_v52  ;;  %v21676_v41 = vld [vmem:[#allocation15_spill] sm:$0xff]  ;;  %v5581_v0 = vadd.f32 %v18284_v13, %v4875_v29  ;;  %v21692_v13 = vld [vmem:[#allocation49_spill] sm:$0xff]  ;;  %v5588_v59 = vadd.f32 %v18308_v28, %v4882_v2 }
 0x3a9   : > { %v18392_v47 = vpop.f32.mrf.mxu0  ;;  %v2280_v52 = vadd.f32 %v21676_v41, %v21675_v14  ;;  %v21681_v14 = vld [vmem:[#allocation31_spill] sm:$0xff] }
 0x3aa   : > { %21667 = vst [vmem:[#allocation75_spill] sm:$0xff] %v18386_v30  ;;  %21670 = vst [vmem:[#allocation11_spill] sm:$0xff] %v18392_v47  ;;  %v5917_v30 = vadd.f32 %v5790_v18, %v18277_v51  ;;  %v2312_v41 = vadd.f32 %v21681_v14, %v21680_v15  ;;  %v5920_v51 = vadd.f32 %v14652_v27, %v18282_v3 }
 0x3ab   : > { %v14644_v19 = vpop.f32.mrf.mxu0  ;;  %v5918_v24 = vadd.f32 %v18342_v50, %v5581_v0  ;;  %v5923_v50 = vadd.f32 %v18346_v48, %v18296_v39 }
 0x3ac   : > { %v18396_v43 = vadd.f32 %v14644_v19, %v18291_v34  ;;  %v18414_v34 = vld [vmem:[%s21426_s5] ss:$0 sm:$0xff]  ;;  %v2296_v19 = vadd.f32 %v21678_v63, %v21677_v61  ;;  %v21688_v63 = vld [vmem:[#allocation61_spill] sm:$0xff] }
 0x3ad   : > { %v18401_v46 = vpop.f32.mrf.mxu0  ;;  %v3108_v14 = vadd.f32 %v21688_v63, %v2312_v41 }
 0x3ae   : > { %21672 = vst [vmem:[#allocation13_spill] sm:$0xff] %v18396_v43  ;;  %21674 = vst [vmem:[#allocation48_spill] sm:$0xff] %v18401_v46  ;;  %v21679_v46 = vld [vmem:[#allocation57_spill] sm:$0xff] }
 0x3af   : > { %v14687_v44 = vpop.f32.mrf.mxu0  ;;  %v3100_v43 = vadd.f32 %v21679_v46, %v2280_v52  ;;  %v21686_v46 = vld [vmem:[#allocation58_spill] sm:$0xff] }
 0x3b0   : > { %v6656_v47 = vadd.f32 %v14687_v44, %v5919_v60  ;;  %v21687_v60 = vld [vmem:[#allocation59_spill] sm:$0xff] }
 0x3b1   : > { %v6527_v61 = vpop.f32.mrf.mxu0  ;;  %v3805_v52 = vadd.f32 %v21686_v46, %v3100_v43  ;;  %v3104_v44 = vadd.f32 %v21687_v60, %v2296_v19  ;;  %v18451_v46 = vadd.f32 %v21692_v13, %v3112_v12 }
 0x3b2   : > { %v6695_v18 = vadd.f32 %v18414_v34, %v6656_v47  ;;  %v6654_v15 = vadd.f32 %v6527_v61, %v5917_v30  ;;  %v21690_v47 = vld [vmem:[#allocation60_spill] sm:$0xff]  ;;  %v18448_v61 = vpop.f32.mrf.mxu1 }
 0x3b3   : > { %v14688_v10 = vpop.f32.mrf.mxu0  ;;  %v3809_v43 = vadd.f32 %v21690_v47, %v3104_v44  ;;  %v21691_v30 = vld [vmem:[#allocation16_spill] sm:$0xff]  ;;  %v4142_v41 = vadd.f32 %v18109_v6, %v3805_v52  ;;  %v5921_v44 = vadd.f32 %v18353_v9, %v5584_v38  ;;  %v5927_v38 = vadd.f32 %v18379_v7, %v18306_v55 }
 0x3b4   : > { %v18441_v53 = vadd.f32 %v18429_v5, %v6695_v18  ;;  %v6693_v27 = vadd.f32 %v18414_v34, %v6654_v15  ;;  %v6657_v3 = vadd.f32 %v14688_v10, %v5920_v51  ;;  %v3813_v19 = vadd.f32 %v21691_v30, %v3108_v14 }
 0x3b5   : > { %v6530_v29 = vpop.f32.mrf.mxu0  ;;  %v18459_v18 = vadd.f32 %v17948_v33, %v2344_v35  ;;  %v4879_v6 = vadd.f32 %v18165_v49, %v4142_v41  ;;  %v4146_v60 = vadd.f32 %v18154_v57, %v3809_v43  ;;  %v18475_v35 = vpop.f32.mrf.mxu1  ;;  %v5928_v55 = vadd.f32 %v18390_v11, %v18311_v8 }
 0x3b6   : > { %v18455_v26 = vadd.f32 %v18429_v5, %v6693_v27  ;;  %v6696_v51 = vadd.f32 %v18414_v34, %v6657_v3  ;;  %v6655_v52 = vadd.f32 %v6530_v29, %v5918_v24  ;;  %v18472_v33 = vadd.f32 %v18197_v31, %v3813_v19 }
 0x3b7   : > { %v14691_v15 = vpop.f32.mrf.mxu0  ;;  %v5585_v49 = vadd.f32 %v18303_v17, %v4879_v6  ;;  %v4883_v57 = vadd.f32 %v18202_v25, %v4146_v60  ;;  %v6841_v25 = vmul.f32 %v18441_v53, %v18441_v53  ;;  %v18493_v42 = vpop.f32.mrf.mxu1  ;;  %v6773_v41 = vsel %vm465_vm1, %v18441_v53, 0.0 }
 0x3b8   : > { %v18469_v63 = vadd.f32 %v18429_v5, %v6696_v51  ;;  %v6694_v48 = vadd.f32 %v18414_v34, %v6655_v52  ;;  %v6660_v39 = vadd.f32 %v14691_v15, %v5923_v50  ;;  %v6839_v31 = vmul.f32 %v18455_v26, %v18455_v26 }
 0x3b9   : > { %v6543_v14 = vpop.f32.mrf.mxu0  ;;  %v5922_v62 = vadd.f32 %v18374_v23, %v5585_v49  ;;  %v5589_v10 = vadd.f32 %v18315_v21, %v4883_v57  ;;  %v6770_v23 = vsel %vm465_vm1, %v18455_v26, 0.0  ;;  %v6874_v51 = vsel %vm465_vm1, %v6841_v25, 0.0  ;;  %v18517_v52 = vpop.f32.mrf.mxu1 }
 0x3ba   : > { %v6658_v9 = vadd.f32 %v6543_v14, %v5921_v44  ;;  %v18486_v17 = vadd.f32 %v18429_v5, %v6694_v48  ;;  %v6699_v12 = vadd.f32 %v18414_v34, %v6660_v39  ;;  %v6871_v24 = vsel %vm465_vm1, %v6839_v31, 0.0 }
 0x3bb   : > { %v14692_v0 = vpop.f32.mrf.mxu0  ;;  %v6842_v29 = vmul.f32 %v18469_v63, %v18469_v63  ;;  %v6775_v15 = vsel %vm465_vm1, %v18469_v63, 0.0  ;;  %v5925_v49 = vadd.f32 %v18383_v32, %v5588_v59  ;;  %v18539_v8 = vpop.f32.mrf.mxu1 }
 0x3bc   : > { %v6697_v28 = vadd.f32 %v18414_v34, %v6658_v9  ;;  %v6661_v22 = vadd.f32 %v14692_v0, %v5924_v54  ;;  %v6771_v36 = vsel %vm465_vm1, %v18486_v17, 0.0  ;;  %v6840_v27 = vmul.f32 %v18486_v17, %v18486_v17 }
 0x3bd   : > { %v18502_v3 = vadd.f32 %v18429_v5, %v6699_v12  ;;  %v6546_v21 = vpop.f32.mrf.mxu0  ;;  %v6772_v47 = vadd.f32 %v6771_v36, %v6770_v23  ;;  %v6876_v14 = vsel %vm465_vm1, %v6842_v29, 0.0 }
 0x3be   : > { %v18505_v43 = vadd.f32 %v18429_v5, %v6697_v28  ;;  %v6700_v30 = vadd.f32 %v18414_v34, %v6661_v22  ;;  %v6659_v19 = vadd.f32 %v6546_v21, %v5922_v62  ;;  %v6872_v13 = vsel %vm465_vm1, %v6840_v27, 0.0 }
 0x3bf   : > { %v6774_v6 = vadd.f32 %v6773_v41, %v6772_v47  ;;  %v6873_v50 = vadd.f32 %v6872_v13, %v6871_v24  ;;  %v5926_v62 = vadd.f32 %v18399_v1, %v5589_v10  ;;  %v6845_v32 = vmul.f32 %v18502_v3, %v18502_v3 }
 0x3c0   : > { %v6843_v60 = vmul.f32 %v18505_v43, %v18505_v43  ;;  %v18524_v2 = vadd.f32 %v18429_v5, %v6700_v30  ;;  %v6698_v44 = vadd.f32 %v18414_v34, %v6659_v19  ;;  %v6777_v57 = vsel %vm465_vm1, %v18505_v43, 0.0 }
 0x3c1   : > { %v6875_v7 = vadd.f32 %v6874_v51, %v6873_v50  ;;  %v6776_v48 = vadd.f32 %v6775_v15, %v6774_v6  ;;  %v6781_v1 = vsel %vm465_vm1, %v18502_v3, 0.0  ;;  %v4886_v19 = vadd.f32 %v18210_v4, %v18194_v58 }
 0x3c2   : > { %v14695_v39 = vpop.f32.mrf.mxu0  ;;  %v18534_v54 = vadd.f32 %v18429_v5, %v6698_v44  ;;  %v6878_v12 = vsel %vm465_vm1, %v6843_v60, 0.0  ;;  %v6846_v27 = vmul.f32 %v18524_v2, %v18524_v2  ;;  %v6882_v51 = vsel %vm465_vm1, %v6845_v32, 0.0 }
 0x3c3   : > { %v6664_v9 = vadd.f32 %v14695_v39, %v5927_v38  ;;  %v6778_v59 = vadd.f32 %v6777_v57, %v6776_v48  ;;  %v6877_v31 = vadd.f32 %v6876_v14, %v6875_v7  ;;  %v18558_v38 = vpop.f32.mrf.mxu1  ;;  %v6783_v6 = vsel %vm465_vm1, %v18524_v2, 0.0 }
 0x3c4   : > { %v6559_v11 = vpop.f32.mrf.mxu0  ;;  %v6779_v0 = vsel %vm465_vm1, %v18534_v54, 0.0  ;;  %v6844_v25 = vmul.f32 %v18534_v54, %v18534_v54  ;;  %v4887_v60 = vadd.f32 %v18217_v45, %v18472_v33  ;;  %v5931_v39 = vadd.f32 %v18427_v20, %v18318_v16  ;;  %v21694_v20 = vld [vmem:[#allocation26_spill] sm:$0xff] }
 0x3c5   : > { %v6703_v28 = vadd.f32 %v18414_v34, %v6664_v9  ;;  %v6879_v10 = vadd.f32 %v6878_v12, %v6877_v31  ;;  %v6780_v22 = vadd.f32 %v6779_v0, %v6778_v59  ;;  %v6662_v23 = vadd.f32 %v6559_v11, %v5925_v49  ;;  %v21693_v9 = vld [vmem:[#allocation44_spill] sm:$0xff]  ;;  %v18584_v32 = vpop.f32.mrf.mxu1 }
 0x3c6   : > { %v14696_v36 = vpop.f32.mrf.mxu0  ;;  %v6880_v21 = vsel %vm465_vm1, %v6844_v25, 0.0  ;;  %v5592_v49 = vadd.f32 %v18320_v40, %v4886_v19  ;;  %v4890_v40 = vadd.f32 %v18225_v56, %v18208_v37  ;;  %v5932_v11 = vadd.f32 %v18475_v35, %v21694_v20  ;;  %v21699_v20 = vld [vmem:[#allocation42_spill] sm:$0xff] }
 0x3c7   : > { %v18553_v47 = vadd.f32 %v18429_v5, %v6703_v28  ;;  %v6665_v30 = vadd.f32 %v14696_v36, %v5928_v55  ;;  %v6782_v41 = vadd.f32 %v6781_v1, %v6780_v22  ;;  %v6881_v24 = vadd.f32 %v6880_v21, %v6879_v10  ;;  %v18601_v36 = vpop.f32.mrf.mxu1 }
 0x3c8   : > { %v6701_v29 = vadd.f32 %v18414_v34, %v6662_v23  ;;  %v6562_v13 = vpop.f32.mrf.mxu0  ;;  %v6884_v55 = vsel %vm465_vm1, %v6846_v27, 0.0  ;;  %v5929_v16 = vadd.f32 %v18448_v61, %v5592_v49 }
 0x3c9   : > { %v6704_v50 = vadd.f32 %v18414_v34, %v6665_v30  ;;  %v6663_v15 = vadd.f32 %v6562_v13, %v5926_v62  ;;  %v6883_v44 = vadd.f32 %v6882_v51, %v6881_v24  ;;  %v6784_v4 = vadd.f32 %v6783_v6, %v6782_v41  ;;  %v21695_v51 = vld [vmem:[#allocation52_spill] sm:$0xff] }
 0x3ca   : > { %v18567_v58 = vadd.f32 %v18429_v5, %v6701_v29  ;;  %v5593_v62 = vadd.f32 %v21693_v9, %v4887_v60  ;;  %v6849_v37 = vmul.f32 %v18553_v47, %v18553_v47  ;;  %v6789_v27 = vsel %vm465_vm1, %v18553_v47, 0.0 }
 0x3cb   : > { %v18572_v7 = vadd.f32 %v18429_v5, %v6704_v50  ;;  %v6702_v48 = vadd.f32 %v18414_v34, %v6663_v15  ;;  %v6885_v14 = vadd.f32 %v6884_v55, %v6883_v44  ;;  %v4154_v6 = vadd.f32 %v21695_v51, %v18451_v46  ;;  %v21696_v44 = vld [vmem:[#allocation63_spill] sm:$0xff] }
 0x3cc   : > { %v6785_v45 = vsel %vm465_vm1, %v18567_v58, 0.0  ;;  %v6847_v33 = vmul.f32 %v18567_v58, %v18567_v58  ;;  %v5930_v10 = vadd.f32 %v18493_v42, %v5593_v62  ;;  %v6890_v50 = vsel %vm465_vm1, %v6849_v37, 0.0 }
 0x3cd   : > { %v14699_v57 = vpop.f32.mrf.mxu0  ;;  %v6786_v59 = vadd.f32 %v6785_v45, %v6784_v4  ;;  %v18587_v31 = vadd.f32 %v18429_v5, %v6702_v48  ;;  %v6850_v21 = vmul.f32 %v18572_v7, %v18572_v7  ;;  %v5596_v4 = vadd.f32 %v21696_v44, %v4890_v40 }
 0x3ce   : > { %v6886_v12 = vsel %vm465_vm1, %v6847_v33, 0.0  ;;  %v6668_v0 = vadd.f32 %v14699_v57, %v5931_v39  ;;  %v6791_v49 = vsel %vm465_vm1, %v18572_v7, 0.0  ;;  %v5870_v39 = vpop.f32.mrf.mxu1  ;;  %v21697_v57 = vld [vmem:[#allocation62_spill] sm:$0xff] }
 0x3cf   : > { %v6575_v25 = vpop.f32.mrf.mxu0  ;;  %v6887_v56 = vadd.f32 %v6886_v12, %v6885_v14  ;;  %v6787_v28 = vsel %vm465_vm1, %v18587_v31, 0.0  ;;  %v6848_v1 = vmul.f32 %v18587_v31, %v18587_v31  ;;  %v6892_v45 = vsel %vm465_vm1, %v6850_v21, 0.0  ;;  %v21700_v12 = vld [vmem:[#allocation51_spill] sm:$0xff] }
 0x3d0   : > { %v6788_v61 = vadd.f32 %v6787_v28, %v6786_v59  ;;  %v6707_v22 = vadd.f32 %v18414_v34, %v6668_v0  ;;  %v6666_v35 = vadd.f32 %v6575_v25, %v5929_v16  ;;  %v5935_v9 = vadd.f32 %v18517_v52, %v21697_v57  ;;  %v21698_v16 = vld [vmem:[#allocation40_spill] sm:$0xff]  ;;  %v21701_v28 = vld [vmem:[#allocation53_spill] sm:$0xff] }
 0x3d1   : > { %v14700_v23 = vpop.f32.mrf.mxu0  ;;  %v6888_v30 = vsel %vm465_vm1, %v6848_v1, 0.0  ;;  %v3821_v0 = vadd.f32 %v21700_v12, %v18459_v18  ;;  %v4891_v52 = vadd.f32 %v21701_v28, %v4154_v6  ;;  %v5933_v1 = vadd.f32 %v18539_v8, %v5596_v4  ;;  %v21707_v28 = vld [vmem:[#allocation67_spill] sm:$0xff] }
 0x3d2   : > { %v6669_v19 = vadd.f32 %v14700_v23, %v5932_v11  ;;  %v6790_v41 = vadd.f32 %v6789_v27, %v6788_v61  ;;  %v6889_v24 = vadd.f32 %v6888_v30, %v6887_v56  ;;  %v18609_v42 = vadd.f32 %v18429_v5, %v6707_v22  ;;  %v14672_v22 = vpop.f32.mrf.mxu1  ;;  %v21702_v30 = vld [vmem:[#allocation65_spill] sm:$0xff] }
 0x3d3   : > { %v6705_v29 = vadd.f32 %v18414_v34, %v6666_v35  ;;  %v6578_v13 = vpop.f32.mrf.mxu0  ;;  %v2360_v11 = vadd.f32 %v21699_v20, %v21698_v16 }
 0x3d4   : > { %v6708_v15 = vadd.f32 %v18414_v34, %v6669_v19  ;;  %v6667_v60 = vadd.f32 %v6578_v13, %v5930_v10  ;;  %v6891_v55 = vadd.f32 %v6890_v50, %v6889_v24  ;;  %v6792_v33 = vadd.f32 %v6791_v49, %v6790_v41 }
 0x3d5   : > { %v18620_v48 = vadd.f32 %v18429_v5, %v6705_v29  ;;  %v6853_v35 = vmul.f32 %v18609_v42, %v18609_v42  ;;  %v5597_v19 = vadd.f32 %v21702_v30, %v4891_v52  ;;  %v21703_v29 = vld [vmem:[#allocation64_spill] sm:$0xff]  ;;  %v6797_v51 = vsel %vm465_vm1, %v18609_v42, 0.0 }
 0x3d6   : > { %v18624_v46 = vadd.f32 %v18429_v5, %v6708_v15  ;;  %v6706_v14 = vadd.f32 %v18414_v34, %v6667_v60  ;;  %v6893_v59 = vadd.f32 %v6892_v45, %v6891_v55  ;;  %v5936_v13 = vadd.f32 %v18558_v38, %v21703_v29  ;;  %v21704_v55 = vld [vmem:[#allocation46_spill] sm:$0xff] }
 0x3d7   : > { %v6793_v40 = vsel %vm465_vm1, %v18620_v48, 0.0  ;;  %v6851_v62 = vmul.f32 %v18620_v48, %v18620_v48  ;;  %v14703_v56 = vpop.f32.mrf.mxu0  ;;  %v3120_v45 = vadd.f32 %v21704_v55, %v2360_v11  ;;  %v5934_v38 = vadd.f32 %v18584_v32, %v5597_v19 }
 0x3d8   : > { %v6794_v25 = vadd.f32 %v6793_v40, %v6792_v33  ;;  %v18638_v37 = vadd.f32 %v18429_v5, %v6706_v14  ;;  %v6672_v61 = vadd.f32 %v14703_v56, %v5935_v9  ;;  %v6854_v6 = vmul.f32 %v18624_v46, %v18624_v46  ;;  %v5873_v33 = vpop.f32.mrf.mxu1  ;;  %v21705_v40 = vld [vmem:[#allocation24_spill] sm:$0xff] }
 0x3d9   : > { %v6894_v10 = vsel %vm465_vm1, %v6851_v62, 0.0  ;;  %v6591_v21 = vpop.f32.mrf.mxu0  ;;  %v6898_v14 = vsel %vm465_vm1, %v6853_v35, 0.0  ;;  %v21706_v62 = vld [vmem:[#allocation27_spill] sm:$0xff]  ;;  %v6799_v16 = vsel %vm465_vm1, %v18624_v46, 0.0 }
 0x3da   : > { %v6895_v23 = vadd.f32 %v6894_v10, %v6893_v59  ;;  %v6795_v18 = vsel %vm465_vm1, %v18638_v37, 0.0  ;;  %v6852_v27 = vmul.f32 %v18638_v37, %v18638_v37  ;;  %v6711_v8 = vadd.f32 %v18414_v34, %v6672_v61 }
 0x3db   : > { %v6796_v41 = vadd.f32 %v6795_v18, %v6794_v25  ;;  %v6670_v24 = vadd.f32 %v6591_v21, %v5933_v1  ;;  %v14704_v15 = vpop.f32.mrf.mxu0  ;;  %v4894_v59 = vadd.f32 %v21706_v62, %v21705_v40  ;;  %v6900_v25 = vsel %vm465_vm1, %v6854_v6, 0.0  ;;  %v21708_v1 = vld [vmem:[#allocation66_spill] sm:$0xff] }
 0x3dc   : > { %v6896_v50 = vsel %vm465_vm1, %v6852_v27, 0.0  ;;  %v18659_v4 = vadd.f32 %v18429_v5, %v6711_v8  ;;  %v6673_v57 = vadd.f32 %v14704_v15, %v5936_v13  ;;  %v5939_v10 = vadd.f32 %v18601_v36, %v21708_v1  ;;  %v14675_v27 = vpop.f32.mrf.mxu1  ;;  %v21710_v8 = vld [vmem:[#allocation22_spill] sm:$0xff] }
 0x3dd   : > { %v6798_v60 = vadd.f32 %v6797_v51, %v6796_v41  ;;  %v6897_v44 = vadd.f32 %v6896_v50, %v6895_v23  ;;  %v6709_v49 = vadd.f32 %v18414_v34, %v6670_v24  ;;  %v6594_v9 = vpop.f32.mrf.mxu0  ;;  %v5600_v52 = vadd.f32 %v21707_v28, %v4894_v59  ;;  %v21709_v23 = vld [vmem:[#allocation29_spill] sm:$0xff]  ;;  %v21711_v51 = vld [vmem:[#allocation32_spill] sm:$0xff] }
 0x3de   : > { %v6712_v32 = vadd.f32 %v18414_v34, %v6673_v57  ;;  %v6671_v56 = vadd.f32 %v6594_v9, %v5934_v38  ;;  %v4158_v18 = vadd.f32 %v21709_v23, %v3821_v0  ;;  %v3825_v24 = vadd.f32 %v21710_v8, %v3120_v45  ;;  %v21712_v50 = vld [vmem:[#allocation68_spill] sm:$0xff]  ;;  %v5886_v57 = vpop.f32.mrf.mxu1 }
 0x3df   : > { %v6899_v20 = vadd.f32 %v6898_v14, %v6897_v44  ;;  %v18670_v12 = vadd.f32 %v18429_v5, %v6709_v49  ;;  %v6800_v11 = vadd.f32 %v6799_v16, %v6798_v60  ;;  %v5937_v29 = vadd.f32 %v5870_v39, %v5600_v52  ;;  %v21713_v39 = vld [vmem:[#allocation69_spill] sm:$0xff] }
 0x3e0   : > { %v18683_v30 = vadd.f32 %v18429_v5, %v6712_v32  ;;  %v6710_v19 = vadd.f32 %v18414_v34, %v6671_v56  ;;  %v4895_v6 = vadd.f32 %v21711_v51, %v4158_v18  ;;  %v5940_v15 = vadd.f32 %v14672_v22, %v21712_v50 }
 0x3e1   : > { %v6855_v61 = vmul.f32 %v18670_v12, %v18670_v12  ;;  %v6901_v35 = vadd.f32 %v6900_v25, %v6899_v20  ;;  %v6801_v21 = vsel %vm465_vm1, %v18670_v12, 0.0  ;;  %v14707_v41 = vpop.f32.mrf.mxu0  ;;  %v6857_v49 = vmul.f32 %v18659_v4, %v18659_v4 }
 0x3e2   : > { %v6802_v36 = vadd.f32 %v6801_v21, %v6800_v11  ;;  %v6676_v13 = vadd.f32 %v14707_v41, %v5939_v10  ;;  %v18691_v60 = vadd.f32 %v18429_v5, %v6710_v19  ;;  %v5601_v14 = vadd.f32 %v21713_v39, %v4895_v6  ;;  %v21714_v11 = vld [vmem:[#allocation55_spill] sm:$0xff]  ;;  %v21715_v10 = vld [vmem:[#allocation56_spill] sm:$0xff]  ;;  %v14676_v19 = vpop.f32.mrf.mxu1 }
 0x3e3   : > { %v6902_v0 = vsel %vm465_vm1, %v6855_v61, 0.0  ;;  %v6607_v44 = vpop.f32.mrf.mxu0  ;;  %v6858_v9 = vmul.f32 %v18683_v30, %v18683_v30  ;;  %v4162_v32 = vadd.f32 %v21714_v11, %v3825_v24  ;;  %v6805_v28 = vsel %vm465_vm1, %v18659_v4, 0.0  ;;  %v21716_v61 = vld [vmem:[#allocation30_spill] sm:$0xff] }
 0x3e4   : > { %v6903_v55 = vadd.f32 %v6902_v0, %v6901_v35  ;;  %v6715_v38 = vadd.f32 %v18414_v34, %v6676_v13  ;;  %v6674_v45 = vadd.f32 %v6607_v44, %v5937_v29  ;;  %v6803_v22 = vsel %vm465_vm1, %v18691_v60, 0.0  ;;  %v21717_v29 = vld [vmem:[#allocation72_spill] sm:$0xff] }
 0x3e5   : > { %v6856_v40 = vmul.f32 %v18691_v60, %v18691_v60  ;;  %v14708_v62 = vpop.f32.mrf.mxu0  ;;  %v6804_v59 = vadd.f32 %v6803_v22, %v6802_v36  ;;  %v5938_v56 = vadd.f32 %v5873_v33, %v5601_v14  ;;  %v4898_v35 = vadd.f32 %v21716_v61, %v21715_v10 }
 0x3e6   : > { %v18704_v16 = vadd.f32 %v18429_v5, %v6715_v38  ;;  %v6713_v20 = vadd.f32 %v18414_v34, %v6674_v45  ;;  %v6677_v25 = vadd.f32 %v14708_v62, %v5940_v15  ;;  %v6906_v23 = vsel %vm465_vm1, %v6857_v49, 0.0  ;;  %v21718_v49 = vld [vmem:[#allocation41_spill] sm:$0xff]  ;;  %v21719_v38 = vld [vmem:[#allocation70_spill] sm:$0xff] }
 0x3e7   : > { %v6904_v52 = vsel %vm465_vm1, %v6856_v40, 0.0  ;;  %v6610_v1 = vpop.f32.mrf.mxu0  ;;  %v6806_v18 = vadd.f32 %v6805_v28, %v6804_v59  ;;  %v6807_v41 = vsel %vm465_vm1, %v18683_v30, 0.0  ;;  %v5604_v36 = vadd.f32 %v21717_v29, %v4898_v35  ;;  %v5889_v40 = vpop.f32.mrf.mxu1 }
 0x3e8   : > { %v6905_v21 = vadd.f32 %v6904_v52, %v6903_v55  ;;  %v18717_v8 = vadd.f32 %v18429_v5, %v6713_v20  ;;  %v6716_v33 = vadd.f32 %v18414_v34, %v6677_v25  ;;  %v6675_v24 = vadd.f32 %v6610_v1, %v5938_v56  ;;  %v21720_v20 = vld [vmem:[#allocation74_spill] sm:$0xff]  ;;  %v21721_v52 = vld [vmem:[#allocation73_spill] sm:$0xff] }
 0x3e9   : > { %v6908_v13 = vsel %vm465_vm1, %v6858_v9, 0.0  ;;  %v6808_v6 = vadd.f32 %v6807_v41, %v6806_v18  ;;  %v4899_v55 = vadd.f32 %v21718_v49, %v4162_v32  ;;  %v5943_v45 = vadd.f32 %v14675_v27, %v21719_v38  ;;  %v14679_v41 = vpop.f32.mrf.mxu1  ;;  %v21722_v38 = vld [vmem:[#allocation43_spill] sm:$0xff] }
 0x3ea   : > { %v6907_v51 = vadd.f32 %v6906_v23, %v6905_v21  ;;  %v6809_v50 = vsel %vm465_vm1, %v18717_v8, 0.0  ;;  %v6859_v15 = vmul.f32 %v18717_v8, %v18717_v8  ;;  %v18727_v0 = vadd.f32 %v18429_v5, %v6716_v33 }
 0x3eb   : > { %v6714_v44 = vadd.f32 %v18414_v34, %v6675_v24  ;;  %v6810_v39 = vadd.f32 %v6809_v50, %v6808_v6  ;;  %v14711_v9 = vpop.f32.mrf.mxu0  ;;  %v5941_v22 = vadd.f32 %v5886_v57, %v5604_v36  ;;  %v5605_v25 = vadd.f32 %v21720_v20, %v4899_v55 }
 0x3ec   : > { %v6909_v14 = vadd.f32 %v6908_v13, %v6907_v51  ;;  %v6910_v62 = vsel %vm465_vm1, %v6859_v15, 0.0  ;;  %v6861_v11 = vmul.f32 %v18704_v16, %v18704_v16  ;;  %v6680_v28 = vadd.f32 %v14711_v9, %v5943_v45  ;;  %v21723_v45 = vld [vmem:[#allocation47_spill] sm:$0xff] }
 0x3ed   : > { %v18734_v59 = vadd.f32 %v18429_v5, %v6714_v44  ;;  %v6623_v32 = vpop.f32.mrf.mxu0  ;;  %v5944_v27 = vadd.f32 %v14676_v19, %v21721_v52  ;;  %v5942_v61 = vadd.f32 %v5889_v40, %v5605_v25  ;;  %v6862_v35 = vmul.f32 %v18727_v0, %v18727_v0  ;;  %v5902_v40 = vpop.f32.mrf.mxu1 }
 0x3ee   : > { %v6911_v56 = vadd.f32 %v6910_v62, %v6909_v14  ;;  %v6678_v10 = vadd.f32 %v6623_v32, %v5941_v22  ;;  %v6719_v18 = vadd.f32 %v18414_v34, %v6680_v28  ;;  %v6813_v33 = vsel %vm465_vm1, %v18704_v16, 0.0 }
 0x3ef   : > { %v6811_v1 = vsel %vm465_vm1, %v18734_v59, 0.0  ;;  %v6860_v57 = vmul.f32 %v18734_v59, %v18734_v59  ;;  %v14712_v21 = vpop.f32.mrf.mxu0  ;;  %v6914_v36 = vsel %vm465_vm1, %v6861_v11, 0.0  ;;  %v6815_v15 = vsel %vm465_vm1, %v18727_v0, 0.0 }
 0x3f0   : > { %v6812_v23 = vadd.f32 %v6811_v1, %v6810_v39  ;;  %v6717_v24 = vadd.f32 %v18414_v34, %v6678_v10  ;;  %v6681_v29 = vadd.f32 %v14712_v21, %v5944_v27  ;;  %v18753_v6 = vadd.f32 %v18429_v5, %v6719_v18  ;;  %v21725_v27 = vld [vmem:[#allocation33_spill] sm:$0xff]  ;;  %v21728_v21 = vld [vmem:[#allocation11_spill] sm:$0xff] }
 0x3f1   : > { %v6912_v19 = vsel %vm465_vm1, %v6860_v57, 0.0  ;;  %v6626_v50 = vpop.f32.mrf.mxu0  ;;  %v2376_v39 = vadd.f32 %v21723_v45, %v21722_v38  ;;  %v6916_v14 = vsel %vm465_vm1, %v6862_v35, 0.0  ;;  %v21726_v1 = vld [vmem:[#allocation45_spill] sm:$0xff]  ;;  %v21727_v35 = vld [vmem:[#allocation50_spill] sm:$0xff] }
 0x3f2   : > { %v6814_v13 = vadd.f32 %v6813_v33, %v6812_v23  ;;  %v6913_v51 = vadd.f32 %v6912_v19, %v6911_v56  ;;  %v18758_v44 = vadd.f32 %v18429_v5, %v6717_v24  ;;  %v6720_v49 = vadd.f32 %v18414_v34, %v6681_v29  ;;  %v21724_v56 = vld [vmem:[#allocation28_spill] sm:$0xff]  ;;  %v21729_v19 = vld [vmem:[#allocation75_spill] sm:$0xff]  ;;  %v14680_v29 = vpop.f32.mrf.mxu1 }
 0x3f3   : > { %v6679_v55 = vadd.f32 %v6626_v50, %v5942_v61  ;;  %v3124_v28 = vadd.f32 %v21724_v56, %v2376_v39  ;;  %v4902_v57 = vadd.f32 %v21726_v1, %v21725_v27  ;;  %v5947_v24 = vadd.f32 %v14679_v41, %v21729_v19 }
 0x3f4   : > { %v6915_v9 = vadd.f32 %v6914_v36, %v6913_v51  ;;  %v6816_v22 = vadd.f32 %v6815_v15, %v6814_v13  ;;  %v6817_v62 = vsel %vm465_vm1, %v18758_v44, 0.0  ;;  %v6863_v20 = vmul.f32 %v18758_v44, %v18758_v44  ;;  %v21730_v51 = vld [vmem:[#allocation34_spill] sm:$0xff]  ;;  %v5905_v56 = vpop.f32.mrf.mxu1 }
 0x3f5   : > { %v18769_v25 = vadd.f32 %v18429_v5, %v6720_v49  ;;  %v6718_v11 = vadd.f32 %v18414_v34, %v6679_v55  ;;  %v3829_v23 = vadd.f32 %v21727_v35, %v3124_v28  ;;  %v5608_v33 = vadd.f32 %v21728_v21, %v4902_v57 }
 0x3f6   : > { %v6818_v32 = vadd.f32 %v6817_v62, %v6816_v22  ;;  %v6917_v52 = vadd.f32 %v6916_v14, %v6915_v9  ;;  %v6918_v10 = vsel %vm465_vm1, %v6863_v20, 0.0  ;;  %v6865_v15 = vmul.f32 %v18753_v6, %v18753_v6  ;;  %v21731_v14 = vld [vmem:[#allocation17_spill] sm:$0xff] }
 0x3f7   : > { %v18777_v61 = vadd.f32 %v18429_v5, %v6718_v11  ;;  %v4166_v50 = vadd.f32 %v21730_v51, %v3829_v23  ;;  %v5945_v38 = vadd.f32 %v5902_v40, %v5608_v33  ;;  %v6821_v9 = vsel %vm465_vm1, %v18753_v6, 0.0  ;;  %v21732_v20 = vld [vmem:[#allocation13_spill] sm:$0xff] }
 0x3f8   : > { %v6919_v18 = vadd.f32 %v6918_v10, %v6917_v52  ;;  %v5948_v11 = vadd.f32 %v14680_v29, %v21732_v20  ;;  %v6922_v40 = vsel %vm465_vm1, %v6865_v15, 0.0  ;;  %v6866_v57 = vmul.f32 %v18769_v25, %v18769_v25 }
 0x3f9   : > { %v6819_v36 = vsel %vm465_vm1, %v18777_v61, 0.0  ;;  %v6864_v13 = vmul.f32 %v18777_v61, %v18777_v61  ;;  %v4903_v41 = vadd.f32 %v21731_v14, %v4166_v50  ;;  %v6823_v19 = vsel %vm465_vm1, %v18769_v25, 0.0 }
 0x3fa   : > { %v6820_v49 = vadd.f32 %v6819_v36, %v6818_v32  ;;  %v14715_v55 = vpop.f32.mrf.mxu0  ;;  %v21733_v32 = vld [vmem:[#allocation48_spill] sm:$0xff]  ;;  %v6924_v51 = vsel %vm465_vm1, %v6866_v57, 0.0 }
 0x3fb   : > { %v6920_v45 = vsel %vm465_vm1, %v6864_v13, 0.0  ;;  %v6684_v39 = vadd.f32 %v14715_v55, %v5947_v24  ;;  %v5609_v1 = vadd.f32 %v21733_v32, %v4903_v41 }
 0x3fc   : > { %v6921_v22 = vadd.f32 %v6920_v45, %v6919_v18  ;;  %v6639_v62 = vpop.f32.mrf.mxu0  ;;  %v6822_v28 = vadd.f32 %v6821_v9, %v6820_v49 }
 0x3fd   : > { %v6723_v52 = vadd.f32 %v18414_v34, %v6684_v39  ;;  %v6682_v27 = vadd.f32 %v6639_v62, %v5945_v38  ;;  %v5946_v33 = vadd.f32 %v5905_v56, %v5609_v1 }
 0x3fe   : > { %v14716_v10 = vpop.f32.mrf.mxu0  ;;  %v6923_v35 = vadd.f32 %v6922_v40, %v6921_v22  ;;  %v6824_v36 = vadd.f32 %v6823_v19, %v6822_v28 }
 0x3ff   : > { %v18800_v23 = vadd.f32 %v18429_v5, %v6723_v52  ;;  %v6721_v18 = vadd.f32 %v18414_v34, %v6682_v27  ;;  %v6685_v21 = vadd.f32 %v14716_v10, %v5948_v11 }
 0x400   : > { %v6642_v24 = vpop.f32.mrf.mxu0  ;;  %v6925_v49 = vadd.f32 %v6924_v51, %v6923_v35 }
 0x401   : > { %v18806_v29 = vadd.f32 %v18429_v5, %v6721_v18  ;;  %v6724_v13 = vadd.f32 %v18414_v34, %v6685_v21  ;;  %v6683_v50 = vadd.f32 %v6642_v24, %v5946_v33  ;;  %v6869_v22 = vmul.f32 %v18800_v23, %v18800_v23 }
 0x403   : > { %v6867_v15 = vmul.f32 %v18806_v29, %v18806_v29  ;;  %v18813_v55 = vadd.f32 %v18429_v5, %v6724_v13  ;;  %v6825_v38 = vsel %vm465_vm1, %v18806_v29, 0.0  ;;  %v6722_v45 = vadd.f32 %v18414_v34, %v6683_v50 }
 0x404   : > { %v6826_v39 = vadd.f32 %v6825_v38, %v6824_v36  ;;  %v6829_v34 = vsel %vm465_vm1, %v18800_v23, 0.0  ;;  %v6930_v27 = vsel %vm465_vm1, %v6869_v22, 0.0 }
 0x405   : > { %v6926_v14 = vsel %vm465_vm1, %v6867_v15, 0.0  ;;  %v18820_v41 = vadd.f32 %v18429_v5, %v6722_v45  ;;  %v6870_v56 = vmul.f32 %v18813_v55, %v18813_v55  ;;  %v6831_v32 = vsel %vm465_vm1, %v18813_v55, 0.0  ;;  %v21734_v15 = vld [vmem:[#allocation36_spill] sm:$0xff]  ;;  %v21736_v45 = vld [vmem:[#allocation18_spill] sm:$0xff] }
 0x406   : > { %v6927_v9 = vadd.f32 %v6926_v14, %v6925_v49  ;;  %v21735_v49 = vmov 0.0  }
 0x407   : > { %v6827_v62 = vsel %vm465_vm1, %v18820_v41, 0.0  ;;  %v6868_v20 = vmul.f32 %v18820_v41, %v18820_v41  ;;  %v6932_v57 = vsel %vm465_vm1, %v6870_v56, 0.0 }
 0x408   : > { %v6828_v11 = vadd.f32 %v6827_v62, %v6826_v39  ;;  %v21737_v39 = vld [vmem:[#allocation21_spill] sm:$0xff] }
 0x409   : > { %v6928_v5 = vsel %vm465_vm1, %v6868_v20, 0.0 }
 0x40a   : > { %v6830_v28 = vadd.f32 %v6829_v34, %v6828_v11  ;;  %v6929_v52 = vadd.f32 %v6928_v5, %v6927_v9  ;;  %v21738_v9 = vld [vmem:[#allocation71_spill] sm:$0xff] }
 0x40c   : > { %v6832_v1 = vadd.f32 %v6831_v32, %v6830_v28  ;;  %v6931_v40 = vadd.f32 %v6930_v27, %v6929_v52  ;;  %v21739_v28 = vld [vmem:[#allocation9_spill] sm:$0xff] }
 0x40e   : > { %v6833_v10 = vrot.slane %v6832_v1, 4  ;;  %v6933_v35 = vadd.f32 %v6932_v57, %v6931_v40  ;;  %v15173_v40 = vld [vmem:[%s21431_s10 + $0x18] sm:$0xff]   ;;  %v15174_v57 = vld [vmem:[%s21431_s10 + $0x10] sm:$0xff]  }
 0x410   : > { %v6834_v18 = vadd.f32 %v6833_v10, %v6832_v1  ;;  %v6934_v21 = vrot.slane %v6933_v35, 4  ;;  %v15175_v10 = vld [vmem:[%s21431_s10 + $0x8] sm:$0xff]  }
 0x411   : > { %14775 = vmatprep.subr.bf16.mxu0 %v15175_v10 }
 0x412   : > { %v6835_v33 = vrot.slane %v6834_v18, 2  ;;  %v6935_v19 = vadd.f32 %v6934_v21, %v6933_v35  ;;  %14776 = vmatpush3.bf16.msra.mxu0 %v15175_v10 }
 0x414   : > { %v6836_v24 = vadd.f32 %v6835_v33, %v6834_v18  ;;  %v6936_v36 = vrot.slane %v6935_v19, 2 }
 0x416   : > { %v6837_v13 = vrot.slane %v6836_v24, 1  ;;  %v6937_v50 = vadd.f32 %v6936_v36, %v6935_v19  ;;  %v18874_v19 = vld [vmem:[#allocation3 + $0x4] sm:$0xf] }
 0x418   : > { %v6838_v51 = vadd.f32 %v6837_v13, %v6836_v24  ;;  %v6938_v38 = vrot.slane %v6937_v50, 1  ;;  %v18876_v24 = vld [vmem:[#allocation3 + $0x8] sm:$0xf] }
 0x41a   : > { %14726 = vmatmul.mubr.msk.f32.vlgmr.msra.gmra.mxu1 %vm465_vm1, %v6838_v51  ;;  %v6939_v14 = vadd.f32 %v6938_v38, %v6937_v50  ;;  %v15177_v50 = vld [vmem:[%s21431_s10 + $0x28] sm:$0xff]   ;;  %v7617_v38 = vld [vmem:[#allocation3 + $0x40] sm:$0x8] }
 0x41b   : > { %14729 = vmatpush3.msra.mxu1 %v21734_v15  ;;  %14736 = vmatprep.mubr.msk.f32.mxu1 %vm15624_vm0, %v21735_v49  ;;  %v15180_v15 = vld [vmem:[%s21431_s10] sm:$0xff]  }
 0x41c   : > { %14730 = vmatprep.subr.mxu1 %v21735_v49  ;;  %14777 = vmatprep.subr.bf16.mxu0 %v15180_v15 }
 0x41d   : > { %14731 = vmatpush3.msra.mxu1 %v21736_v45  ;;  %v13617_v45 = vcombine.low %v18874_v19, %v18876_v24  ;;  %14778 = vmatpush3.bf16.msra.mxu0 %v15180_v15 }
 0x41e   : > { %14732 = vmatprep.subr.mxu1 %v21735_v49 }
 0x41f   : > { %14733 = vmatpush3.msra.mxu1 %v21737_v39  ;;  %v7591_v39 = vld [vmem:[#allocation3] sm:$0x8] }
 0x420   : > { %14734 = vmatprep.subr.mxu1 %v21735_v49 }
 0x421   : > { %14735 = vmatpush3.msra.mxu1 %v21738_v9  ;;  %v7611_v9 = vld [vmem:[#allocation3 + $0x20] sm:$0x8] }
 0x422   : > { %14737 = vmatmul.mubr.msk.f32.vlgmr.msra.gmra.mxu1 %vm465_vm1, %v6939_v14  ;;  %14739 = vmatprep.subr.bf16.mxu1 %v15173_v40  ;;  %v7608_v14 = vld [vmem:[#allocation3 + $0x10] sm:$0x8]  ;;  %v7612_v10 = vsel %vm16072_vm5, 0, %v7611_v9 }
 0x423   : > { %14740 = vmatpush3.bf16.msra.mxu1 %v15173_v40  ;;  %14743 = vmatprep.mubr.msk.bf16.mxu1 %vm465_vm1, %v13617_v45  ;;  %7613 = vst [vmem:[#allocation3 + $0x20] sm:$0x8] %v7612_v10  ;;  %v7618_v45 = vsel %vm16072_vm5, 0, %v7617_v38 }
 0x424   : > { %14741 = vmatprep.subr.bf16.mxu1 %v15174_v57  ;;  %7619 = vst [vmem:[#allocation3 + $0x40] sm:$0x8] %v7618_v45 }
 0x427   : > { %14742 = vmatpush3.bf16.msra.mxu1 %v15174_v57 }
 0x428   : > { %14811 = vmatprep.subr.bf16.mxu1 %v15177_v50 }
 0x4da   : > { %v7009_v22 = vpop.f32.mrf.mxu1 }
 0x4db   : > { %v7086_v11 = vmul.f32 %v7009_v22, %v7009_v22  ;;  %v18849_v52 = vrot.slane %v7009_v22, %v21739_v28  ;;  %v7758_v22 = vshrl.u32 %v18874_v19, 16 }
 0x4dc   : > { %v14727_v62 = vpop.f32.mrf.mxu1 }
 0x4dd   : > { %v7094_v27 = vsub.f32 %v18455_v26, %v18849_v52  ;;  %v7095_v32 = vsub.f32 %v18486_v17, %v18849_v52  ;;  %v7096_v1 = vsub.f32 %v18441_v53, %v18849_v52  ;;  %v7097_v35 = vsub.f32 %v18469_v63, %v18849_v52 }
 0x4de   : > { %v7098_v18 = vsub.f32 %v18505_v43, %v18849_v52  ;;  %v7099_v21 = vsub.f32 %v18534_v54, %v18849_v52  ;;  %v7100_v33 = vsub.f32 %v18502_v3, %v18849_v52  ;;  %v7101_v36 = vsub.f32 %v18524_v2, %v18849_v52 }
 0x4df   : > { %v7102_v13 = vsub.f32 %v18567_v58, %v18849_v52  ;;  %v7103_v51 = vsub.f32 %v18587_v31, %v18849_v52  ;;  %v7104_v49 = vsub.f32 %v18553_v47, %v18849_v52  ;;  %v7767_v62 = vshrl.u32 %v18876_v24, 16  ;;  %v13567_v31 = vld [vmem:[%s21428_s7] ss:$0 sm:$0xff] }
 0x4e0   : > { %v7107_v40 = vsub.f32 %v18638_v37, %v18849_v52  ;;  %v7110_v37 = vsub.f32 %v18670_v12, %v18849_v52  ;;  %v7111_v9 = vsub.f32 %v18691_v60, %v18849_v52  ;;  %v7114_v60 = vsub.f32 %v18717_v8, %v18849_v52 }
 0x4e1   : > { %v7769_v12 = vrot.slane %v7767_v62, 7  ;;  %v7117_v57 = vsub.f32 %v18727_v0, %v18849_v52  ;;  %v7119_v50 = vsub.f32 %v18777_v61, %v18849_v52  ;;  %v7120_v8 = vsub.f32 %v18753_v6, %v18849_v52 }
 0x4e2   : > { %v7082_v20 = vpop.f32.mrf.mxu1  ;;  %v7123_v0 = vsub.f32 %v18820_v41, %v18849_v52  ;;  %v7125_v61 = vsub.f32 %v18813_v55, %v18849_v52  ;;  %v21741_v3 = vsub.f32 %v18572_v7, %v18849_v52 }
 0x4e3   : > { %v7087_v56 = vsub.f32 %v7082_v20, %v7086_v11  ;;  %v7592_v11 = vsel %vm16072_vm5, 0, %v7591_v39 }
 0x4e4   : > { %v14738_v34 = vpop.f32.mrf.mxu1  ;;  %7593 = vst [vmem:[#allocation3] sm:$0x8] %v7592_v11  ;;  %v7112_v11 = vsub.f32 %v18659_v4, %v18849_v52  ;;  %v7115_v4 = vsub.f32 %v18734_v59, %v18849_v52  ;;  %v7121_v59 = vsub.f32 %v18769_v25, %v18849_v52 }
 0x4e5   : > { %v7088_v5 = vadd.f32 1e-05, %v7087_v56  ;;  %v7609_v34 = vsel %vm16072_vm5, 0, %v7608_v14  ;;  %v7614_v56 = vld [vmem:[#allocation3 + $0x30] sm:$0x8]  ;;  %v7108_v14 = vsub.f32 %v18609_v42, %v18849_v52  ;;  %v7113_v42 = vsub.f32 %v18683_v30, %v18849_v52 }
 0x4e6   : > { %7610 = vst [vmem:[#allocation3 + $0x10] sm:$0x8] %v7609_v34  ;;  %v7615_v39 = vsel %vm16072_vm5, 0, %v7614_v56  ;;  %v18925_v34 = vrot.slane %v7758_v22, 7  ;;  %v7770_v56 = vshll.u32 %v18876_v24, 16  ;;  %v7116_v30 = vsub.f32 %v18704_v16, %v18849_v52 }
 0x4e7   : > { %15369 = vrsqrt.f32 %v7088_v5  ;;  %v7106_v5 = vsub.f32 %v18620_v48, %v18849_v52  ;;  %v7109_v48 = vsub.f32 %v18624_v46, %v18849_v52  ;;  %7616 = vst [vmem:[#allocation3 + $0x30] sm:$0x8] %v7615_v39  ;;  %v7620_v46 = vld [vmem:[#allocation3 + $0x50] sm:$0x8]  ;;  %v7118_v24 = vsub.f32 %v18758_v44, %v18849_v52 }
 0x4e8   : > { %v7621_v38 = vsel %vm16072_vm5, 0, %v7620_v46  ;;  %v7122_v16 = vsub.f32 %v18806_v29, %v18849_v52  ;;  %v7124_v22 = vsub.f32 %v18800_v23, %v18849_v52  ;;  %v18957_v10 = vor.u32 %v7770_v56, %v7769_v12 }
 0x4e9   : > { %7622 = vst [vmem:[#allocation3 + $0x50] sm:$0x8] %v7621_v38 }
 0x4f4   : > { %v15370_v15 = vpop.eup %15369 }
 0x4f5   : > { %v7129_v44 = vrot.slane %v15370_v15, %v21739_v28 }
 0x4f7   : > { %v7130_v25 = vmul.f32 %v7129_v44, %v7094_v27  ;;  %v7131_v29 = vmul.f32 %v7129_v44, %v7095_v32  ;;  %v7132_v23 = vmul.f32 %v7129_v44, %v7096_v1  ;;  %v7133_v55 = vmul.f32 %v7129_v44, %v7097_v35 }
 0x4f8   : > { %v7134_v41 = vmul.f32 %v7129_v44, %v7098_v18  ;;  %v7135_v26 = vmul.f32 %v7129_v44, %v7099_v21  ;;  %v7136_v17 = vmul.f32 %v7129_v44, %v7100_v33  ;;  %v7137_v53 = vmul.f32 %v7129_v44, %v7101_v36 }
 0x4f9   : > { %v7138_v63 = vmul.f32 %v7129_v44, %v7102_v13  ;;  %v7139_v43 = vmul.f32 %v7129_v44, %v7103_v51  ;;  %v7140_v54 = vmul.f32 %v7129_v44, %v7104_v49  ;;  %v7141_v28 = vmul.f32 %v7129_v44, %v21741_v3 }
 0x4fa   : > { %v7142_v27 = vmul.f32 %v7129_v44, %v7106_v5  ;;  %v7143_v32 = vmul.f32 %v7129_v44, %v7107_v40  ;;  %v7144_v2 = vmul.f32 %v7129_v44, %v7108_v14  ;;  %v7145_v1 = vmul.f32 %v7129_v44, %v7109_v48 }
 0x4fb   : > { %v7146_v35 = vmul.f32 %v7129_v44, %v7110_v37  ;;  %v7147_v18 = vmul.f32 %v7129_v44, %v7111_v9  ;;  %v7148_v58 = vmul.f32 %v7129_v44, %v7112_v11  ;;  %v7149_v21 = vmul.f32 %v7129_v44, %v7113_v42 }
 0x4fc   : > { %v7150_v33 = vmul.f32 %v7129_v44, %v7114_v60  ;;  %v7151_v36 = vmul.f32 %v7129_v44, %v7115_v4  ;;  %v7152_v47 = vmul.f32 %v7129_v44, %v7116_v30  ;;  %v7153_v13 = vmul.f32 %v7129_v44, %v7117_v57 }
 0x4fd   : > { %v7154_v51 = vmul.f32 %v7129_v44, %v7118_v24  ;;  %v7155_v49 = vmul.f32 %v7129_v44, %v7119_v50  ;;  %v7156_v7 = vmul.f32 %v7129_v44, %v7120_v8  ;;  %v7157_v52 = vmul.f32 %v7129_v44, %v7121_v59 }
 0x4fe   : > { %v7158_v5 = vmul.f32 %v7129_v44, %v7122_v16  ;;  %v7159_v40 = vmul.f32 %v7129_v44, %v7123_v0  ;;  %v7160_v39 = vmul.f32 %v7129_v44, %v7124_v22  ;;  %v7161_v14 = vmul.f32 %v7129_v44, %v7125_v61  ;;  %v13568_v0 = vld [vmem:[%s21429_s8] ss:$0 sm:$0xff] }
 0x4ff   : > { %v7168_v48 = vmul.f32 %v13567_v31, %v7130_v25  ;;  %v7169_v37 = vmul.f32 %v13567_v31, %v7131_v29  ;;  %v7170_v45 = vmul.f32 %v13567_v31, %v7132_v23  ;;  %v7171_v9 = vmul.f32 %v13567_v31, %v7133_v55 }
 0x500   : > { %v7172_v11 = vmul.f32 %v13567_v31, %v7134_v41  ;;  %v7173_v42 = vmul.f32 %v13567_v31, %v7135_v26  ;;  %v7174_v46 = vmul.f32 %v13567_v31, %v7136_v17  ;;  %v7175_v12 = vmul.f32 %v13567_v31, %v7137_v53 }
 0x501   : > { %v7176_v56 = vmul.f32 %v13567_v31, %v7138_v63  ;;  %v7177_v38 = vmul.f32 %v13567_v31, %v7139_v43  ;;  %v7178_v60 = vmul.f32 %v13567_v31, %v7140_v54  ;;  %v7179_v4 = vmul.f32 %v13567_v31, %v7141_v28 }
 0x502   : > { %v7180_v30 = vmul.f32 %v13567_v31, %v7142_v27  ;;  %v7181_v57 = vmul.f32 %v13567_v31, %v7143_v32  ;;  %v7182_v15 = vmul.f32 %v13567_v31, %v7144_v2  ;;  %v7183_v24 = vmul.f32 %v13567_v31, %v7145_v1 }
 0x503   : > { %v7184_v50 = vmul.f32 %v13567_v31, %v7146_v35  ;;  %v7185_v8 = vmul.f32 %v13567_v31, %v7147_v18  ;;  %v7186_v59 = vmul.f32 %v13567_v31, %v7148_v58  ;;  %v7187_v16 = vmul.f32 %v13567_v31, %v7149_v21 }
 0x504   : > { %v7188_v22 = vmul.f32 %v13567_v31, %v7150_v33  ;;  %v7189_v44 = vmul.f32 %v13567_v31, %v7151_v36  ;;  %v7190_v61 = vmul.f32 %v13567_v31, %v7152_v47  ;;  %v7191_v25 = vmul.f32 %v13567_v31, %v7153_v13 }
 0x505   : > { %v7192_v29 = vmul.f32 %v13567_v31, %v7154_v51  ;;  %v7193_v23 = vmul.f32 %v13567_v31, %v7155_v49  ;;  %v7194_v55 = vmul.f32 %v13567_v31, %v7156_v7  ;;  %v7195_v41 = vmul.f32 %v13567_v31, %v7157_v52 }
 0x506   : > { %v7196_v26 = vmul.f32 %v13567_v31, %v7158_v5  ;;  %v7197_v17 = vmul.f32 %v13567_v31, %v7159_v40  ;;  %v7198_v53 = vmul.f32 %v13567_v31, %v7160_v39  ;;  %v7199_v63 = vmul.f32 %v13567_v31, %v7161_v14 }
 0x507   : > { %v19001_v43 = vadd.f32 %v13568_v0, %v7168_v48  ;;  %v19003_v54 = vadd.f32 %v13568_v0, %v7169_v37  ;;  %v19005_v3 = vadd.f32 %v13568_v0, %v7170_v45  ;;  %v19007_v28 = vadd.f32 %v13568_v0, %v7171_v9 }
 0x508   : > { %v19009_v27 = vadd.f32 %v13568_v0, %v7172_v11  ;;  %v19011_v32 = vadd.f32 %v13568_v0, %v7173_v42  ;;  %v19013_v2 = vadd.f32 %v13568_v0, %v7174_v46  ;;  %v19015_v1 = vadd.f32 %v13568_v0, %v7175_v12 }
 0x509   : > { %v19017_v35 = vadd.f32 %v13568_v0, %v7176_v56  ;;  %v19019_v18 = vadd.f32 %v13568_v0, %v7177_v38  ;;  %v19021_v58 = vadd.f32 %v13568_v0, %v7178_v60  ;;  %v19023_v21 = vadd.f32 %v13568_v0, %v7179_v4 }
 0x50a   : > { %v19025_v31 = vadd.f32 %v13568_v0, %v7180_v30  ;;  %v19027_v33 = vadd.f32 %v13568_v0, %v7181_v57  ;;  %v19029_v36 = vadd.f32 %v13568_v0, %v7182_v15  ;;  %v19031_v47 = vadd.f32 %v13568_v0, %v7183_v24 }
 0x50b   : > { %v19033_v13 = vadd.f32 %v13568_v0, %v7184_v50  ;;  %v19035_v51 = vadd.f32 %v13568_v0, %v7185_v8  ;;  %v19037_v49 = vadd.f32 %v13568_v0, %v7186_v59  ;;  %v19039_v7 = vadd.f32 %v13568_v0, %v7187_v16 }
 0x50c   : > { %21742 = vst [vmem:[#allocation54_spill] sm:$0xff] %v19031_v47  ;;  %v19041_v52 = vadd.f32 %v13568_v0, %v7188_v22  ;;  %v19043_v5 = vadd.f32 %v13568_v0, %v7189_v44  ;;  %v19045_v40 = vadd.f32 %v13568_v0, %v7190_v61  ;;  %v19047_v39 = vadd.f32 %v13568_v0, %v7191_v25 }
 0x50d   : > { %21743 = vst [vmem:[#allocation14_spill] sm:$0xff] %v19033_v13  ;;  %21744 = vst [vmem:[#allocation15_spill] sm:$0xff] %v19035_v51  ;;  %v19049_v14 = vadd.f32 %v13568_v0, %v7192_v29  ;;  %v19051_v48 = vadd.f32 %v13568_v0, %v7193_v23  ;;  %v19053_v37 = vadd.f32 %v13568_v0, %v7194_v55  ;;  %v7238_v12 = vsub.f32 0.0, %v19001_v43 }
 0x50e   : > { %21745 = vst [vmem:[#allocation19_spill] sm:$0xff] %v19037_v49  ;;  %21746 = vst [vmem:[#allocation23_spill] sm:$0xff] %v19039_v7  ;;  %v19055_v45 = vadd.f32 %v13568_v0, %v7195_v41  ;;  %v19057_v9 = vadd.f32 %v13568_v0, %v7196_v26  ;;  %v19059_v11 = vadd.f32 %v13568_v0, %v7197_v17  ;;  %v7239_v56 = vsub.f32 0.0, %v19003_v54 }
 0x50f   : > { %21747 = vst [vmem:[#allocation57_spill] sm:$0xff] %v19041_v52  ;;  %21748 = vst [vmem:[#allocation25_spill] sm:$0xff] %v19043_v5  ;;  %v19061_v42 = vadd.f32 %v13568_v0, %v7198_v53  ;;  %v19063_v46 = vadd.f32 %v13568_v0, %v7199_v63  ;;  %v7240_v38 = vsub.f32 0.0, %v19005_v3  ;;  %v7241_v60 = vsub.f32 0.0, %v19007_v28 }
 0x510   : > { %21749 = vst [vmem:[#allocation31_spill] sm:$0xff] %v19045_v40  ;;  %21750 = vst [vmem:[#allocation35_spill] sm:$0xff] %v19047_v39  ;;  %v7242_v4 = vsub.f32 0.0, %v19009_v27  ;;  %v7243_v30 = vsub.f32 0.0, %v19011_v32  ;;  %v7244_v57 = vsub.f32 0.0, %v19013_v2  ;;  %v7245_v15 = vsub.f32 0.0, %v19015_v1 }
 0x511   : > { %21751 = vst [vmem:[#allocation37_spill] sm:$0xff] %v19049_v14  ;;  %21752 = vst [vmem:[#allocation38_spill] sm:$0xff] %v19051_v48  ;;  %v7246_v24 = vsub.f32 0.0, %v19017_v35  ;;  %v7247_v50 = vsub.f32 0.0, %v19019_v18  ;;  %v7248_v8 = vsub.f32 0.0, %v19021_v58  ;;  %v7249_v59 = vsub.f32 0.0, %v19023_v21 }
 0x512   : > { %21753 = vst [vmem:[#allocation39_spill] sm:$0xff] %v19053_v37  ;;  %21754 = vst [vmem:[#allocation58_spill] sm:$0xff] %v19055_v45  ;;  %v7250_v16 = vsub.f32 0.0, %v19025_v31  ;;  %v7251_v0 = vsub.f32 0.0, %v19027_v33  ;;  %v7252_v22 = vsub.f32 0.0, %v19029_v36  ;;  %v7253_v44 = vsub.f32 0.0, %v19031_v47 }
 0x513   : > { %21755 = vst [vmem:[#allocation59_spill] sm:$0xff] %v19057_v9  ;;  %21756 = vst [vmem:[#allocation61_spill] sm:$0xff] %v19059_v11  ;;  %v7254_v61 = vsub.f32 0.0, %v19033_v13  ;;  %v7255_v25 = vsub.f32 0.0, %v19035_v51  ;;  %v7256_v29 = vsub.f32 0.0, %v19037_v49  ;;  %v7257_v23 = vsub.f32 0.0, %v19039_v7 }
 0x514   : > { %21757 = vst [vmem:[#allocation20_spill] sm:$0xff] %v19061_v42  ;;  %21758 = vst [vmem:[#allocation60_spill] sm:$0xff] %v19063_v46  ;;  %v7258_v55 = vsub.f32 0.0, %v19041_v52  ;;  %v7259_v41 = vsub.f32 0.0, %v19043_v5  ;;  %v7260_v26 = vsub.f32 0.0, %v19045_v40  ;;  %v7261_v17 = vsub.f32 0.0, %v19047_v39 }
 0x515   : > { %v7262_v53 = vsub.f32 0.0, %v19049_v14  ;;  %v7263_v63 = vsub.f32 0.0, %v19051_v48  ;;  %v7264_v6 = vsub.f32 0.0, %v19053_v37  ;;  %v7265_v62 = vsub.f32 0.0, %v19055_v45 }
 0x516   : > { %v7266_v49 = vsub.f32 0.0, %v19057_v9  ;;  %v7267_v7 = vsub.f32 0.0, %v19059_v11  ;;  %v7268_v52 = vsub.f32 0.0, %v19061_v42  ;;  %v7269_v5 = vsub.f32 0.0, %v19063_v46 }
 0x517   : > { %v7270_v51 = vmul.f32 1.442695, %v7238_v12  ;;  %v7272_v40 = vmul.f32 1.442695, %v7239_v56  ;;  %v7274_v13 = vmul.f32 1.442695, %v7240_v38 }
 0x518   : > { %v21759_v14 = vshll.u32 %v18874_v19, 16  ;;  %v7276_v48 = vmul.f32 1.442695, %v7241_v60  ;;  %v7278_v37 = vmul.f32 1.442695, %v7242_v4  ;;  %v21760_v9 = vrot.slane %v18925_v34, 4 }
 0x519   : > { %v7280_v47 = vmul.f32 1.442695, %v7243_v30  ;;  %15371 = vpow2.f32 %v7270_v51  ;;  %v7282_v46 = vmul.f32 1.442695, %v7244_v57  ;;  %v7284_v12 = vmul.f32 1.442695, %v7245_v15 }
 0x51a   : > { %v19100_v39 = vor.u32 %v21759_v14, %v18925_v34  ;;  %v19107_v11 = vsel %vm16088_vm8, %v21760_v9, %v18957_v10  ;;  %v7286_v56 = vmul.f32 1.442695, %v7246_v24  ;;  %15373 = vpow2.f32 %v7272_v40  ;;  %v7704_v51 = vld [vmem:[#allocation3] sm:$0x8]  ;;  %v7713_v24 = vld [vmem:[#allocation3 + $0x30] sm:$0x8] }
 0x51b   : > { %v7288_v38 = vmul.f32 1.442695, %v7247_v50  ;;  %v7290_v42 = vmul.f32 1.442695, %v7248_v8  ;;  %v7292_v19 = vmul.f32 1.442695, %v7249_v59  ;;  %15375 = vpow2.f32 %v7274_v13 }
 0x51c   : > { %v7294_v14 = vmul.f32 1.442695, %v7250_v16  ;;  %v7296_v60 = vmul.f32 1.442695, %v7251_v0  ;;  %v19109_v4 = vmul.f32 1.442695, %v7252_v22  ;;  %15377 = vpow2.f32 %v7276_v48 }
 0x51d   : > { %v19111_v30 = vmul.f32 1.442695, %v7253_v44  ;;  %v19113_v34 = vmul.f32 1.442695, %v7254_v61  ;;  %v19115_v10 = vmul.f32 1.442695, %v7255_v25  ;;  %15379 = vpow2.f32 %v7278_v37 }
 0x51e   : > { %v19117_v9 = vmul.f32 1.442695, %v7256_v29  ;;  %v19119_v40 = vmul.f32 1.442695, %v7257_v23  ;;  %v19121_v57 = vmul.f32 1.442695, %v7258_v55  ;;  %15381 = vpow2.f32 %v7280_v47 }
 0x51f   : > { %v7707_v13 = vld [vmem:[#allocation3 + $0x10] sm:$0x8]  ;;  %v7710_v15 = vld [vmem:[#allocation3 + $0x20] sm:$0x8]  ;;  %v19123_v50 = vmul.f32 1.442695, %v7259_v41  ;;  %15383 = vpow2.f32 %v7282_v46 }
 0x520   : > { %v19125_v48 = vmul.f32 1.442695, %v7260_v26  ;;  %v19127_v8 = vmul.f32 1.442695, %v7261_v17  ;;  %v7716_v59 = vld [vmem:[#allocation3 + $0x40] sm:$0x8]  ;;  %15385 = vpow2.f32 %v7284_v12 }
 0x521   : > { %v7719_v16 = vld [vmem:[#allocation3 + $0x50] sm:$0x8]  ;;  %v19129_v37 = vmul.f32 1.442695, %v7262_v53  ;;  %v19131_v0 = vmul.f32 1.442695, %v7263_v63  ;;  %15387 = vpow2.f32 %v7286_v56 }
 0x522   : > { %v19133_v22 = vmul.f32 1.442695, %v7264_v6  ;;  %v19135_v44 = vmul.f32 1.442695, %v7265_v62  ;;  %v19137_v61 = vmul.f32 1.442695, %v7266_v49  ;;  %15389 = vpow2.f32 %v7288_v38 }
 0x523   : > { %v19139_v47 = vmul.f32 1.442695, %v7267_v7  ;;  %v19141_v25 = vmul.f32 1.442695, %v7268_v52  ;;  %v19143_v29 = vmul.f32 1.442695, %v7269_v5  ;;  %15391 = vpow2.f32 %v7290_v42 }
 0x524   : > { %v7753_v23 = vshrl.u32 %v7704_v51, 16  ;;  %v7623_v46 = vld [vmem:[#allocation3 + $0x60] sm:$0x8]  ;;  %v7626_v55 = vld [vmem:[#allocation3 + $0x70] sm:$0x8]  ;;  %v19148_v6 = vld [vmem:[%s21431_s10 + $0x38] sm:$0xff]   ;;  %15393 = vpow2.f32 %v7292_v19 }
 0x525   : > { %v7775_v62 = vshrl.u32 %v7707_v13, 16  ;;  %v7797_v41 = vshrl.u32 %v7710_v15, 16  ;;  %v7819_v49 = vshrl.u32 %v7713_v24, 16  ;;  %v7629_v26 = vld [vmem:[#allocation3 + $0x80] sm:$0x8]  ;;  %v7841_v52 = vshrl.u32 %v7716_v59, 16  ;;  %14847 = vmatprep.subr.bf16.mxu0 %v19148_v6 }
 0x526   : > { %v7632_v7 = vld [vmem:[#allocation3 + $0x90] sm:$0x8]  ;;  %v13601_v17 = vrot.slane %v7753_v23, 11  ;;  %v7863_v53 = vshrl.u32 %v7719_v16, 16  ;;  %v7635_v5 = vld [vmem:[#allocation3 + $0xa0] sm:$0x8]  ;;  %15395 = vpow2.f32 %v7294_v14  ;;  %v15372_v59 = vpop.eup %15371 }
 0x527   : > { %v19151_v63 = vrot.slane %v7775_v62, 11  ;;  %v19153_v12 = vrot.slane %v7797_v41, 11  ;;  %v19155_v56 = vrot.slane %v7819_v49, 11  ;;  %v7638_v38 = vld [vmem:[#allocation3 + $0xb0] sm:$0x8]  ;;  %v19160_v42 = vrot.slane %v7841_v52, 11  ;;  %v15374_v41 = vpop.eup %15373 }
 0x528   : > { %v7764_v51 = vsel %vm16088_vm8, %v13601_v17, %v19100_v39  ;;  %v19162_v13 = vrot.slane %v7863_v53, 11  ;;  %v7641_v15 = vld [vmem:[#allocation3 + $0xc0] sm:$0x8]  ;;  %v7644_v24 = vld [vmem:[#allocation3 + $0xd0] sm:$0x8]  ;;  %15397 = vpow2.f32 %v7296_v60  ;;  %v7624_v16 = vsel %vm16072_vm5, 0, %v7623_v46  ;;  %v15376_v46 = vpop.eup %15375 }
 0x529   : > { %v13651_v19 = vcombine.low %v7764_v51, %v19107_v11  ;;  %v7627_v14 = vsel %vm16072_vm5, 0, %v7626_v55  ;;  %v7647_v23 = vld [vmem:[#allocation3 + $0xe0] sm:$0x8]  ;;  %v7650_v62 = vld [vmem:[#allocation3 + $0xf0] sm:$0x8]  ;;  %15399 = vpow2.f32 %v19109_v4  ;;  %v19170_v39 = vadd.f32 1.0, %v15372_v59  ;;  %v15378_v52 = vpop.eup %15377 }
 0x52a   : > { %7625 = vst [vmem:[#allocation3 + $0x60] sm:$0x8] %v7624_v16  ;;  %7628 = vst [vmem:[#allocation3 + $0x70] sm:$0x8] %v7627_v14  ;;  %v7630_v60 = vsel %vm16072_vm5, 0, %v7629_v26  ;;  %v7633_v11 = vsel %vm16072_vm5, 0, %v7632_v7  ;;  %15401 = vpow2.f32 %v19111_v30 }
 0x52b   : > { %v7596_v49 = vld [vmem:[#allocation3 + $0xc] sm:$0x1]  ;;  %v19177_v55 = vadd.f32 1.0, %v15374_v41  ;;  %14779 = vmatprep.mubr.msk.bf16.mxu0 %vm465_vm1, %v13651_v19  ;;  %7631 = vst [vmem:[#allocation3 + $0x80] sm:$0x8] %v7630_v60  ;;  %v7636_v4 = vsel %vm16072_vm5, 0, %v7635_v5  ;;  %15403 = vpow2.f32 %v19113_v34  ;;  %v15380_v5 = vpop.eup %15379 }
 0x52c   : > { %7634 = vst [vmem:[#allocation3 + $0x90] sm:$0x8] %v7633_v11  ;;  %v7639_v17 = vsel %vm16072_vm5, 0, %v7638_v38  ;;  %v8682_v26 = vld [vmem:[#allocation3 + $0x4] sm:$0xf]  ;;  %v19185_v7 = vadd.f32 1.0, %v15376_v46  ;;  %15405 = vpow2.f32 %v19115_v10  ;;  %v15382_v19 = vpop.eup %15381 }
 0x52d   : > { %7637 = vst [vmem:[#allocation3 + $0xa0] sm:$0x8] %v7636_v4  ;;  %7640 = vst [vmem:[#allocation3 + $0xb0] sm:$0x8] %v7639_v17  ;;  %v7642_v30 = vsel %vm16072_vm5, 0, %v7641_v15  ;;  %v7645_v53 = vsel %vm16072_vm5, 0, %v7644_v24  ;;  %15407 = vpow2.f32 %v19117_v9  ;;  %v15384_v14 = vpop.eup %15383 }
 0x52e   : > { %v19191_v51 = vld [vmem:[#allocation3 + $0x8] sm:$0xf]  ;;  %v19194_v38 = vadd.f32 1.0, %v15378_v52  ;;  %7643 = vst [vmem:[#allocation3 + $0xc0] sm:$0x8] %v7642_v30  ;;  %v7648_v34 = vsel %vm16072_vm5, 0, %v7647_v23  ;;  %15409 = vpow2.f32 %v19119_v40  ;;  %v15386_v60 = vpop.eup %15385 }
 0x52f   : > { %7646 = vst [vmem:[#allocation3 + $0xd0] sm:$0x8] %v7645_v53  ;;  %v7651_v59 = vsel %vm16072_vm5, 0, %v7650_v62  ;;  %v19201_v15 = vadd.f32 1.0, %v15380_v5  ;;  %7649 = vst [vmem:[#allocation3 + $0xe0] sm:$0x8] %v7648_v34  ;;  %15411 = vpow2.f32 %v19121_v57 }
 0x530   : > { %7652 = vst [vmem:[#allocation3 + $0xf0] sm:$0x8] %v7651_v59  ;;  %v7597_v10 = vsel %vm16204_vm10, 0, %v7596_v49  ;;  %v8731_v16 = vshrl.u32 %v8682_v26, 16  ;;  %v19206_v41 = vadd.f32 1.0, %v15382_v19  ;;  %v8734_v23 = vshll.u32 %v8682_v26, 16  ;;  %v15388_v49 = vpop.eup %15387 }
 0x531   : > { %7598 = vst [vmem:[#allocation3 + $0xc] sm:$0x1] %v7597_v10  ;;  %v19210_v9 = vadd.f32 1.0, %v15384_v14  ;;  %15413 = vpow2.f32 %v19123_v50  ;;  %v19216_v4 = vadd.f32 1.0, %v15386_v60  ;;  %v7722_v40 = vld [vmem:[#allocation3 + $0x60] sm:$0x8]  ;;  %v15390_v26 = vpop.eup %15389 }
 0x532   : > { %v19212_v11 = vrot.slane %v8731_v16, 4  ;;  %v7725_v17 = vld [vmem:[#allocation3 + $0x70] sm:$0x8]  ;;  %v19218_v52 = vrot.slane %v8734_v23, 5  ;;  %15415 = vpow2.f32 %v19125_v48  ;;  %v19221_v30 = vadd.f32 1.0, %v15388_v49  ;;  %v15392_v34 = vpop.eup %15391 }
 0x533   : > { %v7885_v57 = vshrl.u32 %v7722_v40, 16  ;;  %v7907_v53 = vshrl.u32 %v7725_v17, 16  ;;  %v7728_v5 = vld [vmem:[#allocation3 + $0x80] sm:$0x8]  ;;  %15417 = vpow2.f32 %v19127_v8  ;;  %v19224_v59 = vadd.f32 1.0, %v15390_v26  ;;  %v15394_v16 = vpop.eup %15393 }
 0x534   : > { %v7929_v50 = vshrl.u32 %v7728_v5, 16  ;;  %v7731_v19 = vld [vmem:[#allocation3 + $0x90] sm:$0x8]  ;;  %v7734_v10 = vld [vmem:[#allocation3 + $0xa0] sm:$0x8]  ;;  %15419 = vpow2.f32 %v19129_v37  ;;  %v19227_v14 = vadd.f32 1.0, %v15392_v34  ;;  %v8737_v60 = vor.u32 %v19218_v52, %v19212_v11  ;;  %v15396_v49 = vpop.eup %15395 }
 0x535   : > { %v19229_v23 = vrot.slane %v7885_v57, 11  ;;  %v7737_v48 = vld [vmem:[#allocation3 + $0xb0] sm:$0x8]  ;;  %15421 = vpow2.f32 %v19131_v0  ;;  %v19234_v8 = vadd.f32 1.0, %v15394_v16  ;;  %v19236_v40 = vrot.slane %v7907_v53, 11  ;;  %v15398_v5 = vpop.eup %15397 }
 0x536   : > { %v7951_v17 = vshrl.u32 %v7731_v19, 16  ;;  %v7740_v26 = vld [vmem:[#allocation3 + $0xc0] sm:$0x8]  ;;  %15423 = vpow2.f32 %v19133_v22  ;;  %v19239_v37 = vrot.slane %v7929_v50, 11  ;;  %v7973_v57 = vshrl.u32 %v7734_v10, 16  ;;  %v15400_v62 = vpop.eup %15399 }
 0x537   : > { %v7995_v34 = vshrl.u32 %v7737_v48, 16  ;;  %v7743_v46 = vld [vmem:[#allocation3 + $0xd0] sm:$0x8]  ;;  %15425 = vpow2.f32 %v19135_v44  ;;  %v19242_v11 = vadd.f32 1.0, %v15396_v49  ;;  %v19244_v0 = vadd.f32 1.0, %v15398_v5  ;;  %v15402_v16 = vpop.eup %15401 }
 0x538   : > { %21763 = vst [vmem:[#allocation16_spill] sm:$0xff] %v19239_v37  ;;  %v8017_v52 = vshrl.u32 %v7740_v26, 16  ;;  %v7746_v53 = vld [vmem:[#allocation3 + $0xe0] sm:$0x8]  ;;  %15427 = vpow2.f32 %v19137_v61  ;;  %v19247_v19 = vadd.f32 1.0, %v15400_v62  ;;  %v19249_v22 = vrot.slane %v7951_v17, 11  ;;  %v15404_v48 = vpop.eup %15403 }
 0x539   : > { %v19251_v50 = vrot.slane %v7973_v57, 11  ;;  %v7749_v10 = vld [vmem:[#allocation3 + $0xf0] sm:$0x8]  ;;  %15429 = vpow2.f32 %v19139_v47  ;;  %v19254_v44 = vadd.f32 1.0, %v15402_v16  ;;  %v19256_v49 = vrot.slane %v7995_v34, 11  ;;  %v15406_v26 = vpop.eup %15405 }
 0x53a   : > { %21764 = vst [vmem:[#allocation49_spill] sm:$0xff] %v19249_v22  ;;  %v8039_v5 = vshrl.u32 %v7743_v46, 16  ;;  %15431 = vpow2.f32 %v19141_v25  ;;  %v19259_v20 = vrot.slane %v8017_v52, 11  ;;  %v8061_v61 = vshrl.u32 %v7746_v53, 16  ;;  %v7656_v17 = vld [vmem:[#allocation3 + $0x1c] sm:$0x1]  ;;  %v15408_v22 = vpop.eup %15407 }
 0x53b   : > { %21765 = vst [vmem:[#allocation44_spill] sm:$0xff] %v19251_v50  ;;  %21766 = vst [vmem:[#allocation26_spill] sm:$0xff] %v19256_v49  ;;  %v8083_v62 = vshrl.u32 %v7749_v10, 16  ;;  %15433 = vpow2.f32 %v19143_v29  ;;  %v19262_v57 = vadd.f32 1.0, %v15404_v48  ;;  %v19264_v50 = vadd.f32 1.0, %v15406_v26  ;;  %v15410_v16 = vpop.eup %15409 }
 0x53c   : > { %21767 = vst [vmem:[#allocation52_spill] sm:$0xff] %v19259_v20  ;;  %v19266_v47 = vrot.slane %v8039_v5, 11  ;;  %v8684_v34 = vld [vmem:[#allocation3 + $0xc] sm:$0x1]  ;;  %v19268_v46 = vadd.f32 1.0, %v15408_v22  ;;  %15435 = vrcp.f32 %v19170_v39  ;;  %v19271_v25 = vrot.slane %v8061_v61, 11  ;;  %v15412_v53 = vpop.eup %15411 }
 0x53d   : > { %v8738_v52 = vrot.slane %v8737_v60, 4  ;;  %15437 = vrcp.f32 %v19177_v55  ;;  %v19274_v10 = vrot.slane %v8083_v62, 11  ;;  %v21771_v29 = vshll.u32 %v19191_v51, 16  ;;  %v7659_v61 = vld [vmem:[#allocation3 + $0x2c] sm:$0x1] }
 0x53e   : > { %21768 = vst [vmem:[#allocation63_spill] sm:$0xff] %v19266_v47  ;;  %21769 = vst [vmem:[#allocation62_spill] sm:$0xff] %v19271_v25  ;;  %v21772_v5 = vshrl.u32 %v19191_v51, 16  ;;  %v9419_v47 = vld [vmem:[#allocation3 + $0x10] sm:$0x8]  ;;  %v15414_v20 = vpop.eup %15413  ;;  %v19280_v22 = vadd.f32 1.0, %v15410_v16  ;;  %15439 = vrcp.f32 %v19185_v7 }
 0x53f   : > { %21770 = vst [vmem:[#allocation40_spill] sm:$0xff] %v19274_v10  ;;  %v8742_v48 = vrot.slane %v21771_v29, 5  ;;  %v8750_v39 = vshll.u32 %v8684_v34, 16  ;;  %v7657_v60 = vsel %vm16204_vm10, 0, %v7656_v17  ;;  %v15416_v55 = vpop.eup %15415  ;;  %v19285_v62 = vadd.f32 1.0, %v15412_v53 }
 0x540   : > { %v8746_v26 = vrot.slane %v21772_v5, 4  ;;  %v19287_v10 = vadd.f32 1.0, %v15414_v20  ;;  %15441 = vrcp.f32 %v19194_v38  ;;  %7658 = vst [vmem:[#allocation3 + $0x1c] sm:$0x1] %v7657_v60  ;;  %v9422_v29 = vld [vmem:[#allocation3 + $0x20] sm:$0x8]  ;;  %v15418_v5 = vpop.eup %15417 }
 0x541   : > { %15443 = vrcp.f32 %v19201_v15  ;;  %v8743_v7 = vsel %vm16852_vm13, %v8738_v52, %v8742_v48  ;;  %v8752_v34 = vrot.slane %v8750_v39, 5  ;;  %v9468_v25 = vshrl.u32 %v9419_v47, 16  ;;  %v7662_v17 = vld [vmem:[#allocation3 + $0x3c] sm:$0x1]  ;;  %v15420_v49 = vpop.eup %15419  ;;  %v9425_v53 = vld [vmem:[#allocation3 + $0x30] sm:$0x8] }
 0x542   : > { %v8747_v51 = vor.u32 %v8746_v26, %v8742_v48  ;;  %v19293_v37 = vadd.f32 1.0, %v15416_v55  ;;  %15445 = vrcp.f32 %v19206_v41  ;;  %v7660_v38 = vsel %vm16204_vm10, 0, %v7659_v61  ;;  %v15422_v26 = vpop.eup %15421  ;;  %v7665_v52 = vld [vmem:[#allocation3 + $0x4c] sm:$0x1]  ;;  %v9428_v55 = vld [vmem:[#allocation3 + $0x40] sm:$0x8] }
 0x543   : > { %v19298_v60 = vadd.f32 1.0, %v15418_v5  ;;  %v19300_v15 = vadd.f32 1.0, %v15420_v49  ;;  %15447 = vrcp.f32 %v19210_v9  ;;  %7661 = vst [vmem:[#allocation3 + $0x2c] sm:$0x1] %v7660_v38  ;;  %v9490_v47 = vshrl.u32 %v9422_v29, 16  ;;  %v15424_v48 = vpop.eup %15423 }
 0x544   : > { %v8748_v20 = vrot.slane %v8747_v51, 4  ;;  %15449 = vrcp.f32 %v19216_v4  ;;  %v19306_v39 = vrot.slane %v9468_v25, 11  ;;  %v7663_v61 = vsel %vm16204_vm10, 0, %v7662_v17  ;;  %v7668_v51 = vld [vmem:[#allocation3 + $0x5c] sm:$0x1]  ;;  %v15426_v49 = vpop.eup %15425 }
 0x545   : > { %v19310_v5 = vadd.f32 1.0, %v15422_v26  ;;  %v19312_v9 = vadd.f32 1.0, %v15424_v48  ;;  %15451 = vrcp.f32 %v19221_v30  ;;  %7664 = vst [vmem:[#allocation3 + $0x3c] sm:$0x1] %v7663_v61  ;;  %v9431_v4 = vld [vmem:[#allocation3 + $0x50] sm:$0x8]  ;;  %v15428_v38 = vpop.eup %15427 }
 0x546   : > { %v8753_v41 = vsel %vm16852_vm13, %v8748_v20, %v8752_v34  ;;  %21774 = vst [vmem:[#allocation42_spill] sm:$0xff] %v19306_v39  ;;  %15453 = vrcp.f32 %v19224_v59  ;;  %v19318_v25 = vrot.slane %v9490_v47, 11  ;;  %v9512_v34 = vshrl.u32 %v9425_v53, 16  ;;  %v7671_v20 = vld [vmem:[#allocation3 + $0x6c] sm:$0x1]  ;;  %v15430_v26 = vpop.eup %15429 }
 0x547   : > { %v19315_v29 = vcombine.low %v8743_v7, %v8753_v41  ;;  %v7666_v17 = vsel %vm16204_vm10, 0, %v7665_v52  ;;  %v19322_v39 = vadd.f32 1.0, %v15426_v49  ;;  %15455 = vrcp.f32 %v19227_v14  ;;  %v8687_v30 = vld [vmem:[#allocation3 + $0x1c] sm:$0x1]  ;;  %v15432_v41 = vpop.eup %15431  ;;  %v19332_v52 = vld [vmem:[#allocation3 + $0x60] sm:$0x8] }
 0x548   : > { %7667 = vst [vmem:[#allocation3 + $0x4c] sm:$0x1] %v7666_v17  ;;  %v9534_v7 = vshrl.u32 %v9428_v55, 16  ;;  %v7669_v48 = vsel %vm16204_vm10, 0, %v7668_v51  ;;  %v19327_v59 = vadd.f32 1.0, %v15428_v38  ;;  %v19329_v47 = vadd.f32 1.0, %v15430_v26  ;;  %v15434_v61 = vpop.eup %15433 }
 0x549   : > { %15457 = vrcp.f32 %v19234_v8  ;;  %v8774_v53 = vshll.u32 %v8687_v30, 16  ;;  %7670 = vst [vmem:[#allocation3 + $0x5c] sm:$0x1] %v7669_v48  ;;  %v19334_v49 = vadd.f32 1.0, %v15432_v41  ;;  %v19337_v14 = vrot.slane %v9512_v34, 11  ;;  %v15436_v17 = vpop.eup %15435 }
 0x54a   : > { %15459 = vrcp.f32 %v19242_v11  ;;  %v9556_v55 = vshrl.u32 %v9431_v4, 16  ;;  %v7674_v51 = vld [vmem:[#allocation3 + $0x7c] sm:$0x1]  ;;  %v19339_v38 = vadd.f32 1.0, %v15434_v61  ;;  %v8690_v26 = vld [vmem:[#allocation3 + $0x2c] sm:$0x1]  ;;  %v15438_v48 = vpop.eup %15437  ;;  %v7398_v11 = vmul.f32 %v15436_v17, %v19001_v43 }
 0x54b   : > { %15461 = vrcp.f32 %v19244_v0  ;;  %v19342_v8 = vrot.slane %v9534_v7, 11  ;;  %v7672_v30 = vsel %vm16204_vm10, 0, %v7671_v20  ;;  %v19348_v34 = vrot.slane %v8774_v53, 5  ;;  %v15440_v41 = vpop.eup %15439 }
 0x54c   : > { %15463 = vrcp.f32 %v19247_v19  ;;  %v8798_v4 = vshll.u32 %v8690_v26, 16  ;;  %7673 = vst [vmem:[#allocation3 + $0x6c] sm:$0x1] %v7672_v30  ;;  %v7399_v0 = vmul.f32 %v15438_v48, %v19003_v54  ;;  %v8693_v61 = vld [vmem:[#allocation3 + $0x3c] sm:$0x1]  ;;  %v19352_v7 = vrot.slane %v9556_v55, 11 }
 0x54d   : > { %21775 = vst [vmem:[#allocation51_spill] sm:$0xff] %v19342_v8  ;;  %15465 = vrcp.f32 %v19254_v44  ;;  %v7675_v20 = vsel %vm16204_vm10, 0, %v7674_v51  ;;  %v15442_v8 = vpop.eup %15441  ;;  %v7400_v43 = vmul.f32 %v15440_v41, %v19005_v3  ;;  %v13994_v19 = vpack.c.bf16 %v7398_v11, %v7398_v11 }
 0x54e   : > { %15467 = vrcp.f32 %v19262_v57  ;;  %v9578_v53 = vshrl.u32 %v19332_v52, 16  ;;  %7676 = vst [vmem:[#allocation3 + $0x7c] sm:$0x1] %v7675_v20  ;;  %v15444_v17 = vpop.eup %15443  ;;  %v7401_v54 = vmul.f32 %v15442_v8, %v19007_v28  ;;  %v13995_v44 = vpack.c.bf16 %v7399_v0, %v7399_v0 }
 0x54f   : > { %15469 = vrcp.f32 %v19264_v50  ;;  %v8822_v55 = vshll.u32 %v8693_v61, 16  ;;  %v8696_v26 = vld [vmem:[#allocation3 + $0x4c] sm:$0x1]  ;;  %v15446_v30 = vpop.eup %15445  ;;  %v7402_v51 = vmul.f32 %v15444_v17, %v19009_v27  ;;  %v13996_v57 = vpack.c.bf16 %v7400_v43, %v7400_v43  ;;  %7559 = vst.msk [vmem:[#allocation3 + $0x14] sm:$0xf] %vm1255_vm2, %v13994_v19 }
 0x550   : > { %15471 = vrcp.f32 %v19268_v46  ;;  %v19364_v3 = vrot.slane %v8798_v4, 5  ;;  %v8699_v48 = vld [vmem:[#allocation3 + $0x5c] sm:$0x1]  ;;  %v15448_v11 = vpop.eup %15447  ;;  %v7403_v50 = vmul.f32 %v15446_v30, %v19011_v32  ;;  %v13997_v28 = vpack.c.bf16 %v7401_v54, %v7401_v54  ;;  %7560 = vst.msk [vmem:[#allocation3 + $0x18] sm:$0xf] %vm1255_vm2, %v13995_v44 }
 0x551   : > { %15473 = vrcp.f32 %v19280_v22  ;;  %v8846_v8 = vshll.u32 %v8696_v26, 16  ;;  %v15450_v41 = vpop.eup %15449  ;;  %v7404_v27 = vmul.f32 %v15448_v11, %v19013_v2  ;;  %v13998_v46 = vpack.c.bf16 %v7402_v51, %v7402_v51  ;;  %7561 = vst.msk [vmem:[#allocation3 + $0x24] sm:$0xf] %vm1255_vm2, %v13996_v57 }
 0x552   : > { %15475 = vrcp.f32 %v19285_v62  ;;  %v19372_v4 = vrot.slane %v8822_v55, 5  ;;  %v15452_v0 = vpop.eup %15451  ;;  %v7405_v22 = vmul.f32 %v15450_v41, %v19015_v1  ;;  %v13999_v32 = vpack.c.bf16 %v7403_v50, %v7403_v50  ;;  %7562 = vst.msk [vmem:[#allocation3 + $0x28] sm:$0xf] %vm1255_vm2, %v13997_v28 }
 0x553   : > { %15477 = vrcp.f32 %v19287_v10  ;;  %v8870_v61 = vshll.u32 %v8699_v48, 16  ;;  %v8702_v20 = vld [vmem:[#allocation3 + $0x6c] sm:$0x1]  ;;  %v15454_v43 = vpop.eup %15453  ;;  %v7406_v2 = vmul.f32 %v15452_v0, %v19017_v35  ;;  %v14000_v62 = vpack.c.bf16 %v7404_v27, %v7404_v27  ;;  %7563 = vst.msk [vmem:[#allocation3 + $0x34] sm:$0xf] %vm1255_vm2, %v13998_v46 }
 0x554   : > { %15479 = vrcp.f32 %v19293_v37  ;;  %v8894_v19 = vshll.u32 %v8702_v20, 16  ;;  %v15456_v17 = vpop.eup %15455  ;;  %v7407_v10 = vmul.f32 %v15454_v43, %v19019_v18  ;;  %v14001_v1 = vpack.c.bf16 %v7405_v22, %v7405_v22  ;;  %7564 = vst.msk [vmem:[#allocation3 + $0x38] sm:$0xf] %vm1255_vm2, %v13999_v32  ;;  %v21778_v43 = vld [vmem:[#allocation15_spill] sm:$0xff] }
 0x555   : > { %15481 = vrcp.f32 %v19298_v60  ;;  %v19383_v54 = vrot.slane %v8846_v8, 5  ;;  %v7408_v37 = vmul.f32 %v15456_v17, %v19021_v58  ;;  %v14002_v35 = vpack.c.bf16 %v7406_v2, %v7406_v2  ;;  %7565 = vst.msk [vmem:[#allocation3 + $0x44] sm:$0xf] %vm1255_vm2, %v14000_v62  ;;  %v21779_v17 = vld [vmem:[#allocation19_spill] sm:$0xff] }
 0x556   : > { %v15458_v44 = vpop.eup %15457  ;;  %15483 = vrcp.f32 %v19300_v15  ;;  %v19388_v55 = vrot.slane %v8870_v61, 5  ;;  %v14003_v60 = vpack.c.bf16 %v7407_v10, %v7407_v10  ;;  %7566 = vst.msk [vmem:[#allocation3 + $0x48] sm:$0xf] %vm1255_vm2, %v14001_v1  ;;  %v19393_v30 = vld [vmem:[#allocation3 + $0x14] sm:$0xf]  ;;  %v19395_v51 = vrot.slane %v8894_v19, 5 }
 0x557   : > { %v15460_v26 = vpop.eup %15459  ;;  %15485 = vrcp.f32 %v19310_v5  ;;  %v7409_v18 = vmul.f32 %v15458_v44, %v19023_v21  ;;  %v14004_v57 = vpack.c.bf16 %v7408_v37, %v7408_v37  ;;  %7567 = vst.msk [vmem:[#allocation3 + $0x54] sm:$0xf] %vm1255_vm2, %v14002_v35  ;;  %v7709_v48 = vld [vmem:[#allocation3 + $0x18] sm:$0xf]  ;;  %v7780_v5 = vshrl.u32 %v19393_v30, 16 }
 0x558   : > { %v15462_v15 = vpop.eup %15461  ;;  %15487 = vrcp.f32 %v19312_v9  ;;  %v7410_v58 = vmul.f32 %v15460_v26, %v19025_v31  ;;  %7568 = vst.msk [vmem:[#allocation3 + $0x58] sm:$0xf] %vm1255_vm2, %v14003_v60  ;;  %v7783_v28 = vshll.u32 %v19393_v30, 16  ;;  %v7789_v0 = vshrl.u32 %v7709_v48, 16  ;;  %v19419_v20 = vld [vmem:[#allocation3 + $0x24] sm:$0xf] }
 0x559   : > { %v15464_v11 = vpop.eup %15463  ;;  %15489 = vrcp.f32 %v19322_v39  ;;  %v7411_v21 = vmul.f32 %v15462_v15, %v19027_v33  ;;  %v14005_v50 = vpack.c.bf16 %v7409_v18, %v7409_v18  ;;  %7569 = vst.msk [vmem:[#allocation3 + $0x64] sm:$0xf] %vm1255_vm2, %v14004_v57  ;;  %v19408_v41 = vrot.slane %v7780_v5, 7  ;;  %v21776_v39 = vld [vmem:[#allocation54_spill] sm:$0xff]  ;;  %v19427_v35 = vld [vmem:[#allocation3 + $0x28] sm:$0xf] }
 0x55a   : > { %v15466_v8 = vpop.eup %15465  ;;  %15491 = vrcp.f32 %v19327_v59  ;;  %v7412_v31 = vmul.f32 %v15464_v11, %v19029_v36  ;;  %v14006_v9 = vpack.c.bf16 %v7410_v58, %v7410_v58  ;;  %v21777_v59 = vld [vmem:[#allocation14_spill] sm:$0xff]  ;;  %v7791_v44 = vrot.slane %v7789_v0, 7  ;;  %v21780_v18 = vld [vmem:[#allocation23_spill] sm:$0xff]  ;;  %v21781_v11 = vld [vmem:[#allocation57_spill] sm:$0xff] }
 0x55b   : > { %v15468_v27 = vpop.eup %15467  ;;  %15493 = vrcp.f32 %v19329_v47  ;;  %v7413_v33 = vmul.f32 %v15466_v8, %v21776_v39  ;;  %v14007_v46 = vpack.c.bf16 %v7411_v21, %v7411_v21  ;;  %7570 = vst.msk [vmem:[#allocation3 + $0x68] sm:$0xf] %vm1255_vm2, %v14005_v50  ;;  %v19417_v61 = vor.u32 %v7783_v28, %v19408_v41  ;;  %v15187_v57 = vld [vmem:[%s21431_s10 + $0x20] sm:$0xff]   ;;  %v19445_v39 = vld [vmem:[#allocation3 + $0x34] sm:$0xf] }
 0x55c   : > { %v15470_v22 = vpop.eup %15469  ;;  %15495 = vrcp.f32 %v19334_v49  ;;  %v7414_v32 = vmul.f32 %v15468_v27, %v21777_v59  ;;  %v14008_v36 = vpack.c.bf16 %v7412_v31, %v7412_v31  ;;  %7571 = vst.msk [vmem:[#allocation3 + $0x74] sm:$0xf] %vm1255_vm2, %v14006_v9  ;;  %v7787_v49 = vrot.slane %v19408_v41, 4  ;;  %v21782_v9 = vld [vmem:[#allocation25_spill] sm:$0xff]  ;;  %v15514_v59 = vld [vmem:[%s21431_s10 + $0x28] sm:$0xff]  }
 0x55d   : > { %v15472_v47 = vpop.eup %15471  ;;  %15497 = vrcp.f32 %v19339_v38  ;;  %v7415_v2 = vmul.f32 %v15470_v22, %v21778_v43  ;;  %v14009_v62 = vpack.c.bf16 %v7413_v33, %v7413_v33  ;;  %7572 = vst.msk [vmem:[#allocation3 + $0x78] sm:$0xf] %vm1255_vm2, %v14007_v46  ;;  %v7792_v37 = vshll.u32 %v7709_v48, 16  ;;  %v21783_v46 = vld [vmem:[#allocation31_spill] sm:$0xff]  ;;  %v20135_v24 = vld [vmem:[#allocation3 + $0x34] sm:$0xf] }
 0x55e   : > { %v15474_v19 = vpop.eup %15473  ;;  %v7416_v10 = vmul.f32 %v15472_v47, %v21779_v17  ;;  %v14010_v1 = vpack.c.bf16 %v7414_v32, %v7414_v32  ;;  %7573 = vst.msk [vmem:[#allocation3 + $0x84] sm:$0xf] %vm1255_vm2, %v14008_v36  ;;  %v13618_v15 = vcombine.low %v19393_v30, %v7709_v48  ;;  %v7802_v58 = vshrl.u32 %v19419_v20, 16  ;;  %v21784_v43 = vld [vmem:[#allocation35_spill] sm:$0xff] }
 0x55f   : > { %v15476_v26 = vpop.eup %15475  ;;  %v7417_v38 = vmul.f32 %v15474_v19, %v21780_v18  ;;  %v14011_v60 = vpack.c.bf16 %v7415_v2, %v7415_v2  ;;  %7574 = vst.msk [vmem:[#allocation3 + $0x88] sm:$0xf] %vm1255_vm2, %v14009_v62  ;;  %v7794_v28 = vor.u32 %v7792_v37, %v7791_v44  ;;  %v7805_v8 = vshll.u32 %v19419_v20, 16  ;;  %v21785_v44 = vld [vmem:[#allocation37_spill] sm:$0xff]  ;;  %v21786_v18 = vld [vmem:[#allocation38_spill] sm:$0xff] }
 0x560   : > { %v15478_v5 = vpop.eup %15477  ;;  %v7418_v21 = vmul.f32 %v15476_v26, %v21781_v11  ;;  %v14012_v50 = vpack.c.bf16 %v7416_v10, %v7416_v10  ;;  %7575 = vst.msk [vmem:[#allocation3 + $0x94] sm:$0xf] %vm1255_vm2, %v14010_v1  ;;  %14744 = vmatmul.mubr.msk.bf16.vlgmr.msra.gmra.mxu1 %vm465_vm1, %v13618_v15  ;;  %v19442_v30 = vrot.slane %v7802_v58, 7  ;;  %v7811_v48 = vshrl.u32 %v19427_v35, 16  ;;  %v19461_v10 = vld [vmem:[#allocation3 + $0x38] sm:$0xf] }
 0x561   : > { %v15480_v31 = vpop.eup %15479  ;;  %v7419_v41 = vmul.f32 %v15478_v5, %v21782_v9  ;;  %v14013_v27 = vpack.c.bf16 %v7417_v38, %v7417_v38  ;;  %7576 = vst.msk [vmem:[#allocation3 + $0x98] sm:$0xf] %vm1255_vm2, %v14011_v60  ;;  %14812 = vmatpush3.bf16.msra.mxu1 %v15514_v59  ;;  %v7814_v32 = vshll.u32 %v19427_v35, 16  ;;  %v13619_v36 = vcombine.low %v19419_v20, %v19427_v35  ;;  %v19466_v1 = vld [vmem:[%s21431_s10 + $0x48] sm:$0xff]   ;;  %v15197_v5 = vld [vmem:[%s21431_s10 + $0x30] sm:$0xff]   ;;  %v21789_v59 = vld [vmem:[#allocation59_spill] sm:$0xff] }
 0x562   : > { %v15482_v33 = vpop.eup %15481  ;;  %v7420_v0 = vmul.f32 %v15480_v31, %v21783_v46  ;;  %v14014_v22 = vpack.c.bf16 %v7418_v21, %v7418_v21  ;;  %7577 = vst.msk [vmem:[#allocation3 + $0xa4] sm:$0xf] %vm1255_vm2, %v14012_v50  ;;  %v7813_v19 = vrot.slane %v7811_v48, 7  ;;  %v7786_v17 = vsel %vm16088_vm8, %v19151_v63, %v19417_v61  ;;  %14813 = vmatprep.subr.bf16.mxu1 %v15187_v57  ;;  %v21787_v21 = vld [vmem:[#allocation39_spill] sm:$0xff] }
 0x563   : > { %v15484_v47 = vpop.eup %15483  ;;  %v7421_v2 = vmul.f32 %v15482_v33, %v21784_v43  ;;  %v14015_v62 = vpack.c.bf16 %v7419_v41, %v7419_v41  ;;  %7578 = vst.msk [vmem:[#allocation3 + $0xa8] sm:$0xf] %vm1255_vm2, %v14013_v27  ;;  %14747 = vmatprep.mubr.msk.bf16.mxu1 %vm465_vm1, %v13619_v36  ;;  %v7795_v26 = vsel %vm16088_vm8, %v7787_v49, %v7794_v28  ;;  %v7824_v63 = vshrl.u32 %v19445_v39, 16  ;;  %v21788_v41 = vld [vmem:[#allocation58_spill] sm:$0xff] }
 0x564   : > { %v15486_v20 = vpop.eup %15485  ;;  %v7422_v37 = vmul.f32 %v15484_v47, %v21785_v44  ;;  %v14016_v35 = vpack.c.bf16 %v7420_v0, %v7420_v0  ;;  %7579 = vst.msk [vmem:[#allocation3 + $0xb4] sm:$0xf] %vm1255_vm2, %v14014_v22  ;;  %v13652_v15 = vcombine.low %v7786_v17, %v7795_v26  ;;  %v7827_v58 = vshll.u32 %v19445_v39, 16  ;;  %v7717_v0 = vld [vmem:[#allocation3 + $0x44] sm:$0xf] }
 0x565   : > { %v15488_v61 = vpop.eup %15487  ;;  %v7423_v38 = vmul.f32 %v15486_v20, %v21786_v18  ;;  %v14017_v60 = vpack.c.bf16 %v7421_v2, %v7421_v2  ;;  %7580 = vst.msk [vmem:[#allocation3 + $0xb8] sm:$0xf] %vm1255_vm2, %v14015_v62  ;;  %v19482_v49 = vrot.slane %v7824_v63, 7  ;;  %v7833_v28 = vshrl.u32 %v19461_v10, 16  ;;  %14814 = vmatpush3.bf16.msra.mxu1 %v15187_v57  ;;  %v21790_v62 = vld [vmem:[#allocation61_spill] sm:$0xff] }
 0x566   : > { %v15490_v11 = vpop.eup %15489  ;;  %v7424_v50 = vmul.f32 %v15488_v61, %v21787_v21  ;;  %v14018_v31 = vpack.c.bf16 %v7422_v37, %v7422_v37  ;;  %7581 = vst.msk [vmem:[#allocation3 + $0xc4] sm:$0xf] %vm1255_vm2, %v14016_v35  ;;  %14780 = vmatmul.mubr.msk.bf16.vlgmr.msra.gmra.mxu0 %vm465_vm1, %v13652_v15  ;;  %v7836_v33 = vshll.u32 %v19461_v10, 16  ;;  %v13620_v46 = vcombine.low %v19445_v39, %v19461_v10  ;;  %v7718_v44 = vld [vmem:[#allocation3 + $0x48] sm:$0xf] }
 0x567   : > { %v15492_v9 = vpop.eup %15491  ;;  %v7425_v27 = vmul.f32 %v15490_v11, %v21788_v41  ;;  %v14019_v48 = vpack.c.bf16 %v7423_v38, %v7423_v38  ;;  %7582 = vst.msk [vmem:[#allocation3 + $0xc8] sm:$0xf] %vm1255_vm2, %v14017_v60  ;;  %14883 = vmatprep.subr.bf16.mxu1 %v19466_v1  ;;  %v7835_v47 = vrot.slane %v7833_v28, 7  ;;  %v7807_v43 = vor.u32 %v7805_v8, %v19442_v30  ;;  %v21791_v35 = vld [vmem:[#allocation20_spill] sm:$0xff] }
 0x568   : > { %v15494_v22 = vpop.eup %15493  ;;  %v7426_v36 = vmul.f32 %v15492_v9, %v21789_v59  ;;  %v14020_v57 = vpack.c.bf16 %v7424_v50, %v7424_v50  ;;  %7583 = vst.msk [vmem:[#allocation3 + $0xd4] sm:$0xf] %vm1255_vm2, %v14018_v31  ;;  %14848 = vmatpush3.bf16.msra.mxu0 %v19148_v6  ;;  %14748 = vmatmul.mubr.msk.bf16.gmra.mxu1 %vm465_vm1, %v13620_v46  ;;  %v7809_v39 = vrot.slane %v19442_v30, 4  ;;  %v7846_v8 = vshrl.u32 %v7717_v0, 16  ;;  %v21792_v61 = vld [vmem:[#allocation60_spill] sm:$0xff] }
 0x569   : > { %v15496_v2 = vpop.eup %15495  ;;  %v7427_v17 = vmul.f32 %v15494_v22, %v21790_v62  ;;  %v14021_v20 = vpack.c.bf16 %v7425_v27, %v7425_v27  ;;  %7584 = vst.msk [vmem:[#allocation3 + $0xd8] sm:$0xf] %vm1255_vm2, %v14019_v48  ;;  %v7816_v10 = vor.u32 %v7814_v32, %v7813_v19  ;;  %14849 = vmatprep.subr.bf16.mxu0 %v15197_v5  ;;  %v7849_v32 = vshll.u32 %v7717_v0, 16  ;;  %v7720_v19 = vld [vmem:[#allocation3 + $0x54] sm:$0xf] }
 0x56a   : > { %v15498_v37 = vpop.eup %15497  ;;  %v7428_v26 = vmul.f32 %v15496_v2, %v21791_v35  ;;  %v14022_v63 = vpack.c.bf16 %v7426_v36, %v7426_v36  ;;  %7585 = vst.msk [vmem:[#allocation3 + $0xe4] sm:$0xf] %vm1255_vm2, %v14020_v57  ;;  %v7808_v6 = vsel %vm16088_vm8, %v19153_v12, %v7807_v43  ;;  %v7848_v11 = vrot.slane %v7846_v8, 7  ;;  %v7721_v50 = vld [vmem:[#allocation3 + $0x58] sm:$0xf] }
 0x56b   : > { %v7429_v18 = vmul.f32 %v15498_v37, %v21792_v61  ;;  %v14023_v38 = vpack.c.bf16 %v7427_v17, %v7427_v17  ;;  %7586 = vst.msk [vmem:[#allocation3 + $0xe8] sm:$0xf] %vm1255_vm2, %v14021_v20  ;;  %v7817_v30 = vsel %vm16088_vm8, %v7809_v39, %v7816_v10  ;;  %v7855_v21 = vshrl.u32 %v7718_v44, 16  ;;  %v7723_v22 = vld [vmem:[#allocation3 + $0x64] sm:$0xf] }
 0x56c   : > { %v14024_v60 = vpack.c.bf16 %v7428_v26, %v7428_v26  ;;  %7587 = vst.msk [vmem:[#allocation3 + $0xf4] sm:$0xf] %vm1255_vm2, %v14022_v63  ;;  %v13653_v15 = vcombine.low %v7808_v6, %v7817_v30  ;;  %14850 = vmatpush3.bf16.msra.mxu0 %v15197_v5  ;;  %v7858_v31 = vshll.u32 %v7718_v44, 16  ;;  %v13621_v28 = vcombine.low %v7717_v0, %v7718_v44  ;;  %v7724_v36 = vld [vmem:[#allocation3 + $0x68] sm:$0xf] }
 0x56d   : > { %v14025_v12 = vpack.c.bf16 %v7429_v18, %v7429_v18  ;;  %7588 = vst.msk [vmem:[#allocation3 + $0xf8] sm:$0xf] %vm1255_vm2, %v14023_v38  ;;  %v7829_v9 = vor.u32 %v7827_v58, %v19482_v49  ;;  %v7857_v41 = vrot.slane %v7855_v21, 7  ;;  %v7831_v27 = vrot.slane %v19482_v49, 4  ;;  %v7726_v44 = vld [vmem:[#allocation3 + $0x74] sm:$0xf] }
 0x56e   : > { %7589 = vst.msk [vmem:[#allocation3 + $0x104] sm:$0xf] %vm1255_vm2, %v14024_v60  ;;  %14783 = vmatprep.mubr.msk.bf16.mxu0 %vm465_vm1, %v13653_v15  ;;  %v7838_v48 = vor.u32 %v7836_v33, %v7835_v47  ;;  %v7868_v46 = vshrl.u32 %v7720_v19, 16  ;;  %14751 = vmatprep.mubr.msk.bf16.mxu1 %vm465_vm1, %v13621_v28  ;;  %v7871_v0 = vshll.u32 %v7720_v19, 16  ;;  %v7877_v58 = vshrl.u32 %v7721_v50, 16 }
 0x56f   : > { %7590 = vst.msk [vmem:[#allocation3 + $0x108] sm:$0xf] %vm1255_vm2, %v14025_v12  ;;  %v7830_v5 = vsel %vm16088_vm8, %v19155_v56, %v7829_v9  ;;  %v7880_v59 = vshll.u32 %v7721_v50, 16  ;;  %v13622_v49 = vcombine.low %v7720_v19, %v7721_v50  ;;  %v7851_v33 = vor.u32 %v7849_v32, %v7848_v11  ;;  %v7727_v6 = vld [vmem:[#allocation3 + $0x78] sm:$0xf] }
 0x570   : > { %v7839_v57 = vsel %vm16088_vm8, %v7831_v27, %v7838_v48  ;;  %v7870_v43 = vrot.slane %v7868_v46, 7  ;;  %v7879_v2 = vrot.slane %v7877_v58, 7  ;;  %v7853_v62 = vrot.slane %v7848_v11, 4  ;;  %v7729_v60 = vld [vmem:[#allocation3 + $0x84] sm:$0xf] }
 0x571   : > { %v13654_v47 = vcombine.low %v7830_v5, %v7839_v57  ;;  %v7860_v17 = vor.u32 %v7858_v31, %v7857_v41  ;;  %14752 = vmatmul.mubr.msk.bf16.gmra.mxu1 %vm465_vm1, %v13622_v49  ;;  %v7852_v56 = vsel %vm16088_vm8, %v19160_v42, %v7851_v33  ;;  %v7890_v20 = vshrl.u32 %v7723_v22, 16  ;;  %v7730_v12 = vld [vmem:[#allocation3 + $0x88] sm:$0xf] }
 0x572   : > { %v7893_v39 = vshll.u32 %v7723_v22, 16  ;;  %v7899_v10 = vshrl.u32 %v7724_v36, 16  ;;  %v7902_v35 = vshll.u32 %v7724_v36, 16  ;;  %v13623_v26 = vcombine.low %v7723_v22, %v7724_v36  ;;  %v7732_v22 = vld [vmem:[#allocation3 + $0x94] sm:$0xf] }
 0x573   : > { %14784 = vmatmul.mubr.msk.bf16.gmra.mxu0 %vm465_vm1, %v13654_v47  ;;  %v7861_v37 = vsel %vm16088_vm8, %v7853_v62, %v7860_v17  ;;  %v7873_v63 = vor.u32 %v7871_v0, %v7870_v43  ;;  %v7892_v61 = vrot.slane %v7890_v20, 7  ;;  %v7875_v38 = vrot.slane %v7870_v43, 4  ;;  %v7733_v36 = vld [vmem:[#allocation3 + $0x98] sm:$0xf]  ;;  %v7735_v17 = vld [vmem:[#allocation3 + $0xa4] sm:$0xf] }
 0x574   : > { %v13655_v8 = vcombine.low %v7852_v56, %v7861_v37  ;;  %v7901_v18 = vrot.slane %v7899_v10, 7  ;;  %14755 = vmatprep.mubr.msk.bf16.mxu1 %vm465_vm1, %v13623_v26  ;;  %v7882_v30 = vor.u32 %v7880_v59, %v7879_v2  ;;  %v7912_v32 = vshrl.u32 %v7726_v44, 16 }
 0x575   : > { %v7874_v42 = vsel %vm16088_vm8, %v19162_v13, %v7873_v63  ;;  %v7915_v19 = vshll.u32 %v7726_v44, 16  ;;  %v7921_v15 = vshrl.u32 %v7727_v6, 16  ;;  %v7924_v11 = vshll.u32 %v7727_v6, 16 }
 0x576   : > { %14787 = vmatprep.mubr.msk.bf16.mxu0 %vm465_vm1, %v13655_v8  ;;  %v13624_v21 = vcombine.low %v7726_v44, %v7727_v6  ;;  %v7895_v50 = vor.u32 %v7893_v39, %v7892_v61  ;;  %v7883_v31 = vsel %vm16088_vm8, %v7875_v38, %v7882_v30  ;;  %v7914_v28 = vrot.slane %v7912_v32, 7  ;;  %v7736_v44 = vld [vmem:[#allocation3 + $0xa8] sm:$0xf] }
 0x577   : > { %v7897_v9 = vrot.slane %v7892_v61, 4  ;;  %v7904_v41 = vor.u32 %v7902_v35, %v7901_v18  ;;  %v13656_v27 = vcombine.low %v7874_v42, %v7883_v31  ;;  %v7923_v48 = vrot.slane %v7921_v15, 7  ;;  %v21793_v38 = vld [vmem:[#allocation16_spill] sm:$0xff] }
 0x578   : > { %v7896_v13 = vsel %vm16088_vm8, %v19229_v23, %v7895_v50  ;;  %v7934_v46 = vshrl.u32 %v7729_v60, 16  ;;  %v7937_v0 = vshll.u32 %v7729_v60, 16  ;;  %v7943_v58 = vshrl.u32 %v7730_v12, 16  ;;  %v7739_v50 = vld [vmem:[#allocation3 + $0xb8] sm:$0xf] }
 0x579   : > { %v7905_v5 = vsel %vm16088_vm8, %v7897_v9, %v7904_v41  ;;  %v7946_v59 = vshll.u32 %v7730_v12, 16  ;;  %14756 = vmatmul.mubr.msk.bf16.gmra.mxu1 %vm465_vm1, %v13624_v21  ;;  %v13625_v49 = vcombine.low %v7729_v60, %v7730_v12  ;;  %v7917_v33 = vor.u32 %v7915_v19, %v7914_v28  ;;  %v7738_v19 = vld [vmem:[#allocation3 + $0xb4] sm:$0xf] }
 0x57a   : > { %v13657_v57 = vcombine.low %v7896_v13, %v7905_v5  ;;  %v7936_v43 = vrot.slane %v7934_v46, 7  ;;  %v7945_v47 = vrot.slane %v7943_v58, 7  ;;  %v7919_v2 = vrot.slane %v7914_v28, 4  ;;  %v21794_v41 = vld [vmem:[#allocation49_spill] sm:$0xff] }
 0x57b   : > { %14788 = vmatmul.mubr.msk.bf16.gmra.mxu0 %vm465_vm1, %v13656_v27  ;;  %v7926_v23 = vor.u32 %v7924_v11, %v7923_v48  ;;  %v7956_v62 = vshrl.u32 %v7732_v22, 16  ;;  %14759 = vmatprep.mubr.msk.bf16.mxu1 %vm465_vm1, %v13625_v49  ;;  %v7918_v56 = vsel %vm16088_vm8, %v19236_v40, %v7917_v33  ;;  %v7959_v20 = vshll.u32 %v7732_v22, 16 }
 0x57c   : > { %14791 = vmatprep.mubr.msk.bf16.mxu0 %vm465_vm1, %v13657_v57  ;;  %v7965_v39 = vshrl.u32 %v7733_v36, 16  ;;  %v7968_v10 = vshll.u32 %v7733_v36, 16  ;;  %v13626_v26 = vcombine.low %v7732_v22, %v7733_v36  ;;  %v7939_v63 = vor.u32 %v7937_v0, %v7936_v43  ;;  %v7741_v22 = vld [vmem:[#allocation3 + $0xc4] sm:$0xf]  ;;  %v7742_v36 = vld [vmem:[#allocation3 + $0xc8] sm:$0xf] }
 0x57d   : > { %v7927_v37 = vsel %vm16088_vm8, %v7919_v2, %v7926_v23  ;;  %v7958_v35 = vrot.slane %v7956_v62, 7  ;;  %v7941_v61 = vrot.slane %v7936_v43, 4  ;;  %v7948_v18 = vor.u32 %v7946_v59, %v7945_v47  ;;  %v21795_v23 = vld [vmem:[#allocation44_spill] sm:$0xff] }
 0x57e   : > { %v13658_v6 = vcombine.low %v7918_v56, %v7927_v37  ;;  %v7967_v8 = vrot.slane %v7965_v39, 7  ;;  %v7940_v42 = vsel %vm16088_vm8, %v21793_v38, %v7939_v63  ;;  %v7978_v30 = vshrl.u32 %v7735_v17, 16  ;;  %v19567_v56 = vld [vmem:[#allocation3 + $0xd4] sm:$0xf]  ;;  %v7745_v37 = vld [vmem:[#allocation3 + $0xd8] sm:$0xf] }
 0x57f   : > { %v7981_v40 = vshll.u32 %v7735_v17, 16  ;;  %v7987_v32 = vshrl.u32 %v7736_v44, 16  ;;  %v7949_v60 = vsel %vm16088_vm8, %v7941_v61, %v7948_v18  ;;  %v7990_v15 = vshll.u32 %v7736_v44, 16 }
 0x580   : > { %v13627_v11 = vcombine.low %v7735_v17, %v7736_v44  ;;  %v7961_v21 = vor.u32 %v7959_v20, %v7958_v35  ;;  %v13659_v12 = vcombine.low %v7940_v42, %v7949_v60  ;;  %v7980_v31 = vrot.slane %v7978_v30, 7  ;;  %v7747_v42 = vld [vmem:[#allocation3 + $0xe4] sm:$0xf]  ;;  %v21796_v30 = vld [vmem:[#allocation26_spill] sm:$0xff] }
 0x581   : > { %v7989_v28 = vrot.slane %v7987_v32, 7  ;;  %v7963_v9 = vrot.slane %v7958_v35, 4  ;;  %14760 = vmatmul.mubr.msk.bf16.gmra.mxu1 %vm465_vm1, %v13626_v26  ;;  %v7970_v48 = vor.u32 %v7968_v10, %v7967_v8  ;;  %v8000_v13 = vshrl.u32 %v7738_v19, 16 }
 0x582   : > { %v7962_v27 = vsel %vm16088_vm8, %v21794_v41, %v7961_v21  ;;  %v8003_v46 = vshll.u32 %v7738_v19, 16  ;;  %14763 = vmatprep.mubr.msk.bf16.mxu1 %vm465_vm1, %v13627_v11  ;;  %v8009_v5 = vshrl.u32 %v7739_v50, 16  ;;  %v8012_v0 = vshll.u32 %v7739_v50, 16 }
 0x583   : > { %14792 = vmatmul.mubr.msk.bf16.gmra.mxu0 %vm465_vm1, %v13658_v6  ;;  %v13628_v58 = vcombine.low %v7738_v19, %v7739_v50  ;;  %v7983_v59 = vor.u32 %v7981_v40, %v7980_v31  ;;  %v7971_v57 = vsel %vm16088_vm8, %v7963_v9, %v7970_v48  ;;  %v8002_v43 = vrot.slane %v8000_v13, 7  ;;  %v21797_v48 = vld [vmem:[#allocation52_spill] sm:$0xff] }
 0x584   : > { %14795 = vmatprep.mubr.msk.bf16.mxu0 %vm465_vm1, %v13659_v12  ;;  %v7985_v49 = vrot.slane %v7980_v31, 4  ;;  %v7992_v33 = vor.u32 %v7990_v15, %v7989_v28  ;;  %v13660_v47 = vcombine.low %v7962_v27, %v7971_v57  ;;  %v8011_v2 = vrot.slane %v8009_v5, 7  ;;  %v7748_v15 = vld [vmem:[#allocation3 + $0xe8] sm:$0xf]  ;;  %v19583_v31 = vld [vmem:[%s21431_s10 + $0x58] sm:$0xff]  }
 0x585   : > { %v7984_v62 = vsel %vm16088_vm8, %v21795_v23, %v7983_v59  ;;  %v8022_v17 = vshrl.u32 %v7741_v22, 16  ;;  %v8025_v39 = vshll.u32 %v7741_v22, 16  ;;  %v8031_v10 = vshrl.u32 %v7742_v36, 16  ;;  %14919 = vmatprep.subr.bf16.mxu0 %v19583_v31  ;;  %v21798_v23 = vld [vmem:[#allocation63_spill] sm:$0xff] }
 0x586   : > { %v7993_v20 = vsel %vm16088_vm8, %v7985_v49, %v7992_v33  ;;  %v8034_v44 = vshll.u32 %v7742_v36, 16  ;;  %v13629_v63 = vcombine.low %v7741_v22, %v7742_v36  ;;  %v8005_v6 = vor.u32 %v8003_v46, %v8002_v43 }
 0x587   : > { %v13661_v35 = vcombine.low %v7984_v62, %v7993_v20  ;;  %v8024_v26 = vrot.slane %v8022_v17, 7  ;;  %v8033_v8 = vrot.slane %v8031_v10, 7  ;;  %v8007_v61 = vrot.slane %v8002_v43, 4  ;;  %v7751_v43 = vld [vmem:[#allocation3 + $0xf8] sm:$0xf] }
 0x588   : > { %v8014_v18 = vor.u32 %v8012_v0, %v8011_v2  ;;  %v8044_v38 = vshrl.u32 %v19567_v56, 16  ;;  %v8006_v40 = vsel %vm16088_vm8, %v21796_v30, %v8005_v6  ;;  %v8047_v32 = vshll.u32 %v19567_v56, 16  ;;  %v19591_v0 = vld [vmem:[#allocation3 + $0xf4] sm:$0xf] }
 0x589   : > { %v8053_v19 = vshrl.u32 %v7745_v37, 16  ;;  %v8056_v60 = vshll.u32 %v7745_v37, 16  ;;  %14764 = vmatmul.mubr.msk.bf16.gmra.mxu1 %vm465_vm1, %v13628_v58  ;;  %v13630_v50 = vcombine.low %v19567_v56, %v7745_v37  ;;  %v8027_v12 = vor.u32 %v8025_v39, %v8024_v26  ;;  %v8685_v39 = vld [vmem:[#allocation3 + $0x14] sm:$0xf] }
 0x58a   : > { %v8015_v11 = vsel %vm16088_vm8, %v8007_v61, %v8014_v18  ;;  %v8046_v21 = vrot.slane %v8044_v38, 7  ;;  %14767 = vmatprep.mubr.msk.bf16.mxu1 %vm465_vm1, %v13629_v63  ;;  %v8029_v41 = vrot.slane %v8024_v26, 4  ;;  %v8036_v27 = vor.u32 %v8034_v44, %v8033_v8  ;;  %v8686_v61 = vld [vmem:[#allocation3 + $0x18] sm:$0xf] }
 0x58b   : > { %14796 = vmatmul.mubr.msk.bf16.gmra.mxu0 %vm465_vm1, %v13660_v47  ;;  %v13662_v28 = vcombine.low %v8006_v40, %v8015_v11  ;;  %v8055_v9 = vrot.slane %v8053_v19, 7  ;;  %v8028_v13 = vsel %vm16088_vm8, %v21797_v48, %v8027_v12  ;;  %v8066_v46 = vshrl.u32 %v7747_v42, 16 }
 0x58c   : > { %14799 = vmatprep.mubr.msk.bf16.mxu0 %vm465_vm1, %v13661_v35  ;;  %v8069_v22 = vshll.u32 %v7747_v42, 16  ;;  %v8075_v5 = vshrl.u32 %v7748_v15, 16  ;;  %v8037_v58 = vsel %vm16088_vm8, %v8029_v41, %v8036_v27  ;;  %v8078_v59 = vshll.u32 %v7748_v15, 16  ;;  %v21800_v27 = vld [vmem:[#allocation40_spill] sm:$0xff] }
 0x58d   : > { %v13631_v36 = vcombine.low %v7747_v42, %v7748_v15  ;;  %v8049_v57 = vor.u32 %v8047_v32, %v8046_v21  ;;  %v13663_v49 = vcombine.low %v8028_v13, %v8037_v58  ;;  %v8068_v33 = vrot.slane %v8066_v46, 7  ;;  %v21799_v42 = vld [vmem:[#allocation62_spill] sm:$0xff]  ;;  %v9420_v32 = vld [vmem:[#allocation3 + $0x14] sm:$0xf] }
 0x58e   : > { %v8077_v47 = vrot.slane %v8075_v5, 7  ;;  %v8051_v2 = vrot.slane %v8046_v21, 4  ;;  %v8058_v17 = vor.u32 %v8056_v60, %v8055_v9  ;;  %v8088_v56 = vshrl.u32 %v19591_v0, 16  ;;  %v9421_v21 = vld [vmem:[#allocation3 + $0x18] sm:$0xf] }
 0x58f   : > { %v8050_v62 = vsel %vm16088_vm8, %v21798_v23, %v8049_v57  ;;  %v8091_v20 = vshll.u32 %v19591_v0, 16  ;;  %v8097_v10 = vshrl.u32 %v7751_v43, 16  ;;  %v8100_v44 = vshll.u32 %v7751_v43, 16 }
 0x590   : > { %v13632_v37 = vcombine.low %v19591_v0, %v7751_v43  ;;  %v8071_v35 = vor.u32 %v8069_v22, %v8068_v33  ;;  %v8059_v26 = vsel %vm16088_vm8, %v8051_v2, %v8058_v17  ;;  %v8090_v63 = vrot.slane %v8088_v56, 7  ;;  %v8688_v22 = vld [vmem:[#allocation3 + $0x24] sm:$0xf] }
 0x591   : > { %v8073_v6 = vrot.slane %v8068_v33, 4  ;;  %v8080_v8 = vor.u32 %v8078_v59, %v8077_v47  ;;  %14768 = vmatmul.mubr.msk.bf16.gmra.mxu1 %vm465_vm1, %v13630_v50  ;;  %v13664_v18 = vcombine.low %v8050_v62, %v8059_v26  ;;  %v8099_v38 = vrot.slane %v8097_v10, 7  ;;  %v8689_v33 = vld [vmem:[#allocation3 + $0x28] sm:$0xf]  ;;  %v9423_v10 = vld [vmem:[#allocation3 + $0x24] sm:$0xf] }
 0x592   : > { %v8072_v30 = vsel %vm16088_vm8, %v21799_v42, %v8071_v35  ;;  %v8755_v40 = vshrl.u32 %v8685_v39, 16  ;;  %14771 = vmatprep.mubr.msk.bf16.mxu1 %vm465_vm1, %v13631_v36  ;;  %v8093_v60 = vor.u32 %v8091_v20, %v8090_v63  ;;  %v8095_v15 = vrot.slane %v8090_v63, 4 }
 0x593   : > { %14800 = vmatmul.mubr.msk.bf16.gmra.mxu0 %vm465_vm1, %v13662_v28  ;;  %v8081_v19 = vsel %vm16088_vm8, %v8073_v6, %v8080_v8  ;;  %v8758_v11 = vshll.u32 %v8685_v39, 16  ;;  %v8102_v12 = vor.u32 %v8100_v44, %v8099_v38  ;;  %v8764_v41 = vshll.u32 %v8686_v61, 16 }
 0x594   : > { %14803 = vmatprep.mubr.msk.bf16.mxu0 %vm465_vm1, %v13663_v49  ;;  %v13665_v50 = vcombine.low %v8072_v30, %v8081_v19  ;;  %v8757_v9 = vrot.slane %v8755_v40, 4  ;;  %v8094_v48 = vsel %vm16088_vm8, %v21800_v27, %v8093_v60  ;;  %v8768_v13 = vshrl.u32 %v8686_v61, 16  ;;  %v21801_v61 = vld [vmem:[#allocation42_spill] sm:$0xff]  ;;  %v9424_v30 = vld [vmem:[#allocation3 + $0x28] sm:$0xf] }
 0x595   : > { %v8760_v28 = vrot.slane %v8758_v11, 5  ;;  %v9473_v46 = vshrl.u32 %v9420_v32, 16  ;;  %v8103_v5 = vsel %vm16088_vm8, %v8095_v15, %v8102_v12  ;;  %v8766_v0 = vrot.slane %v8764_v41, 5  ;;  %v8691_v19 = vld [vmem:[#allocation3 + $0x34] sm:$0xf] }
 0x596   : > { %v9476_v58 = vshll.u32 %v9420_v32, 16  ;;  %v9482_v59 = vshrl.u32 %v9421_v21, 16  ;;  %v13666_v36 = vcombine.low %v8094_v48, %v8103_v5  ;;  %v8770_v43 = vrot.slane %v8768_v13, 4  ;;  %v8692_v27 = vld [vmem:[#allocation3 + $0x38] sm:$0xf] }
 0x597   : > { %v8761_v57 = vor.u32 %v8760_v28, %v8757_v9  ;;  %v9475_v49 = vrot.slane %v9473_v46, 7  ;;  %v9485_v2 = vshll.u32 %v9421_v21, 16  ;;  %v8779_v23 = vshrl.u32 %v8688_v22, 16  ;;  %v9426_v46 = vld [vmem:[#allocation3 + $0x34] sm:$0xf] }
 0x598   : > { %v9484_v47 = vrot.slane %v9482_v59, 7  ;;  %v8782_v62 = vshll.u32 %v8688_v22, 16  ;;  %v8771_v56 = vor.u32 %v8770_v43, %v8766_v0  ;;  %v8788_v63 = vshll.u32 %v8689_v33, 16 }
 0x599   : > { %v8762_v17 = vrot.slane %v8761_v57, 4  ;;  %v9478_v20 = vor.u32 %v9476_v58, %v9475_v49  ;;  %v9480_v39 = vrot.slane %v9475_v49, 4  ;;  %14772 = vmatmul.mubr.msk.bf16.gmra.mxu1 %vm465_vm1, %v13632_v37  ;;  %v8781_v35 = vrot.slane %v8779_v23, 4  ;;  %v9427_v23 = vld [vmem:[#allocation3 + $0x38] sm:$0xf] }
 0x59a   : > { %v9487_v44 = vor.u32 %v9485_v2, %v9484_v47  ;;  %v8784_v26 = vrot.slane %v8782_v62, 5  ;;  %14815 = vmatprep.mubr.msk.bf16.mxu1 %vm465_vm1, %v19315_v29  ;;  %v8772_v8 = vrot.slane %v8771_v56, 4  ;;  %v8792_v42 = vshrl.u32 %v8689_v33, 16 }
 0x59b   : > { %14804 = vmatmul.mubr.msk.bf16.gmra.mxu0 %vm465_vm1, %v13664_v18  ;;  %v8767_v6 = vsel %vm16852_vm13, %v8762_v17, %v8766_v0  ;;  %v9479_v38 = vsel %vm16088_vm8, %v21801_v61, %v9478_v20  ;;  %v8790_v18 = vrot.slane %v8788_v63, 5  ;;  %v9495_v32 = vshrl.u32 %v9423_v10, 16  ;;  %v8695_v63 = vld [vmem:[#allocation3 + $0x48] sm:$0xf] }
 0x59c   : > { %14807 = vmatprep.mubr.msk.bf16.mxu0 %vm465_vm1, %v13665_v50  ;;  %v9488_v37 = vsel %vm16088_vm8, %v9480_v39, %v9487_v44  ;;  %v8785_v40 = vor.u32 %v8784_v26, %v8781_v35  ;;  %v8777_v29 = vsel %vm16852_vm13, %v8772_v8, %v19348_v34  ;;  %v8794_v15 = vrot.slane %v8792_v42, 4  ;;  %v15198_v34 = vld [vmem:[%s21431_s10 + $0x40] sm:$0xff]  }
 0x59d   : > { %v13735_v60 = vcombine.low %v9479_v38, %v9488_v37  ;;  %v9498_v11 = vshll.u32 %v9423_v10, 16  ;;  %v13686_v21 = vcombine.low %v8767_v6, %v8777_v29  ;;  %v9497_v9 = vrot.slane %v9495_v32, 7  ;;  %v8694_v10 = vld [vmem:[#allocation3 + $0x44] sm:$0xf]  ;;  %v9430_v29 = vld [vmem:[#allocation3 + $0x48] sm:$0xf] }
 0x59e   : > { %v8786_v12 = vrot.slane %v8785_v40, 4  ;;  %v9504_v41 = vshrl.u32 %v9424_v30, 16  ;;  %v8795_v50 = vor.u32 %v8794_v15, %v8790_v18  ;;  %v9507_v48 = vshll.u32 %v9424_v30, 16  ;;  %v9429_v37 = vld [vmem:[#allocation3 + $0x44] sm:$0xf] }
 0x59f   : > { %v8803_v28 = vshrl.u32 %v8691_v19, 16  ;;  %v8806_v13 = vshll.u32 %v8691_v19, 16  ;;  %v9500_v5 = vor.u32 %v9498_v11, %v9497_v9  ;;  %v9502_v0 = vrot.slane %v9497_v9, 4 }
 0x5a0   : > { %v8791_v22 = vsel %vm16852_vm13, %v8786_v12, %v8790_v18  ;;  %v9506_v58 = vrot.slane %v9504_v41, 7  ;;  %v8796_v59 = vrot.slane %v8795_v50, 4  ;;  %v8812_v49 = vshll.u32 %v8692_v27, 16  ;;  %v15204_v50 = vld [vmem:[%s21431_s10 + $0x50] sm:$0xff]  }
 0x5a1   : > { %v8805_v57 = vrot.slane %v8803_v28, 4  ;;  %v8808_v43 = vrot.slane %v8806_v13, 5  ;;  %14816 = vmatmul.mubr.msk.bf16.vlgmr.msra.gmra.mxu1 %vm465_vm1, %v13686_v21  ;;  %v9501_v33 = vsel %vm16088_vm8, %v19318_v25, %v9500_v5  ;;  %v8816_v2 = vshrl.u32 %v8692_v27, 16 }
 0x5a2   : > { %v9509_v47 = vor.u32 %v9507_v48, %v9506_v58  ;;  %v9517_v62 = vshrl.u32 %v9426_v46, 16  ;;  %14884 = vmatpush3.bf16.msra.mxu1 %v19466_v1  ;;  %v8801_v17 = vsel %vm16852_vm13, %v8796_v59, %v19364_v3  ;;  %v8814_v20 = vrot.slane %v8812_v49, 5  ;;  %v15201_v1 = vld [vmem:[%s21431_s10 + $0x68] sm:$0xff]  }
 0x5a3   : > { %14808 = vmatmul.mubr.msk.bf16.gmra.mxu0 %vm465_vm1, %v13666_v36  ;;  %v8809_v56 = vor.u32 %v8808_v43, %v8805_v57  ;;  %v9520_v39 = vshll.u32 %v9426_v46, 16  ;;  %v13687_v44 = vcombine.low %v8791_v22, %v8801_v17  ;;  %v8818_v35 = vrot.slane %v8816_v2, 4  ;;  %14885 = vmatprep.subr.bf16.mxu1 %v15198_v34  ;;  %v8697_v22 = vld [vmem:[#allocation3 + $0x54] sm:$0xf] }
 0x5a4   : > { %14851 = vmatprep.mubr.msk.bf16.mxu0 %vm465_vm1, %v13735_v60  ;;  %v9510_v25 = vsel %vm16088_vm8, %v9502_v0, %v9509_v47  ;;  %v9519_v26 = vrot.slane %v9517_v62, 7  ;;  %v9526_v6 = vshrl.u32 %v9427_v23, 16  ;;  %v9529_v8 = vshll.u32 %v9427_v23, 16 }
 0x5a5   : > { %v13736_v36 = vcombine.low %v9501_v33, %v9510_v25  ;;  %v8810_v3 = vrot.slane %v8809_v56, 4  ;;  %14819 = vmatprep.mubr.msk.bf16.mxu1 %vm465_vm1, %v13687_v44  ;;  %v8819_v61 = vor.u32 %v8818_v35, %v8814_v20  ;;  %v8827_v30 = vshrl.u32 %v8694_v10, 16  ;;  %v9433_v35 = vld [vmem:[#allocation3 + $0x58] sm:$0xf] }
 0x5a6   : > { %v9522_v38 = vor.u32 %v9520_v39, %v9519_v26  ;;  %v9524_v42 = vrot.slane %v9519_v26, 4  ;;  %v9528_v18 = vrot.slane %v9526_v6, 7  ;;  %v8830_v32 = vshll.u32 %v8694_v10, 16  ;;  %14886 = vmatpush3.bf16.msra.mxu1 %v15198_v34  ;;  %v8698_v34 = vld [vmem:[#allocation3 + $0x58] sm:$0xf]  ;;  %v21802_v10 = vld [vmem:[#allocation51_spill] sm:$0xff] }
 0x5a7   : > { %v8815_v40 = vsel %vm16852_vm13, %v8810_v3, %v8814_v20  ;;  %v8836_v19 = vshll.u32 %v8695_v63, 16  ;;  %v8820_v60 = vrot.slane %v8819_v61, 4  ;;  %v8829_v11 = vrot.slane %v8827_v30, 4  ;;  %14955 = vmatprep.subr.bf16.mxu1 %v15201_v1  ;;  %v9432_v20 = vld [vmem:[#allocation3 + $0x54] sm:$0xf] }
 0x5a8   : > { %v9523_v15 = vsel %vm16088_vm8, %v19337_v14, %v9522_v38  ;;  %v8840_v21 = vshrl.u32 %v8695_v63, 16  ;;  %v9531_v12 = vor.u32 %v9529_v8, %v9528_v18  ;;  %v8832_v9 = vrot.slane %v8830_v32, 5  ;;  %v8700_v3 = vld [vmem:[#allocation3 + $0x64] sm:$0xf] }
 0x5a9   : > { %v8838_v41 = vrot.slane %v8836_v19, 5  ;;  %v9539_v27 = vshrl.u32 %v9429_v37, 16  ;;  %v8825_v48 = vsel %vm16852_vm13, %v8820_v60, %v19372_v4  ;;  %v9542_v13 = vshll.u32 %v9429_v37, 16 }
 0x5aa   : > { %v8842_v28 = vrot.slane %v8840_v21, 4  ;;  %v9548_v46 = vshrl.u32 %v9430_v29, 16  ;;  %v13688_v14 = vcombine.low %v8815_v40, %v8825_v48  ;;  %v9532_v5 = vsel %vm16088_vm8, %v9524_v42, %v9531_v12  ;;  %v8701_v42 = vld [vmem:[#allocation3 + $0x68] sm:$0xf] }
 0x5ab   : > { %14852 = vmatmul.mubr.msk.bf16.vlgmr.msra.gmra.mxu0 %vm465_vm1, %v13736_v36  ;;  %v8833_v0 = vor.u32 %v8832_v9, %v8829_v11  ;;  %v9541_v58 = vrot.slane %v9539_v27, 7  ;;  %v13737_v59 = vcombine.low %v9523_v15, %v9532_v5  ;;  %v9551_v49 = vshll.u32 %v9430_v29, 16 }
 0x5ac   : > { %v8843_v57 = vor.u32 %v8842_v28, %v8838_v41  ;;  %v9550_v43 = vrot.slane %v9548_v46, 7  ;;  %14920 = vmatpush3.bf16.msra.mxu0 %v19583_v31  ;;  %14820 = vmatmul.mubr.msk.bf16.gmra.mxu1 %vm465_vm1, %v13688_v14  ;;  %v8851_v2 = vshrl.u32 %v8697_v22, 16  ;;  %v8854_v17 = vshll.u32 %v8697_v22, 16  ;;  %v9436_v22 = vld [vmem:[#allocation3 + $0x68] sm:$0xf] }
 0x5ad   : > { %v8834_v4 = vrot.slane %v8833_v0, 4  ;;  %v9544_v33 = vor.u32 %v9542_v13, %v9541_v58  ;;  %v9546_v47 = vrot.slane %v9541_v58, 4  ;;  %14921 = vmatprep.subr.bf16.mxu0 %v15204_v50  ;;  %14855 = vmatprep.mubr.msk.bf16.mxu0 %vm465_vm1, %v13737_v59  ;;  %v8860_v56 = vshll.u32 %v8698_v34, 16 }
 0x5ae   : > { %v8844_v23 = vrot.slane %v8843_v57, 4  ;;  %v9553_v62 = vor.u32 %v9551_v49, %v9550_v43  ;;  %v8853_v44 = vrot.slane %v8851_v2, 4  ;;  %v8864_v25 = vshrl.u32 %v8698_v34, 16  ;;  %v8703_v34 = vld [vmem:[#allocation3 + $0x74] sm:$0xf] }
 0x5af   : > { %v8839_v39 = vsel %vm16852_vm13, %v8834_v4, %v8838_v41  ;;  %v9545_v31 = vsel %vm16088_vm8, %v21802_v10, %v9544_v33  ;;  %v8856_v1 = vrot.slane %v8854_v17, 5  ;;  %v8862_v36 = vrot.slane %v8860_v56, 5  ;;  %v8704_v4 = vld [vmem:[#allocation3 + $0x78] sm:$0xf]  ;;  %v8705_v56 = vld [vmem:[#allocation3 + $0x7c] sm:$0x1] }
 0x5b0   : > { %v8849_v26 = vsel %vm16852_vm13, %v8844_v23, %v19383_v54  ;;  %v9554_v63 = vsel %vm16088_vm8, %v9546_v47, %v9553_v62  ;;  %14922 = vmatpush3.bf16.msra.mxu0 %v15204_v50  ;;  %v8866_v61 = vrot.slane %v8864_v25, 4  ;;  %v9561_v38 = vshrl.u32 %v9432_v20, 16  ;;  %v9435_v50 = vld [vmem:[#allocation3 + $0x64] sm:$0xf] }
 0x5b1   : > { %v13689_v6 = vcombine.low %v8839_v39, %v8849_v26  ;;  %v13738_v8 = vcombine.low %v9545_v31, %v9554_v63  ;;  %v8857_v30 = vor.u32 %v8856_v1, %v8853_v44  ;;  %v9564_v37 = vshll.u32 %v9432_v20, 16  ;;  %v9438_v26 = vld [vmem:[#allocation3 + $0x74] sm:$0xf] }
 0x5b2   : > { %v9570_v40 = vshrl.u32 %v9433_v35, 16  ;;  %v9573_v18 = vshll.u32 %v9433_v35, 16  ;;  %v8867_v54 = vor.u32 %v8866_v61, %v8862_v36  ;;  %v9563_v32 = vrot.slane %v9561_v38, 7  ;;  %v9437_v35 = vld [vmem:[#allocation3 + $0x70] sm:$0x8] }
 0x5b3   : > { %14823 = vmatprep.mubr.msk.bf16.mxu1 %vm465_vm1, %v13689_v6  ;;  %14856 = vmatmul.mubr.msk.bf16.gmra.mxu0 %vm465_vm1, %v13738_v8  ;;  %v8875_v19 = vshrl.u32 %v8700_v3, 16  ;;  %v8878_v29 = vshll.u32 %v8700_v3, 16  ;;  %v8858_v60 = vrot.slane %v8857_v30, 4  ;;  %v8884_v11 = vshll.u32 %v8701_v42, 16 }
 0x5b4   : > { %v9572_v15 = vrot.slane %v9570_v40, 7  ;;  %v8888_v21 = vshrl.u32 %v8701_v42, 16  ;;  %v8868_v12 = vrot.slane %v8867_v54, 4  ;;  %v9566_v9 = vor.u32 %v9564_v37, %v9563_v32  ;;  %v19704_v42 = vld [vmem:[#allocation3 + $0x78] sm:$0xf] }
 0x5b5   : > { %v9568_v41 = vrot.slane %v9563_v32, 4  ;;  %v8877_v27 = vrot.slane %v8875_v19, 4  ;;  %v8863_v48 = vsel %vm16852_vm13, %v8858_v60, %v8862_v36  ;;  %v8880_v13 = vrot.slane %v8878_v29, 5  ;;  %v7677_v54 = vld [vmem:[#allocation3 + $0x8c] sm:$0x1] }
 0x5b6   : > { %v9575_v28 = vor.u32 %v9573_v18, %v9572_v15  ;;  %v8886_v46 = vrot.slane %v8884_v11, 5  ;;  %v8873_v14 = vsel %vm16852_vm13, %v8868_v12, %v19388_v55  ;;  %v9567_v5 = vsel %vm16088_vm8, %v19352_v7, %v9566_v9  ;;  %v8706_v32 = vld [vmem:[#allocation3 + $0x84] sm:$0xf]  ;;  %v8707_v9 = vld [vmem:[#allocation3 + $0x88] sm:$0xf] }
 0x5b7   : > { %v8890_v0 = vrot.slane %v8888_v21, 4  ;;  %v13724_v58 = vrot.slane %v9578_v53, 11  ;;  %v13690_v59 = vcombine.low %v8863_v48, %v8873_v14  ;;  %v8881_v43 = vor.u32 %v8880_v13, %v8877_v27 }
 0x5b8   : > { %v9576_v57 = vsel %vm16088_vm8, %v9568_v41, %v9575_v28  ;;  %v9583_v49 = vshrl.u32 %v9435_v50, 16  ;;  %v9586_v2 = vshll.u32 %v9435_v50, 16  ;;  %v9592_v55 = vshrl.u32 %v9436_v22, 16  ;;  %v9440_v28 = vld [vmem:[#allocation3 + $0x80] sm:$0x8] }
 0x5b9   : > { %v13739_v33 = vcombine.low %v9567_v5, %v9576_v57  ;;  %v8891_v47 = vor.u32 %v8890_v0, %v8886_v46  ;;  %14824 = vmatmul.mubr.msk.bf16.gmra.mxu1 %vm465_vm1, %v13690_v59  ;;  %v8882_v23 = vrot.slane %v8881_v43, 4  ;;  %v9595_v62 = vshll.u32 %v9436_v22, 16  ;;  %v19716_v5 = vld [vmem:[#allocation3 + $0x84] sm:$0xf] }
 0x5ba   : > { %v9585_v7 = vrot.slane %v9583_v49, 7  ;;  %v8899_v17 = vshrl.u32 %v8703_v34, 16  ;;  %v9594_v53 = vrot.slane %v9592_v55, 7  ;;  %v8902_v20 = vshll.u32 %v8703_v34, 16 }
 0x5bb   : > { %14859 = vmatprep.mubr.msk.bf16.mxu0 %vm465_vm1, %v13739_v33  ;;  %v8892_v52 = vrot.slane %v8891_v47, 4  ;;  %v8908_v39 = vshll.u32 %v8704_v4, 16  ;;  %v8887_v10 = vsel %vm16852_vm13, %v8882_v23, %v8886_v46  ;;  %v8912_v61 = vshrl.u32 %v8704_v4, 16  ;;  %v7680_v33 = vld [vmem:[#allocation3 + $0x9c] sm:$0x1] }
 0x5bc   : > { %v9588_v31 = vor.u32 %v9586_v2, %v9585_v7  ;;  %v9590_v44 = vrot.slane %v9585_v7, 4  ;;  %v8901_v25 = vrot.slane %v8899_v17, 4  ;;  %v9597_v1 = vor.u32 %v9595_v62, %v9594_v53  ;;  %v19722_v23 = vld [vmem:[#allocation3 + $0x88] sm:$0xf] }
 0x5bd   : > { %v8897_v63 = vsel %vm16852_vm13, %v8892_v52, %v19395_v51  ;;  %v8904_v36 = vrot.slane %v8902_v20, 5  ;;  %v8910_v3 = vrot.slane %v8908_v39, 5  ;;  %v8918_v38 = vshll.u32 %v8705_v56, 16  ;;  %v8709_v56 = vld [vmem:[#allocation3 + $0x94] sm:$0xf] }
 0x5be   : > { %v13691_v6 = vcombine.low %v8887_v10, %v8897_v63  ;;  %v9589_v8 = vsel %vm16088_vm8, %v13724_v58, %v9588_v31  ;;  %v9598_v30 = vsel %vm16088_vm8, %v9590_v44, %v9597_v1  ;;  %v9600_v40 = vshrl.u32 %v9437_v35, 16  ;;  %v8710_v44 = vld [vmem:[#allocation3 + $0x98] sm:$0xf]  ;;  %v9443_v1 = vld [vmem:[#allocation3 + $0x90] sm:$0x8] }
 0x5bf   : > { %v8905_v37 = vor.u32 %v8904_v36, %v8901_v25  ;;  %v9605_v18 = vshrl.u32 %v9438_v26, 16  ;;  %v13740_v51 = vcombine.low %v9589_v8, %v9598_v30  ;;  %v8914_v19 = vrot.slane %v8912_v61, 4 }
 0x5c0   : > { %14827 = vmatprep.mubr.msk.bf16.mxu1 %vm465_vm1, %v13691_v6  ;;  %v8920_v29 = vrot.slane %v8918_v38, 5  ;;  %v9608_v60 = vshll.u32 %v9438_v26, 16  ;;  %v13725_v11 = vrot.slane %v9600_v40, 11  ;;  %v9614_v12 = vshrl.u32 %v19704_v42, 16 }
 0x5c1   : > { %v8906_v15 = vrot.slane %v8905_v37, 4  ;;  %v9607_v21 = vrot.slane %v9605_v18, 7  ;;  %14860 = vmatmul.mubr.msk.bf16.gmra.mxu0 %vm465_vm1, %v13740_v51  ;;  %v8915_v41 = vor.u32 %v8914_v19, %v8910_v3  ;;  %v9617_v27 = vshll.u32 %v19704_v42, 16  ;;  %v19734_v18 = vld [vmem:[#allocation3 + $0x94] sm:$0xf] }
 0x5c2   : > { %v7678_v50 = vsel %vm16204_vm10, 0, %v7677_v54  ;;  %v8923_v48 = vshrl.u32 %v8706_v32, 16  ;;  %v9616_v14 = vrot.slane %v9614_v12, 7  ;;  %v8926_v34 = vshll.u32 %v8706_v32, 16  ;;  %v19740_v12 = vld [vmem:[#allocation3 + $0x98] sm:$0xf] }
 0x5c3   : > { %v8911_v13 = vsel %vm16852_vm13, %v8906_v15, %v8910_v3  ;;  %v9610_v46 = vor.u32 %v9608_v60, %v9607_v21  ;;  %v9612_v22 = vrot.slane %v9607_v21, 4  ;;  %7679 = vst [vmem:[#allocation3 + $0x8c] sm:$0x1] %v7678_v50  ;;  %v8916_v0 = vrot.slane %v8915_v41, 4 }
 0x5c4   : > { %v8925_v58 = vrot.slane %v8923_v48, 4  ;;  %v8932_v59 = vshll.u32 %v8707_v9, 16  ;;  %v9619_v43 = vor.u32 %v9617_v27, %v9616_v14  ;;  %v8936_v49 = vshrl.u32 %v8707_v9, 16 }
 0x5c5   : > { %v9611_v57 = vsel %vm16088_vm8, %v13725_v11, %v9610_v46  ;;  %v9622_v4 = vshrl.u32 %v9440_v28, 16  ;;  %v8921_v47 = vsel %vm16852_vm13, %v8916_v0, %v8920_v29  ;;  %v8928_v2 = vrot.slane %v8926_v34, 5  ;;  %v7683_v46 = vld [vmem:[#allocation3 + $0xac] sm:$0x1]  ;;  %v8712_v34 = vld [vmem:[#allocation3 + $0xa4] sm:$0xf] }
 0x5c6   : > { %v8934_v55 = vrot.slane %v8932_v59, 5  ;;  %v9627_v7 = vshrl.u32 %v19716_v5, 16  ;;  %v13692_v62 = vcombine.low %v8911_v13, %v8921_v47  ;;  %v9620_v17 = vsel %vm16088_vm8, %v9612_v22, %v9619_v43  ;;  %v8713_v59 = vld [vmem:[#allocation3 + $0xa8] sm:$0xf] }
 0x5c7   : > { %v8938_v52 = vrot.slane %v8936_v49, 4  ;;  %v13726_v53 = vrot.slane %v9622_v4, 11  ;;  %v13741_v20 = vcombine.low %v9611_v57, %v9620_v17  ;;  %v8929_v39 = vor.u32 %v8928_v2, %v8925_v58 }
 0x5c8   : > { %v9629_v10 = vrot.slane %v9627_v7, 7  ;;  %v9630_v31 = vshll.u32 %v19716_v5, 16  ;;  %14828 = vmatmul.mubr.msk.bf16.gmra.mxu1 %vm465_vm1, %v13692_v62  ;;  %v9636_v35 = vshrl.u32 %v19722_v23, 16  ;;  %v9639_v26 = vshll.u32 %v19722_v23, 16  ;;  %v9446_v62 = vld [vmem:[#allocation3 + $0xa0] sm:$0x8] }
 0x5c9   : > { %v8939_v25 = vor.u32 %v8938_v52, %v8934_v55  ;;  %v7681_v63 = vsel %vm16204_vm10, 0, %v7680_v33  ;;  %14863 = vmatprep.mubr.msk.bf16.mxu0 %vm465_vm1, %v13741_v20  ;;  %v8930_v3 = vrot.slane %v8929_v39, 4  ;;  %v8947_v61 = vshrl.u32 %v8709_v56, 16  ;;  %v19756_v20 = vld [vmem:[#allocation3 + $0xa4] sm:$0xf] }
 0x5ca   : > { %v8708_v36 = vld [vmem:[#allocation3 + $0x8c] sm:$0x1]  ;;  %v9632_v6 = vor.u32 %v9630_v31, %v9629_v10  ;;  %v9634_v8 = vrot.slane %v9629_v10, 4  ;;  %7682 = vst [vmem:[#allocation3 + $0x9c] sm:$0x1] %v7681_v63  ;;  %v9638_v37 = vrot.slane %v9636_v35, 7 }
 0x5cb   : > { %v8940_v38 = vrot.slane %v8939_v25, 4  ;;  %v8942_v30 = vshll.u32 %v8708_v36, 16  ;;  %v8950_v40 = vshll.u32 %v8709_v56, 16  ;;  %v8935_v54 = vsel %vm16852_vm13, %v8930_v3, %v8934_v55  ;;  %v19760_v63 = vld [vmem:[#allocation3 + $0xa8] sm:$0xf]  ;;  %v19765_v36 = vld [vmem:[%s21431_s10 + $0x78] sm:$0xff]  }
 0x5cc   : > { %v9633_v32 = vsel %vm16088_vm8, %v13726_v53, %v9632_v6  ;;  %v8949_v51 = vrot.slane %v8947_v61, 4  ;;  %v8956_v19 = vshll.u32 %v8710_v44, 16  ;;  %v9641_v60 = vor.u32 %v9639_v26, %v9638_v37  ;;  %14991 = vmatprep.subr.bf16.mxu0 %v19765_v36 }
 0x5cd   : > { %v8944_v29 = vrot.slane %v8942_v30, 5  ;;  %v8952_v15 = vrot.slane %v8950_v40, 5  ;;  %v8960_v11 = vshrl.u32 %v8710_v44, 16  ;;  %v9644_v9 = vshrl.u32 %v9443_v1, 16 }
 0x5ce   : > { %v8958_v21 = vrot.slane %v8956_v19, 5  ;;  %v9649_v41 = vshrl.u32 %v19734_v18, 16  ;;  %v9652_v27 = vshll.u32 %v19734_v18, 16  ;;  %v9642_v48 = vsel %vm16088_vm8, %v9634_v8, %v9641_v60 }
 0x5cf   : > { %v8945_v50 = vsel %vm16852_vm13, %v8940_v38, %v8944_v29  ;;  %v8953_v28 = vor.u32 %v8952_v15, %v8949_v51  ;;  %v8962_v13 = vrot.slane %v8960_v11, 4  ;;  %v13742_v14 = vcombine.low %v9633_v32, %v9642_v48  ;;  %v7686_v38 = vld [vmem:[#allocation3 + $0xbc] sm:$0x1]  ;;  %v8715_v32 = vld [vmem:[#allocation3 + $0xb4] sm:$0xf] }
 0x5d0   : > { %v13693_v22 = vcombine.low %v8935_v54, %v8945_v50  ;;  %v13727_v0 = vrot.slane %v9644_v9, 11  ;;  %v9651_v58 = vrot.slane %v9649_v41, 7  ;;  %v9658_v4 = vshrl.u32 %v19740_v12, 16  ;;  %v8716_v15 = vld [vmem:[#allocation3 + $0xb8] sm:$0xf] }
 0x5d1   : > { %v8711_v57 = vld [vmem:[#allocation3 + $0x9c] sm:$0x1]  ;;  %v8954_v43 = vrot.slane %v8953_v28, 4  ;;  %v8963_v49 = vor.u32 %v8962_v13, %v8958_v21  ;;  %v9661_v33 = vshll.u32 %v19740_v12, 16  ;;  %14864 = vmatmul.mubr.msk.bf16.gmra.mxu0 %vm465_vm1, %v13742_v14  ;;  %v7684_v7 = vsel %vm16204_vm10, 0, %v7683_v46 }
 0x5d2   : > { %14831 = vmatprep.mubr.msk.bf16.mxu1 %vm465_vm1, %v13693_v22  ;;  %v8966_v47 = vshll.u32 %v8711_v57, 16  ;;  %v9654_v2 = vor.u32 %v9652_v27, %v9651_v58  ;;  %v9656_v55 = vrot.slane %v9651_v58, 4  ;;  %v9660_v53 = vrot.slane %v9658_v4, 7  ;;  %7685 = vst [vmem:[#allocation3 + $0xac] sm:$0x1] %v7684_v7 }
 0x5d3   : > { %v8959_v17 = vsel %vm16852_vm13, %v8954_v43, %v8958_v21  ;;  %v8964_v52 = vrot.slane %v8963_v49, 4  ;;  %v8971_v56 = vshrl.u32 %v8712_v34, 16  ;;  %v8974_v31 = vshll.u32 %v8712_v34, 16  ;;  %v9449_v27 = vld [vmem:[#allocation3 + $0xb0] sm:$0x8] }
 0x5d4   : > { %v8968_v39 = vrot.slane %v8966_v47, 5  ;;  %v9655_v10 = vsel %vm16088_vm8, %v13727_v0, %v9654_v2  ;;  %v8980_v44 = vshll.u32 %v8713_v59, 16  ;;  %v9663_v25 = vor.u32 %v9661_v33, %v9660_v53  ;;  %v19780_v34 = vld [vmem:[#allocation3 + $0xb4] sm:$0xf]  ;;  %v19786_v7 = vld [vmem:[#allocation3 + $0xb8] sm:$0xf] }
 0x5d5   : > { %v8973_v35 = vrot.slane %v8971_v56, 4  ;;  %v8984_v26 = vshrl.u32 %v8713_v59, 16  ;;  %v9666_v1 = vshrl.u32 %v9446_v62, 16  ;;  %v8976_v6 = vrot.slane %v8974_v31, 5  ;;  %v7689_v31 = vld [vmem:[#allocation3 + $0xcc] sm:$0x1] }
 0x5d6   : > { %v8969_v3 = vsel %vm16852_vm13, %v8964_v52, %v8968_v39  ;;  %v8982_v8 = vrot.slane %v8980_v44, 5  ;;  %v9671_v61 = vshrl.u32 %v19756_v20, 16  ;;  %v9664_v37 = vsel %vm16088_vm8, %v9656_v55, %v9663_v25 }
 0x5d7   : > { %v13694_v30 = vcombine.low %v8959_v17, %v8969_v3  ;;  %v8986_v40 = vrot.slane %v8984_v26, 4  ;;  %v13728_v54 = vrot.slane %v9666_v1, 11  ;;  %v13743_v51 = vcombine.low %v9655_v10, %v9664_v37  ;;  %v8718_v1 = vld [vmem:[#allocation3 + $0xc4] sm:$0xf]  ;;  %v8719_v3 = vld [vmem:[#allocation3 + $0xc8] sm:$0xf] }
 0x5d8   : > { %v8977_v19 = vor.u32 %v8976_v6, %v8973_v35  ;;  %v9673_v29 = vrot.slane %v9671_v61, 7  ;;  %v9674_v60 = vshll.u32 %v19756_v20, 16  ;;  %v9680_v21 = vshrl.u32 %v19760_v63, 16 }
 0x5d9   : > { %14832 = vmatmul.mubr.msk.bf16.gmra.mxu1 %vm465_vm1, %v13694_v30  ;;  %v8987_v11 = vor.u32 %v8986_v40, %v8982_v8  ;;  %v9683_v9 = vshll.u32 %v19760_v63, 16  ;;  %v7687_v41 = vsel %vm16204_vm10, 0, %v7686_v38  ;;  %14867 = vmatprep.mubr.msk.bf16.mxu0 %vm465_vm1, %v13743_v51  ;;  %v8714_v50 = vld [vmem:[#allocation3 + $0xac] sm:$0x1]  ;;  %v8995_v46 = vshrl.u32 %v8715_v32, 16 }
 0x5da   : > { %v8978_v48 = vrot.slane %v8977_v19, 4  ;;  %v9676_v28 = vor.u32 %v9674_v60, %v9673_v29  ;;  %v9678_v13 = vrot.slane %v9673_v29, 4  ;;  %7688 = vst [vmem:[#allocation3 + $0xbc] sm:$0x1] %v7687_v41  ;;  %v8990_v14 = vshll.u32 %v8714_v50, 16 }
 0x5db   : > { %v8988_v22 = vrot.slane %v8987_v11, 4  ;;  %v9682_v0 = vrot.slane %v9680_v21, 7  ;;  %v8998_v58 = vshll.u32 %v8715_v32, 16  ;;  %v8997_v43 = vrot.slane %v8995_v46, 4  ;;  %v9452_v51 = vld [vmem:[#allocation3 + $0xc0] sm:$0x8] }
 0x5dc   : > { %v8983_v59 = vsel %vm16852_vm13, %v8978_v48, %v8982_v8  ;;  %v9677_v57 = vsel %vm16088_vm8, %v13728_v54, %v9676_v28  ;;  %v9004_v49 = vshll.u32 %v8716_v15, 16  ;;  %v8992_v4 = vrot.slane %v8990_v14, 5  ;;  %v19802_v11 = vld [vmem:[#allocation3 + $0xc4] sm:$0xf] }
 0x5dd   : > { %v9685_v33 = vor.u32 %v9683_v9, %v9682_v0  ;;  %v9000_v47 = vrot.slane %v8998_v58, 5  ;;  %v9008_v2 = vshrl.u32 %v8716_v15, 16  ;;  %v9688_v62 = vshrl.u32 %v9449_v27, 16 }
 0x5de   : > { %v9006_v55 = vrot.slane %v9004_v49, 5  ;;  %v9693_v17 = vshrl.u32 %v19780_v34, 16  ;;  %v9696_v52 = vshll.u32 %v19780_v34, 16  ;;  %v8993_v53 = vsel %vm16852_vm13, %v8988_v22, %v8992_v4 }
 0x5df   : > { %v9686_v56 = vsel %vm16088_vm8, %v9678_v13, %v9685_v33  ;;  %v9001_v39 = vor.u32 %v9000_v47, %v8997_v43  ;;  %v9010_v10 = vrot.slane %v9008_v2, 4  ;;  %v13695_v44 = vcombine.low %v8983_v59, %v8993_v53  ;;  %v19806_v13 = vld [vmem:[#allocation3 + $0xc8] sm:$0xf]  ;;  %v7692_v59 = vld [vmem:[#allocation3 + $0xdc] sm:$0x1] }
 0x5e0   : > { %v13744_v25 = vcombine.low %v9677_v57, %v9686_v56  ;;  %v13729_v35 = vrot.slane %v9688_v62, 11  ;;  %v9695_v26 = vrot.slane %v9693_v17, 7  ;;  %v9702_v38 = vshrl.u32 %v19786_v7, 16  ;;  %v8721_v33 = vld [vmem:[#allocation3 + $0xd4] sm:$0xf] }
 0x5e1   : > { %v8717_v6 = vld [vmem:[#allocation3 + $0xbc] sm:$0x1]  ;;  %v9002_v8 = vrot.slane %v9001_v39, 4  ;;  %v9011_v61 = vor.u32 %v9010_v10, %v9006_v55  ;;  %v9705_v30 = vshll.u32 %v19786_v7, 16  ;;  %14835 = vmatprep.mubr.msk.bf16.mxu1 %vm465_vm1, %v13695_v44  ;;  %v7690_v32 = vsel %vm16204_vm10, 0, %v7689_v31 }
 0x5e2   : > { %14868 = vmatmul.mubr.msk.bf16.gmra.mxu0 %vm465_vm1, %v13744_v25  ;;  %v9014_v37 = vshll.u32 %v8717_v6, 16  ;;  %v9698_v40 = vor.u32 %v9696_v52, %v9695_v26  ;;  %v9700_v54 = vrot.slane %v9695_v26, 4  ;;  %v9704_v60 = vrot.slane %v9702_v38, 7  ;;  %7691 = vst [vmem:[#allocation3 + $0xcc] sm:$0x1] %v7690_v32 }
 0x5e3   : > { %v9007_v19 = vsel %vm16852_vm13, %v9002_v8, %v9006_v55  ;;  %v9012_v29 = vrot.slane %v9011_v61, 4  ;;  %v9019_v15 = vshrl.u32 %v8718_v1, 16  ;;  %v9022_v41 = vshll.u32 %v8718_v1, 16  ;;  %v8722_v17 = vld [vmem:[#allocation3 + $0xd8] sm:$0xf] }
 0x5e4   : > { %v9016_v21 = vrot.slane %v9014_v37, 5  ;;  %v9699_v9 = vsel %vm16088_vm8, %v13729_v35, %v9698_v40  ;;  %v9028_v27 = vshll.u32 %v8719_v3, 16  ;;  %v9707_v50 = vor.u32 %v9705_v30, %v9704_v60  ;;  %v9455_v10 = vld [vmem:[#allocation3 + $0xd0] sm:$0x8]  ;;  %v19820_v61 = vld [vmem:[#allocation3 + $0xd4] sm:$0xf] }
 0x5e5   : > { %v9021_v48 = vrot.slane %v9019_v15, 4  ;;  %v9032_v28 = vshrl.u32 %v8719_v3, 16  ;;  %v9710_v46 = vshrl.u32 %v9452_v51, 16  ;;  %v9024_v14 = vrot.slane %v9022_v41, 5  ;;  %v19826_v60 = vld [vmem:[#allocation3 + $0xd8] sm:$0xf] }
 0x5e6   : > { %v9017_v22 = vsel %vm16852_vm13, %v9012_v29, %v9016_v21  ;;  %v9030_v0 = vrot.slane %v9028_v27, 5  ;;  %v9715_v58 = vshrl.u32 %v19802_v11, 16  ;;  %v9708_v43 = vsel %vm16088_vm8, %v9700_v54, %v9707_v50 }
 0x5e7   : > { %v13696_v57 = vcombine.low %v9007_v19, %v9017_v22  ;;  %v9034_v49 = vrot.slane %v9032_v28, 4  ;;  %v13730_v4 = vrot.slane %v9710_v46, 11  ;;  %v13745_v47 = vcombine.low %v9699_v9, %v9708_v43  ;;  %v7695_v28 = vld [vmem:[#allocation3 + $0xec] sm:$0x1] }
 0x5e8   : > { %v9025_v2 = vor.u32 %v9024_v14, %v9021_v48  ;;  %v9717_v55 = vrot.slane %v9715_v58, 7  ;;  %v9718_v62 = vshll.u32 %v19802_v11, 16  ;;  %v9724_v53 = vshrl.u32 %v19806_v13, 16  ;;  %v8724_v58 = vld [vmem:[#allocation3 + $0xe4] sm:$0xf] }
 0x5e9   : > { %14836 = vmatmul.mubr.msk.bf16.gmra.mxu1 %vm465_vm1, %v13696_v57  ;;  %v9035_v52 = vor.u32 %v9034_v49, %v9030_v0  ;;  %v9727_v56 = vshll.u32 %v19806_v13, 16  ;;  %v7693_v39 = vsel %vm16204_vm10, 0, %v7692_v59  ;;  %14871 = vmatprep.mubr.msk.bf16.mxu0 %vm465_vm1, %v13745_v47  ;;  %v8720_v31 = vld [vmem:[#allocation3 + $0xcc] sm:$0x1]  ;;  %v9043_v26 = vshrl.u32 %v8721_v33, 16 }
 0x5ea   : > { %v9026_v44 = vrot.slane %v9025_v2, 4  ;;  %v9720_v25 = vor.u32 %v9718_v62, %v9717_v55  ;;  %v9722_v35 = vrot.slane %v9717_v55, 4  ;;  %7694 = vst [vmem:[#allocation3 + $0xdc] sm:$0x1] %v7693_v39  ;;  %v9038_v3 = vshll.u32 %v8720_v31, 16 }
 0x5eb   : > { %v9036_v1 = vrot.slane %v9035_v52, 4  ;;  %v9726_v6 = vrot.slane %v9724_v53, 7  ;;  %v9046_v8 = vshll.u32 %v8721_v33, 16  ;;  %v9045_v37 = vrot.slane %v9043_v26, 4  ;;  %v8725_v59 = vld [vmem:[#allocation3 + $0xe8] sm:$0xf] }
 0x5ec   : > { %v9031_v38 = vsel %vm16852_vm13, %v9026_v44, %v9030_v0  ;;  %v9721_v30 = vsel %vm16088_vm8, %v13730_v4, %v9720_v25  ;;  %v9052_v40 = vshll.u32 %v8722_v17, 16  ;;  %v9040_v54 = vrot.slane %v9038_v3, 5 }
 0x5ed   : > { %v9729_v32 = vor.u32 %v9727_v56, %v9726_v6  ;;  %v9048_v51 = vrot.slane %v9046_v8, 5  ;;  %v9056_v19 = vshrl.u32 %v8722_v17, 16  ;;  %v9732_v15 = vshrl.u32 %v9455_v10, 16  ;;  %v9458_v17 = vld [vmem:[#allocation3 + $0xe0] sm:$0x8] }
 0x5ee   : > { %v9054_v29 = vrot.slane %v9052_v40, 5  ;;  %v9737_v21 = vshrl.u32 %v19820_v61, 16  ;;  %v9740_v9 = vshll.u32 %v19820_v61, 16  ;;  %v9041_v41 = vsel %vm16852_vm13, %v9036_v1, %v9040_v54  ;;  %v19842_v10 = vld [vmem:[#allocation3 + $0xe4] sm:$0xf] }
 0x5ef   : > { %v9730_v27 = vsel %vm16088_vm8, %v9722_v35, %v9729_v32  ;;  %v9049_v50 = vor.u32 %v9048_v51, %v9045_v37  ;;  %v9058_v48 = vrot.slane %v9056_v19, 4  ;;  %v13697_v46 = vcombine.low %v9031_v38, %v9041_v41  ;;  %v19846_v6 = vld [vmem:[#allocation3 + $0xe8] sm:$0xf]  ;;  %v7698_v54 = vld [vmem:[#allocation3 + $0xfc] sm:$0x1] }
 0x5f0   : > { %v13746_v22 = vcombine.low %v9721_v30, %v9730_v27  ;;  %v13731_v14 = vrot.slane %v9732_v15, 11  ;;  %v9739_v0 = vrot.slane %v9737_v21, 7  ;;  %v9746_v4 = vshrl.u32 %v19826_v60, 16  ;;  %v8727_v15 = vld [vmem:[#allocation3 + $0xf4] sm:$0xf] }
 0x5f1   : > { %v8723_v57 = vld [vmem:[#allocation3 + $0xdc] sm:$0x1]  ;;  %v9050_v43 = vrot.slane %v9049_v50, 4  ;;  %v9059_v49 = vor.u32 %v9058_v48, %v9054_v29  ;;  %v9749_v33 = vshll.u32 %v19826_v60, 16  ;;  %14839 = vmatprep.mubr.msk.bf16.mxu1 %vm465_vm1, %v13697_v46  ;;  %v7696_v62 = vsel %vm16204_vm10, 0, %v7695_v28 }
 0x5f2   : > { %14872 = vmatmul.mubr.msk.bf16.gmra.mxu0 %vm465_vm1, %v13746_v22  ;;  %v9062_v47 = vshll.u32 %v8723_v57, 16  ;;  %v9742_v2 = vor.u32 %v9740_v9, %v9739_v0  ;;  %v9744_v55 = vrot.slane %v9739_v0, 4  ;;  %v9748_v56 = vrot.slane %v9746_v4, 7  ;;  %7697 = vst [vmem:[#allocation3 + $0xec] sm:$0x1] %v7696_v62 }
 0x5f3   : > { %v9055_v52 = vsel %vm16852_vm13, %v9050_v43, %v9054_v29  ;;  %v9060_v53 = vrot.slane %v9059_v49, 4  ;;  %v9067_v39 = vshrl.u32 %v8724_v58, 16  ;;  %v9070_v25 = vshll.u32 %v8724_v58, 16  ;;  %v8728_v50 = vld [vmem:[#allocation3 + $0xf8] sm:$0xf] }
 0x5f4   : > { %v9064_v31 = vrot.slane %v9062_v47, 5  ;;  %v9743_v44 = vsel %vm16088_vm8, %v13731_v14, %v9742_v2  ;;  %v9076_v35 = vshll.u32 %v8725_v59, 16  ;;  %v9751_v26 = vor.u32 %v9749_v33, %v9748_v56  ;;  %v9461_v14 = vld [vmem:[#allocation3 + $0xf0] sm:$0x8]  ;;  %v19860_v2 = vld [vmem:[#allocation3 + $0xf4] sm:$0xf] }
 0x5f5   : > { %v9069_v1 = vrot.slane %v9067_v39, 4  ;;  %v9080_v3 = vshrl.u32 %v8725_v59, 16  ;;  %v9754_v8 = vshrl.u32 %v9458_v17, 16  ;;  %v9072_v30 = vrot.slane %v9070_v25, 5  ;;  %v19866_v25 = vld [vmem:[#allocation3 + $0xf8] sm:$0xf] }
 0x5f6   : > { %v9065_v38 = vsel %vm16852_vm13, %v9060_v53, %v9064_v31  ;;  %v9078_v37 = vrot.slane %v9076_v35, 5  ;;  %v9759_v40 = vshrl.u32 %v19842_v10, 16  ;;  %v9752_v51 = vsel %vm16088_vm8, %v9744_v55, %v9751_v26 }
 0x5f7   : > { %v13698_v32 = vcombine.low %v9055_v52, %v9065_v38  ;;  %v9082_v19 = vrot.slane %v9080_v3, 4  ;;  %v13732_v29 = vrot.slane %v9754_v8, 11  ;;  %v13747_v21 = vcombine.low %v9743_v44, %v9752_v51  ;;  %v7653_v51 = vld [vmem:[#allocation3 + $0x100] sm:$0x8] }
 0x5f8   : > { %v9073_v9 = vor.u32 %v9072_v30, %v9069_v1  ;;  %v9761_v41 = vrot.slane %v9759_v40, 7  ;;  %v9762_v27 = vshll.u32 %v19842_v10, 16  ;;  %v9768_v28 = vshrl.u32 %v19846_v6, 16 }
 0x5f9   : > { %14840 = vmatmul.mubr.msk.bf16.gmra.mxu1 %vm465_vm1, %v13698_v32  ;;  %v9083_v48 = vor.u32 %v9082_v19, %v9078_v37  ;;  %v9771_v46 = vshll.u32 %v19846_v6, 16  ;;  %v7699_v22 = vsel %vm16204_vm10, 0, %v7698_v54  ;;  %14875 = vmatprep.mubr.msk.bf16.mxu0 %vm465_vm1, %v13747_v21  ;;  %v8726_v0 = vld [vmem:[#allocation3 + $0xec] sm:$0x1]  ;;  %v9091_v43 = vshrl.u32 %v8727_v15, 16 }
 0x5fa   : > { %v9074_v58 = vrot.slane %v9073_v9, 4  ;;  %v9764_v59 = vor.u32 %v9762_v27, %v9761_v41  ;;  %v9766_v57 = vrot.slane %v9761_v41, 4  ;;  %7700 = vst [vmem:[#allocation3 + $0xfc] sm:$0x1] %v7699_v22  ;;  %v9086_v4 = vshll.u32 %v8726_v0, 16 }
 0x5fb   : > { %v9084_v49 = vrot.slane %v9083_v48, 4  ;;  %v9770_v33 = vrot.slane %v9768_v28, 7  ;;  %v9094_v47 = vshll.u32 %v8727_v15, 16  ;;  %v9093_v17 = vrot.slane %v9091_v43, 4  ;;  %v19874_v19 = vld [vmem:[#allocation3 + $0x104] sm:$0xf] }
 0x5fc   : > { %v9079_v55 = vsel %vm16852_vm13, %v9074_v58, %v9078_v37  ;;  %v9765_v62 = vsel %vm16088_vm8, %v13732_v29, %v9764_v59  ;;  %v9100_v52 = vshll.u32 %v8728_v50, 16  ;;  %v9088_v53 = vrot.slane %v9086_v4, 5  ;;  %v15515_v28 = vld [vmem:[#allocation3 + $0x14] sm:$0xf] }
 0x5fd   : > { %v9773_v56 = vor.u32 %v9771_v46, %v9770_v33  ;;  %v9096_v39 = vrot.slane %v9094_v47, 5  ;;  %v9104_v31 = vshrl.u32 %v8728_v50, 16  ;;  %v9776_v35 = vshrl.u32 %v9461_v14, 16  ;;  %v15516_v46 = vld [vmem:[#allocation3 + $0x18] sm:$0xf] }
 0x5fe   : > { %v9102_v44 = vrot.slane %v9100_v52, 5  ;;  %v9781_v26 = vshrl.u32 %v19860_v2, 16  ;;  %v9784_v1 = vshll.u32 %v19860_v2, 16  ;;  %v9089_v3 = vsel %vm16852_vm13, %v9084_v49, %v9088_v53  ;;  %v19880_v14 = vld [vmem:[#allocation3 + $0x108] sm:$0xf] }
 0x5ff   : > { %v9774_v8 = vsel %vm16088_vm8, %v9766_v57, %v9773_v56  ;;  %v9097_v38 = vor.u32 %v9096_v39, %v9093_v17  ;;  %v9106_v30 = vrot.slane %v9104_v31, 4  ;;  %v13699_v37 = vcombine.low %v9079_v55, %v9089_v3  ;;  %v10461_v49 = vld [vmem:[#allocation3 + $0x14] sm:$0xf]  ;;  %v19892_v56 = vld [vmem:[#allocation3 + $0x24] sm:$0xf] }
 0x600   : > { %v13748_v40 = vcombine.low %v9765_v62, %v9774_v8  ;;  %v13733_v54 = vrot.slane %v9776_v35, 11  ;;  %v9783_v32 = vrot.slane %v9781_v26, 7  ;;  %v9790_v9 = vshrl.u32 %v19866_v25, 16  ;;  %v10462_v62 = vld [vmem:[#allocation3 + $0x18] sm:$0xf] }
 0x601   : > { %v8729_v29 = vld [vmem:[#allocation3 + $0xfc] sm:$0x1]  ;;  %v9098_v15 = vrot.slane %v9097_v38, 4  ;;  %v9107_v21 = vor.u32 %v9106_v30, %v9102_v44  ;;  %v9793_v41 = vshll.u32 %v19866_v25, 16  ;;  %14843 = vmatprep.mubr.msk.bf16.mxu1 %vm465_vm1, %v13699_v37  ;;  %v13769_v22 = vcombine.low %v15515_v28, %v15516_v46  ;;  %v19894_v39 = vld [vmem:[#allocation3 + $0x28] sm:$0xf] }
 0x602   : > { %14876 = vmatmul.mubr.msk.bf16.gmra.mxu0 %vm465_vm1, %v13748_v40  ;;  %v9110_v27 = vshll.u32 %v8729_v29, 16  ;;  %v9786_v50 = vor.u32 %v9784_v1, %v9783_v32  ;;  %v9788_v48 = vrot.slane %v9783_v32, 4  ;;  %v9792_v59 = vrot.slane %v9790_v9, 7  ;;  %v10463_v30 = vld [vmem:[#allocation3 + $0x1c] sm:$0x1] }
 0x603   : > { %v9103_v0 = vsel %vm16852_vm13, %v9098_v15, %v9102_v44  ;;  %v9108_v58 = vrot.slane %v9107_v21, 4  ;;  %v7654_v43 = vsel %vm16072_vm5, 0, %v7653_v51  ;;  %v9803_v47 = vshrl.u32 %v19874_v19, 16  ;;  %v10464_v40 = vld [vmem:[#allocation3 + $0x24] sm:$0xf] }
 0x604   : > { %v9112_v4 = vrot.slane %v9110_v27, 5  ;;  %v9787_v33 = vsel %vm16088_vm8, %v13733_v54, %v9786_v50  ;;  %7655 = vst [vmem:[#allocation3 + $0x100] sm:$0x8] %v7654_v43  ;;  %v9806_v55 = vshll.u32 %v19874_v19, 16  ;;  %v9795_v17 = vor.u32 %v9793_v41, %v9792_v59  ;;  %v10465_v15 = vld [vmem:[#allocation3 + $0x28] sm:$0xf] }
 0x605   : > { %v9812_v52 = vshrl.u32 %v19880_v14, 16  ;;  %v9815_v53 = vshll.u32 %v19880_v14, 16  ;;  %v13770_v31 = vcombine.low %v19892_v56, %v19894_v39  ;;  %v9805_v35 = vrot.slane %v9803_v47, 7  ;;  %v15520_v28 = vld [vmem:[#allocation3 + $0x38] sm:$0xf] }
 0x606   : > { %v9113_v44 = vsel %vm16852_vm13, %v9108_v58, %v9112_v4  ;;  %v10510_v26 = vshrl.u32 %v10461_v49, 16  ;;  %v10513_v1 = vshll.u32 %v10461_v49, 16  ;;  %v9796_v8 = vsel %vm16088_vm8, %v9788_v48, %v9795_v17  ;;  %v15519_v48 = vld [vmem:[#allocation3 + $0x34] sm:$0xf] }
 0x607   : > { %v13700_v3 = vcombine.low %v9103_v0, %v9113_v44  ;;  %v9814_v38 = vrot.slane %v9812_v52, 7  ;;  %v10519_v37 = vshll.u32 %v10462_v62, 16  ;;  %v13749_v54 = vcombine.low %v9787_v33, %v9796_v8  ;;  %v10466_v33 = vld [vmem:[#allocation3 + $0x2c] sm:$0x1]  ;;  %v19909_v8 = vld [vmem:[#allocation3 + $0x48] sm:$0xf] }
 0x608   : > { %v9808_v32 = vor.u32 %v9806_v55, %v9805_v35  ;;  %v9810_v51 = vrot.slane %v9805_v35, 4  ;;  %v10512_v29 = vrot.slane %v10510_v26, 4  ;;  %v10515_v9 = vrot.slane %v10513_v1, 5 }
 0x609   : > { %14844 = vmatmul.mubr.msk.bf16.gmra.mxu1 %vm465_vm1, %v13700_v3  ;;  %v9817_v21 = vor.u32 %v9815_v53, %v9814_v38  ;;  %v10521_v41 = vrot.slane %v10519_v37, 5  ;;  %v10523_v27 = vshrl.u32 %v10462_v62, 16  ;;  %14879 = vmatprep.mubr.msk.bf16.mxu0 %vm465_vm1, %v13749_v54  ;;  %v10529_v50 = vshll.u32 %v10463_v30, 16  ;;  %v10467_v53 = vld [vmem:[#allocation3 + $0x34] sm:$0xf] }
 0x60a   : > { %14887 = vmatprep.mubr.msk.bf16.mxu1 %vm465_vm1, %v13769_v22  ;;  %v13771_v46 = vcombine.low %v15519_v48, %v15520_v28  ;;  %v10534_v0 = vshrl.u32 %v10464_v40, 16  ;;  %v10537_v58 = vshll.u32 %v10464_v40, 16  ;;  %v10516_v49 = vor.u32 %v10515_v9, %v10512_v29  ;;  %v19907_v3 = vld [vmem:[#allocation3 + $0x44] sm:$0xf]  ;;  %v10468_v54 = vld [vmem:[#allocation3 + $0x38] sm:$0xf] }
 0x60b   : > { %v9464_v59 = vld [vmem:[#allocation3 + $0x100] sm:$0x8]  ;;  %v9818_v43 = vsel %vm16088_vm8, %v9810_v51, %v9817_v21  ;;  %v10525_v4 = vrot.slane %v10523_v27, 4  ;;  %v10543_v47 = vshll.u32 %v10465_v15, 16  ;;  %v10531_v62 = vrot.slane %v10529_v50, 5 }
 0x60c   : > { %v9798_v55 = vshrl.u32 %v9464_v59, 16  ;;  %v10536_v17 = vrot.slane %v10534_v0, 4  ;;  %v10539_v52 = vrot.slane %v10537_v58, 5  ;;  %v10517_v22 = vrot.slane %v10516_v49, 4  ;;  %v15211_v29 = vld [vmem:[%s21431_s10 + $0x60] sm:$0xff]   ;;  %v15523_v49 = vld [vmem:[%s21431_s10 + $0x68] sm:$0xff]  }
 0x60d   : > { %v10526_v56 = vor.u32 %v10525_v4, %v10521_v41  ;;  %v10545_v39 = vrot.slane %v10543_v47, 5  ;;  %v10547_v44 = vshrl.u32 %v10465_v15, 16  ;;  %v10553_v1 = vshll.u32 %v10466_v33, 16  ;;  %v10469_v27 = vld [vmem:[#allocation3 + $0x3c] sm:$0x1] }
 0x60e   : > { %v13734_v35 = vrot.slane %v9798_v55, 11  ;;  %v10540_v26 = vor.u32 %v10539_v52, %v10536_v17  ;;  %v13772_v38 = vcombine.low %v19907_v3, %v19909_v8  ;;  %v10522_v30 = vsel %vm16852_vm13, %v10517_v22, %v10521_v41  ;;  %v10470_v58 = vld [vmem:[#allocation3 + $0x44] sm:$0xf]  ;;  %v15525_v17 = vld [vmem:[#allocation3 + $0x58] sm:$0xf] }
 0x60f   : > { %v10527_v37 = vrot.slane %v10526_v56, 4  ;;  %v10549_v40 = vrot.slane %v10547_v44, 4  ;;  %v10558_v51 = vshrl.u32 %v10467_v53, 16  ;;  %v10555_v9 = vrot.slane %v10553_v1, 5  ;;  %v10472_v56 = vld [vmem:[#allocation3 + $0x4c] sm:$0x1] }
 0x610   : > { %v9809_v15 = vsel %vm16088_vm8, %v13734_v35, %v9808_v32  ;;  %v10541_v21 = vrot.slane %v10540_v26, 4  ;;  %v10561_v50 = vshll.u32 %v10467_v53, 16  ;;  %v10567_v4 = vshll.u32 %v10468_v54, 16  ;;  %v19933_v53 = vld [vmem:[%s21431_s10 + $0x88] sm:$0xff]  }
 0x611   : > { %v13750_v48 = vcombine.low %v9809_v15, %v9818_v43  ;;  %14888 = vmatmul.mubr.msk.bf16.vlgmr.msra.gmra.mxu1 %vm465_vm1, %v13770_v31  ;;  %v10532_v41 = vsel %vm16852_vm13, %v10527_v37, %v10531_v62  ;;  %v10550_v28 = vor.u32 %v10549_v40, %v10545_v39  ;;  %v10560_v0 = vrot.slane %v10558_v51, 4  ;;  %v10471_v31 = vld [vmem:[#allocation3 + $0x48] sm:$0xf]  ;;  %v15524_v62 = vld [vmem:[#allocation3 + $0x54] sm:$0xf] }
 0x612   : > { %v13803_v59 = vcombine.low %v10522_v30, %v10532_v41  ;;  %14956 = vmatpush3.bf16.msra.mxu1 %v15523_v49  ;;  %14891 = vmatprep.mubr.msk.bf16.mxu1 %vm465_vm1, %v13771_v46  ;;  %v10546_v32 = vsel %vm16852_vm13, %v10541_v21, %v10545_v39  ;;  %v10563_v43 = vrot.slane %v10561_v50, 5  ;;  %v10571_v47 = vshrl.u32 %v10468_v54, 16  ;;  %v10473_v37 = vld [vmem:[#allocation3 + $0x54] sm:$0xf]  ;;  %v10474_v41 = vld [vmem:[#allocation3 + $0x58] sm:$0xf] }
 0x613   : > { %14880 = vmatmul.mubr.msk.bf16.gmra.mxu0 %vm465_vm1, %v13750_v48  ;;  %v10551_v33 = vrot.slane %v10550_v28, 4  ;;  %v10577_v55 = vshll.u32 %v10469_v27, 16  ;;  %v13773_v52 = vcombine.low %v15524_v62, %v15525_v17  ;;  %14957 = vmatprep.subr.bf16.mxu1 %v15211_v29  ;;  %v10569_v22 = vrot.slane %v10567_v4, 5  ;;  %v10475_v49 = vld [vmem:[#allocation3 + $0x5c] sm:$0x1] }
 0x614   : > { %14923 = vmatprep.mubr.msk.bf16.mxu0 %vm465_vm1, %v13803_v59  ;;  %v10564_v46 = vor.u32 %v10563_v43, %v10560_v0  ;;  %v10582_v39 = vshrl.u32 %v10470_v58, 16  ;;  %v10585_v44 = vshll.u32 %v10470_v58, 16  ;;  %v10573_v26 = vrot.slane %v10571_v47, 4  ;;  %v15526_v0 = vld [vmem:[#allocation3 + $0x64] sm:$0xf] }
 0x615   : > { %v10556_v35 = vsel %vm16852_vm13, %v10551_v33, %v10555_v9  ;;  %v10579_v1 = vrot.slane %v10577_v55, 5  ;;  %v10591_v30 = vshll.u32 %v10471_v31, 16  ;;  %v10595_v50 = vshrl.u32 %v10471_v31, 16  ;;  %v15527_v58 = vld [vmem:[#allocation3 + $0x68] sm:$0xf]  ;;  %v15222_v33 = vld [vmem:[%s21431_s10 + $0x70] sm:$0xff]  }
 0x616   : > { %v13804_v40 = vcombine.low %v10546_v32, %v10556_v35  ;;  %v10565_v54 = vrot.slane %v10564_v46, 4  ;;  %v10584_v51 = vrot.slane %v10582_v39, 4  ;;  %v10587_v15 = vrot.slane %v10585_v44, 5  ;;  %14958 = vmatpush3.bf16.msra.mxu1 %v15211_v29 }
 0x617   : > { %v10574_v21 = vor.u32 %v10573_v26, %v10569_v22  ;;  %v10593_v27 = vrot.slane %v10591_v30, 5  ;;  %v10601_v48 = vshll.u32 %v10472_v56, 16  ;;  %15027 = vmatprep.subr.bf16.mxu1 %v19933_v53  ;;  %v13774_v59 = vcombine.low %v15526_v0, %v15527_v58  ;;  %v10477_v56 = vld [vmem:[#allocation3 + $0x68] sm:$0xf]  ;;  %v10478_v26 = vld [vmem:[#allocation3 + $0x6c] sm:$0x1] }
 0x618   : > { %v10570_v28 = vsel %vm16852_vm13, %v10565_v54, %v10569_v22  ;;  %v10588_v9 = vor.u32 %v10587_v15, %v10584_v51  ;;  %v10606_v32 = vshrl.u32 %v10473_v37, 16  ;;  %v10597_v43 = vrot.slane %v10595_v50, 4  ;;  %v10476_v22 = vld [vmem:[#allocation3 + $0x64] sm:$0xf]  ;;  %v15528_v54 = vld [vmem:[#allocation3 + $0x74] sm:$0xf] }
 0x619   : > { %14892 = vmatmul.mubr.msk.bf16.gmra.mxu1 %vm465_vm1, %v13772_v38  ;;  %v10575_v29 = vrot.slane %v10574_v21, 4  ;;  %v10603_v4 = vrot.slane %v10601_v48, 5  ;;  %v10609_v31 = vshll.u32 %v10473_v37, 16  ;;  %v10615_v62 = vshll.u32 %v10474_v41, 16 }
 0x61a   : > { %14895 = vmatprep.mubr.msk.bf16.mxu1 %vm465_vm1, %v13773_v52  ;;  %v10589_v47 = vrot.slane %v10588_v9, 4  ;;  %v10608_v55 = vrot.slane %v10606_v32, 4  ;;  %v10619_v17 = vshrl.u32 %v10474_v41, 16  ;;  %v10598_v8 = vor.u32 %v10597_v43, %v10593_v27  ;;  %v10480_v32 = vld [vmem:[#allocation3 + $0x78] sm:$0xf] }
 0x61b   : > { %14924 = vmatmul.mubr.msk.bf16.vlgmr.msra.gmra.mxu0 %vm465_vm1, %v13804_v40  ;;  %v10580_v3 = vsel %vm16852_vm13, %v10575_v29, %v10579_v1  ;;  %v10611_v38 = vrot.slane %v10609_v31, 5  ;;  %v10625_v46 = vshll.u32 %v10475_v49, 16  ;;  %v10617_v35 = vrot.slane %v10615_v62, 5 }
 0x61c   : > { %v13805_v39 = vcombine.low %v10570_v28, %v10580_v3  ;;  %v10594_v44 = vsel %vm16852_vm13, %v10589_v47, %v10593_v27  ;;  %v10621_v52 = vrot.slane %v10619_v17, 4  ;;  %14992 = vmatpush3.bf16.msra.mxu0 %v19765_v36  ;;  %v10599_v30 = vrot.slane %v10598_v8, 4  ;;  %v10479_v36 = vld [vmem:[#allocation3 + $0x74] sm:$0xf]  ;;  %v10481_v47 = vld [vmem:[#allocation3 + $0x7c] sm:$0x1] }
 0x61d   : > { %v10612_v37 = vor.u32 %v10611_v38, %v10608_v55  ;;  %v10627_v40 = vrot.slane %v10625_v46, 5  ;;  %v13775_v1 = vcombine.low %v15528_v54, %v19704_v42  ;;  %14993 = vmatprep.subr.bf16.mxu0 %v15222_v33  ;;  %v10630_v15 = vshrl.u32 %v10476_v22, 16  ;;  %v10482_v46 = vld [vmem:[#allocation3 + $0x84] sm:$0xf] }
 0x61e   : > { %14927 = vmatprep.mubr.msk.bf16.mxu0 %vm465_vm1, %v13805_v39  ;;  %v10622_v51 = vor.u32 %v10621_v52, %v10617_v35  ;;  %v10633_v21 = vshll.u32 %v10476_v22, 16  ;;  %v10639_v50 = vshll.u32 %v10477_v56, 16  ;;  %v10604_v27 = vsel %vm16852_vm13, %v10599_v30, %v10603_v4  ;;  %v10483_v52 = vld [vmem:[#allocation3 + $0x88] sm:$0xf] }
 0x61f   : > { %v10613_v48 = vrot.slane %v10612_v37, 4  ;;  %v10643_v41 = vshrl.u32 %v10477_v56, 16  ;;  %v10649_v28 = vshll.u32 %v10478_v26, 16  ;;  %v13806_v9 = vcombine.low %v10594_v44, %v10604_v27 }
 0x620   : > { %v10623_v0 = vrot.slane %v10622_v51, 4  ;;  %v10632_v58 = vrot.slane %v10630_v15, 4  ;;  %v10635_v49 = vrot.slane %v10633_v21, 5  ;;  %14994 = vmatpush3.bf16.msra.mxu0 %v15222_v33  ;;  %v10641_v29 = vrot.slane %v10639_v50, 5  ;;  %v19962_v4 = vpop.f32.mrf.mxu1  ;;  %v10484_v51 = vld [vmem:[#allocation3 + $0x8c] sm:$0x1] }
 0x621   : > { %14896 = vmatmul.mubr.msk.bf16.gmra.mxu1 %vm465_vm1, %v13774_v59  ;;  %v10618_v42 = vsel %vm16852_vm13, %v10613_v48, %v10617_v35  ;;  %v10645_v43 = vrot.slane %v10643_v41, 4  ;;  %v10651_v31 = vrot.slane %v10649_v28, 5  ;;  %v13776_v33 = vcombine.low %v19716_v5, %v19722_v23  ;;  %v10485_v41 = vld [vmem:[#allocation3 + $0x94] sm:$0xf] }
 0x622   : > { %v10628_v55 = vsel %vm16852_vm13, %v10623_v0, %v10627_v40  ;;  %14899 = vmatprep.mubr.msk.bf16.mxu1 %vm465_vm1, %v13775_v1  ;;  %v10636_v62 = vor.u32 %v10635_v49, %v10632_v58  ;;  %v10654_v17 = vshrl.u32 %v10479_v36, 16  ;;  %v10657_v8 = vshll.u32 %v10479_v36, 16  ;;  %v19970_v22 = vpop.f32.mrf.mxu1 }
 0x623   : > { %14928 = vmatmul.mubr.msk.bf16.gmra.mxu0 %vm465_vm1, %v13806_v9  ;;  %v13807_v59 = vcombine.low %v10618_v42, %v10628_v55  ;;  %v10646_v3 = vor.u32 %v10645_v43, %v10641_v29  ;;  %v10663_v38 = vshll.u32 %v10480_v32, 16  ;;  %v10667_v44 = vshrl.u32 %v10480_v32, 16 }
 0x624   : > { %v10637_v56 = vrot.slane %v10636_v62, 4  ;;  %v10656_v39 = vrot.slane %v10654_v17, 4  ;;  %v10673_v35 = vshll.u32 %v10481_v47, 16  ;;  %v10659_v30 = vrot.slane %v10657_v8, 5  ;;  %v19975_v37 = vpop.f32.mrf.mxu1  ;;  %v10487_v8 = vld [vmem:[#allocation3 + $0x9c] sm:$0x1] }
 0x625   : > { %14931 = vmatprep.mubr.msk.bf16.mxu0 %vm465_vm1, %v13807_v59  ;;  %v10647_v26 = vrot.slane %v10646_v3, 4  ;;  %v10665_v5 = vrot.slane %v10663_v38, 5  ;;  %v13777_v23 = vcombine.low %v19734_v18, %v19740_v12  ;;  %v10669_v54 = vrot.slane %v10667_v44, 4 }
 0x626   : > { %v10642_v40 = vsel %vm16852_vm13, %v10637_v56, %v10641_v29  ;;  %v10675_v1 = vrot.slane %v10673_v35, 5  ;;  %v10678_v15 = vshrl.u32 %v10482_v46, 16  ;;  %v10660_v50 = vor.u32 %v10659_v30, %v10656_v39  ;;  %v19981_v28 = vpop.f32.mrf.mxu1  ;;  %v19983_v36 = vpop.f32.mrf.mxu0  ;;  %v10486_v29 = vld [vmem:[#allocation3 + $0x98] sm:$0xf] }
 0x627   : > { %v10652_v21 = vsel %vm16852_vm13, %v10647_v26, %v10651_v31  ;;  %v10681_v27 = vshll.u32 %v10482_v46, 16  ;;  %v10687_v48 = vshll.u32 %v10483_v52, 16  ;;  %21804 = vst [vmem:[#allocation53_spill] sm:$0xff] %v19981_v28  ;;  %v10670_v12 = vor.u32 %v10669_v54, %v10665_v5 }
 0x628   : > { %v13808_v18 = vcombine.low %v10642_v40, %v10652_v21  ;;  %v10680_v9 = vrot.slane %v10678_v15, 4  ;;  %v10691_v0 = vshrl.u32 %v10483_v52, 16  ;;  %v10661_v58 = vrot.slane %v10660_v50, 4  ;;  %v19986_v43 = vpop.f32.mrf.mxu1  ;;  %v19988_v31 = vpop.f32.mrf.mxu0 }
 0x629   : > { %14900 = vmatmul.mubr.msk.bf16.gmra.mxu1 %vm465_vm1, %v13776_v33  ;;  %v10683_v49 = vrot.slane %v10681_v27, 5  ;;  %v10689_v32 = vrot.slane %v10687_v48, 5  ;;  %v10697_v42 = vshll.u32 %v10484_v51, 16  ;;  %v10671_v47 = vrot.slane %v10670_v12, 4  ;;  %v10490_v48 = vld [vmem:[#allocation3 + $0xac] sm:$0x1] }
 0x62a   : > { %14903 = vmatprep.mubr.msk.bf16.mxu1 %vm465_vm1, %v13777_v23  ;;  %v10693_v55 = vrot.slane %v10691_v0, 4  ;;  %v13778_v62 = vcombine.low %v19756_v20, %v19760_v63  ;;  %v10702_v17 = vshrl.u32 %v10485_v41, 16  ;;  %v10666_v33 = vsel %vm16852_vm13, %v10661_v58, %v10665_v5  ;;  %v19996_v46 = vpop.f32.mrf.mxu1  ;;  %v19998_v56 = vpop.f32.mrf.mxu0  ;;  %v10488_v63 = vld [vmem:[#allocation3 + $0xa4] sm:$0xf]  ;;  %v10489_v5 = vld [vmem:[#allocation3 + $0xa8] sm:$0xf] }
 0x62b   : > { %14932 = vmatmul.mubr.msk.bf16.gmra.mxu0 %vm465_vm1, %v13808_v18  ;;  %v10684_v59 = vor.u32 %v10683_v49, %v10680_v9  ;;  %v10699_v3 = vrot.slane %v10697_v42, 5  ;;  %v10705_v38 = vshll.u32 %v10485_v41, 16  ;;  %v10676_v39 = vsel %vm16852_vm13, %v10671_v47, %v10675_v1 }
 0x62c   : > { %v10694_v44 = vor.u32 %v10693_v55, %v10689_v32  ;;  %v10704_v35 = vrot.slane %v10702_v17, 4  ;;  %v10711_v20 = vshll.u32 %v10486_v29, 16  ;;  %v13809_v52 = vcombine.low %v10666_v33, %v10676_v39  ;;  %v20002_v40 = vpop.f32.mrf.mxu1  ;;  %v20009_v18 = vpop.f32.mrf.mxu0 }
 0x62d   : > { %v10685_v26 = vrot.slane %v10684_v59, 4  ;;  %v10707_v30 = vrot.slane %v10705_v38, 5  ;;  %v10715_v23 = vshrl.u32 %v10486_v29, 16  ;;  %v10721_v15 = vshll.u32 %v10487_v8, 16  ;;  %21805 = vst [vmem:[#allocation65_spill] sm:$0xff] %v20009_v18 }
 0x62e   : > { %v10695_v54 = vrot.slane %v10694_v44, 4  ;;  %v10713_v51 = vrot.slane %v10711_v20, 5  ;;  %v13779_v21 = vcombine.low %v19780_v34, %v19786_v7  ;;  %14935 = vmatprep.mubr.msk.bf16.mxu0 %vm465_vm1, %v13809_v52  ;;  %v10726_v41 = vshrl.u32 %v10488_v63, 16  ;;  %v20011_v12 = vpop.f32.mrf.mxu1  ;;  %v10491_v34 = vld [vmem:[#allocation3 + $0xb4] sm:$0xf] }
 0x62f   : > { %v10690_v1 = vsel %vm16852_vm13, %v10685_v26, %v10689_v32  ;;  %v10708_v50 = vor.u32 %v10707_v30, %v10704_v35  ;;  %v10717_v27 = vrot.slane %v10715_v23, 4  ;;  %21806 = vst [vmem:[#allocation64_spill] sm:$0xff] %v20011_v12  ;;  %v10723_v0 = vrot.slane %v10721_v15, 5  ;;  %v10492_v59 = vld [vmem:[#allocation3 + $0xb8] sm:$0xf] }
 0x630   : > { %v10700_v9 = vsel %vm16852_vm13, %v10695_v54, %v10699_v3  ;;  %v10729_v58 = vshll.u32 %v10488_v63, 16  ;;  %v10735_v49 = vshll.u32 %v10489_v5, 16  ;;  %v10728_v29 = vrot.slane %v10726_v41, 4  ;;  %v10493_v52 = vld [vmem:[#allocation3 + $0xbc] sm:$0x1] }
 0x631   : > { %v13810_v7 = vcombine.low %v10690_v1, %v10700_v9  ;;  %14904 = vmatmul.mubr.msk.bf16.gmra.mxu1 %vm465_vm1, %v13778_v62  ;;  %v10709_v42 = vrot.slane %v10708_v50, 4  ;;  %v10718_v32 = vor.u32 %v10717_v27, %v10713_v51  ;;  %v10739_v17 = vshrl.u32 %v10489_v5, 16  ;;  %v20017_v8 = vpop.f32.mrf.mxu1  ;;  %v10494_v15 = vld [vmem:[#allocation3 + $0xc4] sm:$0xf]  ;;  %v10495_v27 = vld [vmem:[#allocation3 + $0xc8] sm:$0xf] }
 0x632   : > { %14907 = vmatprep.mubr.msk.bf16.mxu1 %vm465_vm1, %v13779_v21  ;;  %v10731_v47 = vrot.slane %v10729_v58, 5  ;;  %v10737_v55 = vrot.slane %v10735_v49, 5  ;;  %v10745_v33 = vshll.u32 %v10490_v48, 16  ;;  %v13780_v62 = vcombine.low %v19802_v11, %v19806_v13 }
 0x633   : > { %14936 = vmatmul.mubr.msk.bf16.gmra.mxu0 %vm465_vm1, %v13810_v7  ;;  %v10714_v3 = vsel %vm16852_vm13, %v10709_v42, %v10713_v51  ;;  %v10719_v38 = vrot.slane %v10718_v32, 4  ;;  %v10750_v39 = vshrl.u32 %v10491_v34, 16  ;;  %v20024_v44 = vpop.f32.mrf.mxu0  ;;  %v10741_v20 = vrot.slane %v10739_v17, 4  ;;  %v20026_v30 = vpop.f32.mrf.mxu1 }
 0x634   : > { %v10732_v35 = vor.u32 %v10731_v47, %v10728_v29  ;;  %v10747_v63 = vrot.slane %v10745_v33, 5  ;;  %v10753_v26 = vshll.u32 %v10491_v34, 16  ;;  %v10759_v54 = vshll.u32 %v10492_v59, 16  ;;  %v10496_v33 = vld [vmem:[#allocation3 + $0xcc] sm:$0x1] }
 0x635   : > { %v10724_v23 = vsel %vm16852_vm13, %v10719_v38, %v10723_v0  ;;  %v10752_v5 = vrot.slane %v10750_v39, 4  ;;  %v10763_v51 = vshrl.u32 %v10492_v59, 16  ;;  %v20030_v21 = vpop.f32.mrf.mxu0  ;;  %v10742_v1 = vor.u32 %v10741_v20, %v10737_v55  ;;  %v20032_v48 = vpop.f32.mrf.mxu1 }
 0x636   : > { %v13811_v11 = vcombine.low %v10714_v3, %v10724_v23  ;;  %v10733_v13 = vrot.slane %v10732_v35, 4  ;;  %v10755_v50 = vrot.slane %v10753_v26, 5  ;;  %v10761_v41 = vrot.slane %v10759_v54, 5  ;;  %v10497_v35 = vld [vmem:[#allocation3 + $0xd4] sm:$0xf] }
 0x637   : > { %v10765_v9 = vrot.slane %v10763_v51, 4  ;;  %v10769_v58 = vshll.u32 %v10493_v52, 16  ;;  %v13781_v49 = vcombine.low %v19820_v61, %v19826_v60  ;;  %v20036_v0 = vpop.f32.mrf.mxu0  ;;  %v10743_v7 = vrot.slane %v10742_v1, 4  ;;  %v20041_v29 = vpop.f32.mrf.mxu1 }
 0x638   : > { %14939 = vmatprep.mubr.msk.bf16.mxu0 %vm465_vm1, %v13811_v11  ;;  %v10738_v34 = vsel %vm16852_vm13, %v10733_v13, %v10737_v55  ;;  %v10756_v42 = vor.u32 %v10755_v50, %v10752_v5  ;;  %v10774_v32 = vshrl.u32 %v10494_v15, 16  ;;  %21807 = vst [vmem:[#allocation46_spill] sm:$0xff] %v20041_v29  ;;  %v10777_v59 = vshll.u32 %v10494_v15, 16  ;;  %v10498_v5 = vld [vmem:[#allocation3 + $0xd8] sm:$0xf] }
 0x639   : > { %14908 = vmatmul.mubr.msk.bf16.gmra.mxu1 %vm465_vm1, %v13780_v62  ;;  %v10766_v47 = vor.u32 %v10765_v9, %v10761_v41  ;;  %v10771_v17 = vrot.slane %v10769_v58, 5  ;;  %v10783_v3 = vshll.u32 %v10495_v27, 16  ;;  %v20044_v61 = vpop.f32.mrf.mxu0  ;;  %v10748_v60 = vsel %vm16852_vm13, %v10743_v7, %v10747_v63  ;;  %v20049_v20 = vpop.f32.mrf.mxu1 }
 0x63a   : > { %21808 = vst [vmem:[#allocation24_spill] sm:$0xff] %v20044_v61  ;;  %v10757_v38 = vrot.slane %v10756_v42, 4  ;;  %14911 = vmatprep.mubr.msk.bf16.mxu1 %vm465_vm1, %v13781_v49  ;;  %v10776_v55 = vrot.slane %v10774_v32, 4  ;;  %v10787_v39 = vshrl.u32 %v10495_v27, 16  ;;  %v13812_v52 = vcombine.low %v10738_v34, %v10748_v60  ;;  %v10499_v27 = vld [vmem:[#allocation3 + $0xdc] sm:$0x1] }
 0x63b   : > { %v10767_v62 = vrot.slane %v10766_v47, 4  ;;  %v10779_v26 = vrot.slane %v10777_v59, 5  ;;  %v10785_v23 = vrot.slane %v10783_v3, 5  ;;  %v20051_v54 = vpop.f32.mrf.mxu0  ;;  %v10793_v63 = vshll.u32 %v10496_v33, 16  ;;  %v20057_v13 = vpop.f32.mrf.mxu1  ;;  %v10500_v32 = vld [vmem:[#allocation3 + $0xe4] sm:$0xf] }
 0x63c   : > { %v10762_v51 = vsel %vm16852_vm13, %v10757_v38, %v10761_v41  ;;  %v10789_v15 = vrot.slane %v10787_v39, 4  ;;  %v13782_v11 = vcombine.low %v19842_v10, %v19846_v6  ;;  %14940 = vmatmul.mubr.msk.bf16.gmra.mxu0 %vm465_vm1, %v13812_v52  ;;  %v10798_v9 = vshrl.u32 %v10497_v35, 16  ;;  %v10501_v3 = vld [vmem:[#allocation3 + $0xe8] sm:$0xf] }
 0x63d   : > { %v10772_v1 = vsel %vm16852_vm13, %v10767_v62, %v10771_v17  ;;  %v10780_v50 = vor.u32 %v10779_v26, %v10776_v55  ;;  %v10801_v58 = vshll.u32 %v10497_v35, 16  ;;  %v20062_v49 = vpop.f32.mrf.mxu0  ;;  %v10795_v7 = vrot.slane %v10793_v63, 5  ;;  %v20064_v47 = vpop.f32.mrf.mxu1 }
 0x63e   : > { %v13813_v34 = vcombine.low %v10762_v51, %v10772_v1  ;;  %v10790_v41 = vor.u32 %v10789_v15, %v10785_v23  ;;  %v10807_v42 = vshll.u32 %v10498_v5, 16  ;;  %v10800_v6 = vrot.slane %v10798_v9, 4 }
 0x63f   : > { %v10781_v10 = vrot.slane %v10780_v50, 4  ;;  %v10803_v33 = vrot.slane %v10801_v58, 5  ;;  %v10811_v59 = vshrl.u32 %v10498_v5, 16  ;;  %v20066_v60 = vpop.f32.mrf.mxu0  ;;  %v10817_v55 = vshll.u32 %v10499_v27, 16  ;;  %v20071_v35 = vpop.f32.mrf.mxu1  ;;  %v10502_v5 = vld [vmem:[#allocation3 + $0xec] sm:$0x1] }
 0x640   : > { %14943 = vmatprep.mubr.msk.bf16.mxu0 %vm465_vm1, %v13813_v34  ;;  %v10791_v17 = vrot.slane %v10790_v41, 4  ;;  %v10809_v38 = vrot.slane %v10807_v42, 5  ;;  %v13783_v39 = vcombine.low %v19860_v2, %v19866_v25  ;;  %21809 = vst [vmem:[#allocation27_spill] sm:$0xff] %v20071_v35  ;;  %v10822_v51 = vshrl.u32 %v10500_v32, 16  ;;  %v10503_v50 = vld [vmem:[#allocation3 + $0xf4] sm:$0xf] }
 0x641   : > { %v10786_v52 = vsel %vm16852_vm13, %v10781_v10, %v10785_v23  ;;  %14912 = vmatmul.mubr.msk.bf16.gmra.mxu1 %vm465_vm1, %v13782_v11  ;;  %v10804_v62 = vor.u32 %v10803_v33, %v10800_v6  ;;  %v10813_v26 = vrot.slane %v10811_v59, 4  ;;  %v20076_v15 = vpop.f32.mrf.mxu0  ;;  %v10819_v1 = vrot.slane %v10817_v55, 5  ;;  %v20081_v27 = vpop.f32.mrf.mxu1  ;;  %v10504_v33 = vld [vmem:[#allocation3 + $0xf8] sm:$0xf] }
 0x642   : > { %21810 = vst [vmem:[#allocation67_spill] sm:$0xff] %v20076_v15  ;;  %v10796_v63 = vsel %vm16852_vm13, %v10791_v17, %v10795_v7  ;;  %14915 = vmatprep.mubr.msk.bf16.mxu1 %vm465_vm1, %v13783_v39  ;;  %v10825_v2 = vshll.u32 %v10500_v32, 16  ;;  %v10831_v25 = vshll.u32 %v10501_v3, 16  ;;  %v10824_v58 = vrot.slane %v10822_v51, 4  ;;  %v11199_v39 = vld [vmem:[#allocation3 + $0x20] sm:$0x8] }
 0x643   : > { %v13814_v23 = vcombine.low %v10786_v52, %v10796_v63  ;;  %v10805_v9 = vrot.slane %v10804_v62, 4  ;;  %v10814_v11 = vor.u32 %v10813_v26, %v10809_v38  ;;  %v20083_v34 = vpop.f32.mrf.mxu0  ;;  %v10835_v10 = vshrl.u32 %v10501_v3, 16  ;;  %v20085_v7 = vpop.f32.mrf.mxu1  ;;  %v20105_v15 = vld [vmem:[#allocation3 + $0x28] sm:$0xf] }
 0x644   : > { %v10827_v41 = vrot.slane %v10825_v2, 5  ;;  %v10833_v42 = vrot.slane %v10831_v25, 5  ;;  %v10841_v6 = vshll.u32 %v10502_v5, 16  ;;  %v13784_v17 = vcombine.low %v19874_v19, %v19880_v14  ;;  %v10505_v5 = vld [vmem:[#allocation3 + $0xfc] sm:$0x1] }
 0x645   : > { %14944 = vmatmul.mubr.msk.bf16.gmra.mxu0 %vm465_vm1, %v13814_v23  ;;  %v10810_v32 = vsel %vm16852_vm13, %v10805_v9, %v10809_v38  ;;  %v10815_v59 = vrot.slane %v10814_v11, 4  ;;  %v10846_v55 = vshrl.u32 %v10503_v50, 16  ;;  %v20092_v52 = vpop.f32.mrf.mxu0  ;;  %v10837_v26 = vrot.slane %v10835_v10, 4  ;;  %v20094_v63 = vpop.f32.mrf.mxu1  ;;  %v20098_v9 = vld [vmem:[#allocation3 + $0x24] sm:$0xf] }
 0x646   : > { %v10828_v62 = vor.u32 %v10827_v41, %v10824_v58  ;;  %v10843_v3 = vrot.slane %v10841_v6, 5  ;;  %v10849_v51 = vshll.u32 %v10503_v50, 16  ;;  %v10855_v38 = vshll.u32 %v10504_v33, 16 }
 0x647   : > { %v10820_v2 = vsel %vm16852_vm13, %v10815_v59, %v10819_v1  ;;  %v10848_v25 = vrot.slane %v10846_v55, 4  ;;  %v10859_v23 = vshrl.u32 %v10504_v33, 16  ;;  %v20100_v19 = vpop.f32.mrf.mxu0  ;;  %v10838_v35 = vor.u32 %v10837_v26, %v10833_v42  ;;  %v20102_v41 = vpop.f32.mrf.mxu1  ;;  %v7701_v26 = vld [vmem:[#allocation3 + $0x10c] sm:$0x1] }
 0x648   : > { %v13815_v14 = vcombine.low %v10810_v32, %v10820_v2  ;;  %v10829_v11 = vrot.slane %v10828_v62, 4  ;;  %v10851_v58 = vrot.slane %v10849_v51, 5  ;;  %21811 = vst [vmem:[#allocation66_spill] sm:$0xff] %v20102_v41  ;;  %v10857_v50 = vrot.slane %v10855_v38, 5 }
 0x649   : > { %14916 = vmatmul.mubr.msk.bf16.gmra.mxu1 %vm465_vm1, %v13784_v17  ;;  %v10861_v10 = vrot.slane %v10859_v23, 4  ;;  %v10865_v6 = vshll.u32 %v10505_v5, 16  ;;  %v11248_v1 = vshrl.u32 %v11199_v39, 16  ;;  %v20107_v59 = vpop.f32.mrf.mxu0  ;;  %v10839_v32 = vrot.slane %v10838_v35, 4  ;;  %v20113_v51 = vpop.f32.mrf.mxu1  ;;  %v10506_v39 = vld [vmem:[#allocation3 + $0x104] sm:$0xf] }
 0x64a   : > { %21812 = vst [vmem:[#allocation29_spill] sm:$0xff] %v20107_v59  ;;  %14947 = vmatprep.mubr.msk.bf16.mxu0 %vm465_vm1, %v13815_v14  ;;  %v10834_v33 = vsel %vm16852_vm13, %v10829_v11, %v10833_v42  ;;  %v10852_v55 = vor.u32 %v10851_v58, %v10848_v25  ;;  %v11253_v62 = vshrl.u32 %v20098_v9, 16  ;;  %21813 = vst [vmem:[#allocation22_spill] sm:$0xff] %v20113_v51  ;;  %v11256_v38 = vshll.u32 %v20098_v9, 16  ;;  %v10507_v25 = vld [vmem:[#allocation3 + $0x108] sm:$0xf] }
 0x64b   : > { %v10862_v17 = vor.u32 %v10861_v10, %v10857_v50  ;;  %v10867_v2 = vrot.slane %v10865_v6, 5  ;;  %v13837_v5 = vrot.slane %v11248_v1, 11  ;;  %v20116_v23 = vpop.f32.mrf.mxu0  ;;  %v10844_v14 = vsel %vm16852_vm13, %v10839_v32, %v10843_v3  ;;  %v20121_v11 = vpop.f32.mrf.mxu1  ;;  %v11208_v51 = vld [vmem:[#allocation3 + $0x50] sm:$0x8] }
 0x64c   : > { %v10853_v59 = vrot.slane %v10852_v55, 4  ;;  %v11255_v42 = vrot.slane %v11253_v62, 7  ;;  %v11262_v35 = vshrl.u32 %v20105_v15, 16  ;;  %21814 = vst [vmem:[#allocation32_spill] sm:$0xff] %v20121_v11  ;;  %v13816_v58 = vcombine.low %v10834_v33, %v10844_v14  ;;  %v11202_v62 = vld [vmem:[#allocation3 + $0x30] sm:$0x8] }
 0x64d   : > { %v10863_v41 = vrot.slane %v10862_v17, 4  ;;  %v11265_v10 = vshll.u32 %v20105_v15, 16  ;;  %v7702_v6 = vsel %vm16204_vm10, 0, %v7701_v26  ;;  %v20126_v1 = vpop.f32.mrf.mxu0  ;;  %v20130_v61 = vpop.f32.mrf.mxu1  ;;  %v10870_v17 = vshrl.u32 %v10506_v39, 16 }
 0x64e   : > { %v10858_v29 = vsel %vm16852_vm13, %v10853_v59, %v10857_v50  ;;  %v11258_v3 = vor.u32 %v11256_v38, %v11255_v42  ;;  %v11260_v32 = vrot.slane %v11255_v42, 4  ;;  %v11264_v55 = vrot.slane %v11262_v35, 7  ;;  %7703 = vst [vmem:[#allocation3 + $0x10c] sm:$0x1] %v7702_v6  ;;  %21815 = vst [vmem:[#allocation68_spill] sm:$0xff] %v20130_v61  ;;  %14948 = vmatmul.mubr.msk.bf16.gmra.mxu0 %vm465_vm1, %v13816_v58 }
 0x64f   : > { %v10868_v33 = vsel %vm16852_vm13, %v10863_v41, %v10867_v2  ;;  %v10873_v14 = vshll.u32 %v10506_v39, 16  ;;  %v10879_v26 = vshll.u32 %v10507_v25, 16  ;;  %v20137_v12 = vpop.f32.mrf.mxu0  ;;  %v10883_v42 = vshrl.u32 %v10507_v25, 16  ;;  %v20141_v35 = vld [vmem:[#allocation3 + $0x38] sm:$0xf]  ;;  %v20143_v6 = vpop.f32.mrf.mxu1 }
 0x650   : > { %v13817_v50 = vcombine.low %v10858_v29, %v10868_v33  ;;  %v11259_v59 = vsel %vm16088_vm8, %v13837_v5, %v11258_v3  ;;  %v11267_v38 = vor.u32 %v11265_v10, %v11264_v55  ;;  %21816 = vst [vmem:[#allocation69_spill] sm:$0xff] %v20143_v6  ;;  %v10872_v58 = vrot.slane %v10870_v17, 4  ;;  %v11205_v10 = vld [vmem:[#allocation3 + $0x40] sm:$0x8]  ;;  %v20151_v25 = vld [vmem:[#allocation3 + $0x44] sm:$0xf] }
 0x651   : > { %v10875_v57 = vrot.slane %v10873_v14, 5  ;;  %v10881_v41 = vrot.slane %v10879_v26, 5  ;;  %v11270_v2 = vshrl.u32 %v11202_v62, 16  ;;  %v20145_v39 = vpop.f32.mrf.mxu0  ;;  %v10885_v33 = vrot.slane %v10883_v42, 4  ;;  %v20153_v3 = vpop.f32.mrf.mxu1 }
 0x652   : > { %21817 = vst [vmem:[#allocation55_spill] sm:$0xff] %v20145_v39  ;;  %14951 = vmatprep.mubr.msk.bf16.mxu0 %vm465_vm1, %v13817_v50  ;;  %v11268_v29 = vsel %vm16088_vm8, %v11260_v32, %v11267_v38  ;;  %v11275_v5 = vshrl.u32 %v20135_v24, 16  ;;  %21818 = vst [vmem:[#allocation56_spill] sm:$0xff] %v20153_v3  ;;  %v11278_v14 = vshll.u32 %v20135_v24, 16  ;;  %v11284_v62 = vshrl.u32 %v20141_v35, 16 }
 0x653   : > { %v13853_v55 = vcombine.low %v11259_v59, %v11268_v29  ;;  %v10876_v17 = vor.u32 %v10875_v57, %v10872_v58  ;;  %v20157_v26 = vpop.f32.mrf.mxu0  ;;  %v10886_v50 = vor.u32 %v10885_v33, %v10881_v41  ;;  %v13838_v6 = vrot.slane %v11270_v2, 11  ;;  %v20160_v38 = vld [vmem:[#allocation3 + $0x48] sm:$0xf]  ;;  %v20162_v42 = vpop.f32.mrf.mxu1 }
 0x654   : > { %21819 = vst [vmem:[#allocation30_spill] sm:$0xff] %v20157_v26  ;;  %v11277_v39 = vrot.slane %v11275_v5, 7  ;;  %v11287_v32 = vshll.u32 %v20141_v35, 16  ;;  %21820 = vst [vmem:[#allocation72_spill] sm:$0xff] %v20162_v42  ;;  %v11286_v57 = vrot.slane %v11284_v62, 7  ;;  %v11292_v58 = vshrl.u32 %v11205_v10, 16 }
 0x655   : > { %14959 = vmatprep.mubr.msk.bf16.mxu1 %vm465_vm1, %v13853_v55  ;;  %v10508_v18 = vld [vmem:[#allocation3 + $0x10c] sm:$0x1]  ;;  %v10877_v59 = vrot.slane %v10876_v17, 4  ;;  %v11297_v29 = vshrl.u32 %v20151_v25, 16  ;;  %v20166_v28 = vpop.f32.mrf.mxu0  ;;  %v10887_v3 = vrot.slane %v10886_v50, 4  ;;  %v20168_v61 = vpop.f32.mrf.mxu1  ;;  %v11300_v50 = vshll.u32 %v20151_v25, 16 }
 0x656   : > { %v10889_v33 = vshll.u32 %v10508_v18, 16  ;;  %v11280_v2 = vor.u32 %v11278_v14, %v11277_v39  ;;  %v11282_v5 = vrot.slane %v11277_v39, 4  ;;  %21821 = vst [vmem:[#allocation41_spill] sm:$0xff] %v20168_v61  ;;  %v11289_v42 = vor.u32 %v11287_v32, %v11286_v57  ;;  %v20178_v39 = vld [vmem:[#allocation3 + $0x54] sm:$0xf] }
 0x657   : > { %v10882_v11 = vsel %vm16852_vm13, %v10877_v59, %v10881_v41  ;;  %v13839_v26 = vrot.slane %v11292_v58, 11  ;;  %v11299_v55 = vrot.slane %v11297_v29, 7  ;;  %v20172_v17 = vpop.f32.mrf.mxu0  ;;  %v11306_v18 = vshrl.u32 %v20160_v38, 16  ;;  %v20180_v14 = vpop.f32.mrf.mxu1  ;;  %v20189_v58 = vld [vmem:[#allocation3 + $0x58] sm:$0xf] }
 0x658   : > { %21822 = vst [vmem:[#allocation70_spill] sm:$0xff] %v20172_v17  ;;  %v10891_v10 = vrot.slane %v10889_v33, 5  ;;  %v11281_v62 = vsel %vm16088_vm8, %v13838_v6, %v11280_v2  ;;  %21823 = vst [vmem:[#allocation74_spill] sm:$0xff] %v20180_v14  ;;  %v11290_v41 = vsel %vm16088_vm8, %v11282_v5, %v11289_v42  ;;  %v11309_v59 = vshll.u32 %v20160_v38, 16  ;;  %v15230_v42 = vld [vmem:[%s21431_s10 + $0x80] sm:$0xff]  }
 0x659   : > { %v11304_v32 = vrot.slane %v11299_v55, 4  ;;  %v20187_v57 = vadd.f32 %v19983_v36, %v19962_v4  ;;  %v20191_v6 = vpop.f32.mrf.mxu0  ;;  %v13854_v33 = vcombine.low %v11281_v62, %v11290_v41  ;;  %v11302_v2 = vor.u32 %v11300_v50, %v11299_v55  ;;  %v20198_v5 = vpop.f32.mrf.mxu1  ;;  %v11211_v36 = vld [vmem:[#allocation3 + $0x60] sm:$0x8]  ;;  %v20209_v50 = vld [vmem:[#allocation3 + $0x64] sm:$0xf] }
 0x65a   : > { %21825 = vst [vmem:[#allocation43_spill] sm:$0xff] %v20191_v6  ;;  %v10892_v29 = vsel %vm16852_vm13, %v10887_v3, %v10891_v10  ;;  %v11308_v14 = vrot.slane %v11306_v18, 7  ;;  %v11314_v17 = vshrl.u32 %v11208_v51, 16  ;;  %v11319_v4 = vshrl.u32 %v20178_v39, 16 }
 0x65b   : > { %21824 = vst [vmem:[#allocation73_spill] sm:$0xff] %v20187_v57  ;;  %v13818_v61 = vcombine.low %v10882_v11, %v10892_v29  ;;  %v20201_v57 = vpop.f32.mrf.mxu0  ;;  %14960 = vmatmul.mubr.msk.bf16.vlgmr.msra.gmra.mxu1 %vm465_vm1, %v13854_v33  ;;  %v13887_v3 = vcombine.low %v20098_v9, %v20105_v15  ;;  %v11303_v55 = vsel %vm16088_vm8, %v13839_v26, %v11302_v2  ;;  %v11328_v62 = vshrl.u32 %v20189_v58, 16  ;;  %v20211_v11 = vpop.f32.mrf.mxu1  ;;  %v20217_v9 = vld [vmem:[#allocation3 + $0x68] sm:$0xf] }
 0x65c   : > { %v11311_v10 = vor.u32 %v11309_v59, %v11308_v14  ;;  %21826 = vst [vmem:[#allocation47_spill] sm:$0xff] %v20211_v11  ;;  %15028 = vmatpush3.bf16.msra.mxu1 %v19933_v53  ;;  %v13840_v51 = vrot.slane %v11314_v17, 11  ;;  %v11321_v18 = vrot.slane %v11319_v4, 7  ;;  %v11322_v41 = vshll.u32 %v20178_v39, 16 }
 0x65d   : > { %14952 = vmatmul.mubr.msk.bf16.gmra.mxu0 %vm465_vm1, %v13818_v61  ;;  %v11331_v15 = vshll.u32 %v20189_v58, 16  ;;  %v20219_v26 = vpop.f32.mrf.mxu0  ;;  %v11330_v59 = vrot.slane %v11328_v62, 7  ;;  %v20226_v61 = vadd.f32 %v19988_v31, %v19970_v22  ;;  %v11336_v53 = vshrl.u32 %v11211_v36, 16  ;;  %15029 = vmatprep.subr.bf16.mxu1 %v15230_v42  ;;  %v20228_v17 = vpop.f32.mrf.mxu1  ;;  %v11214_v62 = vld [vmem:[#allocation3 + $0x70] sm:$0x8] }
 0x65e   : > { %14995 = vmatprep.mubr.msk.bf16.mxu0 %vm465_vm1, %v13887_v3  ;;  %v11312_v14 = vsel %vm16088_vm8, %v11304_v32, %v11311_v10  ;;  %v11324_v33 = vor.u32 %v11322_v41, %v11321_v18  ;;  %v11326_v2 = vrot.slane %v11321_v18, 4  ;;  %v11341_v4 = vshrl.u32 %v20209_v50, 16  ;;  %v20244_v18 = vld [vmem:[#allocation3 + $0x74] sm:$0xf] }
 0x65f   : > { %v13855_v29 = vcombine.low %v11303_v55, %v11312_v14  ;;  %v20231_v6 = vpop.f32.mrf.mxu0  ;;  %v11333_v3 = vor.u32 %v11331_v15, %v11330_v59  ;;  %v13841_v11 = vrot.slane %v11336_v53, 11  ;;  %v11350_v32 = vshrl.u32 %v20217_v9, 16  ;;  %v20234_v10 = vpop.f32.mrf.mxu1  ;;  %v20255_v53 = vld [vmem:[#allocation3 + $0x78] sm:$0xf] }
 0x660   : > { %21827 = vst [vmem:[#allocation28_spill] sm:$0xff] %v20234_v10  ;;  %v11325_v22 = vsel %vm16088_vm8, %v13840_v51, %v11324_v33  ;;  %v11343_v31 = vrot.slane %v11341_v4, 7  ;;  %v11344_v36 = vshll.u32 %v20209_v50, 16  ;;  %v20242_v55 = vadd.f32 %v19998_v56, %v19975_v37  ;;  %15030 = vmatpush3.bf16.msra.mxu1 %v15230_v42  ;;  %v20266_v10 = vld [vmem:[#allocation3 + $0x84] sm:$0xf] }
 0x661   : > { %14963 = vmatprep.mubr.msk.bf16.mxu1 %vm465_vm1, %v13855_v29  ;;  %v20246_v41 = vpop.f32.mrf.mxu0  ;;  %v11334_v15 = vsel %vm16088_vm8, %v11326_v2, %v11333_v3  ;;  %v11352_v14 = vrot.slane %v11350_v32, 7  ;;  %v11353_v59 = vshll.u32 %v20217_v9, 16  ;;  %v20253_v51 = vadd.f32 %v20024_v44, %v19986_v43  ;;  %v20257_v37 = vpop.f32.mrf.mxu1  ;;  %v11217_v44 = vld [vmem:[#allocation3 + $0x80] sm:$0x8] }
 0x662   : > { %21828 = vst [vmem:[#allocation33_spill] sm:$0xff] %v20242_v55  ;;  %21829 = vst [vmem:[#allocation45_spill] sm:$0xff] %v20246_v41  ;;  %v13888_v56 = vcombine.low %v20135_v24, %v20141_v35  ;;  %v13856_v42 = vcombine.low %v11325_v22, %v11334_v15  ;;  %v11346_v29 = vor.u32 %v11344_v36, %v11343_v31  ;;  %v11348_v33 = vrot.slane %v11343_v31, 4  ;;  %v20277_v22 = vld [vmem:[#allocation3 + $0x88] sm:$0xf] }
 0x663   : > { %21830 = vst [vmem:[#allocation50_spill] sm:$0xff] %v20253_v51  ;;  %v20261_v4 = vpop.f32.mrf.mxu0  ;;  %v13889_v2 = vcombine.low %v20151_v25, %v20160_v38  ;;  %v11355_v3 = vor.u32 %v11353_v59, %v11352_v14  ;;  %v11358_v32 = vshrl.u32 %v11214_v62, 16  ;;  %v11363_v43 = vshrl.u32 %v20244_v18, 16  ;;  %v20268_v41 = vpop.f32.mrf.mxu1 }
 0x664   : > { %14964 = vmatmul.mubr.msk.bf16.gmra.mxu1 %vm465_vm1, %v13856_v42  ;;  %v11347_v24 = vsel %vm16088_vm8, %v13841_v11, %v11346_v29  ;;  %v11366_v35 = vshll.u32 %v20244_v18, 16  ;;  %v11372_v25 = vshrl.u32 %v20255_v53, 16  ;;  %v11375_v38 = vshll.u32 %v20255_v53, 16 }
 0x665   : > { %14996 = vmatmul.mubr.msk.bf16.vlgmr.msra.gmra.mxu0 %vm465_vm1, %v13888_v56  ;;  %v20279_v31 = vpop.f32.mrf.mxu0  ;;  %v11356_v36 = vsel %vm16088_vm8, %v11348_v33, %v11355_v3  ;;  %v13842_v62 = vrot.slane %v11358_v32, 11  ;;  %v11365_v15 = vrot.slane %v11363_v43, 7  ;;  %v20286_v11 = vadd.f32 %v20030_v21, %v19996_v46  ;;  %v20288_v14 = vpop.f32.mrf.mxu1 }
 0x666   : > { %14999 = vmatprep.mubr.msk.bf16.mxu0 %vm465_vm1, %v13889_v2  ;;  %v13857_v59 = vcombine.low %v11347_v24, %v11356_v36  ;;  %v11374_v56 = vrot.slane %v11372_v25, 7  ;;  %v11380_v42 = vshrl.u32 %v11217_v44, 16  ;;  %v11385_v29 = vshrl.u32 %v20266_v10, 16  ;;  %v11220_v24 = vld [vmem:[#allocation3 + $0x90] sm:$0x8] }
 0x667   : > { %v20291_v51 = vpop.f32.mrf.mxu0  ;;  %v13890_v2 = vcombine.low %v20178_v39, %v20189_v58  ;;  %v11368_v55 = vor.u32 %v11366_v35, %v11365_v15  ;;  %v11370_v33 = vrot.slane %v11365_v15, 4  ;;  %v11394_v3 = vshrl.u32 %v20277_v22, 16  ;;  %v20300_v25 = vpop.f32.mrf.mxu1  ;;  %v20311_v15 = vld [vmem:[#allocation3 + $0x98] sm:$0xf] }
 0x668   : > { %14967 = vmatprep.mubr.msk.bf16.mxu1 %vm465_vm1, %v13857_v59  ;;  %v11377_v46 = vor.u32 %v11375_v38, %v11374_v56  ;;  %v13843_v21 = vrot.slane %v11380_v42, 11  ;;  %v11387_v32 = vrot.slane %v11385_v29, 7  ;;  %v11388_v43 = vshll.u32 %v20266_v10, 16  ;;  %21832 = vst [vmem:[#allocation75_spill] sm:$0xff] %v20300_v25  ;;  %v20309_v38 = vld [vmem:[#allocation3 + $0x94] sm:$0xf] }
 0x669   : > { %v20298_v44 = vpop.f32.mrf.mxu0  ;;  %v11369_v36 = vsel %vm16088_vm8, %v13842_v62, %v11368_v55  ;;  %v11396_v39 = vrot.slane %v11394_v3, 7  ;;  %v11397_v58 = vshll.u32 %v20277_v22, 16  ;;  %v20307_v35 = vadd.f32 %v20036_v0, %v20002_v40  ;;  %v20323_v25 = vld [vmem:[#allocation3 + $0xa4] sm:$0xf] }
 0x66a   : > { %21831 = vst [vmem:[#allocation11_spill] sm:$0xff] %v20298_v44  ;;  %v11378_v59 = vsel %vm16088_vm8, %v11370_v33, %v11377_v46  ;;  %v11390_v56 = vor.u32 %v11388_v43, %v11387_v32  ;;  %v11392_v42 = vrot.slane %v11387_v32, 4  ;;  %v20317_v29 = vadd.f32 %v20051_v54, %v20017_v8  ;;  %v11223_v32 = vld [vmem:[#allocation3 + $0xa0] sm:$0x8]  ;;  %v20332_v43 = vld [vmem:[#allocation3 + $0xa8] sm:$0xf] }
 0x66b   : > { %21833 = vst [vmem:[#allocation34_spill] sm:$0xff] %v20307_v35  ;;  %v20319_v55 = vpop.f32.mrf.mxu0  ;;  %v13858_v62 = vcombine.low %v11369_v36, %v11378_v59  ;;  %v13891_v40 = vcombine.low %v20209_v50, %v20217_v9  ;;  %v11399_v0 = vor.u32 %v11397_v58, %v11396_v39  ;;  %v11402_v3 = vshrl.u32 %v11220_v24, 16 }
 0x66c   : > { %21834 = vst [vmem:[#allocation17_spill] sm:$0xff] %v20317_v29  ;;  %v11391_v33 = vsel %vm16088_vm8, %v13843_v21, %v11390_v56  ;;  %v13892_v46 = vcombine.low %v20244_v18, %v20255_v53  ;;  %v11407_v8 = vshrl.u32 %v20309_v38, 16  ;;  %v11416_v54 = vshrl.u32 %v20311_v15, 16  ;;  %v20334_v50 = vpop.f32.mrf.mxu1  ;;  %v11226_v29 = vld [vmem:[#allocation3 + $0xb0] sm:$0x8] }
 0x66d   : > { %15000 = vmatmul.mubr.msk.bf16.gmra.mxu0 %vm465_vm1, %v13890_v2  ;;  %v20336_v9 = vpop.f32.mrf.mxu0  ;;  %14968 = vmatmul.mubr.msk.bf16.gmra.mxu1 %vm465_vm1, %v13858_v62  ;;  %v11400_v2 = vsel %vm16088_vm8, %v11392_v42, %v11399_v0  ;;  %v13844_v21 = vrot.slane %v11402_v3, 11  ;;  %v11410_v18 = vshll.u32 %v20309_v38, 16  ;;  %v11419_v53 = vshll.u32 %v20311_v15, 16 }
 0x66e   : > { %15003 = vmatprep.mubr.msk.bf16.mxu0 %vm465_vm1, %v13891_v40  ;;  %v13859_v24 = vcombine.low %v11391_v33, %v11400_v2  ;;  %v11409_v36 = vrot.slane %v11407_v8, 7  ;;  %v11418_v39 = vrot.slane %v11416_v54, 7  ;;  %v20346_v58 = vadd.f32 %v20062_v49, %v20026_v30  ;;  %v20348_v59 = vpop.f32.mrf.mxu1  ;;  %v20357_v30 = vld [vmem:[#allocation3 + $0xb4] sm:$0xf] }
 0x66f   : > { %v20350_v56 = vpop.f32.mrf.mxu0  ;;  %v11424_v62 = vshrl.u32 %v11223_v32, 16  ;;  %v11429_v40 = vshrl.u32 %v20323_v25, 16  ;;  %v11432_v42 = vshll.u32 %v20323_v25, 16  ;;  %v11438_v0 = vshrl.u32 %v20332_v43, 16 }
 0x670   : > { %21835 = vst [vmem:[#allocation13_spill] sm:$0xff] %v20346_v58  ;;  %14971 = vmatprep.mubr.msk.bf16.mxu1 %vm465_vm1, %v13859_v24  ;;  %v11412_v3 = vor.u32 %v11410_v18, %v11409_v36  ;;  %v11414_v33 = vrot.slane %v11409_v36, 4  ;;  %v11421_v8 = vor.u32 %v11419_v53, %v11418_v39  ;;  %v11441_v54 = vshll.u32 %v20332_v43, 16  ;;  %v20365_v35 = vpop.f32.mrf.mxu1  ;;  %v20377_v39 = vld [vmem:[#allocation3 + $0xb8] sm:$0xf] }
 0x671   : > { %v20359_v49 = vpop.f32.mrf.mxu0  ;;  %v13845_v2 = vrot.slane %v11424_v62, 11  ;;  %v11431_v44 = vrot.slane %v11429_v40, 7  ;;  %v11440_v32 = vrot.slane %v11438_v0, 7  ;;  %v20363_v58 = vadd.f32 %v20066_v60, %v20032_v48 }
 0x672   : > { %21836 = vst [vmem:[#allocation48_spill] sm:$0xff] %v20359_v49  ;;  %v11413_v18 = vsel %vm16088_vm8, %v13844_v21, %v11412_v3  ;;  %v11422_v53 = vsel %vm16088_vm8, %v11414_v33, %v11421_v8  ;;  %v13893_v24 = vcombine.low %v20266_v10, %v20277_v22  ;;  %v20375_v36 = vadd.f32 %v20083_v34, %v20049_v20  ;;  %v11229_v22 = vld [vmem:[#allocation3 + $0xc0] sm:$0x8]  ;;  %v20385_v33 = vld [vmem:[#allocation3 + $0xc4] sm:$0xf] }
 0x673   : > { %v20379_v48 = vpop.f32.mrf.mxu0  ;;  %v13860_v60 = vcombine.low %v11413_v18, %v11422_v53  ;;  %v11434_v62 = vor.u32 %v11432_v42, %v11431_v44  ;;  %v11436_v40 = vrot.slane %v11431_v44, 4  ;;  %v11443_v0 = vor.u32 %v11441_v54, %v11440_v32 }
 0x674   : > { %v13894_v21 = vcombine.low %v20309_v38, %v20311_v15  ;;  %v11446_v3 = vshrl.u32 %v11226_v29, 16  ;;  %v11451_v10 = vshrl.u32 %v20357_v30, 16  ;;  %v11454_v44 = vshll.u32 %v20357_v30, 16  ;;  %v20395_v15 = vld [vmem:[#allocation3 + $0xc8] sm:$0xf]  ;;  %v20397_v29 = vpop.f32.mrf.mxu1 }
 0x675   : > { %15004 = vmatmul.mubr.msk.bf16.gmra.mxu0 %vm465_vm1, %v13892_v46  ;;  %14972 = vmatmul.mubr.msk.bf16.gmra.mxu1 %vm465_vm1, %v13860_v60  ;;  %v11435_v20 = vsel %vm16088_vm8, %v13845_v2, %v11434_v62  ;;  %v11444_v34 = vsel %vm16088_vm8, %v11436_v40, %v11443_v0  ;;  %v11460_v38 = vshrl.u32 %v20377_v39, 16  ;;  %21837 = vst [vmem:[#allocation36_spill] sm:$0xff] %v20397_v29  ;;  %v11463_v54 = vshll.u32 %v20377_v39, 16  ;;  %v20400_v32 = vpop.f32.mrf.mxu0  ;;  %v11238_v29 = vld [vmem:[#allocation3 + $0xf0] sm:$0x8] }
 0x676   : > { %15007 = vmatprep.mubr.msk.bf16.mxu0 %vm465_vm1, %v13893_v24  ;;  %v13861_v46 = vcombine.low %v11435_v20, %v11444_v34  ;;  %v13846_v42 = vrot.slane %v11446_v3, 11  ;;  %v11453_v8 = vrot.slane %v11451_v10, 7  ;;  %v20404_v2 = vadd.f32 %v20092_v52, %v20057_v13 }
 0x677   : > { %v11462_v18 = vrot.slane %v11460_v38, 7  ;;  %v11468_v53 = vshrl.u32 %v11229_v22, 16  ;;  %v11473_v24 = vshrl.u32 %v20385_v33, 16  ;;  %v13895_v40 = vcombine.low %v20323_v25, %v20332_v43  ;;  %v11232_v38 = vld [vmem:[#allocation3 + $0xd0] sm:$0x8] }
 0x678   : > { %14975 = vmatprep.mubr.msk.bf16.mxu1 %vm465_vm1, %v13861_v46  ;;  %v11456_v60 = vor.u32 %v11454_v44, %v11453_v8  ;;  %v11458_v62 = vrot.slane %v11453_v8, 4  ;;  %v11482_v0 = vshrl.u32 %v20395_v15, 16  ;;  %v11476_v34 = vshll.u32 %v20385_v33, 16  ;;  %v20421_v25 = vld [vmem:[#allocation3 + $0xd4] sm:$0xf]  ;;  %v20425_v8 = vpop.f32.mrf.mxu0 }
 0x679   : > { %v11465_v3 = vor.u32 %v11463_v54, %v11462_v18  ;;  %v13847_v10 = vrot.slane %v11468_v53, 11  ;;  %v11475_v20 = vrot.slane %v11473_v24, 7  ;;  %v20412_v13 = vpop.f32.mrf.mxu1  ;;  %v11485_v44 = vshll.u32 %v20395_v15, 16  ;;  %v20423_v43 = vld [vmem:[#allocation3 + $0xd8] sm:$0xf] }
 0x67a   : > { %v11457_v52 = vsel %vm16088_vm8, %v13846_v42, %v11456_v60  ;;  %v11484_v22 = vrot.slane %v11482_v0, 7  ;;  %v20419_v46 = vadd.f32 %v20100_v19, %v20064_v47  ;;  %v20431_v42 = vadd.f32 %v20116_v23, %v20081_v27  ;;  %v20434_v60 = vld [vmem:[#allocation3 + $0xe4] sm:$0xf] }
 0x67b   : > { %v11466_v54 = vsel %vm16088_vm8, %v11458_v62, %v11465_v3  ;;  %v11478_v18 = vor.u32 %v11476_v34, %v11475_v20  ;;  %v11480_v53 = vrot.slane %v11475_v20, 4  ;;  %v11490_v19 = vshrl.u32 %v11232_v38, 16  ;;  %v20436_v0 = vpop.f32.mrf.mxu1  ;;  %v20445_v20 = vld [vmem:[#allocation3 + $0xe8] sm:$0xf] }
 0x67c   : > { %21838 = vst [vmem:[#allocation18_spill] sm:$0xff] %v20419_v46  ;;  %21839 = vst [vmem:[#allocation21_spill] sm:$0xff] %v20431_v42  ;;  %v13862_v24 = vcombine.low %v11457_v52, %v11466_v54  ;;  %v11487_v47 = vor.u32 %v11485_v44, %v11484_v22  ;;  %v13896_v3 = vcombine.low %v20357_v30, %v20377_v39  ;;  %v11495_v27 = vshrl.u32 %v20421_v25, 16  ;;  %v20452_v52 = vpop.f32.mrf.mxu0 }
 0x67d   : > { %15008 = vmatmul.mubr.msk.bf16.gmra.mxu0 %vm465_vm1, %v13894_v21  ;;  %v11479_v62 = vsel %vm16088_vm8, %v13847_v10, %v11478_v18  ;;  %v11504_v23 = vshrl.u32 %v20423_v43, 16  ;;  %v11235_v21 = vld [vmem:[#allocation3 + $0xe0] sm:$0x8]  ;;  %v13848_v38 = vrot.slane %v11490_v19, 11  ;;  %v11507_v10 = vshll.u32 %v20423_v43, 16  ;;  %21840 = vst [vmem:[#allocation71_spill] sm:$0xff] %v20452_v52 }
 0x67e   : > { %15011 = vmatprep.mubr.msk.bf16.mxu0 %vm465_vm1, %v13895_v40  ;;  %14976 = vmatmul.mubr.msk.bf16.gmra.mxu1 %vm465_vm1, %v13862_v24  ;;  %v11488_v34 = vsel %vm16088_vm8, %v11480_v53, %v11487_v47  ;;  %v11498_v40 = vshll.u32 %v20421_v25, 16  ;;  %v11497_v39 = vrot.slane %v11495_v27, 7  ;;  %v20456_v44 = vadd.f32 %v20126_v1, %v20085_v7  ;;  %v20461_v47 = vpop.f32.mrf.mxu1 }
 0x67f   : > { %v13863_v30 = vcombine.low %v11479_v62, %v11488_v34  ;;  %v11506_v22 = vrot.slane %v11504_v23, 7  ;;  %v11512_v54 = vshrl.u32 %v11235_v21, 16  ;;  %v11517_v18 = vshrl.u32 %v20434_v60, 16  ;;  %v20465_v23 = vld [vmem:[#allocation3 + $0xf4] sm:$0xf] }
 0x680   : > { %21841 = vst [vmem:[#allocation9_spill] sm:$0xff] %v20456_v44  ;;  %v11520_v24 = vshll.u32 %v20434_v60, 16  ;;  %v11526_v53 = vshrl.u32 %v20445_v20, 16  ;;  %v11500_v19 = vor.u32 %v11498_v40, %v11497_v39  ;;  %v11502_v52 = vrot.slane %v11497_v39, 4  ;;  %v21843_v39 = vld [vmem:[#allocation22_spill] sm:$0xff]  ;;  %v20486_v42 = vpop.f32.mrf.mxu1 }
 0x681   : > { %14979 = vmatprep.mubr.msk.bf16.mxu1 %vm465_vm1, %v13863_v30  ;;  %v11509_v62 = vor.u32 %v11507_v10, %v11506_v22  ;;  %v11529_v27 = vshll.u32 %v20445_v20, 16  ;;  %v13849_v7 = vrot.slane %v11512_v54, 11  ;;  %v11519_v1 = vrot.slane %v11517_v18, 7  ;;  %v20471_v44 = vpop.f32.mrf.mxu0  ;;  %v21844_v22 = vld [vmem:[#allocation30_spill] sm:$0xff]  ;;  %21846 = vst [vmem:[#allocation54_spill] sm:$0xff] %v20486_v42 }
 0x682   : > { %v11528_v21 = vrot.slane %v11526_v53, 7  ;;  %v20469_v34 = vadd.f32 %v20137_v12, %v20094_v63  ;;  %v11501_v30 = vsel %vm16088_vm8, %v13848_v38, %v11500_v19  ;;  %v13897_v10 = vcombine.low %v20385_v33, %v20395_v15  ;;  %v20483_v18 = vld [vmem:[#allocation3 + $0xf8] sm:$0xf]  ;;  %v20492_v19 = vld [vmem:[#allocation3 + $0x104] sm:$0xf] }
 0x683   : > { %v11510_v40 = vsel %vm16088_vm8, %v11502_v52, %v11509_v62  ;;  %v20481_v54 = vadd.f32 %v21844_v22, %v21843_v39  ;;  %v11522_v63 = vor.u32 %v11520_v24, %v11519_v1  ;;  %v11524_v53 = vrot.slane %v11519_v1, 4  ;;  %v11241_v52 = vld [vmem:[#allocation3 + $0x100] sm:$0x8]  ;;  %v20501_v1 = vld [vmem:[#allocation3 + $0x108] sm:$0xf] }
 0x684   : > { %21842 = vst [vmem:[#allocation8_spill] sm:$0xff] %v20469_v34  ;;  %v13864_v12 = vcombine.low %v11501_v30, %v11510_v40  ;;  %v11531_v34 = vor.u32 %v11529_v27, %v11528_v21  ;;  %v13898_v38 = vcombine.low %v20421_v25, %v20423_v43  ;;  %v11534_v33 = vshrl.u32 %v11238_v29, 16  ;;  %v20503_v29 = vpop.f32.mrf.mxu0 }
 0x685   : > { %21845 = vst [vmem:[#allocation10_spill] sm:$0xff] %v20481_v54  ;;  %15012 = vmatmul.mubr.msk.bf16.gmra.mxu0 %vm465_vm1, %v13896_v3  ;;  %v11539_v15 = vshrl.u32 %v20465_v23, 16  ;;  %v11523_v3 = vsel %vm16088_vm8, %v13849_v7, %v11522_v63  ;;  %v11542_v62 = vshll.u32 %v20465_v23, 16  ;;  %v11548_v27 = vshrl.u32 %v20483_v18, 16 }
 0x686   : > { %15015 = vmatprep.mubr.msk.bf16.mxu0 %vm465_vm1, %v13897_v10  ;;  %14980 = vmatmul.mubr.msk.bf16.gmra.mxu1 %vm465_vm1, %v13864_v12  ;;  %v11532_v24 = vsel %vm16088_vm8, %v11524_v53, %v11531_v34  ;;  %v13850_v43 = vrot.slane %v11534_v33, 11  ;;  %v11551_v30 = vshll.u32 %v20483_v18, 16  ;;  %v21847_v10 = vld [vmem:[#allocation32_spill] sm:$0xff]  ;;  %v11556_v39 = vshrl.u32 %v11241_v52, 16  ;;  %v20518_v52 = vpop.f32.mrf.mxu0 }
 0x687   : > { %v13865_v25 = vcombine.low %v11523_v3, %v11532_v24  ;;  %v11541_v21 = vrot.slane %v11539_v15, 7  ;;  %v11550_v40 = vrot.slane %v11548_v27, 7  ;;  %v20508_v7 = vadd.f32 %v20166_v28, %v21847_v10  ;;  %v7600_v27 = vld [vmem:[#allocation3 + $0x110] sm:$0x8] }
 0x688   : > { %v11561_v34 = vshrl.u32 %v20492_v19, 16  ;;  %v20511_v22 = vpop.f32.mrf.mxu1  ;;  %v13899_v53 = vcombine.low %v20434_v60, %v20445_v20  ;;  %v11570_v33 = vshrl.u32 %v20501_v1, 16  ;;  %v13851_v3 = vrot.slane %v11556_v39, 11  ;;  %v20527_v60 = vld [vmem:[#allocation3 + $0x114] sm:$0xf] }
 0x689   : > { %21848 = vst [vmem:[#allocation14_spill] sm:$0xff] %v20508_v7  ;;  %14983 = vmatprep.mubr.msk.bf16.mxu1 %vm465_vm1, %v13865_v25  ;;  %v11544_v12 = vor.u32 %v11542_v62, %v11541_v21  ;;  %v11546_v63 = vrot.slane %v11541_v21, 4  ;;  %v11553_v15 = vor.u32 %v11551_v30, %v11550_v40  ;;  %v11564_v28 = vshll.u32 %v20492_v19, 16  ;;  %v21849_v25 = vld [vmem:[#allocation68_spill] sm:$0xff]  ;;  %v21850_v21 = vld [vmem:[#allocation70_spill] sm:$0xff] }
 0x68a   : > { %v11563_v24 = vrot.slane %v11561_v34, 7  ;;  %v11572_v42 = vrot.slane %v11570_v33, 7  ;;  %v11573_v62 = vshll.u32 %v20501_v1, 16  ;;  %v20525_v7 = vadd.f32 %v21850_v21, %v21849_v25  ;;  %v20529_v20 = vld [vmem:[#allocation3 + $0x118] sm:$0xf]  ;;  %v21852_v34 = vld [vmem:[#allocation56_spill] sm:$0xff] }
 0x68b   : > { %v11545_v10 = vsel %vm16088_vm8, %v13850_v43, %v11544_v12  ;;  %v11554_v30 = vsel %vm16088_vm8, %v11546_v63, %v11553_v15  ;;  %v20536_v43 = vadd.f32 %v20201_v57, %v21852_v34  ;;  %v20538_v12 = vpop.f32.mrf.mxu1  ;;  %v21854_v33 = vld [vmem:[#allocation53_spill] sm:$0xff]  ;;  %v7601_v49 = vsel %vm16072_vm5, 0, %v7600_v27  ;;  %v12241_v63 = vld [vmem:[#allocation3 + $0x24] sm:$0xf]  ;;  %v12242_v34 = vld [vmem:[#allocation3 + $0x28] sm:$0xf] }
 0x68c   : > { %21851 = vst [vmem:[#allocation15_spill] sm:$0xff] %v20525_v7  ;;  %v11566_v40 = vor.u32 %v11564_v28, %v11563_v24  ;;  %v11568_v39 = vrot.slane %v11563_v24, 4  ;;  %v21855_v25 = vld [vmem:[#allocation65_spill] sm:$0xff]  ;;  %v13866_v7 = vcombine.low %v11545_v10, %v11554_v30  ;;  %v11575_v54 = vor.u32 %v11573_v62, %v11572_v42  ;;  %7602 = vst [vmem:[#allocation3 + $0x110] sm:$0x8] %v7601_v49  ;;  %v20553_v30 = vpop.f32.mrf.mxu0  ;;  %v21858_v27 = vld [vmem:[#allocation72_spill] sm:$0xff] }
 0x68d   : > { %15016 = vmatmul.mubr.msk.bf16.gmra.mxu0 %vm465_vm1, %v13898_v38  ;;  %21853 = vst [vmem:[#allocation19_spill] sm:$0xff] %v20536_v43  ;;  %v20542_v21 = vadd.f32 %v21855_v25, %v21854_v33  ;;  %v13900_v57 = vcombine.low %v20465_v23, %v20483_v18  ;;  %v11583_v24 = vshrl.u32 %v20527_v60, 16  ;;  %v11592_v28 = vshrl.u32 %v20529_v20, 16  ;;  %v12243_v10 = vld [vmem:[#allocation3 + $0x2c] sm:$0x1]  ;;  %21857 = vst [vmem:[#allocation23_spill] sm:$0xff] %v20553_v30  ;;  %v20564_v33 = vpop.f32.mrf.mxu1 }
 0x68e   : > { %15019 = vmatprep.mubr.msk.bf16.mxu0 %vm465_vm1, %v13899_v53  ;;  %v11567_v15 = vsel %vm16088_vm8, %v13851_v3, %v11566_v40  ;;  %14984 = vmatmul.mubr.msk.bf16.gmra.mxu1 %vm465_vm1, %v13866_v7  ;;  %v11576_v42 = vsel %vm16088_vm8, %v11568_v39, %v11575_v54  ;;  %v11586_v53 = vshll.u32 %v20527_v60, 16  ;;  %v11595_v3 = vshll.u32 %v20529_v20, 16 }
 0x68f   : > { %v20562_v49 = vadd.f32 %v20219_v26, %v21858_v27  ;;  %v13867_v23 = vcombine.low %v11567_v15, %v11576_v42  ;;  %v11585_v18 = vrot.slane %v11583_v24, 7  ;;  %v11594_v62 = vrot.slane %v11592_v28, 7  ;;  %v12244_v26 = vld [vmem:[#allocation3 + $0x34] sm:$0xf] }
 0x690   : > { %v12290_v40 = vshrl.u32 %v12241_v63, 16  ;;  %v12293_v25 = vshll.u32 %v12241_v63, 16  ;;  %v12299_v38 = vshll.u32 %v12242_v34, 16  ;;  %v12303_v7 = vshrl.u32 %v12242_v34, 16 }
 0x691   : > { %21859 = vst [vmem:[#allocation57_spill] sm:$0xff] %v20562_v49  ;;  %v12309_v30 = vshll.u32 %v12243_v10, 16  ;;  %14987 = vmatprep.mubr.msk.bf16.mxu1 %vm465_vm1, %v13867_v23  ;;  %v11590_v54 = vrot.slane %v11585_v18, 4  ;;  %v11597_v39 = vor.u32 %v11595_v3, %v11594_v62  ;;  %v13901_v43 = vcombine.low %v20492_v19, %v20501_v1  ;;  %v20569_v27 = vpop.f32.mrf.mxu0  ;;  %v12245_v49 = vld [vmem:[#allocation3 + $0x38] sm:$0xf]  ;;  %v21860_v10 = vld [vmem:[#allocation41_spill] sm:$0xff] }
 0x692   : > { %v12292_v46 = vrot.slane %v12290_v40, 4  ;;  %v11588_v15 = vor.u32 %v11586_v53, %v11585_v18  ;;  %v12295_v24 = vrot.slane %v12293_v25, 5  ;;  %v12301_v28 = vrot.slane %v12299_v38, 5  ;;  %v12246_v1 = vld [vmem:[#allocation3 + $0x3c] sm:$0x1]  ;;  %v20582_v53 = vpop.f32.mrf.mxu1 }
 0x693   : > { %v12305_v42 = vrot.slane %v12303_v7, 4  ;;  %v11598_v63 = vsel %vm16088_vm8, %v11590_v54, %v11597_v39  ;;  %v12311_v34 = vrot.slane %v12309_v30, 5  ;;  %v20576_v3 = vadd.f32 %v20231_v6, %v21860_v10  ;;  %21862 = vst [vmem:[#allocation31_spill] sm:$0xff] %v20582_v53  ;;  %v11244_v23 = vld [vmem:[#allocation3 + $0x110] sm:$0x8] }
 0x694   : > { %v20580_v19 = vadd.f32 %v20261_v4, %v20198_v5  ;;  %v12296_v18 = vor.u32 %v12295_v24, %v12292_v46  ;;  %v13902_v62 = vcombine.low %v20527_v60, %v20529_v20  ;;  %v21863_v30 = vld [vmem:[#allocation73_spill] sm:$0xff]  ;;  %v11578_v6 = vshrl.u32 %v11244_v23, 16  ;;  %v20589_v5 = vpop.f32.mrf.mxu0  ;;  %v12248_v23 = vld [vmem:[#allocation3 + $0x48] sm:$0xf] }
 0x695   : > { %15020 = vmatmul.mubr.msk.bf16.gmra.mxu0 %vm465_vm1, %v13900_v57  ;;  %v12306_v57 = vor.u32 %v12305_v42, %v12301_v28  ;;  %v9389_v40 = vadd.f32 %v20257_v37, %v21863_v30  ;;  %v12314_v25 = vshrl.u32 %v12244_v26, 16  ;;  %v12317_v38 = vshll.u32 %v12244_v26, 16  ;;  %v12247_v42 = vld [vmem:[#allocation3 + $0x44] sm:$0xf] }
 0x696   : > { %21861 = vst [vmem:[#allocation25_spill] sm:$0xff] %v20580_v19  ;;  %15023 = vmatprep.mubr.msk.bf16.mxu0 %vm465_vm1, %v13901_v43  ;;  %v12323_v7 = vshll.u32 %v12245_v49, 16  ;;  %v12297_v4 = vrot.slane %v12296_v18, 4  ;;  %v12327_v39 = vshrl.u32 %v12245_v49, 16  ;;  %v12333_v10 = vshll.u32 %v12246_v1, 16  ;;  %v21864_v30 = vld [vmem:[#allocation47_spill] sm:$0xff] }
 0x697   : > { %v12307_v54 = vrot.slane %v12306_v57, 4  ;;  %v13852_v53 = vrot.slane %v11578_v6, 11  ;;  %v12316_v43 = vrot.slane %v12314_v25, 4  ;;  %v12319_v46 = vrot.slane %v12317_v38, 5  ;;  %v12249_v18 = vld [vmem:[#allocation3 + $0x4c] sm:$0x1]  ;;  %v20603_v25 = vpop.f32.mrf.mxu0 }
 0x698   : > { %v12325_v24 = vrot.slane %v12323_v7, 5  ;;  %v12302_v37 = vsel %vm16852_vm13, %v12297_v4, %v12301_v28  ;;  %v12329_v20 = vrot.slane %v12327_v39, 4  ;;  %v12335_v26 = vrot.slane %v12333_v10, 5 }
 0x699   : > { %v20591_v19 = vpop.f32.mrf.mxu1  ;;  %v12312_v60 = vsel %vm16852_vm13, %v12307_v54, %v12311_v34  ;;  %v11589_v49 = vsel %vm16088_vm8, %v13852_v53, %v11588_v15  ;;  %v12320_v57 = vor.u32 %v12319_v46, %v12316_v43  ;;  %v20601_v6 = vadd.f32 %v20279_v31, %v21864_v30  ;;  %v21866_v46 = vld [vmem:[#allocation24_spill] sm:$0xff]  ;;  %v21869_v30 = vld [vmem:[#allocation46_spill] sm:$0xff] }
 0x69a   : > { %v13921_v1 = vcombine.low %v12302_v37, %v12312_v60  ;;  %v13868_v38 = vcombine.low %v11589_v49, %v11598_v63  ;;  %v12330_v28 = vor.u32 %v12329_v20, %v12325_v24  ;;  %v12338_v7 = vshrl.u32 %v12247_v42, 16  ;;  %v21865_v63 = vld [vmem:[#allocation64_spill] sm:$0xff]  ;;  %v12250_v20 = vld [vmem:[#allocation3 + $0x54] sm:$0xf] }
 0x69b   : > { %v12341_v4 = vshll.u32 %v12247_v42, 16  ;;  %v12321_v34 = vrot.slane %v12320_v57, 4  ;;  %v12347_v54 = vshll.u32 %v12248_v23, 16  ;;  %v12351_v39 = vshrl.u32 %v12248_v23, 16  ;;  %v20606_v45 = vpop.f32.mrf.mxu1  ;;  %v20618_v23 = vpop.f32.mrf.mxu0 }
 0x69c   : > { %v12357_v10 = vshll.u32 %v12249_v18, 16  ;;  %14988 = vmatmul.mubr.msk.bf16.gmra.mxu1 %vm465_vm1, %v13868_v38  ;;  %v12331_v15 = vrot.slane %v12330_v28, 4  ;;  %v12340_v53 = vrot.slane %v12338_v7, 4  ;;  %v9387_v43 = vadd.f32 %v20268_v41, %v20226_v61  ;;  %21867 = vst [vmem:[#allocation35_spill] sm:$0xff] %v20618_v23  ;;  %v21868_v41 = vld [vmem:[#allocation33_spill] sm:$0xff]  ;;  %v21870_v38 = vld [vmem:[#allocation67_spill] sm:$0xff] }
 0x69d   : > { %15024 = vmatmul.mubr.msk.bf16.gmra.mxu0 %vm465_vm1, %v13902_v62  ;;  %v12343_v31 = vrot.slane %v12341_v4, 5  ;;  %v20613_v37 = vadd.f32 %v21866_v46, %v21865_v63  ;;  %15031 = vmatprep.mubr.msk.bf16.mxu1 %vm465_vm1, %v13921_v1  ;;  %v12326_v62 = vsel %vm16852_vm13, %v12321_v34, %v12325_v24  ;;  %v12349_v42 = vrot.slane %v12347_v54, 5  ;;  %v12251_v1 = vld [vmem:[#allocation3 + $0x58] sm:$0xf]  ;;  %v12252_v34 = vld [vmem:[#allocation3 + $0x5c] sm:$0x1]  ;;  %v20632_v54 = vpop.f32.mrf.mxu1 }
 0x69e   : > { %v12353_v60 = vrot.slane %v12351_v39, 4  ;;  %v12336_v18 = vsel %vm16852_vm13, %v12331_v15, %v12335_v26  ;;  %v20624_v61 = vadd.f32 %v20291_v51, %v20228_v17  ;;  %v9390_v57 = vadd.f32 %v20288_v14, %v21868_v41  ;;  %v21872_v17 = vld [vmem:[#allocation50_spill] sm:$0xff]  ;;  %v12253_v46 = vld [vmem:[#allocation3 + $0x64] sm:$0xf] }
 0x69f   : > { %v12344_v49 = vor.u32 %v12343_v31, %v12340_v53  ;;  %v20630_v24 = vadd.f32 %v21870_v38, %v21869_v30  ;;  %v13922_v28 = vcombine.low %v12326_v62, %v12336_v18  ;;  %v12359_v4 = vrot.slane %v12357_v10, 5  ;;  %v12255_v30 = vld [vmem:[#allocation3 + $0x6c] sm:$0x1] }
 0x6a0   : > { %v12354_v7 = vor.u32 %v12353_v60, %v12349_v42  ;;  %v20635_v39 = vadd.f32 %v20319_v55, %v9389_v40  ;;  %v9393_v51 = vadd.f32 %v20334_v50, %v21872_v17  ;;  %v12362_v15 = vshrl.u32 %v12250_v20, 16  ;;  %v12254_v55 = vld [vmem:[#allocation3 + $0x68] sm:$0xf] }
 0x6a1   : > { %21871 = vst [vmem:[#allocation37_spill] sm:$0xff] %v20630_v24  ;;  %v12345_v26 = vrot.slane %v12344_v49, 4  ;;  %v12365_v53 = vshll.u32 %v12250_v20, 16  ;;  %v12371_v31 = vshll.u32 %v12251_v1, 16  ;;  %v12375_v63 = vshrl.u32 %v12251_v1, 16  ;;  %v20648_v1 = vpop.f32.mrf.mxu1 }
 0x6a2   : > { %v12355_v14 = vrot.slane %v12354_v7, 4  ;;  %v20639_v41 = vpop.f32.mrf.mxu0  ;;  %v12364_v62 = vrot.slane %v12362_v15, 4  ;;  %v12381_v60 = vshll.u32 %v12252_v34, 16  ;;  %v20644_v18 = vadd.f32 %v20336_v9, %v9387_v43 }
 0x6a3   : > { %v12350_v10 = vsel %vm16852_vm13, %v12345_v26, %v12349_v42  ;;  %v12367_v40 = vrot.slane %v12365_v53, 5  ;;  %v12373_v49 = vrot.slane %v12371_v31, 5  ;;  %v12377_v20 = vrot.slane %v12375_v63, 4 }
 0x6a4   : > { %v12360_v50 = vsel %vm16852_vm13, %v12355_v14, %v12359_v4  ;;  %15032 = vmatmul.mubr.msk.bf16.vlgmr.msra.gmra.mxu1 %vm465_vm1, %v13922_v28  ;;  %v12383_v7 = vrot.slane %v12381_v60, 5  ;;  %v12386_v42 = vshrl.u32 %v12253_v46, 16  ;;  %v12389_v26 = vshll.u32 %v12253_v46, 16  ;;  %v20651_v15 = vpop.f32.mrf.mxu0  ;;  %v21873_v46 = vld [vmem:[#allocation66_spill] sm:$0xff] }
 0x6a5   : > { %v13923_v38 = vcombine.low %v12350_v10, %v12360_v50  ;;  %v12368_v34 = vor.u32 %v12367_v40, %v12364_v62  ;;  %v12378_v17 = vor.u32 %v12377_v20, %v12373_v49  ;;  %v12395_v9 = vshll.u32 %v12254_v55, 16  ;;  %v21874_v62 = vld [vmem:[#allocation55_spill] sm:$0xff] }
 0x6a6   : > { %v12399_v43 = vshrl.u32 %v12254_v55, 16  ;;  %v12388_v4 = vrot.slane %v12386_v42, 4  ;;  %v12391_v14 = vrot.slane %v12389_v26, 5  ;;  %v12405_v53 = vshll.u32 %v12255_v30, 16  ;;  %v12256_v42 = vld [vmem:[#allocation3 + $0x74] sm:$0xf] }
 0x6a7   : > { %15035 = vmatprep.mubr.msk.bf16.mxu1 %vm465_vm1, %v13923_v38  ;;  %v9391_v31 = vadd.f32 %v20348_v59, %v20286_v11  ;;  %v12369_v63 = vrot.slane %v12368_v34, 4  ;;  %v12379_v28 = vrot.slane %v12378_v17, 4  ;;  %v12397_v10 = vrot.slane %v12395_v9, 5  ;;  %v21876_v38 = vld [vmem:[#allocation34_spill] sm:$0xff] }
 0x6a8   : > { %v12401_v60 = vrot.slane %v12399_v43, 4  ;;  %v20660_v40 = vadd.f32 %v21874_v62, %v21873_v46  ;;  %v12392_v55 = vor.u32 %v12391_v14, %v12388_v4  ;;  %v20663_v20 = vadd.f32 %v20350_v56, %v9390_v57  ;;  %v12257_v17 = vld [vmem:[#allocation3 + $0x78] sm:$0xf]  ;;  %v12258_v9 = vld [vmem:[#allocation3 + $0x7c] sm:$0x1]  ;;  %v20671_v43 = vpop.f32.mrf.mxu0  ;;  %v21877_v4 = vld [vmem:[#allocation69_spill] sm:$0xff] }
 0x6a9   : > { %v20656_v50 = vpop.f32.mrf.mxu1  ;;  %v9394_v30 = vadd.f32 %v20365_v35, %v21876_v38  ;;  %v12374_v11 = vsel %vm16852_vm13, %v12369_v63, %v12373_v49  ;;  %v12384_v59 = vsel %vm16852_vm13, %v12379_v28, %v12383_v7  ;;  %v12407_v34 = vrot.slane %v12405_v53, 5  ;;  %v21878_v14 = vld [vmem:[#allocation43_spill] sm:$0xff]  ;;  %v21880_v49 = vld [vmem:[#allocation17_spill] sm:$0xff] }
 0x6aa   : > { %21875 = vst [vmem:[#allocation38_spill] sm:$0xff] %v20663_v20  ;;  %v12402_v26 = vor.u32 %v12401_v60, %v12397_v10  ;;  %v20675_v56 = vadd.f32 %v21878_v14, %v21877_v4  ;;  %v13924_v57 = vcombine.low %v12374_v11, %v12384_v59  ;;  %v12393_v46 = vrot.slane %v12392_v55, 4  ;;  %v12259_v53 = vld [vmem:[#allocation3 + $0x84] sm:$0xf]  ;;  %v12260_v59 = vld [vmem:[#allocation3 + $0x88] sm:$0xf]  ;;  %v20692_v14 = vpop.f32.mrf.mxu0 }
 0x6ab   : > { %v20678_v35 = vadd.f32 %v20379_v48, %v9393_v51  ;;  %v9397_v63 = vadd.f32 %v20412_v13, %v21880_v49  ;;  %v12410_v7 = vshrl.u32 %v12256_v42, 16  ;;  %v12413_v28 = vshll.u32 %v12256_v42, 16  ;;  %v20682_v60 = vpop.f32.mrf.mxu1  ;;  %v12261_v42 = vld [vmem:[#allocation3 + $0x8c] sm:$0x1] }
 0x6ac   : > { %v12403_v62 = vrot.slane %v12402_v26, 4  ;;  %15036 = vmatmul.mubr.msk.bf16.gmra.mxu1 %vm465_vm1, %v13924_v57  ;;  %v12398_v38 = vsel %vm16852_vm13, %v12393_v46, %v12397_v10  ;;  %v12419_v4 = vshll.u32 %v12257_v17, 16  ;;  %v12423_v11 = vshrl.u32 %v12257_v17, 16 }
 0x6ad   : > { %21879 = vst [vmem:[#allocation39_spill] sm:$0xff] %v20678_v35  ;;  %v12429_v55 = vshll.u32 %v12258_v9, 16  ;;  %v12412_v51 = vrot.slane %v12410_v7, 4  ;;  %v12415_v26 = vrot.slane %v12413_v28, 5  ;;  %v20690_v13 = vadd.f32 %v20400_v32, %v9391_v31  ;;  %v20694_v24 = vpop.f32.mrf.mxu1  ;;  %v21882_v32 = vld [vmem:[#allocation13_spill] sm:$0xff] }
 0x6ae   : > { %v12408_v48 = vsel %vm16852_vm13, %v12403_v62, %v12407_v34  ;;  %v12421_v57 = vrot.slane %v12419_v4, 5  ;;  %v12425_v23 = vrot.slane %v12423_v11, 4  ;;  %v12434_v46 = vshrl.u32 %v12259_v53, 16 }
 0x6af   : > { %21881 = vst [vmem:[#allocation58_spill] sm:$0xff] %v20690_v13  ;;  %v13925_v49 = vcombine.low %v12398_v38, %v12408_v48  ;;  %v12431_v35 = vrot.slane %v12429_v55, 5  ;;  %v12416_v10 = vor.u32 %v12415_v26, %v12412_v51  ;;  %v12437_v17 = vshll.u32 %v12259_v53, 16  ;;  %v21883_v55 = vld [vmem:[#allocation74_spill] sm:$0xff]  ;;  %v21884_v48 = vld [vmem:[#allocation45_spill] sm:$0xff] }
 0x6b0   : > { %v12443_v9 = vshll.u32 %v12260_v59, 16  ;;  %v12426_v34 = vor.u32 %v12425_v23, %v12421_v57  ;;  %v12447_v62 = vshrl.u32 %v12260_v59, 16  ;;  %v12453_v7 = vshll.u32 %v12261_v42, 16  ;;  %v12262_v23 = vld [vmem:[#allocation3 + $0x94] sm:$0xf]  ;;  %v21885_v59 = vld [vmem:[#allocation28_spill] sm:$0xff] }
 0x6b1   : > { %15039 = vmatprep.mubr.msk.bf16.mxu1 %vm465_vm1, %v13925_v49  ;;  %v9395_v31 = vadd.f32 %v20436_v0, %v21882_v32  ;;  %v12417_v28 = vrot.slane %v12416_v10, 4  ;;  %v12436_v13 = vrot.slane %v12434_v46, 4  ;;  %v12439_v38 = vrot.slane %v12437_v17, 5  ;;  %v21886_v42 = vld [vmem:[#allocation11_spill] sm:$0xff]  ;;  %v12263_v17 = vld [vmem:[#allocation3 + $0x98] sm:$0xf] }
 0x6b2   : > { %v12445_v4 = vrot.slane %v12443_v9, 5  ;;  %v20699_v11 = vpop.f32.mrf.mxu0  ;;  %v20703_v53 = vadd.f32 %v21884_v48, %v21883_v55  ;;  %v12427_v51 = vrot.slane %v12426_v34, 4  ;;  %v12449_v26 = vrot.slane %v12447_v62, 4  ;;  %v20716_v9 = vpop.f32.mrf.mxu1  ;;  %v12264_v32 = vld [vmem:[#allocation3 + $0x9c] sm:$0x1] }
 0x6b3   : > { %v20706_v49 = vadd.f32 %v20425_v8, %v9394_v30  ;;  %v20710_v20 = vadd.f32 %v21886_v42, %v21885_v59  ;;  %v12422_v0 = vsel %vm16852_vm13, %v12417_v28, %v12421_v57  ;;  %v12440_v10 = vor.u32 %v12439_v38, %v12436_v13  ;;  %v12265_v42 = vld [vmem:[#allocation3 + $0xa4] sm:$0xf] }
 0x6b4   : > { %v9398_v46 = vadd.f32 %v20461_v47, %v20363_v58  ;;  %v12432_v34 = vsel %vm16852_vm13, %v12427_v51, %v12431_v35  ;;  %v12450_v8 = vor.u32 %v12449_v26, %v12445_v4  ;;  %v12455_v30 = vrot.slane %v12453_v7, 5  ;;  %v20725_v28 = vpop.f32.mrf.mxu0  ;;  %v12266_v51 = vld [vmem:[#allocation3 + $0xa8] sm:$0xf] }
 0x6b5   : > { %v20721_v62 = vadd.f32 %v20471_v44, %v9397_v63  ;;  %v13926_v55 = vcombine.low %v12422_v0, %v12432_v34  ;;  %v12441_v48 = vrot.slane %v12440_v10, 4  ;;  %v9401_v13 = vadd.f32 %v20511_v22, %v20375_v36  ;;  %v12267_v10 = vld [vmem:[#allocation3 + $0xac] sm:$0x1] }
 0x6b6   : > { %v12458_v57 = vshrl.u32 %v12262_v23, 16  ;;  %v12451_v58 = vrot.slane %v12450_v8, 4  ;;  %v12461_v47 = vshll.u32 %v12262_v23, 16  ;;  %v12467_v38 = vshll.u32 %v12263_v17, 16 }
 0x6b7   : > { %21887 = vst [vmem:[#allocation59_spill] sm:$0xff] %v20721_v62  ;;  %v12471_v59 = vshrl.u32 %v12263_v17, 16  ;;  %15040 = vmatmul.mubr.msk.bf16.gmra.mxu1 %vm465_vm1, %v13926_v55  ;;  %v12446_v44 = vsel %vm16852_vm13, %v12441_v48, %v12445_v4  ;;  %v12477_v63 = vshll.u32 %v12264_v32, 16  ;;  %v20731_v7 = vadd.f32 %v20503_v29, %v9395_v31  ;;  %v20737_v4 = vpop.f32.mrf.mxu0 }
 0x6b8   : > { %v12460_v35 = vrot.slane %v12458_v57, 4  ;;  %v12456_v22 = vsel %vm16852_vm13, %v12451_v58, %v12455_v30  ;;  %v12463_v26 = vrot.slane %v12461_v47, 5  ;;  %v12469_v23 = vrot.slane %v12467_v38, 5 }
 0x6b9   : > { %21888 = vst [vmem:[#allocation61_spill] sm:$0xff] %v20731_v7  ;;  %v20733_v36 = vpop.f32.mrf.mxu1  ;;  %v12473_v0 = vrot.slane %v12471_v59, 4  ;;  %v13927_v17 = vcombine.low %v12446_v44, %v12456_v22  ;;  %v12479_v34 = vrot.slane %v12477_v63, 5  ;;  %v12482_v8 = vshrl.u32 %v12265_v42, 16  ;;  %v21889_v44 = vld [vmem:[#allocation75_spill] sm:$0xff]  ;;  %v21890_v22 = vld [vmem:[#allocation18_spill] sm:$0xff] }
 0x6ba   : > { %v12485_v55 = vshll.u32 %v12265_v42, 16  ;;  %v12464_v32 = vor.u32 %v12463_v26, %v12460_v35  ;;  %v12491_v29 = vshll.u32 %v12266_v51, 16  ;;  %v12495_v31 = vshrl.u32 %v12266_v51, 16 }
 0x6bb   : > { %v12474_v48 = vor.u32 %v12473_v0, %v12469_v23  ;;  %15043 = vmatprep.mubr.msk.bf16.mxu1 %vm465_vm1, %v13927_v17  ;;  %v12484_v57 = vrot.slane %v12482_v8, 4  ;;  %v12501_v62 = vshll.u32 %v12267_v10, 16  ;;  %v9399_v30 = vadd.f32 %v20538_v12, %v20404_v2  ;;  %v20742_v58 = vpop.f32.mrf.mxu1  ;;  %v12268_v0 = vld [vmem:[#allocation3 + $0xb4] sm:$0xf]  ;;  %v20751_v10 = vpop.f32.mrf.mxu0 }
 0x6bc   : > { %v12487_v7 = vrot.slane %v12485_v55, 5  ;;  %v12465_v47 = vrot.slane %v12464_v32, 4  ;;  %v12493_v59 = vrot.slane %v12491_v29, 5  ;;  %v12497_v42 = vrot.slane %v12495_v31, 4  ;;  %v12269_v55 = vld [vmem:[#allocation3 + $0xb8] sm:$0xf] }
 0x6bd   : > { %v12475_v38 = vrot.slane %v12474_v48, 4  ;;  %v9388_v35 = vadd.f32 %v21889_v44, %v20542_v21  ;;  %v20747_v51 = vadd.f32 %v20518_v52, %v9398_v46  ;;  %v9402_v26 = vadd.f32 %v20564_v33, %v21890_v22  ;;  %v12270_v21 = vld [vmem:[#allocation3 + $0xbc] sm:$0x1]  ;;  %v20763_v48 = vpop.f32.mrf.mxu1  ;;  %v21892_v31 = vld [vmem:[#allocation21_spill] sm:$0xff] }
 0x6be   : > { %v12488_v63 = vor.u32 %v12487_v7, %v12484_v57  ;;  %v12470_v2 = vsel %vm16852_vm13, %v12465_v47, %v12469_v23  ;;  %v12498_v17 = vor.u32 %v12497_v42, %v12493_v59  ;;  %v12503_v8 = vrot.slane %v12501_v62, 5  ;;  %v21891_v7 = vld [vmem:[#allocation48_spill] sm:$0xff]  ;;  %v12271_v47 = vld [vmem:[#allocation3 + $0xc4] sm:$0xf] }
 0x6bf   : > { %v12480_v12 = vsel %vm16852_vm13, %v12475_v38, %v12479_v34  ;;  %v20758_v32 = vadd.f32 %v21891_v7, %v9388_v35  ;;  %v20761_v33 = vadd.f32 %v20569_v27, %v9401_v13  ;;  %v9405_v23 = vadd.f32 %v20591_v19, %v21892_v31  ;;  %v12272_v35 = vld [vmem:[#allocation3 + $0xc8] sm:$0xf] }
 0x6c0   : > { %v13928_v52 = vcombine.low %v12470_v2, %v12480_v12  ;;  %v12489_v46 = vrot.slane %v12488_v63, 4  ;;  %v12499_v29 = vrot.slane %v12498_v17, 4  ;;  %v12506_v57 = vshrl.u32 %v12268_v0, 16 }
 0x6c1   : > { %v12509_v34 = vshll.u32 %v12268_v0, 16  ;;  %v12515_v38 = vshll.u32 %v12269_v55, 16  ;;  %v12519_v42 = vshrl.u32 %v12269_v55, 16  ;;  %v12525_v44 = vshll.u32 %v12270_v21, 16  ;;  %v12273_v0 = vld [vmem:[#allocation3 + $0xcc] sm:$0x1] }
 0x6c2   : > { %15044 = vmatmul.mubr.msk.bf16.gmra.mxu1 %vm465_vm1, %v13928_v52  ;;  %v12494_v62 = vsel %vm16852_vm13, %v12489_v46, %v12493_v59  ;;  %v20770_v27 = vpop.f32.mrf.mxu0  ;;  %v12504_v13 = vsel %vm16852_vm13, %v12499_v29, %v12503_v8  ;;  %v12508_v63 = vrot.slane %v12506_v57, 4  ;;  %v20775_v19 = vadd.f32 %v20589_v5, %v9399_v30  ;;  %v20777_v59 = vpop.f32.mrf.mxu1  ;;  %v21894_v57 = vld [vmem:[#allocation9_spill] sm:$0xff] }
 0x6c3   : > { %v12511_v22 = vrot.slane %v12509_v34, 5  ;;  %v13929_v2 = vcombine.low %v12494_v62, %v12504_v13  ;;  %v12517_v12 = vrot.slane %v12515_v38, 5  ;;  %v12521_v17 = vrot.slane %v12519_v42, 4 }
 0x6c4   : > { %21893 = vst [vmem:[#allocation20_spill] sm:$0xff] %v20775_v19  ;;  %v12527_v7 = vrot.slane %v12525_v44, 5  ;;  %v12530_v21 = vshrl.u32 %v12271_v47, 16  ;;  %v12533_v52 = vshll.u32 %v12271_v47, 16  ;;  %v12539_v46 = vshll.u32 %v12272_v35, 16  ;;  %v20782_v30 = vpop.f32.mrf.mxu0  ;;  %v21895_v44 = vld [vmem:[#allocation36_spill] sm:$0xff] }
 0x6c5   : > { %v12512_v55 = vor.u32 %v12511_v22, %v12508_v63  ;;  %15047 = vmatprep.mubr.msk.bf16.mxu1 %vm465_vm1, %v13929_v2  ;;  %v12522_v31 = vor.u32 %v12521_v17, %v12517_v12  ;;  %v12543_v8 = vshrl.u32 %v12272_v35, 16  ;;  %v12549_v29 = vshll.u32 %v12273_v0, 16  ;;  %v12274_v35 = vld [vmem:[#allocation3 + $0xd4] sm:$0xf] }
 0x6c6   : > { %v9403_v5 = vadd.f32 %v20606_v45, %v21894_v57  ;;  %v12532_v62 = vrot.slane %v12530_v21, 4  ;;  %v12535_v38 = vrot.slane %v12533_v52, 5  ;;  %v12541_v42 = vrot.slane %v12539_v46, 5  ;;  %v12275_v52 = vld [vmem:[#allocation3 + $0xd8] sm:$0xf] }
 0x6c7   : > { %v12513_v34 = vrot.slane %v12512_v55, 4  ;;  %v20786_v13 = vadd.f32 %v21895_v44, %v20613_v37  ;;  %v12523_v47 = vrot.slane %v12522_v31, 4  ;;  %v12545_v63 = vrot.slane %v12543_v8, 4  ;;  %v21897_v55 = vld [vmem:[#allocation8_spill] sm:$0xff]  ;;  %v12276_v31 = vld [vmem:[#allocation3 + $0xdc] sm:$0x1] }
 0x6c8   : > { %v20789_v22 = vadd.f32 %v20603_v25, %v9402_v26  ;;  %v12536_v2 = vor.u32 %v12535_v38, %v12532_v62  ;;  %v12551_v17 = vrot.slane %v12549_v29, 5  ;;  %v9406_v21 = vadd.f32 %v20632_v54, %v21897_v55 }
 0x6c9   : > { %v20791_v0 = vpop.f32.mrf.mxu1  ;;  %v12518_v45 = vsel %vm16852_vm13, %v12513_v34, %v12517_v12  ;;  %v12528_v37 = vsel %vm16852_vm13, %v12523_v47, %v12527_v7  ;;  %v12546_v46 = vor.u32 %v12545_v63, %v12541_v42  ;;  %v9404_v25 = vadd.f32 %v20648_v1, %v20660_v40  ;;  %v20806_v12 = vpop.f32.mrf.mxu0  ;;  %v21899_v34 = vld [vmem:[#allocation10_spill] sm:$0xff]  ;;  %v12277_v63 = vld [vmem:[#allocation3 + $0xe4] sm:$0xf] }
 0x6ca   : > { %21896 = vst [vmem:[#allocation60_spill] sm:$0xff] %v20789_v22  ;;  %v20802_v26 = vadd.f32 %v20639_v41, %v9405_v23  ;;  %v13930_v29 = vcombine.low %v12518_v45, %v12528_v37  ;;  %v12537_v57 = vrot.slane %v12536_v2, 4  ;;  %v9409_v54 = vadd.f32 %v20656_v50, %v21899_v34  ;;  %v12278_v2 = vld [vmem:[#allocation3 + $0xe8] sm:$0xf]  ;;  %v12279_v37 = vld [vmem:[#allocation3 + $0xec] sm:$0x1] }
 0x6cb   : > { %v20804_v8 = vpop.f32.mrf.mxu1  ;;  %v12554_v62 = vshrl.u32 %v12274_v35, 16  ;;  %v12547_v38 = vrot.slane %v12546_v46, 4  ;;  %v12557_v7 = vshll.u32 %v12274_v35, 16  ;;  %v12563_v44 = vshll.u32 %v12275_v52, 16  ;;  %v20820_v46 = vpop.f32.mrf.mxu0 }
 0x6cc   : > { %21898 = vst [vmem:[#allocation16_spill] sm:$0xff] %v20802_v26  ;;  %v12567_v47 = vshrl.u32 %v12275_v52, 16  ;;  %15048 = vmatmul.mubr.msk.bf16.gmra.mxu1 %vm465_vm1, %v13930_v29  ;;  %v12542_v41 = vsel %vm16852_vm13, %v12537_v57, %v12541_v42  ;;  %v12573_v23 = vshll.u32 %v12276_v31, 16  ;;  %v20816_v45 = vadd.f32 %v20651_v15, %v9403_v5 }
 0x6cd   : > { %v20810_v1 = vpop.f32.mrf.mxu1  ;;  %v12556_v40 = vrot.slane %v12554_v62, 4  ;;  %v12552_v50 = vsel %vm16852_vm13, %v12547_v38, %v12551_v17  ;;  %v12559_v35 = vrot.slane %v12557_v7, 5  ;;  %v12565_v55 = vrot.slane %v12563_v44, 5  ;;  %v21901_v44 = vld [vmem:[#allocation14_spill] sm:$0xff] }
 0x6ce   : > { %21900 = vst [vmem:[#allocation49_spill] sm:$0xff] %v20816_v45  ;;  %v12569_v52 = vrot.slane %v12567_v47, 4  ;;  %v13931_v29 = vcombine.low %v12542_v41, %v12552_v50  ;;  %v12575_v26 = vrot.slane %v12573_v23, 5  ;;  %v12578_v42 = vshrl.u32 %v12277_v63, 16 }
 0x6cf   : > { %v20822_v34 = vpop.f32.mrf.mxu1  ;;  %v12581_v57 = vshll.u32 %v12277_v63, 16  ;;  %v12560_v31 = vor.u32 %v12559_v35, %v12556_v40  ;;  %v12587_v15 = vshll.u32 %v12278_v2, 16  ;;  %v12591_v5 = vshrl.u32 %v12278_v2, 16 }
 0x6d0   : > { %v12570_v62 = vor.u32 %v12569_v52, %v12565_v55  ;;  %15051 = vmatprep.mubr.msk.bf16.mxu1 %vm465_vm1, %v13931_v29  ;;  %v12580_v17 = vrot.slane %v12578_v42, 4  ;;  %v12597_v7 = vshll.u32 %v12279_v37, 16  ;;  %v9407_v47 = vadd.f32 %v20682_v60, %v21901_v44  ;;  %v21903_v52 = vld [vmem:[#allocation15_spill] sm:$0xff]  ;;  %v12280_v37 = vld [vmem:[#allocation3 + $0xf4] sm:$0xf] }
 0x6d1   : > { %v20824_v45 = vpop.f32.mrf.mxu1  ;;  %v12583_v38 = vrot.slane %v12581_v57, 5  ;;  %v12561_v22 = vrot.slane %v12560_v31, 4  ;;  %v12589_v41 = vrot.slane %v12587_v15, 5  ;;  %v12593_v23 = vrot.slane %v12591_v5, 4  ;;  %v12282_v15 = vld [vmem:[#allocation3 + $0xfc] sm:$0x1] }
 0x6d2   : > { %v12571_v19 = vrot.slane %v12570_v62, 4  ;;  %v12599_v2 = vrot.slane %v12597_v7, 5  ;;  %v20834_v35 = vadd.f32 %v20671_v43, %v9406_v21  ;;  %v9410_v29 = vadd.f32 %v20694_v24, %v21903_v52  ;;  %v12281_v62 = vld [vmem:[#allocation3 + $0xf8] sm:$0xf] }
 0x6d3   : > { %v20829_v50 = vpop.f32.mrf.mxu0  ;;  %v20831_v63 = vpop.f32.mrf.mxu1  ;;  %v12584_v40 = vor.u32 %v12583_v38, %v12580_v17  ;;  %v12566_v60 = vsel %vm16852_vm13, %v12561_v22, %v12565_v55  ;;  %v12594_v57 = vor.u32 %v12593_v23, %v12589_v41  ;;  %v20843_v31 = vadd.f32 %v20692_v14, %v9404_v25  ;;  %v12283_v38 = vld [vmem:[#allocation3 + $0x104] sm:$0xf]  ;;  %v21929_v16 = vld [vmem:[#allocation16_spill] sm:$0xff] }
 0x6d4   : > { %21902 = vst [vmem:[#allocation44_spill] sm:$0xff] %v20834_v35  ;;  %v12576_v42 = vsel %vm16852_vm13, %v12571_v19, %v12575_v26  ;;  %v9408_v24 = vadd.f32 %v20716_v9, %v20675_v56  ;;  %v20852_v22 = vadd.f32 %v20699_v11, %v9409_v54  ;;  %v21906_v19 = vld [vmem:[#allocation19_spill] sm:$0xff]  ;;  %v12602_v14 = vshrl.u32 %v12280_v37, 16  ;;  %v12284_v54 = vld [vmem:[#allocation3 + $0x108] sm:$0xf] }
 0x6d5   : > { %21904 = vst [vmem:[#allocation26_spill] sm:$0xff] %v20843_v31  ;;  %v20845_v5 = vpop.f32.mrf.mxu0  ;;  %v20847_v43 = vpop.f32.mrf.mxu1  ;;  %v13932_v21 = vcombine.low %v12566_v60, %v12576_v42  ;;  %v12585_v17 = vrot.slane %v12584_v40, 4  ;;  %v12595_v55 = vrot.slane %v12594_v57, 4  ;;  %v9413_v26 = vadd.f32 %v20733_v36, %v21906_v19  ;;  %v12285_v60 = vld [vmem:[#allocation3 + $0x10c] sm:$0x1] }
 0x6d6   : > { %21905 = vst [vmem:[#allocation52_spill] sm:$0xff] %v20852_v22  ;;  %v12605_v25 = vshll.u32 %v12280_v37, 16  ;;  %v12611_v56 = vshll.u32 %v12281_v62, 16  ;;  %v12615_v9 = vshrl.u32 %v12281_v62, 16  ;;  %v12621_v11 = vshll.u32 %v12282_v15, 16 }
 0x6d7   : > { %v20856_v7 = vpop.f32.mrf.mxu0  ;;  %v20858_v44 = vpop.f32.mrf.mxu1  ;;  %15052 = vmatmul.mubr.msk.bf16.gmra.mxu1 %vm465_vm1, %v13932_v21  ;;  %v12590_v23 = vsel %vm16852_vm13, %v12585_v17, %v12589_v41  ;;  %v12600_v40 = vsel %vm16852_vm13, %v12595_v55, %v12599_v2  ;;  %v12604_v36 = vrot.slane %v12602_v14, 4  ;;  %v20866_v37 = vadd.f32 %v20725_v28, %v9407_v47  ;;  %v21909_v14 = vld [vmem:[#allocation57_spill] sm:$0xff] }
 0x6d8   : > { %v12607_v52 = vrot.slane %v12605_v25, 5  ;;  %v13933_v21 = vcombine.low %v12590_v23, %v12600_v40  ;;  %v12613_v19 = vrot.slane %v12611_v56, 5  ;;  %v12617_v41 = vrot.slane %v12615_v9, 4 }
 0x6d9   : > { %21907 = vst [vmem:[#allocation63_spill] sm:$0xff] %v20866_v37  ;;  %v20868_v42 = vpop.f32.mrf.mxu0  ;;  %v20870_v57 = vpop.f32.mrf.mxu1  ;;  %v12623_v17 = vrot.slane %v12621_v11, 5  ;;  %v12626_v15 = vshrl.u32 %v12283_v38, 16  ;;  %v12629_v22 = vshll.u32 %v12283_v38, 16  ;;  %v12635_v31 = vshll.u32 %v12284_v54, 16 }
 0x6da   : > { %v12608_v62 = vor.u32 %v12607_v52, %v12604_v36  ;;  %15055 = vmatprep.mubr.msk.bf16.mxu1 %vm465_vm1, %v13933_v21  ;;  %v12618_v28 = vor.u32 %v12617_v41, %v12613_v19  ;;  %v12639_v47 = vshrl.u32 %v12284_v54, 16  ;;  %v12645_v55 = vshll.u32 %v12285_v60, 16  ;;  %v7605_v21 = vld [vmem:[#allocation3 + $0x11c] sm:$0x1]  ;;  %v12287_v41 = vld [vmem:[#allocation3 + $0x118] sm:$0xf] }
 0x6db   : > { %v20872_v35 = vpop.f32.mrf.mxu0  ;;  %v20874_v2 = vpop.f32.mrf.mxu1  ;;  %v9411_v25 = vadd.f32 %v20742_v58, %v21909_v14  ;;  %v12628_v56 = vrot.slane %v12626_v15, 4  ;;  %v12631_v9 = vrot.slane %v12629_v22, 5  ;;  %v12637_v11 = vrot.slane %v12635_v31, 5  ;;  %v12286_v22 = vld [vmem:[#allocation3 + $0x114] sm:$0xf] }
 0x6dc   : > { %21908 = vst [vmem:[#allocation62_spill] sm:$0xff] %v20872_v35  ;;  %v12609_v23 = vrot.slane %v12608_v62, 4  ;;  %v12619_v36 = vrot.slane %v12618_v28, 4  ;;  %v12641_v52 = vrot.slane %v12639_v47, 4  ;;  %v12647_v35 = vrot.slane %v12645_v55, 5 }
 0x6dd   : > { %v20879_v40 = vpop.f32.mrf.mxu0  ;;  %v20881_v38 = vpop.f32.mrf.mxu1  ;;  %v20884_v37 = vadd.f32 %v20737_v4, %v9410_v29  ;;  %v12632_v60 = vor.u32 %v12631_v9, %v12628_v56  ;;  %v9414_v58 = vadd.f32 %v20763_v48, %v20576_v3  ;;  %v20891_v31 = vadd.f32 %v20751_v10, %v9408_v24  ;;  %v21910_v48 = vld [vmem:[#allocation25_spill] sm:$0xff] }
 0x6de   : > { %v12614_v54 = vsel %vm16852_vm13, %v12609_v23, %v12613_v19  ;;  %v12624_v4 = vsel %vm16852_vm13, %v12619_v36, %v12623_v17  ;;  %v12642_v29 = vor.u32 %v12641_v52, %v12637_v11  ;;  %v9412_v28 = vadd.f32 %v20777_v59, %v20703_v53 }
 0x6df   : > { %v20893_v62 = vpop.f32.mrf.mxu0  ;;  %v10321_v15 = vpop.f32.mrf.mxu1  ;;  %v20900_v19 = vadd.f32 %v20770_v27, %v9413_v26  ;;  %v13934_v47 = vcombine.low %v12614_v54, %v12624_v4  ;;  %v12633_v3 = vrot.slane %v12632_v60, 4  ;;  %v9417_v10 = vadd.f32 %v20791_v0, %v21910_v48  ;;  %v21914_v48 = vld [vmem:[#allocation37_spill] sm:$0xff] }
 0x6e0   : > { %v7606_v55 = vsel %vm16204_vm10, 0, %v7605_v21  ;;  %v12643_v56 = vrot.slane %v12642_v29, 4  ;;  %v12650_v17 = vshrl.u32 %v12286_v22, 16  ;;  %v12653_v9 = vshll.u32 %v12286_v22, 16 }
 0x6e1   : > { %v20906_v14 = vpop.f32.mrf.mxu0  ;;  %v14897_v23 = vpop.f32.mrf.mxu1  ;;  %7607 = vst [vmem:[#allocation3 + $0x11c] sm:$0x1] %v7606_v55  ;;  %v12659_v36 = vshll.u32 %v12287_v41, 16  ;;  %15056 = vmatmul.mubr.msk.bf16.gmra.mxu1 %vm465_vm1, %v13934_v47  ;;  %v12638_v53 = vsel %vm16852_vm13, %v12633_v3, %v12637_v11  ;;  %v12663_v27 = vshrl.u32 %v12287_v41, 16  ;;  %v20912_v59 = vadd.f32 %v20782_v30, %v9411_v25 }
 0x6e2   : > { %v9415_v0 = vadd.f32 %v20804_v8, %v20601_v6  ;;  %v12648_v21 = vsel %vm16852_vm13, %v12643_v56, %v12647_v35  ;;  %v12652_v54 = vrot.slane %v12650_v17, 4  ;;  %v12655_v60 = vrot.slane %v12653_v9, 5  ;;  %v21918_v17 = vld [vmem:[#allocation29_spill] sm:$0xff] }
 0x6e3   : > { %v20916_v26 = vpop.f32.mrf.mxu0  ;;  %v10334_v52 = vpop.f32.mrf.mxu1  ;;  %v12661_v22 = vrot.slane %v12659_v36, 5  ;;  %v13935_v4 = vcombine.low %v12638_v53, %v12648_v21  ;;  %v12665_v29 = vrot.slane %v12663_v27, 4  ;;  %v20921_v11 = vadd.f32 %v20806_v12, %v9414_v58  ;;  %v21919_v53 = vld [vmem:[#allocation58_spill] sm:$0xff] }
 0x6e4   : > { %v9418_v30 = vadd.f32 %v20810_v1, %v20624_v61  ;;  %v12656_v8 = vor.u32 %v12655_v60, %v12652_v54  ;;  %v20928_v41 = vadd.f32 %v20820_v46, %v9412_v28  ;;  %v9416_v35 = vadd.f32 %v20822_v34, %v20710_v20  ;;  %v21912_v28 = vld [vmem:[#allocation38_spill] sm:$0xff]  ;;  %v21921_v60 = vld [vmem:[#allocation31_spill] sm:$0xff] }
 0x6e5   : > { %v20925_v25 = vpop.f32.mrf.mxu0  ;;  %v14898_v6 = vpop.f32.mrf.mxu1  ;;  %v20933_v47 = vadd.f32 %v20829_v50, %v9417_v10  ;;  %15059 = vmatprep.mubr.msk.bf16.mxu1 %vm465_vm1, %v13935_v4  ;;  %v12666_v12 = vor.u32 %v12665_v29, %v12661_v22  ;;  %v20938_v58 = vadd.f32 %v20824_v45, %v20635_v39  ;;  %v20941_v61 = vadd.f32 %v20845_v5, %v9415_v0  ;;  %v21913_v45 = vld [vmem:[#allocation71_spill] sm:$0xff] }
 0x6e6   : > { %v20945_v1 = vadd.f32 %v20831_v63, %v20644_v18  ;;  %v12657_v34 = vrot.slane %v12656_v8, 4  ;;  %v20950_v50 = vadd.f32 %v20856_v7, %v9418_v30  ;;  %v20954_v3 = vadd.f32 %v20847_v43, %v21912_v28  ;;  %v21915_v18 = vld [vmem:[#allocation54_spill] sm:$0xff]  ;;  %v21916_v7 = vld [vmem:[#allocation39_spill] sm:$0xff] }
 0x6e7   : > { %v20947_v46 = vpop.f32.mrf.mxu0  ;;  %v10337_v20 = vpop.f32.mrf.mxu1  ;;  %v20957_v39 = vadd.f32 %v20868_v42, %v9416_v35  ;;  %v10097_v5 = vadd.f32 %v21913_v45, %v20786_v13  ;;  %v9396_v63 = vadd.f32 %v21915_v18, %v21914_v48  ;;  %v20965_v24 = vadd.f32 %v20858_v44, %v20758_v32  ;;  %v21917_v42 = vld [vmem:[#allocation27_spill] sm:$0xff]  ;;  %v21923_v35 = vld [vmem:[#allocation61_spill] sm:$0xff] }
 0x6e8   : > { %v12288_v10 = vld [vmem:[#allocation3 + $0x11c] sm:$0x1]  ;;  %v20969_v55 = vadd.f32 %v20870_v57, %v21916_v7  ;;  %v8607_v9 = vadd.f32 %v21918_v17, %v21917_v42  ;;  %v12667_v36 = vrot.slane %v12666_v12, 4  ;;  %v20977_v27 = vadd.f32 %v20874_v2, %v21919_v53  ;;  %v21920_v0 = vld [vmem:[#allocation23_spill] sm:$0xff] }
 0x6e9   : > { %v20971_v43 = vpop.f32.mrf.mxu0  ;;  %v14901_v56 = vpop.f32.mrf.mxu1  ;;  %v12669_v13 = vshll.u32 %v12288_v10, 16  ;;  %v10101_v21 = vadd.f32 %v21920_v0, %v9396_v63  ;;  %v20982_v32 = vadd.f32 %v20881_v38, %v20706_v49  ;;  %v20984_v44 = vadd.f32 %v10321_v15, %v10097_v5  ;;  %v21922_v8 = vld [vmem:[#allocation59_spill] sm:$0xff]  ;;  %v21927_v63 = vld [vmem:[#allocation60_spill] sm:$0xff] }
 0x6ea   : > { %v9400_v4 = vadd.f32 %v21921_v60, %v8607_v9  ;;  %v12662_v29 = vsel %vm16852_vm13, %v12657_v34, %v12661_v22  ;;  %v20992_v2 = vadd.f32 %v14897_v23, %v21922_v8  ;;  %v20995_v12 = vadd.f32 %v10334_v52, %v21923_v35  ;;  %v21924_v28 = vld [vmem:[#allocation35_spill] sm:$0xff]  ;;  %v21926_v34 = vld [vmem:[#allocation20_spill] sm:$0xff] }
 0x6eb   : > { %v20986_v57 = vpop.f32.mrf.mxu0  ;;  %v10350_v54 = vpop.f32.mrf.mxu1  ;;  %v12671_v30 = vrot.slane %v12669_v13, 5  ;;  %v20998_v49 = vadd.f32 %v14898_v6, %v20747_v51  ;;  %v21005_v48 = vadd.f32 %v10337_v20, %v10101_v21  ;;  %v10443_v22 = vadd.f32 %v14901_v56, %v20761_v33  ;;  %v21930_v33 = vld [vmem:[#allocation49_spill] sm:$0xff]  ;;  %v21931_v21 = vld [vmem:[#allocation44_spill] sm:$0xff] }
 0x6ec   : > { %v10105_v45 = vadd.f32 %v21924_v28, %v9400_v4  ;;  %v10441_v18 = vadd.f32 %v10350_v54, %v21926_v34 }
 0x6ed   : > { %v21000_v38 = vpop.f32.mrf.mxu0  ;;  %v14902_v15 = vpop.f32.mrf.mxu1  ;;  %v12672_v5 = vsel %vm16852_vm13, %v12667_v36, %v12671_v30  ;;  %21925 = vst [vmem:[#allocation40_spill] sm:$0xff] %v21005_v48  ;;  %v21932_v30 = vld [vmem:[#allocation26_spill] sm:$0xff] }
 0x6ee   : > { %v13936_v23 = vcombine.low %v12662_v29, %v12672_v5  ;;  %v10444_v51 = vadd.f32 %v14902_v15, %v21927_v63 }
 0x6ef   : > { %v21009_v52 = vpop.f32.mrf.mxu0  ;;  %v10353_v6 = vpop.f32.mrf.mxu1 }
 0x6f0   : > { %v10442_v10 = vadd.f32 %v10353_v6, %v10105_v45  ;;  %15060 = vmatmul.mubr.msk.bf16.gmra.mxu1 %vm465_vm1, %v13936_v23  ;;  %v21933_v45 = vld [vmem:[#allocation52_spill] sm:$0xff]  ;;  %v21934_v23 = vld [vmem:[#allocation63_spill] sm:$0xff] }
 0x6f1   : > { %v21013_v7 = vpop.f32.mrf.mxu0  ;;  %v14905_v42 = vpop.f32.mrf.mxu1 }
 0x6f2   : > { %21928 = vst [vmem:[#allocation42_spill] sm:$0xff] %v21013_v7  ;;  %v10447_v17 = vadd.f32 %v14905_v42, %v21929_v16 }
 0x6f3   : > { %v14937_v20 = vpop.f32.mrf.mxu0  ;;  %v10366_v9 = vpop.f32.mrf.mxu1 }
 0x6f4   : > { %v21016_v36 = vadd.f32 %v14937_v20, %v10443_v22  ;;  %v10445_v56 = vadd.f32 %v10366_v9, %v21930_v33 }
 0x6f5   : > { %v11087_v13 = vpop.f32.mrf.mxu0  ;;  %v14906_v53 = vpop.f32.mrf.mxu1 }
 0x6f6   : > { %v21019_v0 = vadd.f32 %v11087_v13, %v10441_v18  ;;  %v10448_v54 = vadd.f32 %v14906_v53, %v21931_v21 }
 0x6f7   : > { %v14938_v60 = vpop.f32.mrf.mxu0  ;;  %v10369_v4 = vpop.f32.mrf.mxu1 }
 0x6f8   : > { %v21022_v29 = vadd.f32 %v14938_v60, %v10444_v51  ;;  %v10446_v8 = vadd.f32 %v10369_v4, %v21932_v30 }
 0x6f9   : > { %v11090_v35 = vpop.f32.mrf.mxu0  ;;  %v14909_v15 = vpop.f32.mrf.mxu1 }
 0x6fa   : > { %v21025_v28 = vadd.f32 %v11090_v35, %v10442_v10  ;;  %v10451_v5 = vadd.f32 %v14909_v15, %v21933_v45 }
 0x6fb   : > { %v10382_v22 = vpop.f32.mrf.mxu1 }
 0x6fc   : > { %v10449_v34 = vadd.f32 %v10382_v22, %v21934_v23  ;;  %v14941_v63 = vpop.f32.mrf.mxu0 }
 0x6fd   : > { %v14910_v18 = vpop.f32.mrf.mxu1  ;;  %v21029_v6 = vadd.f32 %v14941_v63, %v10447_v17 }
 0x6fe   : > { %v10452_v42 = vadd.f32 %v14910_v18, %v20884_v37  ;;  %v11103_v16 = vpop.f32.mrf.mxu0 }
 0x6ff   : > { %v10385_v51 = vpop.f32.mrf.mxu1  ;;  %v21032_v20 = vadd.f32 %v11103_v16, %v10445_v56 }
 0x700   : > { %v10450_v9 = vadd.f32 %v10385_v51, %v20891_v31  ;;  %v14942_v33 = vpop.f32.mrf.mxu0 }
 0x701   : > { %v14913_v10 = vpop.f32.mrf.mxu1  ;;  %v21035_v13 = vadd.f32 %v14942_v33, %v10448_v54 }
 0x702   : > { %v10455_v53 = vadd.f32 %v14913_v10, %v20900_v19  ;;  %v11106_v21 = vpop.f32.mrf.mxu0 }
 0x703   : > { %v10398_v60 = vpop.f32.mrf.mxu1  ;;  %v21038_v4 = vadd.f32 %v11106_v21, %v10446_v8 }
 0x704   : > { %v10453_v17 = vadd.f32 %v10398_v60, %v20912_v59 }
 0x705   : > { %v14945_v30 = vpop.f32.mrf.mxu0  ;;  %v14914_v37 = vpop.f32.mrf.mxu1 }
 0x706   : > { %v21041_v35 = vadd.f32 %v14945_v30, %v10451_v5  ;;  %v10456_v56 = vadd.f32 %v14914_v37, %v20921_v11 }
 0x707   : > { %v11119_v15 = vpop.f32.mrf.mxu0  ;;  %v10401_v31 = vpop.f32.mrf.mxu1 }
 0x708   : > { %v21044_v45 = vadd.f32 %v11119_v15, %v10449_v34  ;;  %v10454_v54 = vadd.f32 %v10401_v31, %v20928_v41 }
 0x709   : > { %v14946_v22 = vpop.f32.mrf.mxu0  ;;  %v14917_v19 = vpop.f32.mrf.mxu1 }
 0x70a   : > { %v21047_v23 = vadd.f32 %v14946_v22, %v10452_v42  ;;  %v10459_v8 = vadd.f32 %v14917_v19, %v20933_v47 }
 0x70b   : > { %v11122_v63 = vpop.f32.mrf.mxu0  ;;  %v10414_v59 = vpop.f32.mrf.mxu1 }
 0x70c   : > { %v21050_v18 = vadd.f32 %v11122_v63, %v10450_v9  ;;  %v10457_v5 = vadd.f32 %v10414_v59, %v20941_v61 }
 0x70d   : > { %v14918_v16 = vpop.f32.mrf.mxu1 }
 0x70e   : > { %v10460_v11 = vadd.f32 %v14918_v16, %v20950_v50  ;;  %v14949_v51 = vpop.f32.mrf.mxu0 }
 0x70f   : > { %v10417_v34 = vpop.f32.mrf.mxu1  ;;  %v11192_v33 = vadd.f32 %v14949_v51, %v10455_v53 }
 0x710   : > { %v10458_v41 = vadd.f32 %v10417_v34, %v20957_v39  ;;  %v11135_v10 = vpop.f32.mrf.mxu0 }
 0x711   : > { %v11190_v21 = vadd.f32 %v11135_v10, %v10453_v17 }
 0x712   : > { %v14950_v42 = vpop.f32.mrf.mxu0 }
 0x713   : > { %v11193_v60 = vadd.f32 %v14950_v42, %v10456_v56 }
 0x714   : > { %v11138_v30 = vpop.f32.mrf.mxu0 }
 0x715   : > { %v11191_v47 = vadd.f32 %v11138_v30, %v10454_v54 }
 0x71b   : > { %v21055_v37 = vpop.f32.mrf.mxu1 }
 0x71d   : > { %v14953_v9 = vpop.f32.mrf.mxu0  ;;  %v21057_v31 = vpop.f32.mrf.mxu1 }
 0x71e   : > { %v11196_v15 = vadd.f32 %v14953_v9, %v10459_v8 }
 0x71f   : > { %v11151_v61 = vpop.f32.mrf.mxu0  ;;  %v21059_v50 = vpop.f32.mrf.mxu1 }
 0x720   : > { %v11194_v22 = vadd.f32 %v11151_v61, %v10457_v5 }
 0x721   : > { %v14954_v19 = vpop.f32.mrf.mxu0  ;;  %v21063_v39 = vpop.f32.mrf.mxu1 }
 0x722   : > { %v21061_v53 = vadd.f32 %v14954_v19, %v10460_v11 }
 0x723   : > { %v11154_v17 = vpop.f32.mrf.mxu0 }
 0x724   : > { %v21065_v63 = vadd.f32 %v11154_v17, %v10458_v41  ;;  %v21067_v56 = vpop.f32.mrf.mxu1 }
 0x725   : > { %v14997_v10 = vpop.f32.mrf.mxu0 }
 0x726   : > { %v21069_v54 = vpop.f32.mrf.mxu1 }
 0x727   : > { %v12082_v61 = vpop.f32.mrf.mxu0 }
 0x728   : > { %v21071_v59 = vpop.f32.mrf.mxu1 }
 0x72a   : > { %v21073_v8 = vpop.f32.mrf.mxu1 }
 0x72d   : > { %v21075_v16 = vpop.f32.mrf.mxu1 }
 0x72f   : > { %v21077_v5 = vpop.f32.mrf.mxu1 }
 0x731   : > { %v21079_v51 = vpop.f32.mrf.mxu1 }
 0x732   : > { %21935 = vst [vmem:[#allocation51_spill] sm:$0xff] %v21079_v51  ;;  %v14998_v51 = vpop.f32.mrf.mxu0 }
 0x733   : > { %v21081_v11 = vpop.f32.mrf.mxu1 }
 0x734   : > { %21936 = vst [vmem:[#allocation22_spill] sm:$0xff] %v21081_v11 }
 0x735   : > { %v14973_v34 = vpop.f32.mrf.mxu1 }
 0x736   : > { %v21084_v41 = vadd.f32 %v14973_v34, %v21016_v36 }
 0x737   : > { %v11793_v42 = vpop.f32.mrf.mxu1 }
 0x738   : > { %v21087_v30 = vadd.f32 %v11793_v42, %v21019_v0  ;;  %v12085_v0 = vpop.f32.mrf.mxu0 }
 0x739   : > { %v14974_v9 = vpop.f32.mrf.mxu1 }
 0x73a   : > { %21937 = vst [vmem:[#allocation30_spill] sm:$0xff] %v21087_v30  ;;  %v21090_v19 = vadd.f32 %v14974_v9, %v21022_v29 }
 0x73b   : > { %v11796_v17 = vpop.f32.mrf.mxu1 }
 0x73c   : > { %v21093_v7 = vadd.f32 %v11796_v17, %v21025_v28  ;;  %v21107_v28 = vpop.f32.mrf.mxu0 }
 0x73e   : > { %21938 = vst [vmem:[#allocation32_spill] sm:$0xff] %v21093_v7  ;;  %v14977_v11 = vpop.f32.mrf.mxu1 }
 0x73f   : > { %v21096_v48 = vadd.f32 %v14977_v11, %v21029_v6 }
 0x740   : > { %v11809_v36 = vpop.f32.mrf.mxu1 }
 0x741   : > { %v21099_v34 = vadd.f32 %v11809_v36, %v21032_v20  ;;  %v21115_v20 = vpop.f32.mrf.mxu0 }
 0x742   : > { %v14978_v42 = vpop.f32.mrf.mxu1 }
 0x743   : > { %v21102_v30 = vadd.f32 %v14978_v42, %v21035_v13 }
 0x744   : > { %v11812_v29 = vpop.f32.mrf.mxu1 }
 0x745   : > { %21939 = vst [vmem:[#allocation68_spill] sm:$0xff] %v21102_v30  ;;  %v21105_v9 = vadd.f32 %v11812_v29, %v21038_v4  ;;  %v21123_v29 = vpop.f32.mrf.mxu0 }
 0x746   : > { %v14981_v17 = vpop.f32.mrf.mxu1 }
 0x747   : > { %21940 = vst [vmem:[#allocation70_spill] sm:$0xff] %v21105_v9  ;;  %v21110_v7 = vadd.f32 %v14981_v17, %v21041_v35  ;;  %v21127_v17 = vpop.f32.mrf.mxu0 }
 0x748   : > { %v11825_v6 = vpop.f32.mrf.mxu1 }
 0x749   : > { %21941 = vst [vmem:[#allocation56_spill] sm:$0xff] %v21110_v7  ;;  %v21113_v11 = vadd.f32 %v11825_v6, %v21044_v45 }
 0x74a   : > { %v14982_v36 = vpop.f32.mrf.mxu1 }
 0x74b   : > { %21942 = vst [vmem:[#allocation53_spill] sm:$0xff] %v21113_v11  ;;  %v21118_v13 = vadd.f32 %v14982_v36, %v21047_v23  ;;  %v21133_v23 = vpop.f32.mrf.mxu0 }
 0x74c   : > { %v11828_v42 = vpop.f32.mrf.mxu1 }
 0x74d   : > { %v21121_v4 = vadd.f32 %v11828_v42, %v21050_v18  ;;  %v21137_v18 = vpop.f32.mrf.mxu0 }
 0x74e   : > { %v14985_v9 = vpop.f32.mrf.mxu1 }
 0x74f   : > { %21943 = vst [vmem:[#allocation65_spill] sm:$0xff] %v21121_v4  ;;  %v21125_v30 = vadd.f32 %v14985_v9, %v11192_v33  ;;  %v21139_v4 = vpop.f32.mrf.mxu0 }
 0x750   : > { %v11841_v35 = vpop.f32.mrf.mxu1 }
 0x751   : > { %v21129_v45 = vadd.f32 %v11841_v35, %v11190_v21  ;;  %v21946_v21 = vld [vmem:[#allocation62_spill] sm:$0xff] }
 0x752   : > { %v14986_v6 = vpop.f32.mrf.mxu1  ;;  %v11168_v35 = vadd.f32 %v21946_v21, %v20938_v58 }
 0x753   : > { %21944 = vst [vmem:[#allocation7_spill] sm:$0xff] %v21129_v45  ;;  %v21131_v11 = vadd.f32 %v14986_v6, %v11193_v60  ;;  %v11166_v6 = vadd.f32 %v20879_v40, %v20945_v1  ;;  %v21165_v1 = vld [vmem:[%s21432_s11] ss:$0 sm:$0xff] }
 0x754   : > { %v11844_v7 = vpop.f32.mrf.mxu1 }
 0x755   : > { %v21135_v36 = vadd.f32 %v11844_v7, %v11191_v47  ;;  %v11874_v7 = vadd.f32 %v21055_v37, %v11168_v35  ;;  %v21150_v47 = vpop.f32.mrf.mxu0  ;;  %v11872_v58 = vadd.f32 %v21057_v31, %v11166_v6  ;;  %v11167_v37 = vadd.f32 %v20906_v14, %v20965_v24 }
 0x756   : > { %v11172_v31 = vadd.f32 %v20916_v26, %v20969_v55  ;;  %v11170_v14 = vadd.f32 %v20925_v25, %v20977_v27  ;;  %v15530_v27 = vld [vmem:[%s15777_s18] sm:$0xff] }
 0x757   : > { %21945 = vst [vmem:[#allocation72_spill] sm:$0xff] %v21135_v36  ;;  %v12209_v21 = vadd.f32 %v12082_v61, %v11872_v58 }
 0x758   : > { %v11878_v24 = vadd.f32 %v21067_v56, %v11172_v31 }
 0x75a   : > { %v12215_v25 = vadd.f32 %v21107_v28, %v11878_v24 }
 0x75c   : > { %v14989_v42 = vpop.f32.mrf.mxu1 }
 0x75d   : > { %v21141_v33 = vadd.f32 %v14989_v42, %v11196_v15  ;;  %v11169_v42 = vadd.f32 %v20893_v62, %v20954_v3  ;;  %v21170_v62 = vpop.f32.mrf.mxu0 }
 0x75e   : > { %v11857_v9 = vpop.f32.mrf.mxu1 }
 0x75f   : > { %v21145_v45 = vadd.f32 %v11857_v9, %v11194_v22  ;;  %v12211_v22 = vadd.f32 %v14997_v10, %v11874_v7  ;;  %v11873_v10 = vadd.f32 %v21063_v39, %v11167_v37  ;;  %v21181_v7 = vpop.f32.mrf.mxu0  ;;  %v11173_v39 = vadd.f32 %v20947_v46, %v20982_v32  ;;  %v15531_v37 = vld [vmem:[%s15777_s18 + $0x18] sm:$0xff] }
 0x760   : > { %v14990_v60 = vpop.f32.mrf.mxu1  ;;  %v11171_v46 = vadd.f32 %v20971_v43, %v20984_v44  ;;  %v15532_v44 = vld [vmem:[%s15777_s18 + $0x8] sm:$0xff] }
 0x761   : > { %v21153_v36 = vadd.f32 %v14990_v60, %v21061_v53  ;;  %v11875_v53 = vadd.f32 %v21059_v50, %v11169_v42  ;;  %v12210_v61 = vadd.f32 %v12085_v0, %v11873_v10  ;;  %v11879_v32 = vadd.f32 %v21071_v59, %v11173_v39 }
 0x762   : > { %v11860_v15 = vpop.f32.mrf.mxu1  ;;  %v11877_v31 = vadd.f32 %v21073_v8, %v11171_v46  ;;  %v15533_v8 = vld [vmem:[%s15777_s18 + $0x30] sm:$0xff] }
 0x763   : > { %v21160_v9 = vadd.f32 %v11860_v15, %v21065_v63  ;;  %v12212_v35 = vadd.f32 %v14998_v51, %v11875_v53  ;;  %v15529_v15 = vld [vmem:[%s15777_s18 + $0x10] sm:$0xff]  ;;  %v11876_v51 = vadd.f32 %v21069_v54, %v11170_v14  ;;  %v12216_v43 = vadd.f32 %v21123_v29, %v11879_v32  ;;  %v21949_v32 = vld [vmem:[#allocation51_spill] sm:$0xff] }
 0x764   : > { %v15033_v40 = vpop.f32.mrf.mxu1 }
 0x765   : > { %v12948_v3 = vadd.f32 %v15033_v40, %v12211_v22  ;;  %v12213_v28 = vadd.f32 %v21115_v20, %v11876_v51  ;;  %v21199_v40 = vpop.f32.mrf.mxu0 }
 0x766   : > { %v12819_v63 = vpop.f32.mrf.mxu1 }
 0x767   : > { %v12987_v60 = vadd.f32 %v21165_v1, %v12948_v3  ;;  %v12946_v6 = vadd.f32 %v12819_v63, %v12209_v21 }
 0x768   : > { %v15034_v50 = vpop.f32.mrf.mxu1 }
 0x769   : > { %v13019_v42 = vadd.f32 %v15529_v15, %v12987_v60  ;;  %v12985_v26 = vadd.f32 %v21165_v1, %v12946_v6  ;;  %v12949_v55 = vadd.f32 %v15034_v50, %v12212_v35  ;;  %v12214_v60 = vadd.f32 %v21127_v17, %v11877_v31  ;;  %v21212_v6 = vpop.f32.mrf.mxu0  ;;  %v15534_v17 = vld [vmem:[%s15777_s18 + $0x20] sm:$0xff] }
 0x76a   : > { %v12822_v58 = vpop.f32.mrf.mxu1  ;;  %v11176_v50 = vadd.f32 %v20986_v57, %v20992_v2  ;;  %v15535_v57 = vld [vmem:[%s15777_s18 + $0x38] sm:$0xff] }
 0x76b   : > { %13051 = vst.msk [vmem:[%s21189_s19 + $0x10] sm:$0xff] %vm465_vm1, %v13019_v42  ;;  %v13017_v56 = vadd.f32 %v15530_v27, %v12985_v26  ;;  %v12988_v0 = vadd.f32 %v21165_v1, %v12949_v55  ;;  %v12947_v22 = vadd.f32 %v12822_v58, %v12210_v61  ;;  %v11174_v55 = vadd.f32 %v21000_v38, %v20995_v12  ;;  %v21227_v51 = vpop.f32.mrf.mxu0  ;;  %v15536_v12 = vld [vmem:[%s15777_s18 + $0x28] sm:$0xff] }
 0x76c   : > { %v15037_v54 = vpop.f32.mrf.mxu1  ;;  %v11882_v39 = vadd.f32 %v21075_v16, %v11176_v50 }
 0x76d   : > { %13049 = vst.msk [vmem:[%s21189_s19] sm:$0xff] %vm465_vm1, %v13017_v56  ;;  %v13020_v53 = vadd.f32 %v15531_v37, %v12988_v0  ;;  %v12986_v21 = vadd.f32 %v21165_v1, %v12947_v22  ;;  %v12952_v3 = vadd.f32 %v15037_v54, %v12215_v25  ;;  %v11177_v25 = vadd.f32 %v21009_v52, %v20998_v49  ;;  %v21947_v0 = vld [vmem:[#allocation40_spill] sm:$0xff]  ;;  %v21948_v22 = vld [vmem:[#allocation42_spill] sm:$0xff]  ;;  %v12146_v49 = vpop.f32.mrf.mxu0 }
 0x76e   : > { %v12835_v63 = vpop.f32.mrf.mxu1  ;;  %v11880_v27 = vadd.f32 %v21077_v5, %v11174_v55  ;;  %v12219_v56 = vadd.f32 %v21133_v23, %v11882_v39  ;;  %v11175_v46 = vadd.f32 %v21948_v22, %v21947_v0  ;;  %v21950_v5 = vld [vmem:[#allocation22_spill] sm:$0xff] }
 0x76f   : > { %13052 = vst.msk [vmem:[%s21189_s19 + $0x18] sm:$0xff] %vm465_vm1, %v13020_v53  ;;  %v13018_v59 = vadd.f32 %v15532_v44, %v12986_v21  ;;  %v12991_v20 = vadd.f32 %v21165_v1, %v12952_v3  ;;  %v12950_v10 = vadd.f32 %v12835_v63, %v12213_v28  ;;  %v11883_v54 = vadd.f32 %v21949_v32, %v11177_v25 }
 0x770   : > { %v15038_v35 = vpop.f32.mrf.mxu1  ;;  %v12217_v28 = vadd.f32 %v21137_v18, %v11880_v27  ;;  %v11881_v23 = vadd.f32 %v21950_v5, %v11175_v46  ;;  %v15537_v18 = vld [vmem:[%s15777_s18 + $0x50] sm:$0xff] }
 0x771   : > { %13050 = vst.msk [vmem:[%s21189_s19 + $0x8] sm:$0xff] %vm465_vm1, %v13018_v59  ;;  %v13023_v29 = vadd.f32 %v15533_v8, %v12991_v20  ;;  %v12989_v14 = vadd.f32 %v21165_v1, %v12950_v10  ;;  %v12953_v24 = vadd.f32 %v15038_v35, %v12216_v43  ;;  %v12220_v53 = vadd.f32 %v21139_v4, %v11883_v54  ;;  %v15014_v20 = vpop.f32.mrf.mxu0  ;;  %v15538_v4 = vld [vmem:[%s15777_s18 + $0x40] sm:$0xff]  ;;  %v15541_v27 = vld [vmem:[%s15777_s18 + $0x70] sm:$0xff] }
 0x772   : > { %v12838_v61 = vpop.f32.mrf.mxu1  ;;  %v12218_v63 = vadd.f32 %v21150_v47, %v11881_v23  ;;  %v12223_v47 = vadd.f32 %v21170_v62, %v21084_v41  ;;  %v12224_v62 = vadd.f32 %v21199_v40, %v21090_v19  ;;  %v15542_v40 = vld [vmem:[%s15777_s18 + $0x60] sm:$0xff]  ;;  %v12225_v23 = vadd.f32 %v12146_v49, %v21099_v34 }
 0x773   : > { %13055 = vst.msk [vmem:[%s21189_s19 + $0x30] sm:$0xff] %vm465_vm1, %v13023_v29  ;;  %v13021_v15 = vadd.f32 %v15534_v17, %v12989_v14  ;;  %v12992_v42 = vadd.f32 %v21165_v1, %v12953_v24  ;;  %v12951_v26 = vadd.f32 %v12838_v61, %v12214_v60  ;;  %v15539_v29 = vld [vmem:[%s15777_s18 + $0x58] sm:$0xff]  ;;  %v12149_v50 = vpop.f32.mrf.mxu0 }
 0x774   : > { %v21951_v17 = vld [vmem:[#allocation30_spill] sm:$0xff] }
 0x775   : > { %13053 = vst.msk [vmem:[%s21189_s19 + $0x20] sm:$0xff] %vm465_vm1, %v13021_v15  ;;  %v13024_v2 = vadd.f32 %v15535_v57, %v12992_v42  ;;  %v12990_v58 = vadd.f32 %v21165_v1, %v12951_v26  ;;  %v12221_v15 = vadd.f32 %v21181_v7, %v21951_v17  ;;  %v15540_v42 = vld [vmem:[%s15777_s18 + $0x48] sm:$0xff] }
 0x777   : > { %13056 = vst.msk [vmem:[%s21189_s19 + $0x38] sm:$0xff] %vm465_vm1, %v13024_v2  ;;  %v13022_v38 = vadd.f32 %v15536_v12, %v12990_v58  ;;  %v15041_v16 = vpop.f32.mrf.mxu1  ;;  %v15017_v2 = vpop.f32.mrf.mxu0  ;;  %v21952_v58 = vld [vmem:[#allocation32_spill] sm:$0xff] }
 0x778   : > { %v12956_v37 = vadd.f32 %v15041_v16, %v12219_v56  ;;  %v12222_v25 = vadd.f32 %v21212_v6, %v21952_v58  ;;  %v15543_v6 = vld [vmem:[%s15777_s18 + $0x78] sm:$0xff] }
 0x779   : > { %13054 = vst.msk [vmem:[%s21189_s19 + $0x28] sm:$0xff] %vm465_vm1, %v13022_v38  ;;  %v12851_v52 = vpop.f32.mrf.mxu1  ;;  %v12162_v46 = vpop.f32.mrf.mxu0 }
 0x77a   : > { %v12995_v21 = vadd.f32 %v21165_v1, %v12956_v37  ;;  %v12954_v3 = vadd.f32 %v12851_v52, %v12217_v28  ;;  %v12227_v28 = vadd.f32 %v21227_v51, %v21096_v48  ;;  %v15544_v37 = vld [vmem:[%s15777_s18 + $0x68] sm:$0xff] }
 0x77b   : > { %v15042_v31 = vpop.f32.mrf.mxu1 }
 0x77c   : > { %v13027_v43 = vadd.f32 %v15537_v18, %v12995_v21  ;;  %v12993_v44 = vadd.f32 %v21165_v1, %v12954_v3  ;;  %v12957_v59 = vadd.f32 %v15042_v31, %v12220_v53  ;;  %v15018_v53 = vpop.f32.mrf.mxu0  ;;  %v21953_v31 = vld [vmem:[#allocation68_spill] sm:$0xff] }
 0x77d   : > { %v12854_v10 = vpop.f32.mrf.mxu1 }
 0x77e   : > { %13059 = vst.msk [vmem:[%s21189_s19 + $0x50] sm:$0xff] %vm465_vm1, %v13027_v43  ;;  %v13025_v35 = vadd.f32 %v15538_v4, %v12993_v44  ;;  %v12996_v60 = vadd.f32 %v21165_v1, %v12957_v59  ;;  %v12955_v8 = vadd.f32 %v12854_v10, %v12218_v63  ;;  %v12228_v63 = vadd.f32 %v15014_v20, %v21953_v31  ;;  %v21954_v43 = vld [vmem:[#allocation70_spill] sm:$0xff]  ;;  %v12165_v59 = vpop.f32.mrf.mxu0  ;;  %v15545_v10 = vld [vmem:[%s15777_s18 + $0x90] sm:$0xff]  ;;  %v15546_v20 = vld [vmem:[%s15777_s18 + $0x80] sm:$0xff] }
 0x77f   : > { %v12226_v44 = vadd.f32 %v12149_v50, %v21954_v43  ;;  %v15547_v50 = vld [vmem:[%s15777_s18 + $0x98] sm:$0xff] }
 0x780   : > { %13057 = vst.msk [vmem:[%s21189_s19 + $0x40] sm:$0xff] %vm465_vm1, %v13025_v35  ;;  %v13028_v14 = vadd.f32 %v15539_v29, %v12996_v60  ;;  %v12994_v24 = vadd.f32 %v21165_v1, %v12955_v8  ;;  %v21955_v29 = vld [vmem:[#allocation56_spill] sm:$0xff] }
 0x782   : > { %v15045_v61 = vpop.f32.mrf.mxu1  ;;  %13060 = vst.msk [vmem:[%s21189_s19 + $0x58] sm:$0xff] %vm465_vm1, %v13028_v14  ;;  %v13026_v26 = vadd.f32 %v15540_v42, %v12994_v24  ;;  %v12231_v14 = vadd.f32 %v15017_v2, %v21955_v29  ;;  %v15021_v24 = vpop.f32.mrf.mxu0  ;;  %v21956_v42 = vld [vmem:[#allocation53_spill] sm:$0xff]  ;;  %v15555_v29 = vld [vmem:[%s15777_s18 + $0xd8] sm:$0xff] }
 0x783   : > { %v12960_v55 = vadd.f32 %v15045_v61, %v12223_v47 }
 0x784   : > { %v12867_v41 = vpop.f32.mrf.mxu1  ;;  %13058 = vst.msk [vmem:[%s21189_s19 + $0x48] sm:$0xff] %vm465_vm1, %v13026_v26  ;;  %v12229_v26 = vadd.f32 %v12162_v46, %v21956_v42  ;;  %v12178_v2 = vpop.f32.mrf.mxu0 }
 0x785   : > { %v12999_v39 = vadd.f32 %v21165_v1, %v12960_v55  ;;  %v12958_v57 = vadd.f32 %v12867_v41, %v12221_v15  ;;  %v15548_v55 = vld [vmem:[%s15777_s18 + $0x88] sm:$0xff] }
 0x786   : > { %v15046_v7 = vpop.f32.mrf.mxu1 }
 0x787   : > { %v13031_v56 = vadd.f32 %v15541_v27, %v12999_v39  ;;  %v12997_v12 = vadd.f32 %v21165_v1, %v12958_v57  ;;  %v12961_v38 = vadd.f32 %v15046_v7, %v12224_v62  ;;  %v12232_v57 = vadd.f32 %v15018_v53, %v21118_v13  ;;  %v21957_v27 = vld [vmem:[#allocation65_spill] sm:$0xff]  ;;  %v15022_v13 = vpop.f32.mrf.mxu0 }
 0x788   : > { %v12870_v19 = vpop.f32.mrf.mxu1 }
 0x789   : > { %13063 = vst.msk [vmem:[%s21189_s19 + $0x70] sm:$0xff] %vm465_vm1, %v13031_v56  ;;  %v13029_v16 = vadd.f32 %v15542_v40, %v12997_v12  ;;  %v13000_v0 = vadd.f32 %v21165_v1, %v12961_v38  ;;  %v12959_v22 = vadd.f32 %v12870_v19, %v12222_v25  ;;  %v12230_v56 = vadd.f32 %v12165_v59, %v21957_v27  ;;  %v15549_v12 = vld [vmem:[%s15777_s18 + $0xb0] sm:$0xff] }
 0x78b   : > { %13061 = vst.msk [vmem:[%s21189_s19 + $0x60] sm:$0xff] %vm465_vm1, %v13029_v16  ;;  %v13032_v32 = vadd.f32 %v15543_v6, %v13000_v0  ;;  %v12998_v54 = vadd.f32 %v21165_v1, %v12959_v22  ;;  %v15550_v0 = vld [vmem:[%s15777_s18 + $0xa0] sm:$0xff] }
 0x78c   : > { %v15049_v5 = vpop.f32.mrf.mxu1 }
 0x78d   : > { %13064 = vst.msk [vmem:[%s21189_s19 + $0x78] sm:$0xff] %vm465_vm1, %v13032_v32  ;;  %v13030_v52 = vadd.f32 %v15544_v37, %v12998_v54  ;;  %v12964_v21 = vadd.f32 %v15049_v5, %v12227_v28  ;;  %v15551_v32 = vld [vmem:[%s15777_s18 + $0xb8] sm:$0xff]  ;;  %v12235_v37 = vadd.f32 %v15021_v24, %v21125_v30  ;;  %v15552_v5 = vld [vmem:[%s15777_s18 + $0xa8] sm:$0xff] }
 0x78e   : > { %v12883_v3 = vpop.f32.mrf.mxu1 }
 0x78f   : > { %13062 = vst.msk [vmem:[%s21189_s19 + $0x68] sm:$0xff] %vm465_vm1, %v13030_v52  ;;  %v13003_v18 = vadd.f32 %v21165_v1, %v12964_v21  ;;  %v12962_v48 = vadd.f32 %v12883_v3, %v12225_v23  ;;  %v12181_v52 = vpop.f32.mrf.mxu0  ;;  %v21958_v21 = vld [vmem:[#allocation7_spill] sm:$0xff] }
 0x790   : > { %v15050_v51 = vpop.f32.mrf.mxu1  ;;  %v12233_v3 = vadd.f32 %v12178_v2, %v21958_v21 }
 0x791   : > { %v13035_v34 = vadd.f32 %v15545_v10, %v13003_v18  ;;  %v13001_v49 = vadd.f32 %v21165_v1, %v12962_v48  ;;  %v12965_v4 = vadd.f32 %v15050_v51, %v12228_v63  ;;  %v12236_v18 = vadd.f32 %v15022_v13, %v21131_v11  ;;  %v15025_v51 = vpop.f32.mrf.mxu0  ;;  %v15553_v10 = vld [vmem:[%s15777_s18 + $0xd0] sm:$0xff]  ;;  %v15554_v11 = vld [vmem:[%s15777_s18 + $0xc0] sm:$0xff]  ;;  %v15560_v13 = vld [vmem:[%s15777_s18 + $0xe8] sm:$0xff] }
 0x792   : > { %v12886_v35 = vpop.f32.mrf.mxu1 }
 0x793   : > { %13067 = vst.msk [vmem:[%s21189_s19 + $0x90] sm:$0xff] %vm465_vm1, %v13035_v34  ;;  %v13033_v60 = vadd.f32 %v15546_v20, %v13001_v49  ;;  %v13004_v8 = vadd.f32 %v21165_v1, %v12965_v4  ;;  %v12963_v47 = vadd.f32 %v12886_v35, %v12226_v44  ;;  %v21959_v44 = vld [vmem:[#allocation72_spill] sm:$0xff] }
 0x794   : > { %v12234_v59 = vadd.f32 %v12181_v52, %v21959_v44 }
 0x795   : > { %13065 = vst.msk [vmem:[%s21189_s19 + $0x80] sm:$0xff] %vm465_vm1, %v13033_v60  ;;  %v13036_v61 = vadd.f32 %v15547_v50, %v13004_v8  ;;  %v13002_v17 = vadd.f32 %v21165_v1, %v12963_v47  ;;  %v12194_v47 = vpop.f32.mrf.mxu0  ;;  %v15556_v50 = vld [vmem:[%s15777_s18 + $0xc8] sm:$0xff] }
 0x797   : > { %v15053_v15 = vpop.f32.mrf.mxu1  ;;  %13068 = vst.msk [vmem:[%s21189_s19 + $0x98] sm:$0xff] %vm465_vm1, %v13036_v61  ;;  %v13034_v41 = vadd.f32 %v15548_v55, %v13002_v17  ;;  %v15026_v17 = vpop.f32.mrf.mxu0 }
 0x798   : > { %v12968_v62 = vadd.f32 %v15053_v15, %v12231_v14  ;;  %v12239_v15 = vadd.f32 %v15025_v51, %v21141_v33 }
 0x799   : > { %v12899_v39 = vpop.f32.mrf.mxu1  ;;  %13066 = vst.msk [vmem:[%s21189_s19 + $0x88] sm:$0xff] %vm465_vm1, %v13034_v41  ;;  %v12197_v41 = vpop.f32.mrf.mxu0 }
 0x79a   : > { %v13007_v7 = vadd.f32 %v21165_v1, %v12968_v62  ;;  %v12966_v58 = vadd.f32 %v12899_v39, %v12229_v26  ;;  %v12237_v26 = vadd.f32 %v12194_v47, %v21145_v45  ;;  %v12240_v39 = vadd.f32 %v15026_v17, %v21153_v36  ;;  %v15558_v36 = vld [vmem:[%s15777_s18 + $0xe0] sm:$0xff] }
 0x79b   : > { %v15054_v25 = vpop.f32.mrf.mxu1 }
 0x79c   : > { %v13039_v38 = vadd.f32 %v15549_v12, %v13007_v7  ;;  %v13005_v19 = vadd.f32 %v21165_v1, %v12966_v58  ;;  %v12969_v40 = vadd.f32 %v15054_v25, %v12232_v57  ;;  %v12238_v7 = vadd.f32 %v12197_v41, %v21160_v9  ;;  %v15557_v58 = vld [vmem:[%s15777_s18 + $0xf0] sm:$0xff]  ;;  %v15559_v9 = vld [vmem:[%s15777_s18 + $0xf8] sm:$0xff] }
 0x79d   : > { %v12902_v16 = vpop.f32.mrf.mxu1 }
 0x79e   : > { %13071 = vst.msk [vmem:[%s21189_s19 + $0xb0] sm:$0xff] %vm465_vm1, %v13039_v38  ;;  %v13037_v22 = vadd.f32 %v15550_v0, %v13005_v19  ;;  %v13008_v46 = vadd.f32 %v21165_v1, %v12969_v40  ;;  %v12967_v6 = vadd.f32 %v12902_v16, %v12230_v56 }
 0x7a0   : > { %13069 = vst.msk [vmem:[%s21189_s19 + $0xa0] sm:$0xff] %vm465_vm1, %v13037_v22  ;;  %v13040_v54 = vadd.f32 %v15551_v32, %v13008_v46  ;;  %v13006_v28 = vadd.f32 %v21165_v1, %v12967_v6 }
 0x7a1   : > { %v15057_v53 = vpop.f32.mrf.mxu1 }
 0x7a2   : > { %13072 = vst.msk [vmem:[%s21189_s19 + $0xb8] sm:$0xff] %vm465_vm1, %v13040_v54  ;;  %v13038_v23 = vadd.f32 %v15552_v5, %v13006_v28  ;;  %v12972_v31 = vadd.f32 %v15057_v53, %v12235_v37 }
 0x7a3   : > { %v12915_v63 = vpop.f32.mrf.mxu1 }
 0x7a4   : > { %13070 = vst.msk [vmem:[%s21189_s19 + $0xa8] sm:$0xff] %vm465_vm1, %v13038_v23  ;;  %v13011_v48 = vadd.f32 %v21165_v1, %v12972_v31  ;;  %v12970_v30 = vadd.f32 %v12915_v63, %v12233_v3 }
 0x7a5   : > { %v15058_v43 = vpop.f32.mrf.mxu1 }
 0x7a6   : > { %v13043_v34 = vadd.f32 %v15553_v10, %v13011_v48  ;;  %v13009_v49 = vadd.f32 %v21165_v1, %v12970_v30  ;;  %v12973_v4 = vadd.f32 %v15058_v43, %v12236_v18 }
 0x7a7   : > { %v12918_v35 = vpop.f32.mrf.mxu1 }
 0x7a8   : > { %13075 = vst.msk [vmem:[%s21189_s19 + $0xd0] sm:$0xff] %vm465_vm1, %v13043_v34  ;;  %v13041_v20 = vadd.f32 %v15554_v11, %v13009_v49  ;;  %v13012_v60 = vadd.f32 %v21165_v1, %v12973_v4  ;;  %v12971_v8 = vadd.f32 %v12918_v35, %v12234_v59 }
 0x7aa   : > { %13073 = vst.msk [vmem:[%s21189_s19 + $0xc0] sm:$0xff] %vm465_vm1, %v13041_v20  ;;  %v13044_v14 = vadd.f32 %v15555_v29, %v13012_v60  ;;  %v13010_v24 = vadd.f32 %v21165_v1, %v12971_v8 }
 0x7ac   : > { %13076 = vst.msk [vmem:[%s21189_s19 + $0xd8] sm:$0xff] %vm465_vm1, %v13044_v14  ;;  %v13042_v61 = vadd.f32 %v15556_v50, %v13010_v24 }
 0x7ae   : > { %13074 = vst.msk [vmem:[%s21189_s19 + $0xc8] sm:$0xff] %vm465_vm1, %v13042_v61 }
 0x7b0   : > { %v15061_v42 = vpop.f32.mrf.mxu1 }
 0x7b1   : > { %v12976_v55 = vadd.f32 %v15061_v42, %v12239_v15 }
 0x7b2   : > { %v12931_v62 = vpop.f32.mrf.mxu1 }
 0x7b3   : > { %v13015_v57 = vadd.f32 %v21165_v1, %v12976_v55  ;;  %v12974_v2 = vadd.f32 %v12931_v62, %v12237_v26 }
 0x7b4   : > { %v15062_v33 = vpop.f32.mrf.mxu1 }
 0x7b5   : > { %v13047_v25 = vadd.f32 %v15557_v58, %v13015_v57  ;;  %v13013_v27 = vadd.f32 %v21165_v1, %v12974_v2  ;;  %v12977_v45 = vadd.f32 %v15062_v33, %v12240_v39 }
 0x7b6   : > { %v12934_v56 = vpop.f32.mrf.mxu1 }
 0x7b7   : > { %13079 = vst.msk [vmem:[%s21189_s19 + $0xf0] sm:$0xff] %vm465_vm1, %v13047_v25  ;;  %v13045_v12 = vadd.f32 %v15558_v36, %v13013_v27  ;;  %v13016_v38 = vadd.f32 %v21165_v1, %v12977_v45  ;;  %v12975_v19 = vadd.f32 %v12934_v56, %v12238_v7 }
 0x7b9   : > { %13077 = vst.msk [vmem:[%s21189_s19 + $0xe0] sm:$0xff] %vm465_vm1, %v13045_v12  ;;  %v13048_v40 = vadd.f32 %v15559_v9, %v13016_v38  ;;  %v13014_v16 = vadd.f32 %v21165_v1, %v12975_v19 }
 0x7bb   : > { %13080 = vst.msk [vmem:[%s21189_s19 + $0xf8] sm:$0xff] %vm465_vm1, %v13048_v40  ;;  %v13046_v0 = vadd.f32 %v15560_v13, %v13014_v16 }
 0x7bd   : > { %13078 = vst.msk [vmem:[%s21189_s19 + $0xe8] sm:$0xff] %vm465_vm1, %v13046_v0 }
 0x7be   : > { %15574 = shalt.err (!%p15571_p3)
}
 0x7bf   : > { %s15575_s18 = scalar_lea.hbm %s21370_s26, 4096  ;;  %s15579_s15 = scalar_lea.hbm %s21433_s12, 8192 }
 0x7c0   : > { %p15576_p4 = scmp.ne.s32.totalorder %s21370_s26, %s15575_s18  ;;  %p15580_p9 = scmp.lt.s32.totalorder %s21370_s26, %s21433_s12 }
 0x7c1   : > { %p15581_p10 = scmp.lt.s32.totalorder %s15579_s15, %s15575_s18 }
 0x7c2   : > { %p15577_p7 = pnand %p15576_p4, %p15732_p5 }
 0x7c3   : > { %p15582_p11 = por %p15581_p10, %p15580_p9 }
 0x7c4   : > { %p15578_p8 = pneg %p15577_p7 }
 0x7c6   : > { %p15583_p12 = pnand %p15582_p11, %p15578_p8 }
 0x7c8   : > { %15586 = shalt.err (!%p15583_p12)
}
 0x7c9   : > { %s15627_s17 = smov 128   ;;  %s15628_s20 = smov 8  }
 0x7ca   : > { %15063 = dma.vmem_to_hbm [thread:$0]  (%p15732_p5), %s21372_s28, 4096, %s21370_s26, %s21381_s25, %s15627_s17, %s15627_s17, %s15628_s20  }
 0x7cb PF: > { %p15069_p13 = scmp.ge.s32.totalorder %s15621_s24, 2  ;;  %s13110_s29 = sand.u32 1, %s15609_s21  }
 0x7cc   : > { %s13111_s1 = scalar_lea.sflag [#allocation5], %s13110_s29 }
 0x7cd   : > { %p15066_p0 = pnand %p15069_p13, %p15736_p6 }
 0x7cf   : > { %p15067_p1 = pneg %p15066_p0 }
 0x7d1   : > { %15604 = dma.done.wait (%p15067_p1), %s13111_s1, 4096  }
 0x7d2   : > { %15606 = vsyncadd (%p15067_p1), %s13111_s1, 4294963200  ;;  %p22_p2 = scmp.ge.s32.totalorder %s15719_s27, 4   ;;  %s21960_s21 = smov %s15613_s22 }
 0x7d3   : > { %s21961_s22 = smov %s15617_s23  ;;  %s21962_s23 = smov %s15730_s30 }
 0x7d4   : > { %s21963_s24 = smov %s15719_s27  ;;  %24 = sbr.rel (!%p22_p2) target bundleno = 6 (0x6), region = 112 }
 0x7d9   :  { %13116 = vsyncpa [#allocation5], 1 }
 0x7da   :  { %13118 = vsyncpa [#allocation5 + $0x1], 1 }

</bundles_post_ra>
